<compile_context>
chip_gen: v6e
topology: v6e:2x2x1
jax: 0.10.0
libtpu: 0.0.40
codegen_flags: <defaults>
</compile_context>

<pallas_src>
import functools

import jax
import jax.numpy as jnp
from jax.experimental import pallas as pl
from jax.experimental.pallas import tpu as pltpu


# ---------------------------------------------------------------------------
# Pallas kernels
# ---------------------------------------------------------------------------

def _matmul_bias_relu_kernel(x_ref, w_ref, b_ref, o_ref):
    # x: (1, TM, K)  w: (K, Cout) with BN scale folded in  b: (1, Cout)
    y = jnp.dot(x_ref[0].astype(jnp.bfloat16),
                w_ref[...].astype(jnp.bfloat16),
                preferred_element_type=jnp.float32)
    o_ref[0] = jnp.maximum(y + b_ref[...], 0.0).astype(o_ref.dtype)


def _fasternet_block_kernel(xb_ref, p2_ref, w3_ref, b1_ref, s2_ref, b2_ref,
                            w1a_ref, w1b_ref, bb1_ref, w2_ref, bb2_ref, o_ref,
                            *, taps, mp):
    """Fused PConv (3x3 on first Cp ch) + BN + ReLU + PW1 + PW2 per image."""
    # --- PConv: 3x3 conv as 9 shifted-slice matmuls on the padded grid -----
    xb = xb_ref[0]                                     # (L, Cp) f32
    conv = jnp.dot(xb[taps[0]:taps[0] + mp, :].astype(jnp.bfloat16),
                   w3_ref[0].astype(jnp.bfloat16),
                   preferred_element_type=jnp.float32)
    for t in range(1, 9):
        off = taps[t]
        conv = conv + jnp.dot(xb[off:off + mp, :].astype(jnp.bfloat16),
                              w3_ref[t].astype(jnp.bfloat16),
                              preferred_element_type=jnp.float32)
    # BN (scale folded into w3) + ReLU on the conv half.
    y1 = jnp.maximum(conv + b1_ref[...], 0.0)
    # BN + ReLU on the untouched pass-through half.
    y2 = jnp.maximum(p2_ref[0].astype(jnp.float32) * s2_ref[...] + b2_ref[...],
                     0.0)
    # --- PW1 (1x1 conv) as a split matmul: avoids an in-kernel concat ------
    z = (jnp.dot(y1.astype(jnp.bfloat16), w1a_ref[...].astype(jnp.bfloat16),
                 preferred_element_type=jnp.float32)
         + jnp.dot(y2.astype(jnp.bfloat16), w1b_ref[...].astype(jnp.bfloat16),
                   preferred_element_type=jnp.float32))
    z = jnp.maximum(z + bb1_ref[...], 0.0)
    # --- PW2 (1x1 conv) -----------------------------------------------------
    out = jnp.dot(z.astype(jnp.bfloat16), w2_ref[...].astype(jnp.bfloat16),
                  preferred_element_type=jnp.float32)
    o_ref[0] = jnp.maximum(out + bb2_ref[...], 0.0).astype(o_ref.dtype)


# ---------------------------------------------------------------------------
# Kernel wrappers
# ---------------------------------------------------------------------------

def _spatial_tile(m, cap=1024):
    """Largest spatial tile <= cap that divides m and is a multiple of 8."""
    if m <= cap:
        return m
    for t in range(cap - cap % 8, 7, -8):
        if m % t == 0:
            return t
    return m


def matmul_bias_relu(x, w, bias):
    """x: (N, M, K) @ w: (K, Cout) + bias, ReLU. BN scale pre-folded into w."""
    nb, m, k = x.shape
    cout = w.shape[1]
    tm = _spatial_tile(m)
    b2 = bias.reshape(1, cout).astype(jnp.float32)
    return pl.pallas_call(
        _matmul_bias_relu_kernel,
        out_shape=jax.ShapeDtypeStruct((nb, m, cout), x.dtype),
        grid=(nb, m // tm),
        in_specs=[
            pl.BlockSpec((1, tm, k), lambda n, i: (n, i, 0)),
            pl.BlockSpec((k, cout), lambda n, i: (0, 0)),
            pl.BlockSpec((1, cout), lambda n, i: (0, 0)),
        ],
        out_specs=pl.BlockSpec((1, tm, cout), lambda n, i: (n, i, 0)),
        compiler_params=pltpu.CompilerParams(
            dimension_semantics=("parallel", "parallel")),
    )(x, w, b2)


def im2col_3x3(x, stride):
    """x: (N, H, W, C) NHWC, 3x3 kernel, pad=1 -> (N, Ho*Wo, 9*C)."""
    n, h, w, c = x.shape
    xp = jnp.pad(x, ((0, 0), (1, 1), (1, 1), (0, 0)))
    ho = (h + 2 - 3) // stride + 1
    wo = (w + 2 - 3) // stride + 1
    cols = [xp[:, dy:dy + stride * ho:stride, dx:dx + stride * wo:stride, :]
            for dy in range(3) for dx in range(3)]
    patches = jnp.concatenate(cols, axis=-1)           # (N, Ho, Wo, 9*C)
    return patches.reshape(n, ho * wo, 9 * c), ho, wo


def conv3x3_bn_relu(x, wmat, bias, stride):
    """Stride-2 stem / downsample: im2col + fused matmul+bias+ReLU kernel."""
    n = x.shape[0]
    cout = wmat.shape[1]
    patches, ho, wo = im2col_3x3(x, stride)
    y = matmul_bias_relu(patches, wmat, bias)
    return y.reshape(n, ho, wo, cout)


def fasternet_block(x, blk):
    """One fused pallas_call per FasterNetBlock (PConv + PW1 + PW2)."""
    n, h, w, c = x.shape
    cp = blk['cp']
    c2 = c - cp
    hp, wp = h + 2, w + 2
    mp = hp * wp                       # padded-grid spatial extent
    guard = w + 3                      # max tap offset = 2*(w+2)+2 = 2*guard
    l = mp + 2 * guard
    c1 = blk['w1a'].shape[1]
    cout = blk['w2'].shape[1]

    part1 = x[..., :cp]
    part2 = x[..., cp:]
    # Zero-pad spatially, flatten the padded grid, add guard rows so every
    # shifted 3x3 tap slice stays in bounds inside the kernel.
    p1 = jnp.pad(part1, ((0, 0), (1, 1), (1, 1), (0, 0))).reshape(n, mp, cp)
    xbuf = jnp.pad(p1, ((0, 0), (guard, guard), (0, 0)))          # (N, L, Cp)
    p2 = jnp.pad(part2, ((0, 0), (1, 1), (1, 1), (0, 0))).reshape(n, mp, c2)
    taps = tuple(dy * wp + dx for dy in range(3) for dx in range(3))

    kern = functools.partial(_fasternet_block_kernel, taps=taps, mp=mp)
    out = pl.pallas_call(
        kern,
        out_shape=jax.ShapeDtypeStruct((n, mp, cout), x.dtype),
        grid=(n,),
        in_specs=[
            pl.BlockSpec((1, l, cp), lambda i: (i, 0, 0)),
            pl.BlockSpec((1, mp, c2), lambda i: (i, 0, 0)),
            pl.BlockSpec((9, cp, cp), lambda i: (0, 0, 0)),
            pl.BlockSpec((1, cp), lambda i: (0, 0)),
            pl.BlockSpec((1, c2), lambda i: (0, 0)),
            pl.BlockSpec((1, c2), lambda i: (0, 0)),
            pl.BlockSpec((cp, c1), lambda i: (0, 0)),
            pl.BlockSpec((c2, c1), lambda i: (0, 0)),
            pl.BlockSpec((1, c1), lambda i: (0, 0)),
            pl.BlockSpec((c1, cout), lambda i: (0, 0)),
            pl.BlockSpec((1, cout), lambda i: (0, 0)),
        ],
        out_specs=pl.BlockSpec((1, mp, cout), lambda i: (i, 0, 0)),
        compiler_params=pltpu.CompilerParams(
            dimension_semantics=("parallel",)),
    )(xbuf, p2, blk['w3'], blk['b1'], blk['s2'], blk['b2'],
      blk['w1a'], blk['w1b'], blk['b_pw1'], blk['w2'], blk['b_pw2'])

    # Drop the padded border rows (they carry junk values by construction).
    return out.reshape(n, hp, wp, cout)[:, 1:h + 1, 1:w + 1, :]


# ---------------------------------------------------------------------------
# Parameters (BN folded, eval mode) and forward pass
# ---------------------------------------------------------------------------

def fold_bn(key, c, eps=1e-5):
    k1, k2, k3, k4 = jax.random.split(key, 4)
    gamma = 1.0 + 0.1 * jax.random.normal(k1, (c,), jnp.float32)
    beta = 0.1 * jax.random.normal(k2, (c,), jnp.float32)
    mean = 0.1 * jax.random.normal(k3, (c,), jnp.float32)
    var = 1.0 + 0.1 * jax.random.uniform(k4, (c,), jnp.float32)
    scale = gamma / jnp.sqrt(var + eps)
    bias = beta - mean * scale
    return scale, bias


def init_params(key, in_channels=3, base_channels=8,
                num_blocks=(1, 1, 1, 1), ratio=0.5):
    keys = iter(jax.random.split(key, 256))
    nk = lambda: next(keys)
    params = {}
    # Stem: 3x3 s2 conv + BN + ReLU; BN scale folded into the weight columns.
    w = 0.1 * jax.random.normal(nk(), (3, 3, in_channels, base_channels),
                                jnp.float32)
    s, b = fold_bn(nk(), base_channels)
    params['stem_w'] = w.reshape(9 * in_channels, base_channels) * s[None, :]
    params['stem_b'] = b
    stages = []
    in_ch = base_channels
    for i, nb in enumerate(num_blocks):
        out_ch = base_channels * 2 ** i
        stage = {'blocks': []}
        if i > 0:
            w = 0.1 * jax.random.normal(nk(), (3, 3, in_ch, out_ch),
                                        jnp.float32)
            s, b = fold_bn(nk(), out_ch)
            stage['down_w'] = w.reshape(9 * in_ch, out_ch) * s[None, :]
            stage['down_b'] = b
            in_ch = out_ch
        for _ in range(nb):
            cp = int(in_ch * ratio)
            c2 = in_ch - cp
            blk = {'cp': cp}
            # PConv: 3x3 conv (no bias) on first cp channels, BN over in_ch.
            w3 = 0.1 * jax.random.normal(nk(), (3, 3, cp, cp), jnp.float32)
            s, b = fold_bn(nk(), in_ch)
            blk['w3'] = w3.reshape(9, cp, cp) * s[:cp][None, None, :]
            blk['b1'] = b[:cp].reshape(1, cp)
            blk['s2'] = s[cp:].reshape(1, c2)
            blk['b2'] = b[cp:].reshape(1, c2)
            # PW1: 1x1 conv in_ch -> out_ch, BN over out_ch (scale folded).
            w1 = 0.1 * jax.random.normal(nk(), (in_ch, out_ch), jnp.float32)
            s, b = fold_bn(nk(), out_ch)
            w1 = w1 * s[None, :]
            blk['w1a'] = w1[:cp]
            blk['w1b'] = w1[cp:]
            blk['b_pw1'] = b.reshape(1, out_ch)
            # PW2: 1x1 conv out_ch -> out_ch, BN over out_ch (scale folded).
            w2 = 0.1 * jax.random.normal(nk(), (out_ch, out_ch), jnp.float32)
            s, b = fold_bn(nk(), out_ch)
            blk['w2'] = w2 * s[None, :]
            blk['b_pw2'] = b.reshape(1, out_ch)
            stage['blocks'].append(blk)
            in_ch = out_ch
        stages.append(stage)
    params['stages'] = stages
    return params


def fasternet_forward(params, x_nchw):
    x = jnp.transpose(x_nchw, (0, 2, 3, 1))        # NCHW -> NHWC for kernels
    x = conv3x3_bn_relu(x, params['stem_w'], params['stem_b'], stride=2)
    features = []
    for stage in params['stages']:
        if 'down_w' in stage:
            x = conv3x3_bn_relu(x, stage['down_w'], stage['down_b'], stride=2)
        for blk in stage['blocks']:
            x = fasternet_block(x, blk)
        features.append(jnp.transpose(x, (0, 3, 1, 2)))   # back to NCHW
    return features


if __name__ == "__main__":
    key = jax.random.PRNGKey(0)
    kx, kp = jax.random.split(key)
    # Small config consistent with the module: in_channels=3, base_channels=8,
    # num_blocks=[1,1,1,1], ratio=0.5, input 2x3x32x32.
    x = jax.random.normal(kx, (2, 3, 32, 32), jnp.float32)
    params = init_params(kp, in_channels=3, base_channels=8,
                         num_blocks=(1, 1, 1, 1), ratio=0.5)
    fwd = jax.jit(lambda inp: fasternet_forward(params, inp))
    feats = jax.block_until_ready(fwd(x))
    expected = [(2, 8, 16, 16), (2, 16, 8, 8), (2, 32, 4, 4), (2, 64, 2, 2)]
    assert [tuple(f.shape) for f in feats] == expected, \
        [tuple(f.shape) for f in feats]
    assert all(bool(jnp.all(jnp.isfinite(f))) for f in feats)
    print("KERNEL_OK")
</pallas_src>

<mosaic_0001>
module attributes {stable_mosaic.version = 11 : i64} {
  func.func @_matmul_bias_relu_kernel(%arg0: i32, %arg1: i32, %arg2: memref<1x256x27xf32, #tpu.memory_space<vmem>>, %arg3: memref<27x8xf32, #tpu.memory_space<vmem>>, %arg4: memref<1x8xf32, #tpu.memory_space<vmem>>, %arg5: memref<1x256x8xf32, #tpu.memory_space<vmem>>) attributes {dimension_semantics = [#tpu.dimension_semantics<parallel>, #tpu.dimension_semantics<parallel>], iteration_bounds = array<i64: 2, 1>, scalar_prefetch = 0 : i64, scratch_operands = 0 : i64, tpu.core_type = #tpu.core_type<tc>, window_params = [{transform_indices = @transform_0, window_bounds = array<i64: 1, 256, 27>}, {pipeline_mode = #tpu.pipeline_mode<synchronous>, transform_indices = @transform_1, window_bounds = array<i64: 27, 8>}, {pipeline_mode = #tpu.pipeline_mode<synchronous>, transform_indices = @transform_2, window_bounds = array<i64: 1, 8>}, {transform_indices = @transform_3, window_bounds = array<i64: 1, 256, 8>}]} {
    %c0 = arith.constant 0 : index
    %c0_0 = arith.constant 0 : index
    %c0_1 = arith.constant 0 : index
    %0 = vector.load %arg2[%c0, %c0_0, %c0_1] : memref<1x256x27xf32, #tpu.memory_space<vmem>>, vector<1x256x27xf32>
    %1 = vector.shape_cast %0 : vector<1x256x27xf32> to vector<256x27xf32>
    %2 = arith.truncf %1 : vector<256x27xf32> to vector<256x27xbf16>
    %c0_2 = arith.constant 0 : index
    %c0_3 = arith.constant 0 : index
    %3 = vector.load %arg3[%c0_2, %c0_3] : memref<27x8xf32, #tpu.memory_space<vmem>>, vector<27x8xf32>
    %4 = arith.truncf %3 : vector<27x8xf32> to vector<27x8xbf16>
    %cst = arith.constant dense<0.000000e+00> : vector<256x8xf32>
    %5 = tpu.matmul %2, %4, %cst {dimension_numbers = #tpu.dot_dimension_numbers<[1], [0], [0], [1], [0, 0, 1, 1], [], []>} : vector<256x27xbf16>, vector<27x8xbf16>, vector<256x8xf32> -> vector<256x8xf32>
    %c0_4 = arith.constant 0 : index
    %c0_5 = arith.constant 0 : index
    %6 = vector.load %arg4[%c0_4, %c0_5] : memref<1x8xf32, #tpu.memory_space<vmem>>, vector<1x8xf32>
    %7 = vector.broadcast %6 : vector<1x8xf32> to vector<256x8xf32>
    %8 = arith.addf %5, %7 : vector<256x8xf32>
    %cst_6 = arith.constant 0.000000e+00 : f32
    %9 = vector.broadcast %cst_6 : f32 to vector<256x8xf32>
    %10 = arith.maximumf %8, %9 : vector<256x8xf32>
    %c0_7 = arith.constant 0 : index
    %c0_8 = arith.constant 0 : index
    %c0_9 = arith.constant 0 : index
    %11 = vector.load %arg5[%c0_7, %c0_8, %c0_9] : memref<1x256x8xf32, #tpu.memory_space<vmem>>, vector<1x256x8xf32>
    %12 = vector.shape_cast %11 : vector<1x256x8xf32> to vector<256x8xf32>
    %13 = vector.shape_cast %10 : vector<256x8xf32> to vector<1x256x8xf32>
    tpu.vector_store %arg5[%c0_7, %c0_8, %c0_9], %13 {strides = array<i32>} : memref<1x256x8xf32, #tpu.memory_space<vmem>>, vector<1x256x8xf32>,
    return
  }
  func.func @transform_0(%arg0: i32, %arg1: i32) -> (i32, i32, i32) {
    %c0_i32 = arith.constant 0 : i32
    %c0_i32_0 = arith.constant 0 : i32
    return %arg0, %arg1, %c0_i32 : i32, i32, i32
  }
  func.func @transform_1(%arg0: i32, %arg1: i32) -> (i32, i32) {
    %c0_i32 = arith.constant 0 : i32
    %c0_i32_0 = arith.constant 0 : i32
    %c0_i32_1 = arith.constant 0 : i32
    return %c0_i32, %c0_i32_0 : i32, i32
  }
  func.func @transform_2(%arg0: i32, %arg1: i32) -> (i32, i32) {
    %c0_i32 = arith.constant 0 : i32
    %c0_i32_0 = arith.constant 0 : i32
    %c0_i32_1 = arith.constant 0 : i32
    return %c0_i32, %c0_i32_0 : i32, i32
  }
  func.func @transform_3(%arg0: i32, %arg1: i32) -> (i32, i32, i32) {
    %c0_i32 = arith.constant 0 : i32
    %c0_i32_0 = arith.constant 0 : i32
    return %arg0, %arg1, %c0_i32 : i32, i32, i32
  }
}

module attributes {stable_mosaic.version = 11 : i64} {
  func.func @_fasternet_block_kernel(%arg0: i32, %arg1: memref<1x362x4xf32, #tpu.memory_space<vmem>>, %arg2: memref<1x324x4xf32, #tpu.memory_space<vmem>>, %arg3: memref<9x4x4xf32, #tpu.memory_space<vmem>>, %arg4: memref<1x4xf32, #tpu.memory_space<vmem>>, %arg5: memref<1x4xf32, #tpu.memory_space<vmem>>, %arg6: memref<1x4xf32, #tpu.memory_space<vmem>>, %arg7: memref<4x8xf32, #tpu.memory_space<vmem>>, %arg8: memref<4x8xf32, #tpu.memory_space<vmem>>, %arg9: memref<1x8xf32, #tpu.memory_space<vmem>>, %arg10: memref<8x8xf32, #tpu.memory_space<vmem>>, %arg11: memref<1x8xf32, #tpu.memory_space<vmem>>, %arg12: memref<1x324x8xf32, #tpu.memory_space<vmem>>) attributes {dimension_semantics = [#tpu.dimension_semantics<parallel>], iteration_bounds = array<i64: 2>, scalar_prefetch = 0 : i64, scratch_operands = 0 : i64, tpu.core_type = #tpu.core_type<tc>, window_params = [{transform_indices = @transform_0, window_bounds = array<i64: 1, 362, 4>}, {transform_indices = @transform_1, window_bounds = array<i64: 1, 324, 4>}, {pipeline_mode = #tpu.pipeline_mode<synchronous>, transform_indices = @transform_2, window_bounds = array<i64: 9, 4, 4>}, {pipeline_mode = #tpu.pipeline_mode<synchronous>, transform_indices = @transform_3, window_bounds = array<i64: 1, 4>}, {pipeline_mode = #tpu.pipeline_mode<synchronous>, transform_indices = @transform_4, window_bounds = array<i64: 1, 4>}, {pipeline_mode = #tpu.pipeline_mode<synchronous>, transform_indices = @transform_5, window_bounds = array<i64: 1, 4>}, {pipeline_mode = #tpu.pipeline_mode<synchronous>, transform_indices = @transform_6, window_bounds = array<i64: 4, 8>}, {pipeline_mode = #tpu.pipeline_mode<synchronous>, transform_indices = @transform_7, window_bounds = array<i64: 4, 8>}, {pipeline_mode = #tpu.pipeline_mode<synchronous>, transform_indices = @transform_8, window_bounds = array<i64: 1, 8>}, {pipeline_mode = #tpu.pipeline_mode<synchronous>, transform_indices = @transform_9, window_bounds = array<i64: 8, 8>}, {pipeline_mode = #tpu.pipeline_mode<synchronous>, transform_indices = @transform_10, window_bounds = array<i64: 1, 8>}, {transform_indices = @transform_11, window_bounds = array<i64: 1, 324, 8>}]} {
    %c0 = arith.constant 0 : index
    %c0_0 = arith.constant 0 : index
    %c0_1 = arith.constant 0 : index
    %0 = vector.load %arg1[%c0, %c0_0, %c0_1] : memref<1x362x4xf32, #tpu.memory_space<vmem>>, vector<1x362x4xf32>
    %1 = vector.shape_cast %0 : vector<1x362x4xf32> to vector<362x4xf32>
    %2 = vector.extract_strided_slice %1 {offsets = [0, 0], sizes = [324, 4], strides = [1, 1]} : vector<362x4xf32> to vector<324x4xf32>
    %3 = arith.truncf %2 : vector<324x4xf32> to vector<324x4xbf16>
    %c0_2 = arith.constant 0 : index
    %c0_3 = arith.constant 0 : index
    %c0_4 = arith.constant 0 : index
    %4 = vector.load %arg3[%c0_2, %c0_3, %c0_4] : memref<9x4x4xf32, #tpu.memory_space<vmem>>, vector<1x4x4xf32>
    %5 = vector.shape_cast %4 : vector<1x4x4xf32> to vector<4x4xf32>
    %6 = arith.truncf %5 : vector<4x4xf32> to vector<4x4xbf16>
    %cst = arith.constant dense<0.000000e+00> : vector<324x4xf32>
    %7 = tpu.matmul %3, %6, %cst {dimension_numbers = #tpu.dot_dimension_numbers<[1], [0], [0], [1], [0, 0, 1, 1], [], []>} : vector<324x4xbf16>, vector<4x4xbf16>, vector<324x4xf32> -> vector<324x4xf32>
    %8 = vector.extract_strided_slice %1 {offsets = [1, 0], sizes = [324, 4], strides = [1, 1]} : vector<362x4xf32> to vector<324x4xf32>
    %9 = arith.truncf %8 : vector<324x4xf32> to vector<324x4xbf16>
    %c1 = arith.constant 1 : index
    %c0_5 = arith.constant 0 : index
    %c0_6 = arith.constant 0 : index
    %10 = vector.load %arg3[%c1, %c0_5, %c0_6] : memref<9x4x4xf32, #tpu.memory_space<vmem>>, vector<1x4x4xf32>
    %11 = vector.shape_cast %10 : vector<1x4x4xf32> to vector<4x4xf32>
    %12 = arith.truncf %11 : vector<4x4xf32> to vector<4x4xbf16>
    %cst_7 = arith.constant dense<0.000000e+00> : vector<324x4xf32>
    %13 = tpu.matmul %9, %12, %cst_7 {dimension_numbers = #tpu.dot_dimension_numbers<[1], [0], [0], [1], [0, 0, 1, 1], [], []>} : vector<324x4xbf16>, vector<4x4xbf16>, vector<324x4xf32> -> vector<324x4xf32>
    %14 = arith.addf %7, %13 : vector<324x4xf32>
    %15 = vector.extract_strided_slice %1 {offsets = [2, 0], sizes = [324, 4], strides = [1, 1]} : vector<362x4xf32> to vector<324x4xf32>
    %16 = arith.truncf %15 : vector<324x4xf32> to vector<324x4xbf16>
    %c2 = arith.constant 2 : index
    %c0_8 = arith.constant 0 : index
    %c0_9 = arith.constant 0 : index
    %17 = vector.load %arg3[%c2, %c0_8, %c0_9] : memref<9x4x4xf32, #tpu.memory_space<vmem>>, vector<1x4x4xf32>
    %18 = vector.shape_cast %17 : vector<1x4x4xf32> to vector<4x4xf32>
    %19 = arith.truncf %18 : vector<4x4xf32> to vector<4x4xbf16>
    %cst_10 = arith.constant dense<0.000000e+00> : vector<324x4xf32>
    %20 = tpu.matmul %16, %19, %cst_10 {dimension_numbers = #tpu.dot_dimension_numbers<[1], [0], [0], [1], [0, 0, 1, 1], [], []>} : vector<324x4xbf16>, vector<4x4xbf16>, vector<324x4xf32> -> vector<324x4xf32>
    %21 = arith.addf %14, %20 : vector<324x4xf32>
    %22 = vector.extract_strided_slice %1 {offsets = [18, 0], sizes = [324, 4], strides = [1, 1]} : vector<362x4xf32> to vector<324x4xf32>
    %23 = arith.truncf %22 : vector<324x4xf32> to vector<324x4xbf16>
    %c3 = arith.constant 3 : index
    %c0_11 = arith.constant 0 : index
    %c0_12 = arith.constant 0 : index
    %24 = vector.load %arg3[%c3, %c0_11, %c0_12] : memref<9x4x4xf32, #tpu.memory_space<vmem>>, vector<1x4x4xf32>
    %25 = vector.shape_cast %24 : vector<1x4x4xf32> to vector<4x4xf32>
    %26 = arith.truncf %25 : vector<4x4xf32> to vector<4x4xbf16>
    %cst_13 = arith.constant dense<0.000000e+00> : vector<324x4xf32>
    %27 = tpu.matmul %23, %26, %cst_13 {dimension_numbers = #tpu.dot_dimension_numbers<[1], [0], [0], [1], [0, 0, 1, 1], [], []>} : vector<324x4xbf16>, vector<4x4xbf16>, vector<324x4xf32> -> vector<324x4xf32>
    %28 = arith.addf %21, %27 : vector<324x4xf32>
    %29 = vector.extract_strided_slice %1 {offsets = [19, 0], sizes = [324, 4], strides = [1, 1]} : vector<362x4xf32> to vector<324x4xf32>
    %30 = arith.truncf %29 : vector<324x4xf32> to vector<324x4xbf16>
    %c4 = arith.constant 4 : index
    %c0_14 = arith.constant 0 : index
    %c0_15 = arith.constant 0 : index
    %31 = vector.load %arg3[%c4, %c0_14, %c0_15] : memref<9x4x4xf32, #tpu.memory_space<vmem>>, vector<1x4x4xf32>
    %32 = vector.shape_cast %31 : vector<1x4x4xf32> to vector<4x4xf32>
    %33 = arith.truncf %32 : vector<4x4xf32> to vector<4x4xbf16>
    %cst_16 = arith.constant dense<0.000000e+00> : vector<324x4xf32>
    %34 = tpu.matmul %30, %33, %cst_16 {dimension_numbers = #tpu.dot_dimension_numbers<[1], [0], [0], [1], [0, 0, 1, 1], [], []>} : vector<324x4xbf16>, vector<4x4xbf16>, vector<324x4xf32> -> vector<324x4xf32>
    %35 = arith.addf %28, %34 : vector<324x4xf32>
    %36 = vector.extract_strided_slice %1 {offsets = [20, 0], sizes = [324, 4], strides = [1, 1]} : vector<362x4xf32> to vector<324x4xf32>
    %37 = arith.truncf %36 : vector<324x4xf32> to vector<324x4xbf16>
    %c5 = arith.constant 5 : index
    %c0_17 = arith.constant 0 : index
    %c0_18 = arith.constant 0 : index
    %38 = vector.load %arg3[%c5, %c0_17, %c0_18] : memref<9x4x4xf32, #tpu.memory_space<vmem>>, vector<1x4x4xf32>
    %39 = vector.shape_cast %38 : vector<1x4x4xf32> to vector<4x4xf32>
    %40 = arith.truncf %39 : vector<4x4xf32> to vector<4x4xbf16>
    %cst_19 = arith.constant dense<0.000000e+00> : vector<324x4xf32>
    %41 = tpu.matmul %37, %40, %cst_19 {dimension_numbers = #tpu.dot_dimension_numbers<[1], [0], [0], [1], [0, 0, 1, 1], [], []>} : vector<324x4xbf16>, vector<4x4xbf16>, vector<324x4xf32> -> vector<324x4xf32>
    %42 = arith.addf %35, %41 : vector<324x4xf32>
    %43 = vector.extract_strided_slice %1 {offsets = [36, 0], sizes = [324, 4], strides = [1, 1]} : vector<362x4xf32> to vector<324x4xf32>
    %44 = arith.truncf %43 : vector<324x4xf32> to vector<324x4xbf16>
    %c6 = arith.constant 6 : index
    %c0_20 = arith.constant 0 : index
    %c0_21 = arith.constant 0 : index
    %45 = vector.load %arg3[%c6, %c0_20, %c0_21] : memref<9x4x4xf32, #tpu.memory_space<vmem>>, vector<1x4x4xf32>
    %46 = vector.shape_cast %45 : vector<1x4x4xf32> to vector<4x4xf32>
    %47 = arith.truncf %46 : vector<4x4xf32> to vector<4x4xbf16>
    %cst_22 = arith.constant dense<0.000000e+00> : vector<324x4xf32>
    %48 = tpu.matmul %44, %47, %cst_22 {dimension_numbers = #tpu.dot_dimension_numbers<[1], [0], [0], [1], [0, 0, 1, 1], [], []>} : vector<324x4xbf16>, vector<4x4xbf16>, vector<324x4xf32> -> vector<324x4xf32>
    %49 = arith.addf %42, %48 : vector<324x4xf32>
    %50 = vector.extract_strided_slice %1 {offsets = [37, 0], sizes = [324, 4], strides = [1, 1]} : vector<362x4xf32> to vector<324x4xf32>
    %51 = arith.truncf %50 : vector<324x4xf32> to vector<324x4xbf16>
    %c7 = arith.constant 7 : index
    %c0_23 = arith.constant 0 : index
    %c0_24 = arith.constant 0 : index
    %52 = vector.load %arg3[%c7, %c0_23, %c0_24] : memref<9x4x4xf32, #tpu.memory_space<vmem>>, vector<1x4x4xf32>
    %53 = vector.shape_cast %52 : vector<1x4x4xf32> to vector<4x4xf32>
    %54 = arith.truncf %53 : vector<4x4xf32> to vector<4x4xbf16>
    %cst_25 = arith.constant dense<0.000000e+00> : vector<324x4xf32>
    %55 = tpu.matmul %51, %54, %cst_25 {dimension_numbers = #tpu.dot_dimension_numbers<[1], [0], [0], [1], [0, 0, 1, 1], [], []>} : vector<324x4xbf16>, vector<4x4xbf16>, vector<324x4xf32> -> vector<324x4xf32>
    %56 = arith.addf %49, %55 : vector<324x4xf32>
    %57 = vector.extract_strided_slice %1 {offsets = [38, 0], sizes = [324, 4], strides = [1, 1]} : vector<362x4xf32> to vector<324x4xf32>
    %58 = arith.truncf %57 : vector<324x4xf32> to vector<324x4xbf16>
    %c8 = arith.constant 8 : index
    %c0_26 = arith.constant 0 : index
    %c0_27 = arith.constant 0 : index
    %59 = vector.load %arg3[%c8, %c0_26, %c0_27] : memref<9x4x4xf32, #tpu.memory_space<vmem>>, vector<1x4x4xf32>
    %60 = vector.shape_cast %59 : vector<1x4x4xf32> to vector<4x4xf32>
    %61 = arith.truncf %60 : vector<4x4xf32> to vector<4x4xbf16>
    %cst_28 = arith.constant dense<0.000000e+00> : vector<324x4xf32>
    %62 = tpu.matmul %58, %61, %cst_28 {dimension_numbers = #tpu.dot_dimension_numbers<[1], [0], [0], [1], [0, 0, 1, 1], [], []>} : vector<324x4xbf16>, vector<4x4xbf16>, vector<324x4xf32> -> vector<324x4xf32>
    %63 = arith.addf %56, %62 : vector<324x4xf32>
    %c0_29 = arith.constant 0 : index
    %c0_30 = arith.constant 0 : index
    %64 = vector.load %arg4[%c0_29, %c0_30] : memref<1x4xf32, #tpu.memory_space<vmem>>, vector<1x4xf32>
    %65 = vector.broadcast %64 : vector<1x4xf32> to vector<324x4xf32>
    %66 = arith.addf %63, %65 : vector<324x4xf32>
    %cst_31 = arith.constant 0.000000e+00 : f32
    %67 = vector.broadcast %cst_31 : f32 to vector<324x4xf32>
    %68 = arith.maximumf %66, %67 : vector<324x4xf32>
    %c0_32 = arith.constant 0 : index
    %c0_33 = arith.constant 0 : index
    %c0_34 = arith.constant 0 : index
    %69 = vector.load %arg2[%c0_32, %c0_33, %c0_34] : memref<1x324x4xf32, #tpu.memory_space<vmem>>, vector<1x324x4xf32>
    %70 = vector.shape_cast %69 : vector<1x324x4xf32> to vector<324x4xf32>
    %c0_35 = arith.constant 0 : index
    %c0_36 = arith.constant 0 : index
    %71 = vector.load %arg5[%c0_35, %c0_36] : memref<1x4xf32, #tpu.memory_space<vmem>>, vector<1x4xf32>
    %72 = vector.broadcast %71 : vector<1x4xf32> to vector<324x4xf32>
    %73 = arith.mulf %70, %72 : vector<324x4xf32>
    %c0_37 = arith.constant 0 : index
    %c0_38 = arith.constant 0 : index
    %74 = vector.load %arg6[%c0_37, %c0_38] : memref<1x4xf32, #tpu.memory_space<vmem>>, vector<1x4xf32>
    %75 = vector.broadcast %74 : vector<1x4xf32> to vector<324x4xf32>
    %76 = arith.addf %73, %75 : vector<324x4xf32>
    %cst_39 = arith.constant 0.000000e+00 : f32
    %77 = vector.broadcast %cst_39 : f32 to vector<324x4xf32>
    %78 = arith.maximumf %76, %77 : vector<324x4xf32>
    %79 = arith.truncf %68 : vector<324x4xf32> to vector<324x4xbf16>
    %c0_40 = arith.constant 0 : index
    %c0_41 = arith.constant 0 : index
    %80 = vector.load %arg7[%c0_40, %c0_41] : memref<4x8xf32, #tpu.memory_space<vmem>>, vector<4x8xf32>
    %81 = arith.truncf %80 : vector<4x8xf32> to vector<4x8xbf16>
    %cst_42 = arith.constant dense<0.000000e+00> : vector<324x8xf32>
    %82 = tpu.matmul %79, %81, %cst_42 {dimension_numbers = #tpu.dot_dimension_numbers<[1], [0], [0], [1], [0, 0, 1, 1], [], []>} : vector<324x4xbf16>, vector<4x8xbf16>, vector<324x8xf32> -> vector<324x8xf32>
    %83 = arith.truncf %78 : vector<324x4xf32> to vector<324x4xbf16>
    %c0_43 = arith.constant 0 : index
    %c0_44 = arith.constant 0 : index
    %84 = vector.load %arg8[%c0_43, %c0_44] : memref<4x8xf32, #tpu.memory_space<vmem>>, vector<4x8xf32>
    %85 = arith.truncf %84 : vector<4x8xf32> to vector<4x8xbf16>
    %cst_45 = arith.constant dense<0.000000e+00> : vector<324x8xf32>
    %86 = tpu.matmul %83, %85, %cst_45 {dimension_numbers = #tpu.dot_dimension_numbers<[1], [0], [0], [1], [0, 0, 1, 1], [], []>} : vector<324x4xbf16>, vector<4x8xbf16>, vector<324x8xf32> -> vector<324x8xf32>
    %87 = arith.addf %82, %86 : vector<324x8xf32>
    %c0_46 = arith.constant 0 : index
    %c0_47 = arith.constant 0 : index
    %88 = vector.load %arg9[%c0_46, %c0_47] : memref<1x8xf32, #tpu.memory_space<vmem>>, vector<1x8xf32>
    %89 = vector.broadcast %88 : vector<1x8xf32> to vector<324x8xf32>
    %90 = arith.addf %87, %89 : vector<324x8xf32>
    %cst_48 = arith.constant 0.000000e+00 : f32
    %91 = vector.broadcast %cst_48 : f32 to vector<324x8xf32>
    %92 = arith.maximumf %90, %91 : vector<324x8xf32>
    %93 = arith.truncf %92 : vector<324x8xf32> to vector<324x8xbf16>
    %c0_49 = arith.constant 0 : index
    %c0_50 = arith.constant 0 : index
    %94 = vector.load %arg10[%c0_49, %c0_50] : memref<8x8xf32, #tpu.memory_space<vmem>>, vector<8x8xf32>
    %95 = arith.truncf %94 : vector<8x8xf32> to vector<8x8xbf16>
    %cst_51 = arith.constant dense<0.000000e+00> : vector<324x8xf32>
    %96 = tpu.matmul %93, %95, %cst_51 {dimension_numbers = #tpu.dot_dimension_numbers<[1], [0], [0], [1], [0, 0, 1, 1], [], []>} : vector<324x8xbf16>, vector<8x8xbf16>, vector<324x8xf32> -> vector<324x8xf32>
    %c0_52 = arith.constant 0 : index
    %c0_53 = arith.constant 0 : index
    %97 = vector.load %arg11[%c0_52, %c0_53] : memref<1x8xf32, #tpu.memory_space<vmem>>, vector<1x8xf32>
    %98 = vector.broadcast %97 : vector<1x8xf32> to vector<324x8xf32>
    %99 = arith.addf %96, %98 : vector<324x8xf32>
    %cst_54 = arith.constant 0.000000e+00 : f32
    %100 = vector.broadcast %cst_54 : f32 to vector<324x8xf32>
    %101 = arith.maximumf %99, %100 : vector<324x8xf32>
    %c0_55 = arith.constant 0 : index
    %c0_56 = arith.constant 0 : index
    %c0_57 = arith.constant 0 : index
    %102 = vector.load %arg12[%c0_55, %c0_56, %c0_57] : memref<1x324x8xf32, #tpu.memory_space<vmem>>, vector<1x324x8xf32>
    %103 = vector.shape_cast %102 : vector<1x324x8xf32> to vector<324x8xf32>
    %104 = vector.shape_cast %101 : vector<324x8xf32> to vector<1x324x8xf32>
    tpu.vector_store %arg12[%c0_55, %c0_56, %c0_57], %104 {strides = array<i32>} : memref<1x324x8xf32, #tpu.memory_space<vmem>>, vector<1x324x8xf32>,
    return
  }
  func.func @transform_0(%arg0: i32) -> (i32, i32, i32) {
    %c0_i32 = arith.constant 0 : i32
    %c0_i32_0 = arith.constant 0 : i32
    %c0_i32_1 = arith.constant 0 : i32
    return %arg0, %c0_i32, %c0_i32_0 : i32, i32, i32
  }
  func.func @transform_1(%arg0: i32) -> (i32, i32, i32) {
    %c0_i32 = arith.constant 0 : i32
    %c0_i32_0 = arith.constant 0 : i32
    %c0_i32_1 = arith.constant 0 : i32
    return %arg0, %c0_i32, %c0_i32_0 : i32, i32, i32
  }
  func.func @transform_2(%arg0: i32) -> (i32, i32, i32) {
    %c0_i32 = arith.constant 0 : i32
    %c0_i32_0 = arith.constant 0 : i32
    %c0_i32_1 = arith.constant 0 : i32
    %c0_i32_2 = arith.constant 0 : i32
    return %c0_i32, %c0_i32_0, %c0_i32_1 : i32, i32, i32
  }
  func.func @transform_3(%arg0: i32) -> (i32, i32) {
    %c0_i32 = arith.constant 0 : i32
    %c0_i32_0 = arith.constant 0 : i32
    %c0_i32_1 = arith.constant 0 : i32
    return %c0_i32, %c0_i32_0 : i32, i32
  }
  func.func @transform_4(%arg0: i32) -> (i32, i32) {
    %c0_i32 = arith.constant 0 : i32
    %c0_i32_0 = arith.constant 0 : i32
    %c0_i32_1 = arith.constant 0 : i32
    return %c0_i32, %c0_i32_0 : i32, i32
  }
  func.func @transform_5(%arg0: i32) -> (i32, i32) {
    %c0_i32 = arith.constant 0 : i32
    %c0_i32_0 = arith.constant 0 : i32
    %c0_i32_1 = arith.constant 0 : i32
    return %c0_i32, %c0_i32_0 : i32, i32
  }
  func.func @transform_6(%arg0: i32) -> (i32, i32) {
    %c0_i32 = arith.constant 0 : i32
    %c0_i32_0 = arith.constant 0 : i32
    %c0_i32_1 = arith.constant 0 : i32
    return %c0_i32, %c0_i32_0 : i32, i32
  }
  func.func @transform_7(%arg0: i32) -> (i32, i32) {
    %c0_i32 = arith.constant 0 : i32
    %c0_i32_0 = arith.constant 0 : i32
    %c0_i32_1 = arith.constant 0 : i32
    return %c0_i32, %c0_i32_0 : i32, i32
  }
  func.func @transform_8(%arg0: i32) -> (i32, i32) {
    %c0_i32 = arith.constant 0 : i32
    %c0_i32_0 = arith.constant 0 : i32
    %c0_i32_1 = arith.constant 0 : i32
    return %c0_i32, %c0_i32_0 : i32, i32
  }
  func.func @transform_9(%arg0: i32) -> (i32, i32) {
    %c0_i32 = arith.constant 0 : i32
    %c0_i32_0 = arith.constant 0 : i32
    %c0_i32_1 = arith.constant 0 : i32
    return %c0_i32, %c0_i32_0 : i32, i32
  }
  func.func @transform_10(%arg0: i32) -> (i32, i32) {
    %c0_i32 = arith.constant 0 : i32
    %c0_i32_0 = arith.constant 0 : i32
    %c0_i32_1 = arith.constant 0 : i32
    return %c0_i32, %c0_i32_0 : i32, i32
  }
  func.func @transform_11(%arg0: i32) -> (i32, i32, i32) {
    %c0_i32 = arith.constant 0 : i32
    %c0_i32_0 = arith.constant 0 : i32
    %c0_i32_1 = arith.constant 0 : i32
    return %arg0, %c0_i32, %c0_i32_0 : i32, i32, i32
  }
}

module attributes {stable_mosaic.version = 11 : i64} {
  func.func @_matmul_bias_relu_kernel(%arg0: i32, %arg1: i32, %arg2: memref<1x64x72xf32, #tpu.memory_space<vmem>>, %arg3: memref<72x16xf32, #tpu.memory_space<vmem>>, %arg4: memref<1x16xf32, #tpu.memory_space<vmem>>, %arg5: memref<1x64x16xf32, #tpu.memory_space<vmem>>) attributes {dimension_semantics = [#tpu.dimension_semantics<parallel>, #tpu.dimension_semantics<parallel>], iteration_bounds = array<i64: 2, 1>, scalar_prefetch = 0 : i64, scratch_operands = 0 : i64, tpu.core_type = #tpu.core_type<tc>, window_params = [{transform_indices = @transform_0, window_bounds = array<i64: 1, 64, 72>}, {pipeline_mode = #tpu.pipeline_mode<synchronous>, transform_indices = @transform_1, window_bounds = array<i64: 72, 16>}, {pipeline_mode = #tpu.pipeline_mode<synchronous>, transform_indices = @transform_2, window_bounds = array<i64: 1, 16>}, {transform_indices = @transform_3, window_bounds = array<i64: 1, 64, 16>}]} {
    %c0 = arith.constant 0 : index
    %c0_0 = arith.constant 0 : index
    %c0_1 = arith.constant 0 : index
    %0 = vector.load %arg2[%c0, %c0_0, %c0_1] : memref<1x64x72xf32, #tpu.memory_space<vmem>>, vector<1x64x72xf32>
    %1 = vector.shape_cast %0 : vector<1x64x72xf32> to vector<64x72xf32>
    %2 = arith.truncf %1 : vector<64x72xf32> to vector<64x72xbf16>
    %c0_2 = arith.constant 0 : index
    %c0_3 = arith.constant 0 : index
    %3 = vector.load %arg3[%c0_2, %c0_3] : memref<72x16xf32, #tpu.memory_space<vmem>>, vector<72x16xf32>
    %4 = arith.truncf %3 : vector<72x16xf32> to vector<72x16xbf16>
    %cst = arith.constant dense<0.000000e+00> : vector<64x16xf32>
    %5 = tpu.matmul %2, %4, %cst {dimension_numbers = #tpu.dot_dimension_numbers<[1], [0], [0], [1], [0, 0, 1, 1], [], []>} : vector<64x72xbf16>, vector<72x16xbf16>, vector<64x16xf32> -> vector<64x16xf32>
    %c0_4 = arith.constant 0 : index
    %c0_5 = arith.constant 0 : index
    %6 = vector.load %arg4[%c0_4, %c0_5] : memref<1x16xf32, #tpu.memory_space<vmem>>, vector<1x16xf32>
    %7 = vector.broadcast %6 : vector<1x16xf32> to vector<64x16xf32>
    %8 = arith.addf %5, %7 : vector<64x16xf32>
    %cst_6 = arith.constant 0.000000e+00 : f32
    %9 = vector.broadcast %cst_6 : f32 to vector<64x16xf32>
    %10 = arith.maximumf %8, %9 : vector<64x16xf32>
    %c0_7 = arith.constant 0 : index
    %c0_8 = arith.constant 0 : index
    %c0_9 = arith.constant 0 : index
    %11 = vector.load %arg5[%c0_7, %c0_8, %c0_9] : memref<1x64x16xf32, #tpu.memory_space<vmem>>, vector<1x64x16xf32>
    %12 = vector.shape_cast %11 : vector<1x64x16xf32> to vector<64x16xf32>
    %13 = vector.shape_cast %10 : vector<64x16xf32> to vector<1x64x16xf32>
    tpu.vector_store %arg5[%c0_7, %c0_8, %c0_9], %13 {strides = array<i32>} : memref<1x64x16xf32, #tpu.memory_space<vmem>>, vector<1x64x16xf32>,
    return
  }
  func.func @transform_0(%arg0: i32, %arg1: i32) -> (i32, i32, i32) {
    %c0_i32 = arith.constant 0 : i32
    %c0_i32_0 = arith.constant 0 : i32
    return %arg0, %arg1, %c0_i32 : i32, i32, i32
  }
  func.func @transform_1(%arg0: i32, %arg1: i32) -> (i32, i32) {
    %c0_i32 = arith.constant 0 : i32
    %c0_i32_0 = arith.constant 0 : i32
    %c0_i32_1 = arith.constant 0 : i32
    return %c0_i32, %c0_i32_0 : i32, i32
  }
  func.func @transform_2(%arg0: i32, %arg1: i32) -> (i32, i32) {
    %c0_i32 = arith.constant 0 : i32
    %c0_i32_0 = arith.constant 0 : i32
    %c0_i32_1 = arith.constant 0 : i32
    return %c0_i32, %c0_i32_0 : i32, i32
  }
  func.func @transform_3(%arg0: i32, %arg1: i32) -> (i32, i32, i32) {
    %c0_i32 = arith.constant 0 : i32
    %c0_i32_0 = arith.constant 0 : i32
    return %arg0, %arg1, %c0_i32 : i32, i32, i32
  }
}

module attributes {stable_mosaic.version = 11 : i64} {
  func.func @_fasternet_block_kernel(%arg0: i32, %arg1: memref<1x122x8xf32, #tpu.memory_space<vmem>>, %arg2: memref<1x100x8xf32, #tpu.memory_space<vmem>>, %arg3: memref<9x8x8xf32, #tpu.memory_space<vmem>>, %arg4: memref<1x8xf32, #tpu.memory_space<vmem>>, %arg5: memref<1x8xf32, #tpu.memory_space<vmem>>, %arg6: memref<1x8xf32, #tpu.memory_space<vmem>>, %arg7: memref<8x16xf32, #tpu.memory_space<vmem>>, %arg8: memref<8x16xf32, #tpu.memory_space<vmem>>, %arg9: memref<1x16xf32, #tpu.memory_space<vmem>>, %arg10: memref<16x16xf32, #tpu.memory_space<vmem>>, %arg11: memref<1x16xf32, #tpu.memory_space<vmem>>, %arg12: memref<1x100x16xf32, #tpu.memory_space<vmem>>) attributes {dimension_semantics = [#tpu.dimension_semantics<parallel>], iteration_bounds = array<i64: 2>, scalar_prefetch = 0 : i64, scratch_operands = 0 : i64, tpu.core_type = #tpu.core_type<tc>, window_params = [{transform_indices = @transform_0, window_bounds = array<i64: 1, 122, 8>}, {transform_indices = @transform_1, window_bounds = array<i64: 1, 100, 8>}, {pipeline_mode = #tpu.pipeline_mode<synchronous>, transform_indices = @transform_2, window_bounds = array<i64: 9, 8, 8>}, {pipeline_mode = #tpu.pipeline_mode<synchronous>, transform_indices = @transform_3, window_bounds = array<i64: 1, 8>}, {pipeline_mode = #tpu.pipeline_mode<synchronous>, transform_indices = @transform_4, window_bounds = array<i64: 1, 8>}, {pipeline_mode = #tpu.pipeline_mode<synchronous>, transform_indices = @transform_5, window_bounds = array<i64: 1, 8>}, {pipeline_mode = #tpu.pipeline_mode<synchronous>, transform_indices = @transform_6, window_bounds = array<i64: 8, 16>}, {pipeline_mode = #tpu.pipeline_mode<synchronous>, transform_indices = @transform_7, window_bounds = array<i64: 8, 16>}, {pipeline_mode = #tpu.pipeline_mode<synchronous>, transform_indices = @transform_8, window_bounds = array<i64: 1, 16>}, {pipeline_mode = #tpu.pipeline_mode<synchronous>, transform_indices = @transform_9, window_bounds = array<i64: 16, 16>}, {pipeline_mode = #tpu.pipeline_mode<synchronous>, transform_indices = @transform_10, window_bounds = array<i64: 1, 16>}, {transform_indices = @transform_11, window_bounds = array<i64: 1, 100, 16>}]} {
    %c0 = arith.constant 0 : index
    %c0_0 = arith.constant 0 : index
    %c0_1 = arith.constant 0 : index
    %0 = vector.load %arg1[%c0, %c0_0, %c0_1] : memref<1x122x8xf32, #tpu.memory_space<vmem>>, vector<1x122x8xf32>
    %1 = vector.shape_cast %0 : vector<1x122x8xf32> to vector<122x8xf32>
    %2 = vector.extract_strided_slice %1 {offsets = [0, 0], sizes = [100, 8], strides = [1, 1]} : vector<122x8xf32> to vector<100x8xf32>
    %3 = arith.truncf %2 : vector<100x8xf32> to vector<100x8xbf16>
    %c0_2 = arith.constant 0 : index
    %c0_3 = arith.constant 0 : index
    %c0_4 = arith.constant 0 : index
    %4 = vector.load %arg3[%c0_2, %c0_3, %c0_4] : memref<9x8x8xf32, #tpu.memory_space<vmem>>, vector<1x8x8xf32>
    %5 = vector.shape_cast %4 : vector<1x8x8xf32> to vector<8x8xf32>
    %6 = arith.truncf %5 : vector<8x8xf32> to vector<8x8xbf16>
    %cst = arith.constant dense<0.000000e+00> : vector<100x8xf32>
    %7 = tpu.matmul %3, %6, %cst {dimension_numbers = #tpu.dot_dimension_numbers<[1], [0], [0], [1], [0, 0, 1, 1], [], []>} : vector<100x8xbf16>, vector<8x8xbf16>, vector<100x8xf32> -> vector<100x8xf32>
    %8 = vector.extract_strided_slice %1 {offsets = [1, 0], sizes = [100, 8], strides = [1, 1]} : vector<122x8xf32> to vector<100x8xf32>
    %9 = arith.truncf %8 : vector<100x8xf32> to vector<100x8xbf16>
    %c1 = arith.constant 1 : index
    %c0_5 = arith.constant 0 : index
    %c0_6 = arith.constant 0 : index
    %10 = vector.load %arg3[%c1, %c0_5, %c0_6] : memref<9x8x8xf32, #tpu.memory_space<vmem>>, vector<1x8x8xf32>
    %11 = vector.shape_cast %10 : vector<1x8x8xf32> to vector<8x8xf32>
    %12 = arith.truncf %11 : vector<8x8xf32> to vector<8x8xbf16>
    %cst_7 = arith.constant dense<0.000000e+00> : vector<100x8xf32>
    %13 = tpu.matmul %9, %12, %cst_7 {dimension_numbers = #tpu.dot_dimension_numbers<[1], [0], [0], [1], [0, 0, 1, 1], [], []>} : vector<100x8xbf16>, vector<8x8xbf16>, vector<100x8xf32> -> vector<100x8xf32>
    %14 = arith.addf %7, %13 : vector<100x8xf32>
    %15 = vector.extract_strided_slice %1 {offsets = [2, 0], sizes = [100, 8], strides = [1, 1]} : vector<122x8xf32> to vector<100x8xf32>
    %16 = arith.truncf %15 : vector<100x8xf32> to vector<100x8xbf16>
    %c2 = arith.constant 2 : index
    %c0_8 = arith.constant 0 : index
    %c0_9 = arith.constant 0 : index
    %17 = vector.load %arg3[%c2, %c0_8, %c0_9] : memref<9x8x8xf32, #tpu.memory_space<vmem>>, vector<1x8x8xf32>
    %18 = vector.shape_cast %17 : vector<1x8x8xf32> to vector<8x8xf32>
    %19 = arith.truncf %18 : vector<8x8xf32> to vector<8x8xbf16>
    %cst_10 = arith.constant dense<0.000000e+00> : vector<100x8xf32>
    %20 = tpu.matmul %16, %19, %cst_10 {dimension_numbers = #tpu.dot_dimension_numbers<[1], [0], [0], [1], [0, 0, 1, 1], [], []>} : vector<100x8xbf16>, vector<8x8xbf16>, vector<100x8xf32> -> vector<100x8xf32>
    %21 = arith.addf %14, %20 : vector<100x8xf32>
    %22 = vector.extract_strided_slice %1 {offsets = [10, 0], sizes = [100, 8], strides = [1, 1]} : vector<122x8xf32> to vector<100x8xf32>
    %23 = arith.truncf %22 : vector<100x8xf32> to vector<100x8xbf16>
    %c3 = arith.constant 3 : index
    %c0_11 = arith.constant 0 : index
    %c0_12 = arith.constant 0 : index
    %24 = vector.load %arg3[%c3, %c0_11, %c0_12] : memref<9x8x8xf32, #tpu.memory_space<vmem>>, vector<1x8x8xf32>
    %25 = vector.shape_cast %24 : vector<1x8x8xf32> to vector<8x8xf32>
    %26 = arith.truncf %25 : vector<8x8xf32> to vector<8x8xbf16>
    %cst_13 = arith.constant dense<0.000000e+00> : vector<100x8xf32>
    %27 = tpu.matmul %23, %26, %cst_13 {dimension_numbers = #tpu.dot_dimension_numbers<[1], [0], [0], [1], [0, 0, 1, 1], [], []>} : vector<100x8xbf16>, vector<8x8xbf16>, vector<100x8xf32> -> vector<100x8xf32>
    %28 = arith.addf %21, %27 : vector<100x8xf32>
    %29 = vector.extract_strided_slice %1 {offsets = [11, 0], sizes = [100, 8], strides = [1, 1]} : vector<122x8xf32> to vector<100x8xf32>
    %30 = arith.truncf %29 : vector<100x8xf32> to vector<100x8xbf16>
    %c4 = arith.constant 4 : index
    %c0_14 = arith.constant 0 : index
    %c0_15 = arith.constant 0 : index
    %31 = vector.load %arg3[%c4, %c0_14, %c0_15] : memref<9x8x8xf32, #tpu.memory_space<vmem>>, vector<1x8x8xf32>
    %32 = vector.shape_cast %31 : vector<1x8x8xf32> to vector<8x8xf32>
    %33 = arith.truncf %32 : vector<8x8xf32> to vector<8x8xbf16>
    %cst_16 = arith.constant dense<0.000000e+00> : vector<100x8xf32>
    %34 = tpu.matmul %30, %33, %cst_16 {dimension_numbers = #tpu.dot_dimension_numbers<[1], [0], [0], [1], [0, 0, 1, 1], [], []>} : vector<100x8xbf16>, vector<8x8xbf16>, vector<100x8xf32> -> vector<100x8xf32>
    %35 = arith.addf %28, %34 : vector<100x8xf32>
    %36 = vector.extract_strided_slice %1 {offsets = [12, 0], sizes = [100, 8], strides = [1, 1]} : vector<122x8xf32> to vector<100x8xf32>
    %37 = arith.truncf %36 : vector<100x8xf32> to vector<100x8xbf16>
    %c5 = arith.constant 5 : index
    %c0_17 = arith.constant 0 : index
    %c0_18 = arith.constant 0 : index
    %38 = vector.load %arg3[%c5, %c0_17, %c0_18] : memref<9x8x8xf32, #tpu.memory_space<vmem>>, vector<1x8x8xf32>
    %39 = vector.shape_cast %38 : vector<1x8x8xf32> to vector<8x8xf32>
    %40 = arith.truncf %39 : vector<8x8xf32> to vector<8x8xbf16>
    %cst_19 = arith.constant dense<0.000000e+00> : vector<100x8xf32>
    %41 = tpu.matmul %37, %40, %cst_19 {dimension_numbers = #tpu.dot_dimension_numbers<[1], [0], [0], [1], [0, 0, 1, 1], [], []>} : vector<100x8xbf16>, vector<8x8xbf16>, vector<100x8xf32> -> vector<100x8xf32>
    %42 = arith.addf %35, %41 : vector<100x8xf32>
    %43 = vector.extract_strided_slice %1 {offsets = [20, 0], sizes = [100, 8], strides = [1, 1]} : vector<122x8xf32> to vector<100x8xf32>
    %44 = arith.truncf %43 : vector<100x8xf32> to vector<100x8xbf16>
    %c6 = arith.constant 6 : index
    %c0_20 = arith.constant 0 : index
    %c0_21 = arith.constant 0 : index
    %45 = vector.load %arg3[%c6, %c0_20, %c0_21] : memref<9x8x8xf32, #tpu.memory_space<vmem>>, vector<1x8x8xf32>
    %46 = vector.shape_cast %45 : vector<1x8x8xf32> to vector<8x8xf32>
    %47 = arith.truncf %46 : vector<8x8xf32> to vector<8x8xbf16>
    %cst_22 = arith.constant dense<0.000000e+00> : vector<100x8xf32>
    %48 = tpu.matmul %44, %47, %cst_22 {dimension_numbers = #tpu.dot_dimension_numbers<[1], [0], [0], [1], [0, 0, 1, 1], [], []>} : vector<100x8xbf16>, vector<8x8xbf16>, vector<100x8xf32> -> vector<100x8xf32>
    %49 = arith.addf %42, %48 : vector<100x8xf32>
    %50 = vector.extract_strided_slice %1 {offsets = [21, 0], sizes = [100, 8], strides = [1, 1]} : vector<122x8xf32> to vector<100x8xf32>
    %51 = arith.truncf %50 : vector<100x8xf32> to vector<100x8xbf16>
    %c7 = arith.constant 7 : index
    %c0_23 = arith.constant 0 : index
    %c0_24 = arith.constant 0 : index
    %52 = vector.load %arg3[%c7, %c0_23, %c0_24] : memref<9x8x8xf32, #tpu.memory_space<vmem>>, vector<1x8x8xf32>
    %53 = vector.shape_cast %52 : vector<1x8x8xf32> to vector<8x8xf32>
    %54 = arith.truncf %53 : vector<8x8xf32> to vector<8x8xbf16>
    %cst_25 = arith.constant dense<0.000000e+00> : vector<100x8xf32>
    %55 = tpu.matmul %51, %54, %cst_25 {dimension_numbers = #tpu.dot_dimension_numbers<[1], [0], [0], [1], [0, 0, 1, 1], [], []>} : vector<100x8xbf16>, vector<8x8xbf16>, vector<100x8xf32> -> vector<100x8xf32>
    %56 = arith.addf %49, %55 : vector<100x8xf32>
    %57 = vector.extract_strided_slice %1 {offsets = [22, 0], sizes = [100, 8], strides = [1, 1]} : vector<122x8xf32> to vector<100x8xf32>
    %58 = arith.truncf %57 : vector<100x8xf32> to vector<100x8xbf16>
    %c8 = arith.constant 8 : index
    %c0_26 = arith.constant 0 : index
    %c0_27 = arith.constant 0 : index
    %59 = vector.load %arg3[%c8, %c0_26, %c0_27] : memref<9x8x8xf32, #tpu.memory_space<vmem>>, vector<1x8x8xf32>
    %60 = vector.shape_cast %59 : vector<1x8x8xf32> to vector<8x8xf32>
    %61 = arith.truncf %60 : vector<8x8xf32> to vector<8x8xbf16>
    %cst_28 = arith.constant dense<0.000000e+00> : vector<100x8xf32>
    %62 = tpu.matmul %58, %61, %cst_28 {dimension_numbers = #tpu.dot_dimension_numbers<[1], [0], [0], [1], [0, 0, 1, 1], [], []>} : vector<100x8xbf16>, vector<8x8xbf16>, vector<100x8xf32> -> vector<100x8xf32>
    %63 = arith.addf %56, %62 : vector<100x8xf32>
    %c0_29 = arith.constant 0 : index
    %c0_30 = arith.constant 0 : index
    %64 = vector.load %arg4[%c0_29, %c0_30] : memref<1x8xf32, #tpu.memory_space<vmem>>, vector<1x8xf32>
    %65 = vector.broadcast %64 : vector<1x8xf32> to vector<100x8xf32>
    %66 = arith.addf %63, %65 : vector<100x8xf32>
    %cst_31 = arith.constant 0.000000e+00 : f32
    %67 = vector.broadcast %cst_31 : f32 to vector<100x8xf32>
    %68 = arith.maximumf %66, %67 : vector<100x8xf32>
    %c0_32 = arith.constant 0 : index
    %c0_33 = arith.constant 0 : index
    %c0_34 = arith.constant 0 : index
    %69 = vector.load %arg2[%c0_32, %c0_33, %c0_34] : memref<1x100x8xf32, #tpu.memory_space<vmem>>, vector<1x100x8xf32>
    %70 = vector.shape_cast %69 : vector<1x100x8xf32> to vector<100x8xf32>
    %c0_35 = arith.constant 0 : index
    %c0_36 = arith.constant 0 : index
    %71 = vector.load %arg5[%c0_35, %c0_36] : memref<1x8xf32, #tpu.memory_space<vmem>>, vector<1x8xf32>
    %72 = vector.broadcast %71 : vector<1x8xf32> to vector<100x8xf32>
    %73 = arith.mulf %70, %72 : vector<100x8xf32>
    %c0_37 = arith.constant 0 : index
    %c0_38 = arith.constant 0 : index
    %74 = vector.load %arg6[%c0_37, %c0_38] : memref<1x8xf32, #tpu.memory_space<vmem>>, vector<1x8xf32>
    %75 = vector.broadcast %74 : vector<1x8xf32> to vector<100x8xf32>
    %76 = arith.addf %73, %75 : vector<100x8xf32>
    %cst_39 = arith.constant 0.000000e+00 : f32
    %77 = vector.broadcast %cst_39 : f32 to vector<100x8xf32>
    %78 = arith.maximumf %76, %77 : vector<100x8xf32>
    %79 = arith.truncf %68 : vector<100x8xf32> to vector<100x8xbf16>
    %c0_40 = arith.constant 0 : index
    %c0_41 = arith.constant 0 : index
    %80 = vector.load %arg7[%c0_40, %c0_41] : memref<8x16xf32, #tpu.memory_space<vmem>>, vector<8x16xf32>
    %81 = arith.truncf %80 : vector<8x16xf32> to vector<8x16xbf16>
    %cst_42 = arith.constant dense<0.000000e+00> : vector<100x16xf32>
    %82 = tpu.matmul %79, %81, %cst_42 {dimension_numbers = #tpu.dot_dimension_numbers<[1], [0], [0], [1], [0, 0, 1, 1], [], []>} : vector<100x8xbf16>, vector<8x16xbf16>, vector<100x16xf32> -> vector<100x16xf32>
    %83 = arith.truncf %78 : vector<100x8xf32> to vector<100x8xbf16>
    %c0_43 = arith.constant 0 : index
    %c0_44 = arith.constant 0 : index
    %84 = vector.load %arg8[%c0_43, %c0_44] : memref<8x16xf32, #tpu.memory_space<vmem>>, vector<8x16xf32>
    %85 = arith.truncf %84 : vector<8x16xf32> to vector<8x16xbf16>
    %cst_45 = arith.constant dense<0.000000e+00> : vector<100x16xf32>
    %86 = tpu.matmul %83, %85, %cst_45 {dimension_numbers = #tpu.dot_dimension_numbers<[1], [0], [0], [1], [0, 0, 1, 1], [], []>} : vector<100x8xbf16>, vector<8x16xbf16>, vector<100x16xf32> -> vector<100x16xf32>
    %87 = arith.addf %82, %86 : vector<100x16xf32>
    %c0_46 = arith.constant 0 : index
    %c0_47 = arith.constant 0 : index
    %88 = vector.load %arg9[%c0_46, %c0_47] : memref<1x16xf32, #tpu.memory_space<vmem>>, vector<1x16xf32>
    %89 = vector.broadcast %88 : vector<1x16xf32> to vector<100x16xf32>
    %90 = arith.addf %87, %89 : vector<100x16xf32>
    %cst_48 = arith.constant 0.000000e+00 : f32
    %91 = vector.broadcast %cst_48 : f32 to vector<100x16xf32>
    %92 = arith.maximumf %90, %91 : vector<100x16xf32>
    %93 = arith.truncf %92 : vector<100x16xf32> to vector<100x16xbf16>
    %c0_49 = arith.constant 0 : index
    %c0_50 = arith.constant 0 : index
    %94 = vector.load %arg10[%c0_49, %c0_50] : memref<16x16xf32, #tpu.memory_space<vmem>>, vector<16x16xf32>
    %95 = arith.truncf %94 : vector<16x16xf32> to vector<16x16xbf16>
    %cst_51 = arith.constant dense<0.000000e+00> : vector<100x16xf32>
    %96 = tpu.matmul %93, %95, %cst_51 {dimension_numbers = #tpu.dot_dimension_numbers<[1], [0], [0], [1], [0, 0, 1, 1], [], []>} : vector<100x16xbf16>, vector<16x16xbf16>, vector<100x16xf32> -> vector<100x16xf32>
    %c0_52 = arith.constant 0 : index
    %c0_53 = arith.constant 0 : index
    %97 = vector.load %arg11[%c0_52, %c0_53] : memref<1x16xf32, #tpu.memory_space<vmem>>, vector<1x16xf32>
    %98 = vector.broadcast %97 : vector<1x16xf32> to vector<100x16xf32>
    %99 = arith.addf %96, %98 : vector<100x16xf32>
    %cst_54 = arith.constant 0.000000e+00 : f32
    %100 = vector.broadcast %cst_54 : f32 to vector<100x16xf32>
    %101 = arith.maximumf %99, %100 : vector<100x16xf32>
    %c0_55 = arith.constant 0 : index
    %c0_56 = arith.constant 0 : index
    %c0_57 = arith.constant 0 : index
    %102 = vector.load %arg12[%c0_55, %c0_56, %c0_57] : memref<1x100x16xf32, #tpu.memory_space<vmem>>, vector<1x100x16xf32>
    %103 = vector.shape_cast %102 : vector<1x100x16xf32> to vector<100x16xf32>
    %104 = vector.shape_cast %101 : vector<100x16xf32> to vector<1x100x16xf32>
    tpu.vector_store %arg12[%c0_55, %c0_56, %c0_57], %104 {strides = array<i32>} : memref<1x100x16xf32, #tpu.memory_space<vmem>>, vector<1x100x16xf32>,
    return
  }
  func.func @transform_0(%arg0: i32) -> (i32, i32, i32) {
    %c0_i32 = arith.constant 0 : i32
    %c0_i32_0 = arith.constant 0 : i32
    %c0_i32_1 = arith.constant 0 : i32
    return %arg0, %c0_i32, %c0_i32_0 : i32, i32, i32
  }
  func.func @transform_1(%arg0: i32) -> (i32, i32, i32) {
    %c0_i32 = arith.constant 0 : i32
    %c0_i32_0 = arith.constant 0 : i32
    %c0_i32_1 = arith.constant 0 : i32
    return %arg0, %c0_i32, %c0_i32_0 : i32, i32, i32
  }
  func.func @transform_2(%arg0: i32) -> (i32, i32, i32) {
    %c0_i32 = arith.constant 0 : i32
    %c0_i32_0 = arith.constant 0 : i32
    %c0_i32_1 = arith.constant 0 : i32
    %c0_i32_2 = arith.constant 0 : i32
    return %c0_i32, %c0_i32_0, %c0_i32_1 : i32, i32, i32
  }
  func.func @transform_3(%arg0: i32) -> (i32, i32) {
    %c0_i32 = arith.constant 0 : i32
    %c0_i32_0 = arith.constant 0 : i32
    %c0_i32_1 = arith.constant 0 : i32
    return %c0_i32, %c0_i32_0 : i32, i32
  }
  func.func @transform_4(%arg0: i32) -> (i32, i32) {
    %c0_i32 = arith.constant 0 : i32
    %c0_i32_0 = arith.constant 0 : i32
    %c0_i32_1 = arith.constant 0 : i32
    return %c0_i32, %c0_i32_0 : i32, i32
  }
  func.func @transform_5(%arg0: i32) -> (i32, i32) {
    %c0_i32 = arith.constant 0 : i32
    %c0_i32_0 = arith.constant 0 : i32
    %c0_i32_1 = arith.constant 0 : i32
    return %c0_i32, %c0_i32_0 : i32, i32
  }
  func.func @transform_6(%arg0: i32) -> (i32, i32) {
    %c0_i32 = arith.constant 0 : i32
    %c0_i32_0 = arith.constant 0 : i32
    %c0_i32_1 = arith.constant 0 : i32
    return %c0_i32, %c0_i32_0 : i32, i32
  }
  func.func @transform_7(%arg0: i32) -> (i32, i32) {
    %c0_i32 = arith.constant 0 : i32
    %c0_i32_0 = arith.constant 0 : i32
    %c0_i32_1 = arith.constant 0 : i32
    return %c0_i32, %c0_i32_0 : i32, i32
  }
  func.func @transform_8(%arg0: i32) -> (i32, i32) {
    %c0_i32 = arith.constant 0 : i32
    %c0_i32_0 = arith.constant 0 : i32
    %c0_i32_1 = arith.constant 0 : i32
    return %c0_i32, %c0_i32_0 : i32, i32
  }
  func.func @transform_9(%arg0: i32) -> (i32, i32) {
    %c0_i32 = arith.constant 0 : i32
    %c0_i32_0 = arith.constant 0 : i32
    %c0_i32_1 = arith.constant 0 : i32
    return %c0_i32, %c0_i32_0 : i32, i32
  }
  func.func @transform_10(%arg0: i32) -> (i32, i32) {
    %c0_i32 = arith.constant 0 : i32
    %c0_i32_0 = arith.constant 0 : i32
    %c0_i32_1 = arith.constant 0 : i32
    return %c0_i32, %c0_i32_0 : i32, i32
  }
  func.func @transform_11(%arg0: i32) -> (i32, i32, i32) {
    %c0_i32 = arith.constant 0 : i32
    %c0_i32_0 = arith.constant 0 : i32
    %c0_i32_1 = arith.constant 0 : i32
    return %arg0, %c0_i32, %c0_i32_0 : i32, i32, i32
  }
}

module attributes {stable_mosaic.version = 11 : i64} {
  func.func @_matmul_bias_relu_kernel(%arg0: i32, %arg1: i32, %arg2: memref<1x16x144xf32, #tpu.memory_space<vmem>>, %arg3: memref<144x32xf32, #tpu.memory_space<vmem>>, %arg4: memref<1x32xf32, #tpu.memory_space<vmem>>, %arg5: memref<1x16x32xf32, #tpu.memory_space<vmem>>) attributes {dimension_semantics = [#tpu.dimension_semantics<parallel>, #tpu.dimension_semantics<parallel>], iteration_bounds = array<i64: 2, 1>, scalar_prefetch = 0 : i64, scratch_operands = 0 : i64, tpu.core_type = #tpu.core_type<tc>, window_params = [{transform_indices = @transform_0, window_bounds = array<i64: 1, 16, 144>}, {pipeline_mode = #tpu.pipeline_mode<synchronous>, transform_indices = @transform_1, window_bounds = array<i64: 144, 32>}, {pipeline_mode = #tpu.pipeline_mode<synchronous>, transform_indices = @transform_2, window_bounds = array<i64: 1, 32>}, {transform_indices = @transform_3, window_bounds = array<i64: 1, 16, 32>}]} {
    %c0 = arith.constant 0 : index
    %c0_0 = arith.constant 0 : index
    %c0_1 = arith.constant 0 : index
    %0 = vector.load %arg2[%c0, %c0_0, %c0_1] : memref<1x16x144xf32, #tpu.memory_space<vmem>>, vector<1x16x144xf32>
    %1 = vector.shape_cast %0 : vector<1x16x144xf32> to vector<16x144xf32>
    %2 = arith.truncf %1 : vector<16x144xf32> to vector<16x144xbf16>
    %c0_2 = arith.constant 0 : index
    %c0_3 = arith.constant 0 : index
    %3 = vector.load %arg3[%c0_2, %c0_3] : memref<144x32xf32, #tpu.memory_space<vmem>>, vector<144x32xf32>
    %4 = arith.truncf %3 : vector<144x32xf32> to vector<144x32xbf16>
    %cst = arith.constant dense<0.000000e+00> : vector<16x32xf32>
    %5 = tpu.matmul %2, %4, %cst {dimension_numbers = #tpu.dot_dimension_numbers<[1], [0], [0], [1], [0, 0, 1, 1], [], []>} : vector<16x144xbf16>, vector<144x32xbf16>, vector<16x32xf32> -> vector<16x32xf32>
    %c0_4 = arith.constant 0 : index
    %c0_5 = arith.constant 0 : index
    %6 = vector.load %arg4[%c0_4, %c0_5] : memref<1x32xf32, #tpu.memory_space<vmem>>, vector<1x32xf32>
    %7 = vector.broadcast %6 : vector<1x32xf32> to vector<16x32xf32>
    %8 = arith.addf %5, %7 : vector<16x32xf32>
    %cst_6 = arith.constant 0.000000e+00 : f32
    %9 = vector.broadcast %cst_6 : f32 to vector<16x32xf32>
    %10 = arith.maximumf %8, %9 : vector<16x32xf32>
    %c0_7 = arith.constant 0 : index
    %c0_8 = arith.constant 0 : index
    %c0_9 = arith.constant 0 : index
    %11 = vector.load %arg5[%c0_7, %c0_8, %c0_9] : memref<1x16x32xf32, #tpu.memory_space<vmem>>, vector<1x16x32xf32>
    %12 = vector.shape_cast %11 : vector<1x16x32xf32> to vector<16x32xf32>
    %13 = vector.shape_cast %10 : vector<16x32xf32> to vector<1x16x32xf32>
    tpu.vector_store %arg5[%c0_7, %c0_8, %c0_9], %13 {strides = array<i32>} : memref<1x16x32xf32, #tpu.memory_space<vmem>>, vector<1x16x32xf32>,
    return
  }
  func.func @transform_0(%arg0: i32, %arg1: i32) -> (i32, i32, i32) {
    %c0_i32 = arith.constant 0 : i32
    %c0_i32_0 = arith.constant 0 : i32
    return %arg0, %arg1, %c0_i32 : i32, i32, i32
  }
  func.func @transform_1(%arg0: i32, %arg1: i32) -> (i32, i32) {
    %c0_i32 = arith.constant 0 : i32
    %c0_i32_0 = arith.constant 0 : i32
    %c0_i32_1 = arith.constant 0 : i32
    return %c0_i32, %c0_i32_0 : i32, i32
  }
  func.func @transform_2(%arg0: i32, %arg1: i32) -> (i32, i32) {
    %c0_i32 = arith.constant 0 : i32
    %c0_i32_0 = arith.constant 0 : i32
    %c0_i32_1 = arith.constant 0 : i32
    return %c0_i32, %c0_i32_0 : i32, i32
  }
  func.func @transform_3(%arg0: i32, %arg1: i32) -> (i32, i32, i32) {
    %c0_i32 = arith.constant 0 : i32
    %c0_i32_0 = arith.constant 0 : i32
    return %arg0, %arg1, %c0_i32 : i32, i32, i32
  }
}

module attributes {stable_mosaic.version = 11 : i64} {
  func.func @_fasternet_block_kernel(%arg0: i32, %arg1: memref<1x50x16xf32, #tpu.memory_space<vmem>>, %arg2: memref<1x36x16xf32, #tpu.memory_space<vmem>>, %arg3: memref<9x16x16xf32, #tpu.memory_space<vmem>>, %arg4: memref<1x16xf32, #tpu.memory_space<vmem>>, %arg5: memref<1x16xf32, #tpu.memory_space<vmem>>, %arg6: memref<1x16xf32, #tpu.memory_space<vmem>>, %arg7: memref<16x32xf32, #tpu.memory_space<vmem>>, %arg8: memref<16x32xf32, #tpu.memory_space<vmem>>, %arg9: memref<1x32xf32, #tpu.memory_space<vmem>>, %arg10: memref<32x32xf32, #tpu.memory_space<vmem>>, %arg11: memref<1x32xf32, #tpu.memory_space<vmem>>, %arg12: memref<1x36x32xf32, #tpu.memory_space<vmem>>) attributes {dimension_semantics = [#tpu.dimension_semantics<parallel>], iteration_bounds = array<i64: 2>, scalar_prefetch = 0 : i64, scratch_operands = 0 : i64, tpu.core_type = #tpu.core_type<tc>, window_params = [{transform_indices = @transform_0, window_bounds = array<i64: 1, 50, 16>}, {transform_indices = @transform_1, window_bounds = array<i64: 1, 36, 16>}, {pipeline_mode = #tpu.pipeline_mode<synchronous>, transform_indices = @transform_2, window_bounds = array<i64: 9, 16, 16>}, {pipeline_mode = #tpu.pipeline_mode<synchronous>, transform_indices = @transform_3, window_bounds = array<i64: 1, 16>}, {pipeline_mode = #tpu.pipeline_mode<synchronous>, transform_indices = @transform_4, window_bounds = array<i64: 1, 16>}, {pipeline_mode = #tpu.pipeline_mode<synchronous>, transform_indices = @transform_5, window_bounds = array<i64: 1, 16>}, {pipeline_mode = #tpu.pipeline_mode<synchronous>, transform_indices = @transform_6, window_bounds = array<i64: 16, 32>}, {pipeline_mode = #tpu.pipeline_mode<synchronous>, transform_indices = @transform_7, window_bounds = array<i64: 16, 32>}, {pipeline_mode = #tpu.pipeline_mode<synchronous>, transform_indices = @transform_8, window_bounds = array<i64: 1, 32>}, {pipeline_mode = #tpu.pipeline_mode<synchronous>, transform_indices = @transform_9, window_bounds = array<i64: 32, 32>}, {pipeline_mode = #tpu.pipeline_mode<synchronous>, transform_indices = @transform_10, window_bounds = array<i64: 1, 32>}, {transform_indices = @transform_11, window_bounds = array<i64: 1, 36, 32>}]} {
    %c0 = arith.constant 0 : index
    %c0_0 = arith.constant 0 : index
    %c0_1 = arith.constant 0 : index
    %0 = vector.load %arg1[%c0, %c0_0, %c0_1] : memref<1x50x16xf32, #tpu.memory_space<vmem>>, vector<1x50x16xf32>
    %1 = vector.shape_cast %0 : vector<1x50x16xf32> to vector<50x16xf32>
    %2 = vector.extract_strided_slice %1 {offsets = [0, 0], sizes = [36, 16], strides = [1, 1]} : vector<50x16xf32> to vector<36x16xf32>
    %3 = arith.truncf %2 : vector<36x16xf32> to vector<36x16xbf16>
    %c0_2 = arith.constant 0 : index
    %c0_3 = arith.constant 0 : index
    %c0_4 = arith.constant 0 : index
    %4 = vector.load %arg3[%c0_2, %c0_3, %c0_4] : memref<9x16x16xf32, #tpu.memory_space<vmem>>, vector<1x16x16xf32>
    %5 = vector.shape_cast %4 : vector<1x16x16xf32> to vector<16x16xf32>
    %6 = arith.truncf %5 : vector<16x16xf32> to vector<16x16xbf16>
    %cst = arith.constant dense<0.000000e+00> : vector<36x16xf32>
    %7 = tpu.matmul %3, %6, %cst {dimension_numbers = #tpu.dot_dimension_numbers<[1], [0], [0], [1], [0, 0, 1, 1], [], []>} : vector<36x16xbf16>, vector<16x16xbf16>, vector<36x16xf32> -> vector<36x16xf32>
    %8 = vector.extract_strided_slice %1 {offsets = [1, 0], sizes = [36, 16], strides = [1, 1]} : vector<50x16xf32> to vector<36x16xf32>
    %9 = arith.truncf %8 : vector<36x16xf32> to vector<36x16xbf16>
    %c1 = arith.constant 1 : index
    %c0_5 = arith.constant 0 : index
    %c0_6 = arith.constant 0 : index
    %10 = vector.load %arg3[%c1, %c0_5, %c0_6] : memref<9x16x16xf32, #tpu.memory_space<vmem>>, vector<1x16x16xf32>
    %11 = vector.shape_cast %10 : vector<1x16x16xf32> to vector<16x16xf32>
    %12 = arith.truncf %11 : vector<16x16xf32> to vector<16x16xbf16>
    %cst_7 = arith.constant dense<0.000000e+00> : vector<36x16xf32>
    %13 = tpu.matmul %9, %12, %cst_7 {dimension_numbers = #tpu.dot_dimension_numbers<[1], [0], [0], [1], [0, 0, 1, 1], [], []>} : vector<36x16xbf16>, vector<16x16xbf16>, vector<36x16xf32> -> vector<36x16xf32>
    %14 = arith.addf %7, %13 : vector<36x16xf32>
    %15 = vector.extract_strided_slice %1 {offsets = [2, 0], sizes = [36, 16], strides = [1, 1]} : vector<50x16xf32> to vector<36x16xf32>
    %16 = arith.truncf %15 : vector<36x16xf32> to vector<36x16xbf16>
    %c2 = arith.constant 2 : index
    %c0_8 = arith.constant 0 : index
    %c0_9 = arith.constant 0 : index
    %17 = vector.load %arg3[%c2, %c0_8, %c0_9] : memref<9x16x16xf32, #tpu.memory_space<vmem>>, vector<1x16x16xf32>
    %18 = vector.shape_cast %17 : vector<1x16x16xf32> to vector<16x16xf32>
    %19 = arith.truncf %18 : vector<16x16xf32> to vector<16x16xbf16>
    %cst_10 = arith.constant dense<0.000000e+00> : vector<36x16xf32>
    %20 = tpu.matmul %16, %19, %cst_10 {dimension_numbers = #tpu.dot_dimension_numbers<[1], [0], [0], [1], [0, 0, 1, 1], [], []>} : vector<36x16xbf16>, vector<16x16xbf16>, vector<36x16xf32> -> vector<36x16xf32>
    %21 = arith.addf %14, %20 : vector<36x16xf32>
    %22 = vector.extract_strided_slice %1 {offsets = [6, 0], sizes = [36, 16], strides = [1, 1]} : vector<50x16xf32> to vector<36x16xf32>
    %23 = arith.truncf %22 : vector<36x16xf32> to vector<36x16xbf16>
    %c3 = arith.constant 3 : index
    %c0_11 = arith.constant 0 : index
    %c0_12 = arith.constant 0 : index
    %24 = vector.load %arg3[%c3, %c0_11, %c0_12] : memref<9x16x16xf32, #tpu.memory_space<vmem>>, vector<1x16x16xf32>
    %25 = vector.shape_cast %24 : vector<1x16x16xf32> to vector<16x16xf32>
    %26 = arith.truncf %25 : vector<16x16xf32> to vector<16x16xbf16>
    %cst_13 = arith.constant dense<0.000000e+00> : vector<36x16xf32>
    %27 = tpu.matmul %23, %26, %cst_13 {dimension_numbers = #tpu.dot_dimension_numbers<[1], [0], [0], [1], [0, 0, 1, 1], [], []>} : vector<36x16xbf16>, vector<16x16xbf16>, vector<36x16xf32> -> vector<36x16xf32>
    %28 = arith.addf %21, %27 : vector<36x16xf32>
    %29 = vector.extract_strided_slice %1 {offsets = [7, 0], sizes = [36, 16], strides = [1, 1]} : vector<50x16xf32> to vector<36x16xf32>
    %30 = arith.truncf %29 : vector<36x16xf32> to vector<36x16xbf16>
    %c4 = arith.constant 4 : index
    %c0_14 = arith.constant 0 : index
    %c0_15 = arith.constant 0 : index
    %31 = vector.load %arg3[%c4, %c0_14, %c0_15] : memref<9x16x16xf32, #tpu.memory_space<vmem>>, vector<1x16x16xf32>
    %32 = vector.shape_cast %31 : vector<1x16x16xf32> to vector<16x16xf32>
    %33 = arith.truncf %32 : vector<16x16xf32> to vector<16x16xbf16>
    %cst_16 = arith.constant dense<0.000000e+00> : vector<36x16xf32>
    %34 = tpu.matmul %30, %33, %cst_16 {dimension_numbers = #tpu.dot_dimension_numbers<[1], [0], [0], [1], [0, 0, 1, 1], [], []>} : vector<36x16xbf16>, vector<16x16xbf16>, vector<36x16xf32> -> vector<36x16xf32>
    %35 = arith.addf %28, %34 : vector<36x16xf32>
    %36 = vector.extract_strided_slice %1 {offsets = [8, 0], sizes = [36, 16], strides = [1, 1]} : vector<50x16xf32> to vector<36x16xf32>
    %37 = arith.truncf %36 : vector<36x16xf32> to vector<36x16xbf16>
    %c5 = arith.constant 5 : index
    %c0_17 = arith.constant 0 : index
    %c0_18 = arith.constant 0 : index
    %38 = vector.load %arg3[%c5, %c0_17, %c0_18] : memref<9x16x16xf32, #tpu.memory_space<vmem>>, vector<1x16x16xf32>
    %39 = vector.shape_cast %38 : vector<1x16x16xf32> to vector<16x16xf32>
    %40 = arith.truncf %39 : vector<16x16xf32> to vector<16x16xbf16>
    %cst_19 = arith.constant dense<0.000000e+00> : vector<36x16xf32>
    %41 = tpu.matmul %37, %40, %cst_19 {dimension_numbers = #tpu.dot_dimension_numbers<[1], [0], [0], [1], [0, 0, 1, 1], [], []>} : vector<36x16xbf16>, vector<16x16xbf16>, vector<36x16xf32> -> vector<36x16xf32>
    %42 = arith.addf %35, %41 : vector<36x16xf32>
    %43 = vector.extract_strided_slice %1 {offsets = [12, 0], sizes = [36, 16], strides = [1, 1]} : vector<50x16xf32> to vector<36x16xf32>
    %44 = arith.truncf %43 : vector<36x16xf32> to vector<36x16xbf16>
    %c6 = arith.constant 6 : index
    %c0_20 = arith.constant 0 : index
    %c0_21 = arith.constant 0 : index
    %45 = vector.load %arg3[%c6, %c0_20, %c0_21] : memref<9x16x16xf32, #tpu.memory_space<vmem>>, vector<1x16x16xf32>
    %46 = vector.shape_cast %45 : vector<1x16x16xf32> to vector<16x16xf32>
    %47 = arith.truncf %46 : vector<16x16xf32> to vector<16x16xbf16>
    %cst_22 = arith.constant dense<0.000000e+00> : vector<36x16xf32>
    %48 = tpu.matmul %44, %47, %cst_22 {dimension_numbers = #tpu.dot_dimension_numbers<[1], [0], [0], [1], [0, 0, 1, 1], [], []>} : vector<36x16xbf16>, vector<16x16xbf16>, vector<36x16xf32> -> vector<36x16xf32>
    %49 = arith.addf %42, %48 : vector<36x16xf32>
    %50 = vector.extract_strided_slice %1 {offsets = [13, 0], sizes = [36, 16], strides = [1, 1]} : vector<50x16xf32> to vector<36x16xf32>
    %51 = arith.truncf %50 : vector<36x16xf32> to vector<36x16xbf16>
    %c7 = arith.constant 7 : index
    %c0_23 = arith.constant 0 : index
    %c0_24 = arith.constant 0 : index
    %52 = vector.load %arg3[%c7, %c0_23, %c0_24] : memref<9x16x16xf32, #tpu.memory_space<vmem>>, vector<1x16x16xf32>
    %53 = vector.shape_cast %52 : vector<1x16x16xf32> to vector<16x16xf32>
    %54 = arith.truncf %53 : vector<16x16xf32> to vector<16x16xbf16>
    %cst_25 = arith.constant dense<0.000000e+00> : vector<36x16xf32>
    %55 = tpu.matmul %51, %54, %cst_25 {dimension_numbers = #tpu.dot_dimension_numbers<[1], [0], [0], [1], [0, 0, 1, 1], [], []>} : vector<36x16xbf16>, vector<16x16xbf16>, vector<36x16xf32> -> vector<36x16xf32>
    %56 = arith.addf %49, %55 : vector<36x16xf32>
    %57 = vector.extract_strided_slice %1 {offsets = [14, 0], sizes = [36, 16], strides = [1, 1]} : vector<50x16xf32> to vector<36x16xf32>
    %58 = arith.truncf %57 : vector<36x16xf32> to vector<36x16xbf16>
    %c8 = arith.constant 8 : index
    %c0_26 = arith.constant 0 : index
    %c0_27 = arith.constant 0 : index
    %59 = vector.load %arg3[%c8, %c0_26, %c0_27] : memref<9x16x16xf32, #tpu.memory_space<vmem>>, vector<1x16x16xf32>
    %60 = vector.shape_cast %59 : vector<1x16x16xf32> to vector<16x16xf32>
    %61 = arith.truncf %60 : vector<16x16xf32> to vector<16x16xbf16>
    %cst_28 = arith.constant dense<0.000000e+00> : vector<36x16xf32>
    %62 = tpu.matmul %58, %61, %cst_28 {dimension_numbers = #tpu.dot_dimension_numbers<[1], [0], [0], [1], [0, 0, 1, 1], [], []>} : vector<36x16xbf16>, vector<16x16xbf16>, vector<36x16xf32> -> vector<36x16xf32>
    %63 = arith.addf %56, %62 : vector<36x16xf32>
    %c0_29 = arith.constant 0 : index
    %c0_30 = arith.constant 0 : index
    %64 = vector.load %arg4[%c0_29, %c0_30] : memref<1x16xf32, #tpu.memory_space<vmem>>, vector<1x16xf32>
    %65 = vector.broadcast %64 : vector<1x16xf32> to vector<36x16xf32>
    %66 = arith.addf %63, %65 : vector<36x16xf32>
    %cst_31 = arith.constant 0.000000e+00 : f32
    %67 = vector.broadcast %cst_31 : f32 to vector<36x16xf32>
    %68 = arith.maximumf %66, %67 : vector<36x16xf32>
    %c0_32 = arith.constant 0 : index
    %c0_33 = arith.constant 0 : index
    %c0_34 = arith.constant 0 : index
    %69 = vector.load %arg2[%c0_32, %c0_33, %c0_34] : memref<1x36x16xf32, #tpu.memory_space<vmem>>, vector<1x36x16xf32>
    %70 = vector.shape_cast %69 : vector<1x36x16xf32> to vector<36x16xf32>
    %c0_35 = arith.constant 0 : index
    %c0_36 = arith.constant 0 : index
    %71 = vector.load %arg5[%c0_35, %c0_36] : memref<1x16xf32, #tpu.memory_space<vmem>>, vector<1x16xf32>
    %72 = vector.broadcast %71 : vector<1x16xf32> to vector<36x16xf32>
    %73 = arith.mulf %70, %72 : vector<36x16xf32>
    %c0_37 = arith.constant 0 : index
    %c0_38 = arith.constant 0 : index
    %74 = vector.load %arg6[%c0_37, %c0_38] : memref<1x16xf32, #tpu.memory_space<vmem>>, vector<1x16xf32>
    %75 = vector.broadcast %74 : vector<1x16xf32> to vector<36x16xf32>
    %76 = arith.addf %73, %75 : vector<36x16xf32>
    %cst_39 = arith.constant 0.000000e+00 : f32
    %77 = vector.broadcast %cst_39 : f32 to vector<36x16xf32>
    %78 = arith.maximumf %76, %77 : vector<36x16xf32>
    %79 = arith.truncf %68 : vector<36x16xf32> to vector<36x16xbf16>
    %c0_40 = arith.constant 0 : index
    %c0_41 = arith.constant 0 : index
    %80 = vector.load %arg7[%c0_40, %c0_41] : memref<16x32xf32, #tpu.memory_space<vmem>>, vector<16x32xf32>
    %81 = arith.truncf %80 : vector<16x32xf32> to vector<16x32xbf16>
    %cst_42 = arith.constant dense<0.000000e+00> : vector<36x32xf32>
    %82 = tpu.matmul %79, %81, %cst_42 {dimension_numbers = #tpu.dot_dimension_numbers<[1], [0], [0], [1], [0, 0, 1, 1], [], []>} : vector<36x16xbf16>, vector<16x32xbf16>, vector<36x32xf32> -> vector<36x32xf32>
    %83 = arith.truncf %78 : vector<36x16xf32> to vector<36x16xbf16>
    %c0_43 = arith.constant 0 : index
    %c0_44 = arith.constant 0 : index
    %84 = vector.load %arg8[%c0_43, %c0_44] : memref<16x32xf32, #tpu.memory_space<vmem>>, vector<16x32xf32>
    %85 = arith.truncf %84 : vector<16x32xf32> to vector<16x32xbf16>
    %cst_45 = arith.constant dense<0.000000e+00> : vector<36x32xf32>
    %86 = tpu.matmul %83, %85, %cst_45 {dimension_numbers = #tpu.dot_dimension_numbers<[1], [0], [0], [1], [0, 0, 1, 1], [], []>} : vector<36x16xbf16>, vector<16x32xbf16>, vector<36x32xf32> -> vector<36x32xf32>
    %87 = arith.addf %82, %86 : vector<36x32xf32>
    %c0_46 = arith.constant 0 : index
    %c0_47 = arith.constant 0 : index
    %88 = vector.load %arg9[%c0_46, %c0_47] : memref<1x32xf32, #tpu.memory_space<vmem>>, vector<1x32xf32>
    %89 = vector.broadcast %88 : vector<1x32xf32> to vector<36x32xf32>
    %90 = arith.addf %87, %89 : vector<36x32xf32>
    %cst_48 = arith.constant 0.000000e+00 : f32
    %91 = vector.broadcast %cst_48 : f32 to vector<36x32xf32>
    %92 = arith.maximumf %90, %91 : vector<36x32xf32>
    %93 = arith.truncf %92 : vector<36x32xf32> to vector<36x32xbf16>
    %c0_49 = arith.constant 0 : index
    %c0_50 = arith.constant 0 : index
    %94 = vector.load %arg10[%c0_49, %c0_50] : memref<32x32xf32, #tpu.memory_space<vmem>>, vector<32x32xf32>
    %95 = arith.truncf %94 : vector<32x32xf32> to vector<32x32xbf16>
    %cst_51 = arith.constant dense<0.000000e+00> : vector<36x32xf32>
    %96 = tpu.matmul %93, %95, %cst_51 {dimension_numbers = #tpu.dot_dimension_numbers<[1], [0], [0], [1], [0, 0, 1, 1], [], []>} : vector<36x32xbf16>, vector<32x32xbf16>, vector<36x32xf32> -> vector<36x32xf32>
    %c0_52 = arith.constant 0 : index
    %c0_53 = arith.constant 0 : index
    %97 = vector.load %arg11[%c0_52, %c0_53] : memref<1x32xf32, #tpu.memory_space<vmem>>, vector<1x32xf32>
    %98 = vector.broadcast %97 : vector<1x32xf32> to vector<36x32xf32>
    %99 = arith.addf %96, %98 : vector<36x32xf32>
    %cst_54 = arith.constant 0.000000e+00 : f32
    %100 = vector.broadcast %cst_54 : f32 to vector<36x32xf32>
    %101 = arith.maximumf %99, %100 : vector<36x32xf32>
    %c0_55 = arith.constant 0 : index
    %c0_56 = arith.constant 0 : index
    %c0_57 = arith.constant 0 : index
    %102 = vector.load %arg12[%c0_55, %c0_56, %c0_57] : memref<1x36x32xf32, #tpu.memory_space<vmem>>, vector<1x36x32xf32>
    %103 = vector.shape_cast %102 : vector<1x36x32xf32> to vector<36x32xf32>
    %104 = vector.shape_cast %101 : vector<36x32xf32> to vector<1x36x32xf32>
    tpu.vector_store %arg12[%c0_55, %c0_56, %c0_57], %104 {strides = array<i32>} : memref<1x36x32xf32, #tpu.memory_space<vmem>>, vector<1x36x32xf32>,
    return
  }
  func.func @transform_0(%arg0: i32) -> (i32, i32, i32) {
    %c0_i32 = arith.constant 0 : i32
    %c0_i32_0 = arith.constant 0 : i32
    %c0_i32_1 = arith.constant 0 : i32
    return %arg0, %c0_i32, %c0_i32_0 : i32, i32, i32
  }
  func.func @transform_1(%arg0: i32) -> (i32, i32, i32) {
    %c0_i32 = arith.constant 0 : i32
    %c0_i32_0 = arith.constant 0 : i32
    %c0_i32_1 = arith.constant 0 : i32
    return %arg0, %c0_i32, %c0_i32_0 : i32, i32, i32
  }
  func.func @transform_2(%arg0: i32) -> (i32, i32, i32) {
    %c0_i32 = arith.constant 0 : i32
    %c0_i32_0 = arith.constant 0 : i32
    %c0_i32_1 = arith.constant 0 : i32
    %c0_i32_2 = arith.constant 0 : i32
    return %c0_i32, %c0_i32_0, %c0_i32_1 : i32, i32, i32
  }
  func.func @transform_3(%arg0: i32) -> (i32, i32) {
    %c0_i32 = arith.constant 0 : i32
    %c0_i32_0 = arith.constant 0 : i32
    %c0_i32_1 = arith.constant 0 : i32
    return %c0_i32, %c0_i32_0 : i32, i32
  }
  func.func @transform_4(%arg0: i32) -> (i32, i32) {
    %c0_i32 = arith.constant 0 : i32
    %c0_i32_0 = arith.constant 0 : i32
    %c0_i32_1 = arith.constant 0 : i32
    return %c0_i32, %c0_i32_0 : i32, i32
  }
  func.func @transform_5(%arg0: i32) -> (i32, i32) {
    %c0_i32 = arith.constant 0 : i32
    %c0_i32_0 = arith.constant 0 : i32
    %c0_i32_1 = arith.constant 0 : i32
    return %c0_i32, %c0_i32_0 : i32, i32
  }
  func.func @transform_6(%arg0: i32) -> (i32, i32) {
    %c0_i32 = arith.constant 0 : i32
    %c0_i32_0 = arith.constant 0 : i32
    %c0_i32_1 = arith.constant 0 : i32
    return %c0_i32, %c0_i32_0 : i32, i32
  }
  func.func @transform_7(%arg0: i32) -> (i32, i32) {
    %c0_i32 = arith.constant 0 : i32
    %c0_i32_0 = arith.constant 0 : i32
    %c0_i32_1 = arith.constant 0 : i32
    return %c0_i32, %c0_i32_0 : i32, i32
  }
  func.func @transform_8(%arg0: i32) -> (i32, i32) {
    %c0_i32 = arith.constant 0 : i32
    %c0_i32_0 = arith.constant 0 : i32
    %c0_i32_1 = arith.constant 0 : i32
    return %c0_i32, %c0_i32_0 : i32, i32
  }
  func.func @transform_9(%arg0: i32) -> (i32, i32) {
    %c0_i32 = arith.constant 0 : i32
    %c0_i32_0 = arith.constant 0 : i32
    %c0_i32_1 = arith.constant 0 : i32
    return %c0_i32, %c0_i32_0 : i32, i32
  }
  func.func @transform_10(%arg0: i32) -> (i32, i32) {
    %c0_i32 = arith.constant 0 : i32
    %c0_i32_0 = arith.constant 0 : i32
    %c0_i32_1 = arith.constant 0 : i32
    return %c0_i32, %c0_i32_0 : i32, i32
  }
  func.func @transform_11(%arg0: i32) -> (i32, i32, i32) {
    %c0_i32 = arith.constant 0 : i32
    %c0_i32_0 = arith.constant 0 : i32
    %c0_i32_1 = arith.constant 0 : i32
    return %arg0, %c0_i32, %c0_i32_0 : i32, i32, i32
  }
}

module attributes {stable_mosaic.version = 11 : i64} {
  func.func @_matmul_bias_relu_kernel(%arg0: i32, %arg1: i32, %arg2: memref<1x4x288xf32, #tpu.memory_space<vmem>>, %arg3: memref<288x64xf32, #tpu.memory_space<vmem>>, %arg4: memref<1x64xf32, #tpu.memory_space<vmem>>, %arg5: memref<1x4x64xf32, #tpu.memory_space<vmem>>) attributes {dimension_semantics = [#tpu.dimension_semantics<parallel>, #tpu.dimension_semantics<parallel>], iteration_bounds = array<i64: 2, 1>, scalar_prefetch = 0 : i64, scratch_operands = 0 : i64, tpu.core_type = #tpu.core_type<tc>, window_params = [{transform_indices = @transform_0, window_bounds = array<i64: 1, 4, 288>}, {pipeline_mode = #tpu.pipeline_mode<synchronous>, transform_indices = @transform_1, window_bounds = array<i64: 288, 64>}, {pipeline_mode = #tpu.pipeline_mode<synchronous>, transform_indices = @transform_2, window_bounds = array<i64: 1, 64>}, {transform_indices = @transform_3, window_bounds = array<i64: 1, 4, 64>}]} {
    %c0 = arith.constant 0 : index
    %c0_0 = arith.constant 0 : index
    %c0_1 = arith.constant 0 : index
    %0 = vector.load %arg2[%c0, %c0_0, %c0_1] : memref<1x4x288xf32, #tpu.memory_space<vmem>>, vector<1x4x288xf32>
    %1 = vector.shape_cast %0 : vector<1x4x288xf32> to vector<4x288xf32>
    %2 = arith.truncf %1 : vector<4x288xf32> to vector<4x288xbf16>
    %c0_2 = arith.constant 0 : index
    %c0_3 = arith.constant 0 : index
    %3 = vector.load %arg3[%c0_2, %c0_3] : memref<288x64xf32, #tpu.memory_space<vmem>>, vector<288x64xf32>
    %4 = arith.truncf %3 : vector<288x64xf32> to vector<288x64xbf16>
    %cst = arith.constant dense<0.000000e+00> : vector<4x64xf32>
    %5 = tpu.matmul %2, %4, %cst {dimension_numbers = #tpu.dot_dimension_numbers<[1], [0], [0], [1], [0, 0, 1, 1], [], []>} : vector<4x288xbf16>, vector<288x64xbf16>, vector<4x64xf32> -> vector<4x64xf32>
    %c0_4 = arith.constant 0 : index
    %c0_5 = arith.constant 0 : index
    %6 = vector.load %arg4[%c0_4, %c0_5] : memref<1x64xf32, #tpu.memory_space<vmem>>, vector<1x64xf32>
    %7 = vector.broadcast %6 : vector<1x64xf32> to vector<4x64xf32>
    %8 = arith.addf %5, %7 : vector<4x64xf32>
    %cst_6 = arith.constant 0.000000e+00 : f32
    %9 = vector.broadcast %cst_6 : f32 to vector<4x64xf32>
    %10 = arith.maximumf %8, %9 : vector<4x64xf32>
    %c0_7 = arith.constant 0 : index
    %c0_8 = arith.constant 0 : index
    %c0_9 = arith.constant 0 : index
    %11 = vector.load %arg5[%c0_7, %c0_8, %c0_9] : memref<1x4x64xf32, #tpu.memory_space<vmem>>, vector<1x4x64xf32>
    %12 = vector.shape_cast %11 : vector<1x4x64xf32> to vector<4x64xf32>
    %13 = vector.shape_cast %10 : vector<4x64xf32> to vector<1x4x64xf32>
    tpu.vector_store %arg5[%c0_7, %c0_8, %c0_9], %13 {strides = array<i32>} : memref<1x4x64xf32, #tpu.memory_space<vmem>>, vector<1x4x64xf32>,
    return
  }
  func.func @transform_0(%arg0: i32, %arg1: i32) -> (i32, i32, i32) {
    %c0_i32 = arith.constant 0 : i32
    %c0_i32_0 = arith.constant 0 : i32
    return %arg0, %arg1, %c0_i32 : i32, i32, i32
  }
  func.func @transform_1(%arg0: i32, %arg1: i32) -> (i32, i32) {
    %c0_i32 = arith.constant 0 : i32
    %c0_i32_0 = arith.constant 0 : i32
    %c0_i32_1 = arith.constant 0 : i32
    return %c0_i32, %c0_i32_0 : i32, i32
  }
  func.func @transform_2(%arg0: i32, %arg1: i32) -> (i32, i32) {
    %c0_i32 = arith.constant 0 : i32
    %c0_i32_0 = arith.constant 0 : i32
    %c0_i32_1 = arith.constant 0 : i32
    return %c0_i32, %c0_i32_0 : i32, i32
  }
  func.func @transform_3(%arg0: i32, %arg1: i32) -> (i32, i32, i32) {
    %c0_i32 = arith.constant 0 : i32
    %c0_i32_0 = arith.constant 0 : i32
    return %arg0, %arg1, %c0_i32 : i32, i32, i32
  }
}

module attributes {stable_mosaic.version = 11 : i64} {
  func.func @_fasternet_block_kernel(%arg0: i32, %arg1: memref<1x26x32xf32, #tpu.memory_space<vmem>>, %arg2: memref<1x16x32xf32, #tpu.memory_space<vmem>>, %arg3: memref<9x32x32xf32, #tpu.memory_space<vmem>>, %arg4: memref<1x32xf32, #tpu.memory_space<vmem>>, %arg5: memref<1x32xf32, #tpu.memory_space<vmem>>, %arg6: memref<1x32xf32, #tpu.memory_space<vmem>>, %arg7: memref<32x64xf32, #tpu.memory_space<vmem>>, %arg8: memref<32x64xf32, #tpu.memory_space<vmem>>, %arg9: memref<1x64xf32, #tpu.memory_space<vmem>>, %arg10: memref<64x64xf32, #tpu.memory_space<vmem>>, %arg11: memref<1x64xf32, #tpu.memory_space<vmem>>, %arg12: memref<1x16x64xf32, #tpu.memory_space<vmem>>) attributes {dimension_semantics = [#tpu.dimension_semantics<parallel>], iteration_bounds = array<i64: 2>, scalar_prefetch = 0 : i64, scratch_operands = 0 : i64, tpu.core_type = #tpu.core_type<tc>, window_params = [{transform_indices = @transform_0, window_bounds = array<i64: 1, 26, 32>}, {transform_indices = @transform_1, window_bounds = array<i64: 1, 16, 32>}, {pipeline_mode = #tpu.pipeline_mode<synchronous>, transform_indices = @transform_2, window_bounds = array<i64: 9, 32, 32>}, {pipeline_mode = #tpu.pipeline_mode<synchronous>, transform_indices = @transform_3, window_bounds = array<i64: 1, 32>}, {pipeline_mode = #tpu.pipeline_mode<synchronous>, transform_indices = @transform_4, window_bounds = array<i64: 1, 32>}, {pipeline_mode = #tpu.pipeline_mode<synchronous>, transform_indices = @transform_5, window_bounds = array<i64: 1, 32>}, {pipeline_mode = #tpu.pipeline_mode<synchronous>, transform_indices = @transform_6, window_bounds = array<i64: 32, 64>}, {pipeline_mode = #tpu.pipeline_mode<synchronous>, transform_indices = @transform_7, window_bounds = array<i64: 32, 64>}, {pipeline_mode = #tpu.pipeline_mode<synchronous>, transform_indices = @transform_8, window_bounds = array<i64: 1, 64>}, {pipeline_mode = #tpu.pipeline_mode<synchronous>, transform_indices = @transform_9, window_bounds = array<i64: 64, 64>}, {pipeline_mode = #tpu.pipeline_mode<synchronous>, transform_indices = @transform_10, window_bounds = array<i64: 1, 64>}, {transform_indices = @transform_11, window_bounds = array<i64: 1, 16, 64>}]} {
    %c0 = arith.constant 0 : index
    %c0_0 = arith.constant 0 : index
    %c0_1 = arith.constant 0 : index
    %0 = vector.load %arg1[%c0, %c0_0, %c0_1] : memref<1x26x32xf32, #tpu.memory_space<vmem>>, vector<1x26x32xf32>
    %1 = vector.shape_cast %0 : vector<1x26x32xf32> to vector<26x32xf32>
    %2 = vector.extract_strided_slice %1 {offsets = [0, 0], sizes = [16, 32], strides = [1, 1]} : vector<26x32xf32> to vector<16x32xf32>
    %3 = arith.truncf %2 : vector<16x32xf32> to vector<16x32xbf16>
    %c0_2 = arith.constant 0 : index
    %c0_3 = arith.constant 0 : index
    %c0_4 = arith.constant 0 : index
    %4 = vector.load %arg3[%c0_2, %c0_3, %c0_4] : memref<9x32x32xf32, #tpu.memory_space<vmem>>, vector<1x32x32xf32>
    %5 = vector.shape_cast %4 : vector<1x32x32xf32> to vector<32x32xf32>
    %6 = arith.truncf %5 : vector<32x32xf32> to vector<32x32xbf16>
    %cst = arith.constant dense<0.000000e+00> : vector<16x32xf32>
    %7 = tpu.matmul %3, %6, %cst {dimension_numbers = #tpu.dot_dimension_numbers<[1], [0], [0], [1], [0, 0, 1, 1], [], []>} : vector<16x32xbf16>, vector<32x32xbf16>, vector<16x32xf32> -> vector<16x32xf32>
    %8 = vector.extract_strided_slice %1 {offsets = [1, 0], sizes = [16, 32], strides = [1, 1]} : vector<26x32xf32> to vector<16x32xf32>
    %9 = arith.truncf %8 : vector<16x32xf32> to vector<16x32xbf16>
    %c1 = arith.constant 1 : index
    %c0_5 = arith.constant 0 : index
    %c0_6 = arith.constant 0 : index
    %10 = vector.load %arg3[%c1, %c0_5, %c0_6] : memref<9x32x32xf32, #tpu.memory_space<vmem>>, vector<1x32x32xf32>
    %11 = vector.shape_cast %10 : vector<1x32x32xf32> to vector<32x32xf32>
    %12 = arith.truncf %11 : vector<32x32xf32> to vector<32x32xbf16>
    %cst_7 = arith.constant dense<0.000000e+00> : vector<16x32xf32>
    %13 = tpu.matmul %9, %12, %cst_7 {dimension_numbers = #tpu.dot_dimension_numbers<[1], [0], [0], [1], [0, 0, 1, 1], [], []>} : vector<16x32xbf16>, vector<32x32xbf16>, vector<16x32xf32> -> vector<16x32xf32>
    %14 = arith.addf %7, %13 : vector<16x32xf32>
    %15 = vector.extract_strided_slice %1 {offsets = [2, 0], sizes = [16, 32], strides = [1, 1]} : vector<26x32xf32> to vector<16x32xf32>
    %16 = arith.truncf %15 : vector<16x32xf32> to vector<16x32xbf16>
    %c2 = arith.constant 2 : index
    %c0_8 = arith.constant 0 : index
    %c0_9 = arith.constant 0 : index
    %17 = vector.load %arg3[%c2, %c0_8, %c0_9] : memref<9x32x32xf32, #tpu.memory_space<vmem>>, vector<1x32x32xf32>
    %18 = vector.shape_cast %17 : vector<1x32x32xf32> to vector<32x32xf32>
    %19 = arith.truncf %18 : vector<32x32xf32> to vector<32x32xbf16>
    %cst_10 = arith.constant dense<0.000000e+00> : vector<16x32xf32>
    %20 = tpu.matmul %16, %19, %cst_10 {dimension_numbers = #tpu.dot_dimension_numbers<[1], [0], [0], [1], [0, 0, 1, 1], [], []>} : vector<16x32xbf16>, vector<32x32xbf16>, vector<16x32xf32> -> vector<16x32xf32>
    %21 = arith.addf %14, %20 : vector<16x32xf32>
    %22 = vector.extract_strided_slice %1 {offsets = [4, 0], sizes = [16, 32], strides = [1, 1]} : vector<26x32xf32> to vector<16x32xf32>
    %23 = arith.truncf %22 : vector<16x32xf32> to vector<16x32xbf16>
    %c3 = arith.constant 3 : index
    %c0_11 = arith.constant 0 : index
    %c0_12 = arith.constant 0 : index
    %24 = vector.load %arg3[%c3, %c0_11, %c0_12] : memref<9x32x32xf32, #tpu.memory_space<vmem>>, vector<1x32x32xf32>
    %25 = vector.shape_cast %24 : vector<1x32x32xf32> to vector<32x32xf32>
    %26 = arith.truncf %25 : vector<32x32xf32> to vector<32x32xbf16>
    %cst_13 = arith.constant dense<0.000000e+00> : vector<16x32xf32>
    %27 = tpu.matmul %23, %26, %cst_13 {dimension_numbers = #tpu.dot_dimension_numbers<[1], [0], [0], [1], [0, 0, 1, 1], [], []>} : vector<16x32xbf16>, vector<32x32xbf16>, vector<16x32xf32> -> vector<16x32xf32>
    %28 = arith.addf %21, %27 : vector<16x32xf32>
    %29 = vector.extract_strided_slice %1 {offsets = [5, 0], sizes = [16, 32], strides = [1, 1]} : vector<26x32xf32> to vector<16x32xf32>
    %30 = arith.truncf %29 : vector<16x32xf32> to vector<16x32xbf16>
    %c4 = arith.constant 4 : index
    %c0_14 = arith.constant 0 : index
    %c0_15 = arith.constant 0 : index
    %31 = vector.load %arg3[%c4, %c0_14, %c0_15] : memref<9x32x32xf32, #tpu.memory_space<vmem>>, vector<1x32x32xf32>
    %32 = vector.shape_cast %31 : vector<1x32x32xf32> to vector<32x32xf32>
    %33 = arith.truncf %32 : vector<32x32xf32> to vector<32x32xbf16>
    %cst_16 = arith.constant dense<0.000000e+00> : vector<16x32xf32>
    %34 = tpu.matmul %30, %33, %cst_16 {dimension_numbers = #tpu.dot_dimension_numbers<[1], [0], [0], [1], [0, 0, 1, 1], [], []>} : vector<16x32xbf16>, vector<32x32xbf16>, vector<16x32xf32> -> vector<16x32xf32>
    %35 = arith.addf %28, %34 : vector<16x32xf32>
    %36 = vector.extract_strided_slice %1 {offsets = [6, 0], sizes = [16, 32], strides = [1, 1]} : vector<26x32xf32> to vector<16x32xf32>
    %37 = arith.truncf %36 : vector<16x32xf32> to vector<16x32xbf16>
    %c5 = arith.constant 5 : index
    %c0_17 = arith.constant 0 : index
    %c0_18 = arith.constant 0 : index
    %38 = vector.load %arg3[%c5, %c0_17, %c0_18] : memref<9x32x32xf32, #tpu.memory_space<vmem>>, vector<1x32x32xf32>
    %39 = vector.shape_cast %38 : vector<1x32x32xf32> to vector<32x32xf32>
    %40 = arith.truncf %39 : vector<32x32xf32> to vector<32x32xbf16>
    %cst_19 = arith.constant dense<0.000000e+00> : vector<16x32xf32>
    %41 = tpu.matmul %37, %40, %cst_19 {dimension_numbers = #tpu.dot_dimension_numbers<[1], [0], [0], [1], [0, 0, 1, 1], [], []>} : vector<16x32xbf16>, vector<32x32xbf16>, vector<16x32xf32> -> vector<16x32xf32>
    %42 = arith.addf %35, %41 : vector<16x32xf32>
    %43 = vector.extract_strided_slice %1 {offsets = [8, 0], sizes = [16, 32], strides = [1, 1]} : vector<26x32xf32> to vector<16x32xf32>
    %44 = arith.truncf %43 : vector<16x32xf32> to vector<16x32xbf16>
    %c6 = arith.constant 6 : index
    %c0_20 = arith.constant 0 : index
    %c0_21 = arith.constant 0 : index
    %45 = vector.load %arg3[%c6, %c0_20, %c0_21] : memref<9x32x32xf32, #tpu.memory_space<vmem>>, vector<1x32x32xf32>
    %46 = vector.shape_cast %45 : vector<1x32x32xf32> to vector<32x32xf32>
    %47 = arith.truncf %46 : vector<32x32xf32> to vector<32x32xbf16>
    %cst_22 = arith.constant dense<0.000000e+00> : vector<16x32xf32>
    %48 = tpu.matmul %44, %47, %cst_22 {dimension_numbers = #tpu.dot_dimension_numbers<[1], [0], [0], [1], [0, 0, 1, 1], [], []>} : vector<16x32xbf16>, vector<32x32xbf16>, vector<16x32xf32> -> vector<16x32xf32>
    %49 = arith.addf %42, %48 : vector<16x32xf32>
    %50 = vector.extract_strided_slice %1 {offsets = [9, 0], sizes = [16, 32], strides = [1, 1]} : vector<26x32xf32> to vector<16x32xf32>
    %51 = arith.truncf %50 : vector<16x32xf32> to vector<16x32xbf16>
    %c7 = arith.constant 7 : index
    %c0_23 = arith.constant 0 : index
    %c0_24 = arith.constant 0 : index
    %52 = vector.load %arg3[%c7, %c0_23, %c0_24] : memref<9x32x32xf32, #tpu.memory_space<vmem>>, vector<1x32x32xf32>
    %53 = vector.shape_cast %52 : vector<1x32x32xf32> to vector<32x32xf32>
    %54 = arith.truncf %53 : vector<32x32xf32> to vector<32x32xbf16>
    %cst_25 = arith.constant dense<0.000000e+00> : vector<16x32xf32>
    %55 = tpu.matmul %51, %54, %cst_25 {dimension_numbers = #tpu.dot_dimension_numbers<[1], [0], [0], [1], [0, 0, 1, 1], [], []>} : vector<16x32xbf16>, vector<32x32xbf16>, vector<16x32xf32> -> vector<16x32xf32>
    %56 = arith.addf %49, %55 : vector<16x32xf32>
    %57 = vector.extract_strided_slice %1 {offsets = [10, 0], sizes = [16, 32], strides = [1, 1]} : vector<26x32xf32> to vector<16x32xf32>
    %58 = arith.truncf %57 : vector<16x32xf32> to vector<16x32xbf16>
    %c8 = arith.constant 8 : index
    %c0_26 = arith.constant 0 : index
    %c0_27 = arith.constant 0 : index
    %59 = vector.load %arg3[%c8, %c0_26, %c0_27] : memref<9x32x32xf32, #tpu.memory_space<vmem>>, vector<1x32x32xf32>
    %60 = vector.shape_cast %59 : vector<1x32x32xf32> to vector<32x32xf32>
    %61 = arith.truncf %60 : vector<32x32xf32> to vector<32x32xbf16>
    %cst_28 = arith.constant dense<0.000000e+00> : vector<16x32xf32>
    %62 = tpu.matmul %58, %61, %cst_28 {dimension_numbers = #tpu.dot_dimension_numbers<[1], [0], [0], [1], [0, 0, 1, 1], [], []>} : vector<16x32xbf16>, vector<32x32xbf16>, vector<16x32xf32> -> vector<16x32xf32>
    %63 = arith.addf %56, %62 : vector<16x32xf32>
    %c0_29 = arith.constant 0 : index
    %c0_30 = arith.constant 0 : index
    %64 = vector.load %arg4[%c0_29, %c0_30] : memref<1x32xf32, #tpu.memory_space<vmem>>, vector<1x32xf32>
    %65 = vector.broadcast %64 : vector<1x32xf32> to vector<16x32xf32>
    %66 = arith.addf %63, %65 : vector<16x32xf32>
    %cst_31 = arith.constant 0.000000e+00 : f32
    %67 = vector.broadcast %cst_31 : f32 to vector<16x32xf32>
    %68 = arith.maximumf %66, %67 : vector<16x32xf32>
    %c0_32 = arith.constant 0 : index
    %c0_33 = arith.constant 0 : index
    %c0_34 = arith.constant 0 : index
    %69 = vector.load %arg2[%c0_32, %c0_33, %c0_34] : memref<1x16x32xf32, #tpu.memory_space<vmem>>, vector<1x16x32xf32>
    %70 = vector.shape_cast %69 : vector<1x16x32xf32> to vector<16x32xf32>
    %c0_35 = arith.constant 0 : index
    %c0_36 = arith.constant 0 : index
    %71 = vector.load %arg5[%c0_35, %c0_36] : memref<1x32xf32, #tpu.memory_space<vmem>>, vector<1x32xf32>
    %72 = vector.broadcast %71 : vector<1x32xf32> to vector<16x32xf32>
    %73 = arith.mulf %70, %72 : vector<16x32xf32>
    %c0_37 = arith.constant 0 : index
    %c0_38 = arith.constant 0 : index
    %74 = vector.load %arg6[%c0_37, %c0_38] : memref<1x32xf32, #tpu.memory_space<vmem>>, vector<1x32xf32>
    %75 = vector.broadcast %74 : vector<1x32xf32> to vector<16x32xf32>
    %76 = arith.addf %73, %75 : vector<16x32xf32>
    %cst_39 = arith.constant 0.000000e+00 : f32
    %77 = vector.broadcast %cst_39 : f32 to vector<16x32xf32>
    %78 = arith.maximumf %76, %77 : vector<16x32xf32>
    %79 = arith.truncf %68 : vector<16x32xf32> to vector<16x32xbf16>
    %c0_40 = arith.constant 0 : index
    %c0_41 = arith.constant 0 : index
    %80 = vector.load %arg7[%c0_40, %c0_41] : memref<32x64xf32, #tpu.memory_space<vmem>>, vector<32x64xf32>
    %81 = arith.truncf %80 : vector<32x64xf32> to vector<32x64xbf16>
    %cst_42 = arith.constant dense<0.000000e+00> : vector<16x64xf32>
    %82 = tpu.matmul %79, %81, %cst_42 {dimension_numbers = #tpu.dot_dimension_numbers<[1], [0], [0], [1], [0, 0, 1, 1], [], []>} : vector<16x32xbf16>, vector<32x64xbf16>, vector<16x64xf32> -> vector<16x64xf32>
    %83 = arith.truncf %78 : vector<16x32xf32> to vector<16x32xbf16>
    %c0_43 = arith.constant 0 : index
    %c0_44 = arith.constant 0 : index
    %84 = vector.load %arg8[%c0_43, %c0_44] : memref<32x64xf32, #tpu.memory_space<vmem>>, vector<32x64xf32>
    %85 = arith.truncf %84 : vector<32x64xf32> to vector<32x64xbf16>
    %cst_45 = arith.constant dense<0.000000e+00> : vector<16x64xf32>
    %86 = tpu.matmul %83, %85, %cst_45 {dimension_numbers = #tpu.dot_dimension_numbers<[1], [0], [0], [1], [0, 0, 1, 1], [], []>} : vector<16x32xbf16>, vector<32x64xbf16>, vector<16x64xf32> -> vector<16x64xf32>
    %87 = arith.addf %82, %86 : vector<16x64xf32>
    %c0_46 = arith.constant 0 : index
    %c0_47 = arith.constant 0 : index
    %88 = vector.load %arg9[%c0_46, %c0_47] : memref<1x64xf32, #tpu.memory_space<vmem>>, vector<1x64xf32>
    %89 = vector.broadcast %88 : vector<1x64xf32> to vector<16x64xf32>
    %90 = arith.addf %87, %89 : vector<16x64xf32>
    %cst_48 = arith.constant 0.000000e+00 : f32
    %91 = vector.broadcast %cst_48 : f32 to vector<16x64xf32>
    %92 = arith.maximumf %90, %91 : vector<16x64xf32>
    %93 = arith.truncf %92 : vector<16x64xf32> to vector<16x64xbf16>
    %c0_49 = arith.constant 0 : index
    %c0_50 = arith.constant 0 : index
    %94 = vector.load %arg10[%c0_49, %c0_50] : memref<64x64xf32, #tpu.memory_space<vmem>>, vector<64x64xf32>
    %95 = arith.truncf %94 : vector<64x64xf32> to vector<64x64xbf16>
    %cst_51 = arith.constant dense<0.000000e+00> : vector<16x64xf32>
    %96 = tpu.matmul %93, %95, %cst_51 {dimension_numbers = #tpu.dot_dimension_numbers<[1], [0], [0], [1], [0, 0, 1, 1], [], []>} : vector<16x64xbf16>, vector<64x64xbf16>, vector<16x64xf32> -> vector<16x64xf32>
    %c0_52 = arith.constant 0 : index
    %c0_53 = arith.constant 0 : index
    %97 = vector.load %arg11[%c0_52, %c0_53] : memref<1x64xf32, #tpu.memory_space<vmem>>, vector<1x64xf32>
    %98 = vector.broadcast %97 : vector<1x64xf32> to vector<16x64xf32>
    %99 = arith.addf %96, %98 : vector<16x64xf32>
    %cst_54 = arith.constant 0.000000e+00 : f32
    %100 = vector.broadcast %cst_54 : f32 to vector<16x64xf32>
    %101 = arith.maximumf %99, %100 : vector<16x64xf32>
    %c0_55 = arith.constant 0 : index
    %c0_56 = arith.constant 0 : index
    %c0_57 = arith.constant 0 : index
    %102 = vector.load %arg12[%c0_55, %c0_56, %c0_57] : memref<1x16x64xf32, #tpu.memory_space<vmem>>, vector<1x16x64xf32>
    %103 = vector.shape_cast %102 : vector<1x16x64xf32> to vector<16x64xf32>
    %104 = vector.shape_cast %101 : vector<16x64xf32> to vector<1x16x64xf32>
    tpu.vector_store %arg12[%c0_55, %c0_56, %c0_57], %104 {strides = array<i32>} : memref<1x16x64xf32, #tpu.memory_space<vmem>>, vector<1x16x64xf32>,
    return
  }
  func.func @transform_0(%arg0: i32) -> (i32, i32, i32) {
    %c0_i32 = arith.constant 0 : i32
    %c0_i32_0 = arith.constant 0 : i32
    %c0_i32_1 = arith.constant 0 : i32
    return %arg0, %c0_i32, %c0_i32_0 : i32, i32, i32
  }
  func.func @transform_1(%arg0: i32) -> (i32, i32, i32) {
    %c0_i32 = arith.constant 0 : i32
    %c0_i32_0 = arith.constant 0 : i32
    %c0_i32_1 = arith.constant 0 : i32
    return %arg0, %c0_i32, %c0_i32_0 : i32, i32, i32
  }
  func.func @transform_2(%arg0: i32) -> (i32, i32, i32) {
    %c0_i32 = arith.constant 0 : i32
    %c0_i32_0 = arith.constant 0 : i32
    %c0_i32_1 = arith.constant 0 : i32
    %c0_i32_2 = arith.constant 0 : i32
    return %c0_i32, %c0_i32_0, %c0_i32_1 : i32, i32, i32
  }
  func.func @transform_3(%arg0: i32) -> (i32, i32) {
    %c0_i32 = arith.constant 0 : i32
    %c0_i32_0 = arith.constant 0 : i32
    %c0_i32_1 = arith.constant 0 : i32
    return %c0_i32, %c0_i32_0 : i32, i32
  }
  func.func @transform_4(%arg0: i32) -> (i32, i32) {
    %c0_i32 = arith.constant 0 : i32
    %c0_i32_0 = arith.constant 0 : i32
    %c0_i32_1 = arith.constant 0 : i32
    return %c0_i32, %c0_i32_0 : i32, i32
  }
  func.func @transform_5(%arg0: i32) -> (i32, i32) {
    %c0_i32 = arith.constant 0 : i32
    %c0_i32_0 = arith.constant 0 : i32
    %c0_i32_1 = arith.constant 0 : i32
    return %c0_i32, %c0_i32_0 : i32, i32
  }
  func.func @transform_6(%arg0: i32) -> (i32, i32) {
    %c0_i32 = arith.constant 0 : i32
    %c0_i32_0 = arith.constant 0 : i32
    %c0_i32_1 = arith.constant 0 : i32
    return %c0_i32, %c0_i32_0 : i32, i32
  }
  func.func @transform_7(%arg0: i32) -> (i32, i32) {
    %c0_i32 = arith.constant 0 : i32
    %c0_i32_0 = arith.constant 0 : i32
    %c0_i32_1 = arith.constant 0 : i32
    return %c0_i32, %c0_i32_0 : i32, i32
  }
  func.func @transform_8(%arg0: i32) -> (i32, i32) {
    %c0_i32 = arith.constant 0 : i32
    %c0_i32_0 = arith.constant 0 : i32
    %c0_i32_1 = arith.constant 0 : i32
    return %c0_i32, %c0_i32_0 : i32, i32
  }
  func.func @transform_9(%arg0: i32) -> (i32, i32) {
    %c0_i32 = arith.constant 0 : i32
    %c0_i32_0 = arith.constant 0 : i32
    %c0_i32_1 = arith.constant 0 : i32
    return %c0_i32, %c0_i32_0 : i32, i32
  }
  func.func @transform_10(%arg0: i32) -> (i32, i32) {
    %c0_i32 = arith.constant 0 : i32
    %c0_i32_0 = arith.constant 0 : i32
    %c0_i32_1 = arith.constant 0 : i32
    return %c0_i32, %c0_i32_0 : i32, i32
  }
  func.func @transform_11(%arg0: i32) -> (i32, i32, i32) {
    %c0_i32 = arith.constant 0 : i32
    %c0_i32_0 = arith.constant 0 : i32
    %c0_i32_1 = arith.constant 0 : i32
    return %arg0, %c0_i32, %c0_i32_0 : i32, i32, i32
  }
}

</mosaic_0001>

<bundles_post_ra>
// kernel: _lambda_.8
= control target key start
LH: loop header
LB: loop body
LE: loop exit
PB: predicated region body
PF: predicated region fallthrough
CT: control target
= control target key end

     0   :  { %s799_s12 = smov 0   ;;  %s801_s13 = smov 0   ;;  %s1004_s0 = inlined_call_operand.vmem [shape: f32[2,256,27], index: 0, kind: input, shape index: {}]   ;;  %s1005_s1 = inlined_call_operand.vmem [shape: f32[27,8], index: 1, kind: input, shape index: {}]   ;;  %s1006_s2 = inlined_call_operand.vmem [shape: f32[1,8], index: 2, kind: input, shape index: {}]   ;;  %s1007_s3 = inlined_call_operand.vmem [shape: f32[2,256,8], index: 3, kind: output, shape index: {}]  }
   0x1   :  { %s803_s14 = smov 0  }
   0x2 LB: > { %s25_s15 = sadd.s32 1, %s772_s13  ;;  %p645_p0 = scmp.ge.s32.totalorder %s776_s14, 1  ;;  %s776_s14 = sphi %s803_s14, %s13_s14   ;;  %s772_s13 = sphi %s801_s13, %s1009_s13   ;;  %s768_s12 = sphi %s799_s12, %s1008_s12  }
   0x3   : > { %p27_p1 = scmp.ge.s32.totalorder %s25_s15, 2  ;;  %p158_p2 = scmp.lt.s32.totalorder %s776_s14, 3 }
   0x5   : > { %s1011_s15 = smov (%p27_p1, %s25_s15), 0  ;;  %p159_p3 = pnand %p645_p0, %p158_p2 }
   0x6   : > { %p191_p4 = scmp.lt.s32.totalorder (!%p159_p3), %s768_s12, 1 }
   0x7   : > { %162 = sbr.rel (%p159_p3) target bundleno = 253 (0xfd), region = 32 }
   0xc   : > { %v261_v0 = vld [vmem:[%s1005_s1 + $0x10] sm:$0xff]  ;;  %v262_v1 = vld [vmem:[%s1005_s1 + $0x18] sm:$0x7]  ;;  %vm321_vm0 = vcmask 1044480   ;;  %vm322_vm1 = vcmask 1045504   ;;  %v778_v3 = vmov 65535  }
   0xd   : > { %v264_v2 = vpack.c.bf16 %v262_v1, %v261_v0  ;;  %v323_v4 = vsel %vm321_vm0, 4294967295, %v778_v3  ;;  %v259_v5 = vld [vmem:[%s1005_s1] sm:$0xff]  ;;  %v260_v6 = vld [vmem:[%s1005_s1 + $0x8] sm:$0xff]  ;;  %s1013_s12 = smov (!%p191_p4, %s768_s12), 1  ;;  %vm272_vm2 = vcmask 220160   ;;  %vm521_vm3 = vcmask 64512  }
   0xe   : > { %v324_v7 = vsel %vm322_vm1, %v323_v4, 0  ;;  %v263_v9 = vpack.c.bf16 %v260_v6, %v259_v5  ;;  %s669_s24 = sshll.u32 %s1013_s12, 8  ;;  %v890_v58 = vld [vmem:[%s1006_s2] ss:$0 sm:$0xff] }
   0xf   : > { %v326_v8 = vand.u32 %v324_v7, %v264_v2  ;;  %s837_s27 = scalar_lea.vmem %s1004_s0, %s669_s24  ;;  %s899_s5 = scalar_lea.vmem %s1007_s3, %s669_s24 }
  0x10   : > { %v211_v10 = vld [vmem:[%s837_s27] sm:$0xff]  ;;  %v212_v11 = vld [vmem:[%s837_s27 + $0x8] sm:$0xff]  ;;  %v213_v15 = vld [vmem:[%s837_s27 + $0x10] sm:$0xff] }
  0x11   : > { %689 = vmatprep.subr.bf16.mxu0 %v326_v8  ;;  %725 = vmatprep.subr.bf16.mxu1 %v326_v8  ;;  %v227_v12 = vld [vmem:[%s837_s27 + $0x80] sm:$0xff]  ;;  %v243_v13 = vpack.c.bf16 %v212_v11, %v211_v10  ;;  %v228_v14 = vld [vmem:[%s837_s27 + $0x88] sm:$0xff]  ;;  %v214_v16 = vld [vmem:[%s837_s27 + $0x18] sm:$0xff] }
  0x12   : > { %690 = vmatpush3.bf16.msra.mxu0 %v326_v8  ;;  %727 = vmatpush3.bf16.msra.mxu1 %v326_v8  ;;  %v251_v17 = vpack.c.bf16 %v228_v14, %v227_v12  ;;  %v244_v18 = vpack.c.bf16 %v214_v16, %v213_v15  ;;  %v229_v19 = vld [vmem:[%s837_s27 + $0x90] sm:$0xff]  ;;  %v230_v20 = vld [vmem:[%s837_s27 + $0x98] sm:$0xff]  ;;  %v215_v21 = vld [vmem:[%s837_s27 + $0x20] sm:$0xff] }
  0x13   : > { %691 = vmatprep.subr.bf16.mxu0 %v263_v9  ;;  %726 = vmatprep.subr.bf16.mxu1 %v263_v9  ;;  %v252_v22 = vpack.c.bf16 %v230_v20, %v229_v19  ;;  %v216_v23 = vld [vmem:[%s837_s27 + $0x28] sm:$0xff]  ;;  %v231_v24 = vld [vmem:[%s837_s27 + $0xa0] sm:$0xff]  ;;  %v217_v28 = vld [vmem:[%s837_s27 + $0x30] sm:$0xff] }
  0x14   : > { %v232_v25 = vld [vmem:[%s837_s27 + $0xa8] sm:$0xff]  ;;  %693 = vmatprep.mubr.msk.bf16.mxu0 %vm272_vm2, %v243_v13  ;;  %709 = vmatprep.mubr.msk.bf16.mxu1 %vm272_vm2, %v251_v17  ;;  %v245_v26 = vpack.c.bf16 %v216_v23, %v215_v21  ;;  %v218_v29 = vld [vmem:[%s837_s27 + $0x38] sm:$0xff]  ;;  %v233_v30 = vld [vmem:[%s837_s27 + $0xb0] sm:$0xff] }
  0x15   : > { %v253_v27 = vpack.c.bf16 %v232_v25, %v231_v24  ;;  %v234_v31 = vld [vmem:[%s837_s27 + $0xb8] sm:$0xff]  ;;  %v219_v32 = vld [vmem:[%s837_s27 + $0x40] sm:$0xff]  ;;  %v220_v33 = vld [vmem:[%s837_s27 + $0x48] sm:$0xff]  ;;  %v246_v36 = vpack.c.bf16 %v218_v29, %v217_v28 }
  0x16   : > { %692 = vmatpush3.bf16.msra.mxu0 %v263_v9  ;;  %728 = vmatpush3.bf16.msra.mxu1 %v263_v9  ;;  %v235_v34 = vld [vmem:[%s837_s27 + $0xc0] sm:$0xff]  ;;  %v236_v35 = vld [vmem:[%s837_s27 + $0xc8] sm:$0xff]  ;;  %v254_v37 = vpack.c.bf16 %v234_v31, %v233_v30  ;;  %v247_v38 = vpack.c.bf16 %v220_v33, %v219_v32  ;;  %v221_v40 = vld [vmem:[%s837_s27 + $0x50] sm:$0xff] }
  0x17   : > { %v255_v39 = vpack.c.bf16 %v236_v35, %v235_v34  ;;  %v222_v41 = vld [vmem:[%s837_s27 + $0x58] sm:$0xff]  ;;  %v237_v42 = vld [vmem:[%s837_s27 + $0xd0] sm:$0xff]  ;;  %v223_v44 = vld [vmem:[%s837_s27 + $0x60] sm:$0xff] }
  0x18   : > { %v238_v43 = vld [vmem:[%s837_s27 + $0xd8] sm:$0xff]  ;;  %v224_v45 = vld [vmem:[%s837_s27 + $0x68] sm:$0xff]  ;;  %v239_v46 = vld [vmem:[%s837_s27 + $0xe0] sm:$0xff]  ;;  %v248_v48 = vpack.c.bf16 %v222_v41, %v221_v40 }
  0x19   : > { %694 = vmatmul.mubr.msk.bf16.vlgmr.msra.gmra.mxu0 %vm272_vm2, %v244_v18  ;;  %710 = vmatmul.mubr.msk.bf16.vlgmr.msra.gmra.mxu1 %vm272_vm2, %v252_v22  ;;  %v240_v47 = vld [vmem:[%s837_s27 + $0xe8] sm:$0xff]  ;;  %v256_v49 = vpack.c.bf16 %v238_v43, %v237_v42  ;;  %v249_v50 = vpack.c.bf16 %v224_v45, %v223_v44  ;;  %v225_v52 = vld [vmem:[%s837_s27 + $0x70] sm:$0xff]  ;;  %v226_v53 = vld [vmem:[%s837_s27 + $0x78] sm:$0xff] }
  0x1a   : > { %697 = vmatprep.mubr.msk.bf16.mxu0 %vm272_vm2, %v245_v26  ;;  %713 = vmatprep.mubr.msk.bf16.mxu1 %vm272_vm2, %v253_v27  ;;  %v257_v51 = vpack.c.bf16 %v240_v47, %v239_v46  ;;  %v241_v54 = vld [vmem:[%s837_s27 + $0xf0] sm:$0xff]  ;;  %v242_v55 = vld [vmem:[%s837_s27 + $0xf8] sm:$0xff]  ;;  %v250_v56 = vpack.c.bf16 %v226_v53, %v225_v52 }
  0x1b   : > { %v258_v57 = vpack.c.bf16 %v242_v55, %v241_v54 }
  0x21   : > { %698 = vmatmul.mubr.msk.bf16.gmra.mxu0 %vm272_vm2, %v246_v36  ;;  %714 = vmatmul.mubr.msk.bf16.gmra.mxu1 %vm272_vm2, %v254_v37 }
  0x22   : > { %701 = vmatprep.mubr.msk.bf16.mxu0 %vm272_vm2, %v247_v38  ;;  %717 = vmatprep.mubr.msk.bf16.mxu1 %vm272_vm2, %v255_v39 }
  0x29   : > { %702 = vmatmul.mubr.msk.bf16.gmra.mxu0 %vm272_vm2, %v248_v48  ;;  %718 = vmatmul.mubr.msk.bf16.gmra.mxu1 %vm272_vm2, %v256_v49 }
  0x2a   : > { %705 = vmatprep.mubr.msk.bf16.mxu0 %vm272_vm2, %v249_v50  ;;  %721 = vmatprep.mubr.msk.bf16.mxu1 %vm272_vm2, %v257_v51 }
  0x31   : > { %706 = vmatmul.mubr.msk.bf16.gmra.mxu0 %vm272_vm2, %v250_v56  ;;  %722 = vmatmul.mubr.msk.bf16.gmra.mxu1 %vm272_vm2, %v258_v57 }
  0xd9   : > { %v695_v59 = vpop.f32.mrf.mxu0  ;;  %v711_v60 = vpop.f32.mrf.mxu1 }
  0xda   : > { %v371_v61 = vadd.f32 %v695_v59, %v890_v58  ;;  %v435_v62 = vadd.f32 %v711_v60, %v890_v58 }
  0xdb   : > { %v362_v63 = vpop.f32.mrf.mxu0  ;;  %v426_v0 = vpop.f32.mrf.mxu1 }
  0xdc   : > { %v491_v1 = vmax.f32 %v371_v61, 0.0  ;;  %v507_v2 = vmax.f32 %v435_v62, 0.0  ;;  %v363_v3 = vadd.f32 %v890_v58, %v362_v63  ;;  %v427_v4 = vadd.f32 %v890_v58, %v426_v0 }
  0xdd   : > { %v696_v5 = vpop.f32.mrf.mxu0  ;;  %v712_v6 = vpop.f32.mrf.mxu1 }
  0xde   : > { %524 = vst.msk [vmem:[%s899_s5 + $0x10] sm:$0xff] %vm521_vm3, %v491_v1  ;;  %540 = vst.msk [vmem:[%s899_s5 + $0x90] sm:$0xff] %vm521_vm3, %v507_v2  ;;  %v489_v7 = vmax.f32 %v363_v3, 0.0  ;;  %v505_v8 = vmax.f32 %v427_v4, 0.0  ;;  %v374_v9 = vadd.f32 %v696_v5, %v890_v58  ;;  %v438_v10 = vadd.f32 %v712_v6, %v890_v58 }
  0xdf   : > { %v365_v11 = vpop.f32.mrf.mxu0  ;;  %v429_v12 = vpop.f32.mrf.mxu1 }
  0xe0   : > { %522 = vst.msk [vmem:[%s899_s5] sm:$0xff] %vm521_vm3, %v489_v7  ;;  %538 = vst.msk [vmem:[%s899_s5 + $0x80] sm:$0xff] %vm521_vm3, %v505_v8  ;;  %v492_v13 = vmax.f32 %v374_v9, 0.0  ;;  %v508_v14 = vmax.f32 %v438_v10, 0.0  ;;  %v366_v15 = vadd.f32 %v890_v58, %v365_v11  ;;  %v430_v16 = vadd.f32 %v890_v58, %v429_v12 }
  0xe1   : > { %v699_v17 = vpop.f32.mrf.mxu0  ;;  %v715_v18 = vpop.f32.mrf.mxu1 }
  0xe2   : > { %525 = vst.msk [vmem:[%s899_s5 + $0x18] sm:$0xff] %vm521_vm3, %v492_v13  ;;  %541 = vst.msk [vmem:[%s899_s5 + $0x98] sm:$0xff] %vm521_vm3, %v508_v14  ;;  %v490_v19 = vmax.f32 %v366_v15, 0.0  ;;  %v506_v20 = vmax.f32 %v430_v16, 0.0  ;;  %v387_v21 = vadd.f32 %v699_v17, %v890_v58  ;;  %v451_v22 = vadd.f32 %v715_v18, %v890_v58 }
  0xe3   : > { %v378_v23 = vpop.f32.mrf.mxu0  ;;  %v442_v24 = vpop.f32.mrf.mxu1 }
  0xe4   : > { %523 = vst.msk [vmem:[%s899_s5 + $0x8] sm:$0xff] %vm521_vm3, %v490_v19  ;;  %539 = vst.msk [vmem:[%s899_s5 + $0x88] sm:$0xff] %vm521_vm3, %v506_v20  ;;  %v495_v25 = vmax.f32 %v387_v21, 0.0  ;;  %v511_v26 = vmax.f32 %v451_v22, 0.0  ;;  %v379_v27 = vadd.f32 %v890_v58, %v378_v23  ;;  %v443_v28 = vadd.f32 %v890_v58, %v442_v24 }
  0xe5   : > { %v700_v29 = vpop.f32.mrf.mxu0  ;;  %v716_v30 = vpop.f32.mrf.mxu1 }
  0xe6   : > { %528 = vst.msk [vmem:[%s899_s5 + $0x30] sm:$0xff] %vm521_vm3, %v495_v25  ;;  %544 = vst.msk [vmem:[%s899_s5 + $0xb0] sm:$0xff] %vm521_vm3, %v511_v26  ;;  %v493_v31 = vmax.f32 %v379_v27, 0.0  ;;  %v509_v32 = vmax.f32 %v443_v28, 0.0  ;;  %v390_v33 = vadd.f32 %v700_v29, %v890_v58  ;;  %v454_v34 = vadd.f32 %v716_v30, %v890_v58 }
  0xe7   : > { %v381_v35 = vpop.f32.mrf.mxu0  ;;  %v445_v36 = vpop.f32.mrf.mxu1 }
  0xe8   : > { %526 = vst.msk [vmem:[%s899_s5 + $0x20] sm:$0xff] %vm521_vm3, %v493_v31  ;;  %542 = vst.msk [vmem:[%s899_s5 + $0xa0] sm:$0xff] %vm521_vm3, %v509_v32  ;;  %v496_v37 = vmax.f32 %v390_v33, 0.0  ;;  %v512_v38 = vmax.f32 %v454_v34, 0.0  ;;  %v382_v39 = vadd.f32 %v890_v58, %v381_v35  ;;  %v446_v40 = vadd.f32 %v890_v58, %v445_v36 }
  0xe9   : > { %v703_v41 = vpop.f32.mrf.mxu0  ;;  %v719_v42 = vpop.f32.mrf.mxu1 }
  0xea   : > { %529 = vst.msk [vmem:[%s899_s5 + $0x38] sm:$0xff] %vm521_vm3, %v496_v37  ;;  %545 = vst.msk [vmem:[%s899_s5 + $0xb8] sm:$0xff] %vm521_vm3, %v512_v38  ;;  %v494_v43 = vmax.f32 %v382_v39, 0.0  ;;  %v510_v44 = vmax.f32 %v446_v40, 0.0  ;;  %v403_v45 = vadd.f32 %v703_v41, %v890_v58  ;;  %v467_v46 = vadd.f32 %v719_v42, %v890_v58 }
  0xeb   : > { %v394_v47 = vpop.f32.mrf.mxu0  ;;  %v458_v48 = vpop.f32.mrf.mxu1 }
  0xec   : > { %527 = vst.msk [vmem:[%s899_s5 + $0x28] sm:$0xff] %vm521_vm3, %v494_v43  ;;  %543 = vst.msk [vmem:[%s899_s5 + $0xa8] sm:$0xff] %vm521_vm3, %v510_v44  ;;  %v499_v49 = vmax.f32 %v403_v45, 0.0  ;;  %v515_v50 = vmax.f32 %v467_v46, 0.0  ;;  %v395_v51 = vadd.f32 %v890_v58, %v394_v47  ;;  %v459_v52 = vadd.f32 %v890_v58, %v458_v48 }
  0xed   : > { %v704_v53 = vpop.f32.mrf.mxu0  ;;  %v720_v54 = vpop.f32.mrf.mxu1 }
  0xee   : > { %532 = vst.msk [vmem:[%s899_s5 + $0x50] sm:$0xff] %vm521_vm3, %v499_v49  ;;  %548 = vst.msk [vmem:[%s899_s5 + $0xd0] sm:$0xff] %vm521_vm3, %v515_v50  ;;  %v497_v55 = vmax.f32 %v395_v51, 0.0  ;;  %v513_v56 = vmax.f32 %v459_v52, 0.0  ;;  %v406_v57 = vadd.f32 %v704_v53, %v890_v58  ;;  %v470_v59 = vadd.f32 %v720_v54, %v890_v58 }
  0xef   : > { %v397_v60 = vpop.f32.mrf.mxu0  ;;  %v461_v61 = vpop.f32.mrf.mxu1 }
  0xf0   : > { %530 = vst.msk [vmem:[%s899_s5 + $0x40] sm:$0xff] %vm521_vm3, %v497_v55  ;;  %546 = vst.msk [vmem:[%s899_s5 + $0xc0] sm:$0xff] %vm521_vm3, %v513_v56  ;;  %v500_v62 = vmax.f32 %v406_v57, 0.0  ;;  %v516_v63 = vmax.f32 %v470_v59, 0.0  ;;  %v398_v0 = vadd.f32 %v890_v58, %v397_v60  ;;  %v462_v1 = vadd.f32 %v890_v58, %v461_v61 }
  0xf1   : > { %v707_v2 = vpop.f32.mrf.mxu0  ;;  %v723_v3 = vpop.f32.mrf.mxu1 }
  0xf2   : > { %533 = vst.msk [vmem:[%s899_s5 + $0x58] sm:$0xff] %vm521_vm3, %v500_v62  ;;  %549 = vst.msk [vmem:[%s899_s5 + $0xd8] sm:$0xff] %vm521_vm3, %v516_v63  ;;  %v498_v4 = vmax.f32 %v398_v0, 0.0  ;;  %v514_v5 = vmax.f32 %v462_v1, 0.0  ;;  %v419_v6 = vadd.f32 %v707_v2, %v890_v58  ;;  %v483_v7 = vadd.f32 %v723_v3, %v890_v58 }
  0xf3   : > { %v410_v8 = vpop.f32.mrf.mxu0  ;;  %v474_v9 = vpop.f32.mrf.mxu1 }
  0xf4   : > { %531 = vst.msk [vmem:[%s899_s5 + $0x48] sm:$0xff] %vm521_vm3, %v498_v4  ;;  %547 = vst.msk [vmem:[%s899_s5 + $0xc8] sm:$0xff] %vm521_vm3, %v514_v5  ;;  %v503_v10 = vmax.f32 %v419_v6, 0.0  ;;  %v519_v11 = vmax.f32 %v483_v7, 0.0  ;;  %v411_v12 = vadd.f32 %v890_v58, %v410_v8  ;;  %v475_v13 = vadd.f32 %v890_v58, %v474_v9 }
  0xf5   : > { %v708_v14 = vpop.f32.mrf.mxu0  ;;  %v724_v15 = vpop.f32.mrf.mxu1 }
  0xf6   : > { %536 = vst.msk [vmem:[%s899_s5 + $0x70] sm:$0xff] %vm521_vm3, %v503_v10  ;;  %552 = vst.msk [vmem:[%s899_s5 + $0xf0] sm:$0xff] %vm521_vm3, %v519_v11  ;;  %v501_v16 = vmax.f32 %v411_v12, 0.0  ;;  %v517_v17 = vmax.f32 %v475_v13, 0.0  ;;  %v422_v18 = vadd.f32 %v708_v14, %v890_v58  ;;  %v486_v19 = vadd.f32 %v724_v15, %v890_v58 }
  0xf7   : > { %v413_v20 = vpop.f32.mrf.mxu0  ;;  %v477_v21 = vpop.f32.mrf.mxu1 }
  0xf8   : > { %534 = vst.msk [vmem:[%s899_s5 + $0x60] sm:$0xff] %vm521_vm3, %v501_v16  ;;  %550 = vst.msk [vmem:[%s899_s5 + $0xe0] sm:$0xff] %vm521_vm3, %v517_v17  ;;  %v504_v22 = vmax.f32 %v422_v18, 0.0  ;;  %v520_v23 = vmax.f32 %v486_v19, 0.0  ;;  %v414_v24 = vadd.f32 %v890_v58, %v413_v20  ;;  %v478_v25 = vadd.f32 %v890_v58, %v477_v21 }
  0xfa   : > { %537 = vst.msk [vmem:[%s899_s5 + $0x78] sm:$0xff] %vm521_vm3, %v504_v22  ;;  %553 = vst.msk [vmem:[%s899_s5 + $0xf8] sm:$0xff] %vm521_vm3, %v520_v23  ;;  %v502_v26 = vmax.f32 %v414_v24, 0.0  ;;  %v518_v27 = vmax.f32 %v478_v25, 0.0 }
  0xfc   : > { %535 = vst.msk [vmem:[%s899_s5 + $0x68] sm:$0xff] %vm521_vm3, %v502_v26  ;;  %551 = vst.msk [vmem:[%s899_s5 + $0xe8] sm:$0xff] %vm521_vm3, %v518_v27 }
  0xfd PF: > { %s13_s14 = sadd.s32 1, %s776_s14   ;;  %s1008_s12 = smov %s772_s13 }
  0xfe   : > { %p10_p5 = scmp.ge.s32.totalorder %s13_s14, 4   ;;  %s1009_s13 = smov %s1011_s15 }
 0x100   :  { %12 = sbr.rel (!%p10_p5) target bundleno = 2 (0x2), region = 62 }

// kernel: _lambda_.9
= control target key start
LH: loop header
LB: loop body
LE: loop exit
PB: predicated region body
PF: predicated region fallthrough
CT: control target
= control target key end

     0   :  { %s6614_s17 = smov 0   ;;  %s9081_s0 = inlined_call_operand.vmem [shape: f32[2,362,4], index: 0, kind: input, shape index: {}]   ;;  %s9082_s1 = inlined_call_operand.vmem [shape: f32[2,324,4], index: 1, kind: input, shape index: {}]   ;;  %s9083_s2 = inlined_call_operand.vmem [shape: f32[9,4,4], index: 2, kind: input, shape index: {}]   ;;  %s9084_s3 = inlined_call_operand.vmem [shape: f32[1,4], index: 3, kind: input, shape index: {}]   ;;  %s9085_s4 = inlined_call_operand.vmem [shape: f32[1,4], index: 4, kind: input, shape index: {}]   ;;  %s9086_s5 = inlined_call_operand.vmem [shape: f32[1,4], index: 5, kind: input, shape index: {}]   ;;  %s9087_s6 = inlined_call_operand.vmem [shape: f32[4,8], index: 6, kind: input, shape index: {}]   ;;  %s9088_s7 = inlined_call_operand.vmem [shape: f32[4,8], index: 7, kind: input, shape index: {}]   ;;  %s9089_s8 = inlined_call_operand.vmem [shape: f32[1,8], index: 8, kind: input, shape index: {}]   ;;  %s9090_s9 = inlined_call_operand.vmem [shape: f32[8,8], index: 9, kind: input, shape index: {}]   ;;  %s9091_s10 = inlined_call_operand.vmem [shape: f32[1,8], index: 10, kind: input, shape index: {}]   ;;  %s9092_s11 = inlined_call_operand.vmem [shape: f32[2,324,8], index: 11, kind: output, shape index: {}]  }
   0x1 LB: > { %s4958_s18 = sadd.s32 4294967295, %s6550_s17   ;;  %p4962_p0 = scmp.ge.s32.totalorder %s6550_s17, 1  ;;  %s6550_s17 = sphi %s6614_s17, %s21_s17  }
   0x2   : > { %p347_p1 = scmp.lt.s32.totalorder %s6550_s17, 3 }
   0x4   : > { %p348_p2 = pnand %p4962_p0, %p347_p1 }
   0x6   : > { %351 = sbr.rel (%p348_p2) target bundleno = 1469 (0x5bd), region = 64 }
   0xb   : > { %v4966_v0 = vld [vmem:[%s9083_s2 + $0x4] sm:$0xf]  ;;  %vm712_vm0 = vcmask 1041408   ;;  %v475_v1 = vld [vmem:[%s9083_s2] sm:$0xf]  ;;  %v9125_v2 = vmov 0.0  }
   0xc   : > { %5497 = vmatprep.subr.bf16.mxu0 %v9125_v2  ;;  %v479_v3 = vpack.c.bf16 %v4966_v0, %v4966_v0  ;;  %5583 = vmatprep.subr.bf16.mxu1 %v9125_v2  ;;  %v476_v4 = vpack.c.bf16 %v475_v1, %v475_v1  ;;  %p392_p3 = scmp.lt.s32.totalorder %s4958_s18, 1  ;;  %vm6553_vm1 = vmmov 0   ;;  %v5009_v7 = vld [vmem:[%s9083_s2 + $0x8] sm:$0xf]  ;;  %vm648_vm2 = vcmask 31744  }
   0xd   : > { %5499 = vmatprep.mubr.msk.bf16.mxu0 %vm6553_vm1, %v9125_v2  ;;  %5585 = vmatprep.mubr.msk.bf16.mxu1 %vm6553_vm1, %v9125_v2  ;;  %v1163_v20 = vpack.c.bf16 %v5009_v7, %v5009_v7  ;;  %vm480_vm3 = vsmask.f32 7424  ;;  %v5031_v1 = vld [vmem:[%s9083_s2 + $0xc] sm:$0xf]  ;;  %vm1185_vm4 = vcmask 1046528   ;;  %vm2205_vm6 = vcmask 1045504  }
   0xe   : > { %v714_v5 = vsel %vm712_vm0, %v479_v3, 0  ;;  %v959_v6 = vsel %vm712_vm0, %v476_v4, 0  ;;  %s9409_s18 = smov (!%p392_p3, %s4958_s18), 1  ;;  %vm1801_vm5 = vsmask.f32 6400  ;;  %vm3227_vm8 = vcmask 1044480  }
   0xf   : > { %5498 = vmatpush3.bf16.msra.mxu0 %v714_v5  ;;  %5584 = vmatpush3.bf16.msra.mxu1 %v959_v6  ;;  %s6529_s23 = smul.u32 368, %s9409_s18  ;;  %v1291_v28 = vsel %vm712_vm0, %v1163_v20, 0  ;;  %v1538_v6 = vpack.c.bf16 %v5031_v1, %v5031_v1  ;;  %vm2822_vm7 = vsmask.f32 5376  ;;  %vm4604_vm9 = vcmask 1043456  }
  0x10   : > { %5669 = vmatprep.subr.bf16.mxu0 %v9125_v2  ;;  %5755 = vmatprep.subr.bf16.mxu1 %v9125_v2  ;;  %s6530_s28 = smul.u32 328, %s9409_s18  ;;  %vm4540_vm10 = vcmask 64512   ;;  %vm4889_vm11 = vcmask 60416  }
  0x11   : > { %s6644_s26 = scalar_lea.vmem %s9081_s0, %s6529_s23  ;;  %v1555_v7 = vsel %vm712_vm0, %v1538_v6, 0 }
  0x12   : > { %v408_v8 = vld [vmem:[%s6644_s26] sm:$0xff]  ;;  %v409_v9 = vld [vmem:[%s6644_s26 + $0x8] sm:$0xff]  ;;  %v410_v10 = vld [vmem:[%s6644_s26 + $0x10] sm:$0xff]  ;;  %s8205_s12 = scalar_lea.vmem %s9082_s1, %s6530_s28  ;;  %s8955_s15 = scalar_lea.vmem %s9092_s11, %s6530_s28 }
  0x13   : > { %v411_v11 = vld [vmem:[%s6644_s26 + $0x18] sm:$0xff]  ;;  %v6653_v12 = vpack.c.bf16 %v409_v9, %v408_v8  ;;  %v412_v13 = vld [vmem:[%s6644_s26 + $0x20] sm:$0xff]  ;;  %v413_v14 = vld [vmem:[%s6644_s26 + $0x28] sm:$0xff] }
  0x14   : > { %v6657_v15 = vpack.c.bf16 %v411_v11, %v410_v10  ;;  %v6663_v18 = vpack.c.bf16 %v413_v14, %v412_v13  ;;  %v414_v30 = vld [vmem:[%s6644_s26 + $0x30] sm:$0xff]  ;;  %v415_v31 = vld [vmem:[%s6644_s26 + $0x38] sm:$0xff]  ;;  %v416_v39 = vld [vmem:[%s6644_s26 + $0x40] sm:$0xff] }
  0x15   : > { %v482_v16 = vshrl.u32 %v6653_v12, 16  ;;  %v484_v17 = vshll.u32 %v6653_v12, 16  ;;  %5586 = vmatmul.mubr.msk.bf16.vlgmr.msra.gmra.mxu1 %vm648_vm2, %v6653_v12  ;;  %v6686_v35 = vpack.c.bf16 %v415_v31, %v414_v30  ;;  %v417_v40 = vld [vmem:[%s6644_s26 + $0x48] sm:$0xff]  ;;  %v418_v47 = vld [vmem:[%s6644_s26 + $0x50] sm:$0xff]  ;;  %v419_v48 = vld [vmem:[%s6644_s26 + $0x58] sm:$0xff] }
  0x16   : > { %9175 = vst [vmem:[#allocation2_spill] sm:$0xff] %v6663_v18  ;;  %v489_v19 = vshll.u32 %v6657_v15, 16  ;;  %5589 = vmatprep.mubr.msk.bf16.mxu1 %vm6553_vm1, %v9125_v2  ;;  %v493_v21 = vshrl.u32 %v6657_v15, 16  ;;  %v6674_v27 = vshll.u32 %v6663_v18, 16  ;;  %v6695_v37 = vshrl.u32 %v6663_v18, 16  ;;  %v420_v55 = vld [vmem:[%s6644_s26 + $0x60] sm:$0xff]  ;;  %5756 = vmatpush3.bf16.msra.mxu1 %v1555_v7 }
  0x17   : > { %v486_v22 = vrot.slane %v484_v17, 1  ;;  %9176 = vst [vmem:[#allocation3_spill] sm:$0xff] %v6686_v35  ;;  %v6698_v38 = vshll.u32 %v6686_v35, 16  ;;  %v6707_v43 = vpack.c.bf16 %v417_v40, %v416_v39  ;;  %v6715_v45 = vshrl.u32 %v6686_v35, 16  ;;  %v421_v56 = vld [vmem:[%s6644_s26 + $0x68] sm:$0xff]  ;;  %v422_v63 = vld [vmem:[%s6644_s26 + $0x70] sm:$0xff]  ;;  %5927 = vmatprep.subr.bf16.mxu1 %v9125_v2 }
  0x18   : > { %v491_v23 = vrot.slane %v489_v19, 1  ;;  %v6669_v24 = vrot.slane %v489_v19, 2  ;;  %v6671_v25 = vrot.slane %v493_v21, 1  ;;  %v499_v34 = vrot.slane %v6674_v27, 1  ;;  %v423_v0 = vld [vmem:[%s6644_s26 + $0x78] sm:$0xff]  ;;  %v424_v11 = vld [vmem:[%s6644_s26 + $0x80] sm:$0xff] }
  0x19   : > { %v487_v26 = vor.u32 %v486_v22, %v482_v16  ;;  %v507_v42 = vrot.slane %v6698_v38, 1  ;;  %9177 = vst [vmem:[#allocation4_spill] sm:$0xff] %v6707_v43  ;;  %v6718_v46 = vshll.u32 %v6707_v43, 16  ;;  %v6727_v51 = vpack.c.bf16 %v419_v48, %v418_v47  ;;  %v425_v13 = vld [vmem:[%s6644_s26 + $0x88] sm:$0xff]  ;;  %v426_v22 = vld [vmem:[%s6644_s26 + $0x90] sm:$0xff] }
  0x1a   : > { %v495_v33 = vor.u32 %v493_v21, %v491_v23  ;;  %v503_v41 = vor.u32 %v6695_v37, %v499_v34  ;;  %v6735_v53 = vshrl.u32 %v6707_v43, 16  ;;  %v6747_v59 = vpack.c.bf16 %v421_v56, %v420_v55  ;;  %v430_v48 = vld [vmem:[%s6644_s26 + $0xb0] sm:$0xff] }
  0x1b   : > { %v492_v32 = vsel %vm480_vm3, %v487_v26, %v491_v23  ;;  %v511_v49 = vor.u32 %v6715_v45, %v507_v42  ;;  %v515_v50 = vrot.slane %v6718_v46, 1  ;;  %9178 = vst [vmem:[#allocation5_spill] sm:$0xff] %v6727_v51  ;;  %v6738_v54 = vshll.u32 %v6727_v51, 16  ;;  %v427_v23 = vld [vmem:[%s6644_s26 + $0x98] sm:$0xff] }
  0x1c   : > { %5500 = vmatmul.mubr.msk.bf16.vlgmr.msra.gmra.mxu0 %vm648_vm2, %v492_v32  ;;  %v500_v36 = vsel %vm480_vm3, %v495_v33, %v499_v34  ;;  %v508_v44 = vsel %vm480_vm3, %v503_v41, %v507_v42  ;;  %9179 = vst [vmem:[#allocation6_spill] sm:$0xff] %v6747_v59  ;;  %v6755_v61 = vshrl.u32 %v6727_v51, 16  ;;  %v6758_v62 = vshll.u32 %v6747_v59, 16  ;;  %v428_v34 = vld [vmem:[%s6644_s26 + $0xa0] sm:$0xff] }
  0x1d   : > { %5670 = vmatpush3.bf16.msra.mxu0 %v1291_v28  ;;  %5503 = vmatprep.mubr.msk.bf16.mxu0 %vm6553_vm1, %v9125_v2  ;;  %v516_v52 = vsel %vm480_vm3, %v511_v49, %v515_v50  ;;  %v519_v57 = vor.u32 %v6735_v53, %v515_v50  ;;  %v523_v58 = vrot.slane %v6738_v54, 1  ;;  %v6770_v5 = vpack.c.bf16 %v423_v0, %v422_v63  ;;  %v431_v49 = vld [vmem:[%s6644_s26 + $0xb8] sm:$0xff]  ;;  %v433_v63 = vld [vmem:[%s6644_s26 + $0xc8] sm:$0xff] }
  0x1e   : > { %5590 = vmatmul.mubr.msk.bf16.gmra.mxu1 %vm648_vm2, %v6657_v15  ;;  %5841 = vmatprep.subr.bf16.mxu0 %v9125_v2  ;;  %v531_v4 = vrot.slane %v6758_v62, 1  ;;  %v6779_v9 = vshrl.u32 %v6747_v59, 16  ;;  %v6792_v17 = vpack.c.bf16 %v425_v13, %v424_v11  ;;  %v6812_v30 = vpack.c.bf16 %v427_v23, %v426_v22  ;;  %v435_v11 = vld [vmem:[%s6644_s26 + $0xd8] sm:$0xff] }
  0x1f   : > { %5593 = vmatprep.mubr.msk.bf16.mxu1 %vm6553_vm1, %v9125_v2  ;;  %v524_v60 = vsel %vm480_vm3, %v519_v57, %v523_v58  ;;  %v527_v3 = vor.u32 %v6755_v61, %v523_v58  ;;  %9180 = vst [vmem:[#allocation7_spill] sm:$0xff] %v6770_v5  ;;  %v6782_v10 = vshll.u32 %v6770_v5, 16  ;;  %v6800_v20 = vshrl.u32 %v6770_v5, 16 }
  0x20   : > { %v535_v14 = vor.u32 %v6779_v9, %v531_v4  ;;  %9181 = vst [vmem:[#allocation8_spill] sm:$0xff] %v6792_v17  ;;  %v6803_v21 = vshll.u32 %v6792_v17, 16  ;;  %9182 = vst [vmem:[#allocation9_spill] sm:$0xff] %v6812_v30  ;;  %v6820_v32 = vshrl.u32 %v6792_v17, 16  ;;  %v6823_v33 = vshll.u32 %v6812_v30, 16 }
  0x21   : > { %v532_v8 = vsel %vm480_vm3, %v527_v3, %v531_v4  ;;  %v539_v16 = vrot.slane %v6782_v10, 1  ;;  %v6852_v55 = vpack.c.bf16 %v431_v49, %v430_v48  ;;  %v438_v48 = vld [vmem:[%s6644_s26 + $0xf0] sm:$0xff]  ;;  %v439_v49 = vld [vmem:[%s6644_s26 + $0xf8] sm:$0xff] }
  0x22   : > { %v547_v28 = vrot.slane %v6803_v21, 1  ;;  %v555_v40 = vrot.slane %v6823_v33, 1 }
  0x23   : > { %v540_v19 = vsel %vm480_vm3, %v535_v14, %v539_v16  ;;  %v543_v26 = vor.u32 %v6800_v20, %v539_v16  ;;  %9185 = vst [vmem:[#allocation12_spill] sm:$0xff] %v6852_v55  ;;  %v6863_v58 = vshll.u32 %v6852_v55, 16  ;;  %v6880_v6 = vshrl.u32 %v6852_v55, 16 }
  0x24   : > { %5504 = vmatmul.mubr.msk.bf16.gmra.mxu0 %vm648_vm2, %v500_v36  ;;  %v429_v36 = vld [vmem:[%s6644_s26 + $0xa8] sm:$0xff]  ;;  %v551_v39 = vor.u32 %v6820_v32, %v547_v28 }
  0x25   : > { %5507 = vmatprep.mubr.msk.bf16.mxu0 %vm6553_vm1, %v9125_v2  ;;  %v548_v31 = vsel %vm480_vm3, %v543_v26, %v547_v28  ;;  %v6832_v41 = vpack.c.bf16 %v429_v36, %v428_v34  ;;  %9187 = vst [vmem:[#allocation14_spill] sm:$0xff] %v6863_v58  ;;  %v571_v1 = vrot.slane %v6863_v58, 1  ;;  %9189 = vst [vmem:[#allocation16_spill] sm:$0xff] %v6880_v6  ;;  %v436_v26 = vld [vmem:[%s6644_s26 + $0xe0] sm:$0xff]  ;;  %v437_v28 = vld [vmem:[%s6644_s26 + $0xe8] sm:$0xff] }
  0x26   : > { %5594 = vmatmul.mubr.msk.bf16.gmra.mxu1 %vm648_vm2, %v6663_v18  ;;  %v556_v42 = vsel %vm480_vm3, %v551_v39, %v555_v40  ;;  %v6912_v36 = vpack.c.bf16 %v437_v28, %v436_v26  ;;  %v442_v28 = vld [vmem:[%s6644_s26 + $0x110] sm:$0xff]  ;;  %v9213_v58 = vor.u32 %v6669_v24, %v6671_v25  ;;  %v1203_v24 = vrot.slane %v6812_v30, 1 }
  0x27   : > { %5597 = vmatprep.mubr.msk.bf16.mxu1 %vm6553_vm1, %v9125_v2  ;;  %9183 = vst [vmem:[#allocation10_spill] sm:$0xff] %v6832_v41  ;;  %v6843_v47 = vshll.u32 %v6832_v41, 16  ;;  %v6860_v57 = vshrl.u32 %v6832_v41, 16  ;;  %v575_v13 = vor.u32 %v6880_v6, %v571_v1 }
  0x28   : > { %9194 = vst [vmem:[#allocation21_spill] sm:$0xff] %v6912_v36 }
  0x29   : > { %9184 = vst [vmem:[#allocation11_spill] sm:$0xff] %v6843_v47  ;;  %9186 = vst [vmem:[#allocation13_spill] sm:$0xff] %v6860_v57 }
  0x2c   : > { %5508 = vmatmul.mubr.msk.bf16.gmra.mxu0 %vm648_vm2, %v508_v44  ;;  %v6840_v44 = vshrl.u32 %v6812_v30, 16 }
  0x2d   : > { %5511 = vmatprep.mubr.msk.bf16.mxu0 %vm6553_vm1, %v9125_v2 }
  0x2e   : > { %5598 = vmatmul.mubr.msk.bf16.gmra.mxu1 %vm648_vm2, %v6686_v35  ;;  %v559_v50 = vor.u32 %v6840_v44, %v555_v40 }
  0x2f   : > { %5601 = vmatprep.mubr.msk.bf16.mxu1 %vm6553_vm1, %v9125_v2 }
  0x34   : > { %5512 = vmatmul.mubr.msk.bf16.gmra.mxu0 %vm648_vm2, %v516_v52  ;;  %v563_v52 = vrot.slane %v6843_v47, 1 }
  0x35   : > { %5515 = vmatprep.mubr.msk.bf16.mxu0 %vm6553_vm1, %v9125_v2 }
  0x36   : > { %5602 = vmatmul.mubr.msk.bf16.gmra.mxu1 %vm648_vm2, %v6707_v43  ;;  %v564_v56 = vsel %vm480_vm3, %v559_v50, %v563_v52  ;;  %v567_v0 = vor.u32 %v6860_v57, %v563_v52 }
  0x37   : > { %5605 = vmatprep.mubr.msk.bf16.mxu1 %vm6553_vm1, %v9125_v2 }
  0x38   : > { %v572_v4 = vsel %vm480_vm3, %v567_v0, %v571_v1  ;;  %v440_v1 = vld [vmem:[%s6644_s26 + $0x100] sm:$0xff] }
  0x3c   : > { %5516 = vmatmul.mubr.msk.bf16.gmra.mxu0 %vm648_vm2, %v524_v60  ;;  %v432_v60 = vld [vmem:[%s6644_s26 + $0xc0] sm:$0xff] }
  0x3d   : > { %5519 = vmatprep.mubr.msk.bf16.mxu0 %vm6553_vm1, %v9125_v2  ;;  %v6872_v3 = vpack.c.bf16 %v433_v63, %v432_v60  ;;  %v6940_v63 = vshrl.u32 %v6912_v36, 16 }
  0x3e   : > { %5606 = vmatmul.mubr.msk.bf16.gmra.mxu1 %vm648_vm2, %v6727_v51 }
  0x3f   : > { %5609 = vmatprep.mubr.msk.bf16.mxu1 %vm6553_vm1, %v9125_v2  ;;  %9188 = vst [vmem:[#allocation15_spill] sm:$0xff] %v6872_v3  ;;  %v6883_v7 = vshll.u32 %v6872_v3, 16  ;;  %v6900_v22 = vshrl.u32 %v6872_v3, 16  ;;  %9198 = vst [vmem:[#allocation25_spill] sm:$0xff] %v6940_v63 }
  0x41   : > { %9190 = vst [vmem:[#allocation17_spill] sm:$0xff] %v6883_v7  ;;  %v579_v14 = vrot.slane %v6883_v7, 1  ;;  %9192 = vst [vmem:[#allocation19_spill] sm:$0xff] %v6900_v22 }
  0x44   : > { %5520 = vmatmul.mubr.msk.bf16.gmra.mxu0 %vm648_vm2, %v532_v8  ;;  %v434_v8 = vld [vmem:[%s6644_s26 + $0xd0] sm:$0xff] }
  0x45   : > { %5523 = vmatprep.mubr.msk.bf16.mxu0 %vm6553_vm1, %v9125_v2  ;;  %v6892_v16 = vpack.c.bf16 %v435_v11, %v434_v8 }
  0x46   : > { %5610 = vmatmul.mubr.msk.bf16.gmra.mxu1 %vm648_vm2, %v6747_v59 }
  0x47   : > { %5613 = vmatprep.mubr.msk.bf16.mxu1 %vm6553_vm1, %v9125_v2  ;;  %9191 = vst [vmem:[#allocation18_spill] sm:$0xff] %v6892_v16  ;;  %v6903_v23 = vshll.u32 %v6892_v16, 16  ;;  %v6920_v40 = vshrl.u32 %v6892_v16, 16 }
  0x49   : > { %9193 = vst [vmem:[#allocation20_spill] sm:$0xff] %v6903_v23  ;;  %v587_v34 = vrot.slane %v6903_v23, 1  ;;  %9195 = vst [vmem:[#allocation22_spill] sm:$0xff] %v6920_v40  ;;  %v1805_v23 = vrot.slane %v6695_v37, 1 }
  0x4b   : > { %v591_v50 = vor.u32 %v6920_v40, %v587_v34 }
  0x4c   : > { %5524 = vmatmul.mubr.msk.bf16.gmra.mxu0 %vm648_vm2, %v540_v19  ;;  %v580_v19 = vsel %vm480_vm3, %v575_v13, %v579_v14 }
  0x4d   : > { %5527 = vmatprep.mubr.msk.bf16.mxu0 %vm6553_vm1, %v9125_v2 }
  0x4e   : > { %5614 = vmatmul.mubr.msk.bf16.gmra.mxu1 %vm648_vm2, %v6770_v5 }
  0x4f   : > { %5617 = vmatprep.mubr.msk.bf16.mxu1 %vm6553_vm1, %v9125_v2 }
  0x54   : > { %5528 = vmatmul.mubr.msk.bf16.gmra.mxu0 %vm648_vm2, %v548_v31  ;;  %v583_v31 = vor.u32 %v6900_v22, %v579_v14 }
  0x55   : > { %5531 = vmatprep.mubr.msk.bf16.mxu0 %vm6553_vm1, %v9125_v2 }
  0x56   : > { %5618 = vmatmul.mubr.msk.bf16.gmra.mxu1 %vm648_vm2, %v6792_v17  ;;  %v588_v39 = vsel %vm480_vm3, %v583_v31, %v587_v34  ;;  %v443_v31 = vld [vmem:[%s6644_s26 + $0x118] sm:$0xff] }
  0x57   : > { %5621 = vmatprep.mubr.msk.bf16.mxu1 %vm6553_vm1, %v9125_v2 }
  0x5c   : > { %5532 = vmatmul.mubr.msk.bf16.gmra.mxu0 %vm648_vm2, %v556_v42  ;;  %v6923_v42 = vshll.u32 %v6912_v36, 16 }
  0x5d   : > { %5535 = vmatprep.mubr.msk.bf16.mxu0 %vm6553_vm1, %v9125_v2 }
  0x5e   : > { %5622 = vmatmul.mubr.msk.bf16.gmra.mxu1 %vm648_vm2, %v6812_v30  ;;  %9196 = vst [vmem:[#allocation23_spill] sm:$0xff] %v6923_v42  ;;  %v595_v52 = vrot.slane %v6923_v42, 1 }
  0x5f   : > { %5625 = vmatprep.mubr.msk.bf16.mxu1 %vm6553_vm1, %v9125_v2 }
  0x60   : > { %v596_v60 = vsel %vm480_vm3, %v591_v50, %v595_v52  ;;  %v599_v8 = vor.u32 %v6940_v63, %v595_v52  ;;  %v1806_v63 = vrot.slane %v6674_v27, 2 }
  0x64   : > { %5536 = vmatmul.mubr.msk.bf16.gmra.mxu0 %vm648_vm2, %v564_v56  ;;  %v6932_v56 = vpack.c.bf16 %v439_v49, %v438_v48  ;;  %v6972_v48 = vpack.c.bf16 %v443_v31, %v442_v28 }
  0x65   : > { %5539 = vmatprep.mubr.msk.bf16.mxu0 %vm6553_vm1, %v9125_v2 }
  0x66   : > { %5626 = vmatmul.mubr.msk.bf16.gmra.mxu1 %vm648_vm2, %v6832_v41  ;;  %9197 = vst [vmem:[#allocation24_spill] sm:$0xff] %v6932_v56  ;;  %v6943_v0 = vshll.u32 %v6932_v56, 16  ;;  %9203 = vst [vmem:[#allocation30_spill] sm:$0xff] %v6972_v48  ;;  %v6983_v52 = vshll.u32 %v6972_v48, 16  ;;  %v7000_v28 = vshrl.u32 %v6972_v48, 16 }
  0x67   : > { %5629 = vmatprep.mubr.msk.bf16.mxu1 %vm6553_vm1, %v9125_v2 }
  0x68   : > { %9199 = vst [vmem:[#allocation26_spill] sm:$0xff] %v6943_v0  ;;  %v603_v11 = vrot.slane %v6943_v0, 1  ;;  %9205 = vst [vmem:[#allocation32_spill] sm:$0xff] %v6983_v52 }
  0x69   : > { %9207 = vst [vmem:[#allocation34_spill] sm:$0xff] %v7000_v28 }
  0x6a   : > { %v604_v14 = vsel %vm480_vm3, %v599_v8, %v603_v11  ;;  %v619_v8 = vrot.slane %v6983_v52, 1  ;;  %v7026_v52 = vld [vmem:[%s6644_s26 + $0x140] sm:$0xff] }
  0x6c   : > { %5540 = vmatmul.mubr.msk.bf16.gmra.mxu0 %vm648_vm2, %v572_v4  ;;  %v441_v4 = vld [vmem:[%s6644_s26 + $0x108] sm:$0xff] }
  0x6d   : > { %5543 = vmatprep.mubr.msk.bf16.mxu0 %vm6553_vm1, %v9125_v2  ;;  %v6952_v13 = vpack.c.bf16 %v441_v4, %v440_v1  ;;  %v445_v1 = vld [vmem:[%s6644_s26 + $0x128] sm:$0xff] }
  0x6e   : > { %5630 = vmatmul.mubr.msk.bf16.gmra.mxu1 %vm648_vm2, %v6852_v55 }
  0x6f   : > { %5633 = vmatprep.mubr.msk.bf16.mxu1 %vm6553_vm1, %v9125_v2  ;;  %9200 = vst [vmem:[#allocation27_spill] sm:$0xff] %v6952_v13  ;;  %v6963_v26 = vshll.u32 %v6952_v13, 16  ;;  %v6980_v50 = vshrl.u32 %v6952_v13, 16 }
  0x71   : > { %9202 = vst [vmem:[#allocation29_spill] sm:$0xff] %v6963_v26  ;;  %9204 = vst [vmem:[#allocation31_spill] sm:$0xff] %v6980_v50 }
  0x74   : > { %5544 = vmatmul.mubr.msk.bf16.gmra.mxu0 %vm648_vm2, %v580_v19  ;;  %v6960_v19 = vshrl.u32 %v6932_v56, 16 }
  0x75   : > { %5547 = vmatprep.mubr.msk.bf16.mxu0 %vm6553_vm1, %v9125_v2 }
  0x76   : > { %5634 = vmatmul.mubr.msk.bf16.gmra.mxu1 %vm648_vm2, %v6872_v3  ;;  %9201 = vst [vmem:[#allocation28_spill] sm:$0xff] %v6960_v19  ;;  %v607_v34 = vor.u32 %v6960_v19, %v603_v11 }
  0x77   : > { %5637 = vmatprep.mubr.msk.bf16.mxu1 %vm6553_vm1, %v9125_v2 }
  0x7c   : > { %5548 = vmatmul.mubr.msk.bf16.gmra.mxu0 %vm648_vm2, %v588_v39  ;;  %v611_v39 = vrot.slane %v6963_v26, 1 }
  0x7d   : > { %5551 = vmatprep.mubr.msk.bf16.mxu0 %vm6553_vm1, %v9125_v2 }
  0x7e   : > { %5638 = vmatmul.mubr.msk.bf16.gmra.mxu1 %vm648_vm2, %v6892_v16  ;;  %v612_v49 = vsel %vm480_vm3, %v607_v34, %v611_v39  ;;  %v615_v4 = vor.u32 %v6980_v50, %v611_v39  ;;  %v446_v34 = vld [vmem:[%s6644_s26 + $0x130] sm:$0xff]  ;;  %v447_v39 = vld [vmem:[%s6644_s26 + $0x138] sm:$0xff] }
  0x7f   : > { %5641 = vmatprep.mubr.msk.bf16.mxu1 %vm6553_vm1, %v9125_v2 }
  0x84   : > { %5552 = vmatmul.mubr.msk.bf16.gmra.mxu0 %vm648_vm2, %v596_v60  ;;  %v444_v60 = vld [vmem:[%s6644_s26 + $0x120] sm:$0xff] }
  0x85   : > { %5555 = vmatprep.mubr.msk.bf16.mxu0 %vm6553_vm1, %v9125_v2  ;;  %v6992_v11 = vpack.c.bf16 %v445_v1, %v444_v60  ;;  %v7012_v1 = vpack.c.bf16 %v447_v39, %v446_v34  ;;  %v7035_v39 = vpack.c.bf16 %v7026_v52, %v7026_v52 }
  0x86   : > { %5642 = vmatmul.mubr.msk.bf16.gmra.mxu1 %vm648_vm2, %v6912_v36 }
  0x87   : > { %5645 = vmatprep.mubr.msk.bf16.mxu1 %vm6553_vm1, %v9125_v2  ;;  %9206 = vst [vmem:[#allocation33_spill] sm:$0xff] %v6992_v11  ;;  %v7003_v31 = vshll.u32 %v6992_v11, 16  ;;  %9209 = vst [vmem:[#allocation36_spill] sm:$0xff] %v7012_v1  ;;  %v7020_v29 = vshrl.u32 %v6992_v11, 16 }
  0x89   : > { %9208 = vst [vmem:[#allocation35_spill] sm:$0xff] %v7003_v31  ;;  %v627_v60 = vrot.slane %v7003_v31, 1  ;;  %9210 = vst [vmem:[#allocation37_spill] sm:$0xff] %v7020_v29  ;;  %v641_v31 = vshll.u32 %v7035_v39, 16 }
  0x8c   : > { %5556 = vmatmul.mubr.msk.bf16.gmra.mxu0 %vm648_vm2, %v604_v14  ;;  %v620_v14 = vsel %vm480_vm3, %v615_v4, %v619_v8 }
  0x8d   : > { %5559 = vmatprep.mubr.msk.bf16.mxu0 %vm6553_vm1, %v9125_v2 }
  0x8e   : > { %5646 = vmatmul.mubr.msk.bf16.gmra.mxu1 %vm648_vm2, %v6932_v56 }
  0x8f   : > { %5649 = vmatprep.mubr.msk.bf16.mxu1 %vm6553_vm1, %v9125_v2 }
  0x94   : > { %5560 = vmatmul.mubr.msk.bf16.gmra.mxu0 %vm648_vm2, %v612_v49  ;;  %v623_v49 = vor.u32 %v7000_v28, %v619_v8  ;;  %v631_v8 = vor.u32 %v7020_v29, %v627_v60  ;;  %v645_v29 = vshrl.u32 %v7035_v39, 16 }
  0x95   : > { %5563 = vmatprep.mubr.msk.bf16.mxu0 %vm6553_vm1, %v9125_v2 }
  0x96   : > { %5650 = vmatmul.mubr.msk.bf16.gmra.mxu1 %vm648_vm2, %v6952_v13  ;;  %v628_v4 = vsel %vm480_vm3, %v623_v49, %v627_v60 }
  0x97   : > { %5653 = vmatprep.mubr.msk.bf16.mxu1 %vm6553_vm1, %v9125_v2 }
  0x9c   : > { %5564 = vmatmul.mubr.msk.bf16.gmra.mxu0 %vm648_vm2, %v620_v14  ;;  %v7023_v14 = vshll.u32 %v7012_v1, 16 }
  0x9d   : > { %5567 = vmatprep.mubr.msk.bf16.mxu0 %vm6553_vm1, %v9125_v2 }
  0x9e   : > { %5654 = vmatmul.mubr.msk.bf16.gmra.mxu1 %vm648_vm2, %v6972_v48  ;;  %9211 = vst [vmem:[#allocation38_spill] sm:$0xff] %v7023_v14  ;;  %v635_v34 = vrot.slane %v7023_v14, 1  ;;  %v643_v14 = vrot.slane %v641_v31, 1  ;;  %v1189_v31 = vrot.slane %v6663_v18, 1 }
  0x9f   : > { %5657 = vmatprep.mubr.msk.bf16.mxu1 %vm6553_vm1, %v9125_v2 }
  0xa0   : > { %v636_v49 = vsel %vm480_vm3, %v631_v8, %v635_v34 }
  0xa4   : > { %5568 = vmatmul.mubr.msk.bf16.gmra.mxu0 %vm648_vm2, %v628_v4  ;;  %v7043_v4 = vshrl.u32 %v7012_v1, 16 }
  0xa5   : > { %5571 = vmatprep.mubr.msk.bf16.mxu0 %vm6553_vm1, %v9125_v2 }
  0xa6   : > { %5658 = vmatmul.mubr.msk.bf16.gmra.mxu1 %vm648_vm2, %v6992_v11  ;;  %9212 = vst [vmem:[#allocation39_spill] sm:$0xff] %v7043_v4  ;;  %v639_v60 = vor.u32 %v7043_v4, %v635_v34  ;;  %v647_v34 = vor.u32 %v645_v29, %v643_v14  ;;  %v1186_v4 = vrot.slane %v6653_v12, 1  ;;  %v1191_v29 = vrot.slane %v6686_v35, 1 }
  0xa7   : > { %5661 = vmatprep.mubr.msk.bf16.mxu1 %vm6553_vm1, %v9125_v2  ;;  %v1193_v12 = vrot.slane %v6707_v43, 1 }
  0xa8   : > { %v644_v8 = vsel %vm480_vm3, %v639_v60, %v643_v14  ;;  %v5053_v60 = vld [vmem:[%s9083_s2 + $0x10] sm:$0xf]  ;;  %v1192_v50 = vsel %vm1185_vm4, %v1189_v31, %v1191_v29 }
  0xa9   : > { %v1800_v28 = vpack.c.bf16 %v5053_v60, %v5053_v60 }
  0xab   : > { %v1959_v26 = vsel %vm712_vm0, %v1800_v28, 0 }
  0xac   : > { %5572 = vmatmul.mubr.msk.bf16.gmra.mxu0 %vm648_vm2, %v636_v49  ;;  %v1187_v49 = vrot.slane %v6657_v15, 1 }
  0xad   : > { %5575 = vmatprep.mubr.msk.bf16.mxu0 %vm6553_vm1, %v9125_v2 }
  0xae   : > { %5662 = vmatmul.mubr.msk.bf16.gmra.mxu1 %vm648_vm2, %v7012_v1  ;;  %v1188_v14 = vsel %vm1185_vm4, %v1186_v4, %v1187_v49  ;;  %v1194_v4 = vsel %vm1185_vm4, %v1191_v29, %v1193_v12 }
  0xaf   : > { %5665 = vmatprep.mubr.msk.bf16.mxu1 %vm6553_vm1, %v9125_v2 }
  0xb4   : > { %5576 = vmatmul.mubr.msk.bf16.gmra.mxu0 %vm648_vm2, %v644_v8  ;;  %v1190_v8 = vsel %vm1185_vm4, %v1187_v49, %v1189_v31  ;;  %v1197_v49 = vrot.slane %v6747_v59, 1 }
  0xb5   : > { %5579 = vmatprep.mubr.msk.bf16.mxu0 %vm6553_vm1, %v9125_v2 }
  0xb6   : > { %5666 = vmatmul.mubr.msk.bf16.gmra.mxu1 %vm648_vm2, %v7035_v39 }
  0xb7   : > { %5757 = vmatprep.mubr.msk.bf16.mxu1 %vm6553_vm1, %v9125_v2 }
  0xbc   : > { %5580 = vmatmul.mubr.msk.bf16.gmra.mxu0 %vm648_vm2, %v647_v34 }
  0xbd   : > { %5671 = vmatprep.mubr.msk.bf16.mxu0 %vm6553_vm1, %v9125_v2 }
  0xbe   : > { %5758 = vmatmul.mubr.msk.bf16.vlgmr.msra.gmra.mxu1 %vm648_vm2, %v1190_v8 }
  0xbf   : > { %5761 = vmatprep.mubr.msk.bf16.mxu1 %vm6553_vm1, %v9125_v2 }
  0xc4   : > { %5672 = vmatmul.mubr.msk.bf16.vlgmr.msra.gmra.mxu0 %vm648_vm2, %v1188_v14 }
  0xc5   : > { %5842 = vmatpush3.bf16.msra.mxu0 %v1959_v26  ;;  %5675 = vmatprep.mubr.msk.bf16.mxu0 %vm6553_vm1, %v9125_v2  ;;  %v1195_v26 = vrot.slane %v6727_v51, 1 }
  0xc6   : > { %5762 = vmatmul.mubr.msk.bf16.gmra.mxu1 %vm648_vm2, %v1192_v50  ;;  %6013 = vmatprep.subr.bf16.mxu0 %v9125_v2 }
  0xc7   : > { %5765 = vmatprep.mubr.msk.bf16.mxu1 %vm6553_vm1, %v9125_v2  ;;  %v1196_v28 = vsel %vm1185_vm4, %v1193_v12, %v1195_v26  ;;  %v1198_v29 = vsel %vm1185_vm4, %v1195_v26, %v1197_v49 }
  0xcc   : > { %5676 = vmatmul.mubr.msk.bf16.gmra.mxu0 %vm648_vm2, %v1190_v8 }
  0xcd   : > { %5679 = vmatprep.mubr.msk.bf16.mxu0 %vm6553_vm1, %v9125_v2 }
  0xce   : > { %5766 = vmatmul.mubr.msk.bf16.gmra.mxu1 %vm648_vm2, %v1194_v4 }
  0xcf   : > { %5769 = vmatprep.mubr.msk.bf16.mxu1 %vm6553_vm1, %v9125_v2 }
  0xd4   : > { %5680 = vmatmul.mubr.msk.bf16.gmra.mxu0 %vm648_vm2, %v1192_v50 }
  0xd5   : > { %5683 = vmatprep.mubr.msk.bf16.mxu0 %vm6553_vm1, %v9125_v2  ;;  %v995_v31 = vpop.f32.mrf.mxu1 }
  0xd6   : > { %5770 = vmatmul.mubr.msk.bf16.gmra.mxu1 %vm648_vm2, %v1196_v28 }
  0xd7   : > { %v5587_v34 = vpop.f32.mrf.mxu1  ;;  %5773 = vmatprep.mubr.msk.bf16.mxu1 %vm6553_vm1, %v9125_v2 }
  0xd8   : > { %v1199_v34 = vrot.slane %v6770_v5, 1 }
  0xd9   : > { %v998_v60 = vpop.f32.mrf.mxu1 }
  0xdb   : > { %v5588_v8 = vpop.f32.mrf.mxu1 }
  0xdc   : > { %v750_v14 = vpop.f32.mrf.mxu0  ;;  %5684 = vmatmul.mubr.msk.bf16.gmra.mxu0 %vm648_vm2, %v1194_v4 }
  0xdd   : > { %v7106_v50 = vadd.f32 %v995_v31, %v750_v14  ;;  %5687 = vmatprep.mubr.msk.bf16.mxu0 %vm6553_vm1, %v9125_v2  ;;  %v1200_v31 = vsel %vm1185_vm4, %v1197_v49, %v1199_v34 }
  0xde   : > { %v5501_v12 = vpop.f32.mrf.mxu0  ;;  %v1003_v0 = vpop.f32.mrf.mxu1  ;;  %5774 = vmatmul.mubr.msk.bf16.gmra.mxu1 %vm648_vm2, %v1198_v29 }
  0xdf   : > { %5777 = vmatprep.mubr.msk.bf16.mxu1 %vm6553_vm1, %v9125_v2 }
  0xe0   : > { %v753_v8 = vpop.f32.mrf.mxu0  ;;  %v5591_v19 = vpop.f32.mrf.mxu1 }
  0xe1   : > { %v7114_v26 = vadd.f32 %v998_v60, %v753_v8 }
  0xe2   : > { %v5502_v42 = vpop.f32.mrf.mxu0  ;;  %v1006_v4 = vpop.f32.mrf.mxu1 }
  0xe3   : > { %v1201_v42 = vrot.slane %v6792_v17, 1 }
  0xe4   : > { %v758_v14 = vpop.f32.mrf.mxu0  ;;  %5688 = vmatmul.mubr.msk.bf16.gmra.mxu0 %vm648_vm2, %v1196_v28  ;;  %v5592_v12 = vpop.f32.mrf.mxu1  ;;  %v5075_v28 = vld [vmem:[%s9083_s2 + $0x14] sm:$0xf] }
  0xe5   : > { %v7120_v40 = vadd.f32 %v1003_v0, %v758_v14  ;;  %5691 = vmatprep.mubr.msk.bf16.mxu0 %vm6553_vm1, %v9125_v2  ;;  %v2204_v0 = vpack.c.bf16 %v5075_v28, %v5075_v28  ;;  %v7133_v12 = vor.u32 %v1806_v63, %v1805_v23  ;;  %v9214_v63 = vmov 0.0  }
  0xe6   : > { %v5505_v19 = vpop.f32.mrf.mxu0  ;;  %v1011_v60 = vpop.f32.mrf.mxu1  ;;  %5778 = vmatmul.mubr.msk.bf16.gmra.mxu1 %vm648_vm2, %v1200_v31 }
  0xe7   : > { %5781 = vmatprep.mubr.msk.bf16.mxu1 %vm6553_vm1, %v9125_v2  ;;  %v2311_v22 = vsel %vm712_vm0, %v2204_v0, 0  ;;  %v1202_v2 = vsel %vm1185_vm4, %v1199_v34, %v1201_v42  ;;  %v7142_v6 = vsel %vm1801_vm5, %v9213_v58, %v7133_v12 }
  0xe8   : > { %v761_v49 = vpop.f32.mrf.mxu0  ;;  %v5595_v8 = vpop.f32.mrf.mxu1  ;;  %5928 = vmatpush3.bf16.msra.mxu1 %v2311_v22 }
  0xe9   : > { %v7131_v14 = vadd.f32 %v1006_v4, %v761_v49  ;;  %6099 = vmatprep.subr.bf16.mxu1 %v9214_v63 }
  0xea   : > { %v5506_v19 = vpop.f32.mrf.mxu0  ;;  %v1014_v7 = vpop.f32.mrf.mxu1 }
  0xec   : > { %v766_v28 = vpop.f32.mrf.mxu0  ;;  %5692 = vmatmul.mubr.msk.bf16.gmra.mxu0 %vm648_vm2, %v1198_v29  ;;  %v5596_v23 = vpop.f32.mrf.mxu1 }
  0xed   : > { %v7146_v4 = vadd.f32 %v1011_v60, %v766_v28  ;;  %5695 = vmatprep.mubr.msk.bf16.mxu0 %vm6553_vm1, %v9214_v63  ;;  %v1204_v60 = vsel %vm1185_vm4, %v1201_v42, %v1203_v24 }
  0xee   : > { %v5509_v34 = vpop.f32.mrf.mxu0  ;;  %v1019_v22 = vpop.f32.mrf.mxu1  ;;  %5782 = vmatmul.mubr.msk.bf16.gmra.mxu1 %vm648_vm2, %v1202_v2 }
  0xef   : > { %5785 = vmatprep.mubr.msk.bf16.mxu1 %vm6553_vm1, %v9214_v63 }
  0xf0   : > { %v769_v25 = vpop.f32.mrf.mxu0  ;;  %v5599_v58 = vpop.f32.mrf.mxu1 }
  0xf1   : > { %v7154_v29 = vadd.f32 %v1014_v7, %v769_v25  ;;  %v1205_v7 = vrot.slane %v6832_v41, 1 }
  0xf2   : > { %v5510_v49 = vpop.f32.mrf.mxu0  ;;  %v1022_v8 = vpop.f32.mrf.mxu1 }
  0xf4   : > { %v774_v0 = vpop.f32.mrf.mxu0  ;;  %5696 = vmatmul.mubr.msk.bf16.gmra.mxu0 %vm648_vm2, %v1200_v31  ;;  %v5600_v19 = vpop.f32.mrf.mxu1 }
  0xf5   : > { %v7158_v28 = vadd.f32 %v1019_v22, %v774_v0  ;;  %5699 = vmatprep.mubr.msk.bf16.mxu0 %vm6553_vm1, %v9214_v63  ;;  %v1206_v22 = vsel %vm1185_vm4, %v1203_v24, %v1205_v7 }
  0xf6   : > { %v5513_v23 = vpop.f32.mrf.mxu0  ;;  %v1027_v34 = vpop.f32.mrf.mxu1  ;;  %5786 = vmatmul.mubr.msk.bf16.gmra.mxu1 %vm648_vm2, %v1204_v60 }
  0xf7   : > { %5789 = vmatprep.mubr.msk.bf16.mxu1 %vm6553_vm1, %v9214_v63 }
  0xf8   : > { %v777_v25 = vpop.f32.mrf.mxu0  ;;  %v5603_v42 = vpop.f32.mrf.mxu1 }
  0xf9   : > { %v7166_v58 = vadd.f32 %v1022_v8, %v777_v25  ;;  %v1207_v8 = vrot.slane %v6852_v55, 1 }
  0xfa   : > { %v5514_v31 = vpop.f32.mrf.mxu0  ;;  %v1030_v49 = vpop.f32.mrf.mxu1 }
  0xfb   : > { %9215 = vst [vmem:[#allocation40_spill] sm:$0xff] %v7166_v58 }
  0xfc   : > { %v782_v0 = vpop.f32.mrf.mxu0  ;;  %5700 = vmatmul.mubr.msk.bf16.gmra.mxu0 %vm648_vm2, %v1202_v2  ;;  %v5604_v19 = vpop.f32.mrf.mxu1 }
  0xfd   : > { %v7170_v23 = vadd.f32 %v1027_v34, %v782_v0  ;;  %5703 = vmatprep.mubr.msk.bf16.mxu0 %vm6553_vm1, %v9214_v63  ;;  %v1208_v34 = vsel %vm1185_vm4, %v1205_v7, %v1207_v8 }
  0xfe   : > { %v5517_v47 = vpop.f32.mrf.mxu0  ;;  %v1035_v57 = vpop.f32.mrf.mxu1  ;;  %5790 = vmatmul.mubr.msk.bf16.gmra.mxu1 %vm648_vm2, %v1206_v22 }
  0xff   : > { %9216 = vst [vmem:[#allocation41_spill] sm:$0xff] %v7170_v23  ;;  %5793 = vmatprep.mubr.msk.bf16.mxu1 %vm6553_vm1, %v9214_v63 }
 0x100   : > { %v785_v25 = vpop.f32.mrf.mxu0  ;;  %v5607_v24 = vpop.f32.mrf.mxu1 }
 0x101   : > { %v7178_v42 = vadd.f32 %v1030_v49, %v785_v25  ;;  %v1209_v49 = vrot.slane %v6872_v3, 1 }
 0x102   : > { %v5518_v2 = vpop.f32.mrf.mxu0  ;;  %v1038_v31 = vpop.f32.mrf.mxu1 }
 0x103   : > { %9217 = vst [vmem:[#allocation42_spill] sm:$0xff] %v7178_v42 }
 0x104   : > { %v790_v0 = vpop.f32.mrf.mxu0  ;;  %5704 = vmatmul.mubr.msk.bf16.gmra.mxu0 %vm648_vm2, %v1204_v60  ;;  %v5608_v47 = vpop.f32.mrf.mxu1 }
 0x105   : > { %v7182_v19 = vadd.f32 %v1035_v57, %v790_v0  ;;  %5707 = vmatprep.mubr.msk.bf16.mxu0 %vm6553_vm1, %v9214_v63  ;;  %v1210_v57 = vsel %vm1185_vm4, %v1207_v8, %v1209_v49 }
 0x106   : > { %v5521_v23 = vpop.f32.mrf.mxu0  ;;  %v1043_v58 = vpop.f32.mrf.mxu1  ;;  %5794 = vmatmul.mubr.msk.bf16.gmra.mxu1 %vm648_vm2, %v1208_v34 }
 0x107   : > { %9218 = vst [vmem:[#allocation43_spill] sm:$0xff] %v7182_v19  ;;  %5797 = vmatprep.mubr.msk.bf16.mxu1 %vm6553_vm1, %v9214_v63 }
 0x108   : > { %v793_v25 = vpop.f32.mrf.mxu0  ;;  %v5611_v7 = vpop.f32.mrf.mxu1 }
 0x109   : > { %v7190_v24 = vadd.f32 %v1038_v31, %v793_v25  ;;  %v1211_v31 = vrot.slane %v6892_v16, 1 }
 0x10a   : > { %v5522_v60 = vpop.f32.mrf.mxu0  ;;  %v1046_v2 = vpop.f32.mrf.mxu1 }
 0x10b   : > { %9219 = vst [vmem:[#allocation44_spill] sm:$0xff] %v7190_v24 }
 0x10c   : > { %v798_v0 = vpop.f32.mrf.mxu0  ;;  %5708 = vmatmul.mubr.msk.bf16.gmra.mxu0 %vm648_vm2, %v1206_v22  ;;  %v5612_v23 = vpop.f32.mrf.mxu1 }
 0x10d   : > { %v7194_v47 = vadd.f32 %v1043_v58, %v798_v0  ;;  %5711 = vmatprep.mubr.msk.bf16.mxu0 %vm6553_vm1, %v9214_v63  ;;  %v1212_v58 = vsel %vm1185_vm4, %v1209_v49, %v1211_v31 }
 0x10e   : > { %v5525_v19 = vpop.f32.mrf.mxu0  ;;  %v1051_v42 = vpop.f32.mrf.mxu1  ;;  %5798 = vmatmul.mubr.msk.bf16.gmra.mxu1 %vm648_vm2, %v1210_v57 }
 0x10f   : > { %9220 = vst [vmem:[#allocation45_spill] sm:$0xff] %v7194_v47  ;;  %5801 = vmatprep.mubr.msk.bf16.mxu1 %vm6553_vm1, %v9214_v63 }
 0x110   : > { %v801_v25 = vpop.f32.mrf.mxu0  ;;  %v5615_v8 = vpop.f32.mrf.mxu1 }
 0x111   : > { %v7202_v7 = vadd.f32 %v1046_v2, %v801_v25  ;;  %v1213_v2 = vrot.slane %v6912_v36, 1 }
 0x112   : > { %v5526_v22 = vpop.f32.mrf.mxu0  ;;  %v1054_v60 = vpop.f32.mrf.mxu1 }
 0x113   : > { %9221 = vst [vmem:[#allocation46_spill] sm:$0xff] %v7202_v7 }
 0x114   : > { %v806_v0 = vpop.f32.mrf.mxu0  ;;  %5712 = vmatmul.mubr.msk.bf16.gmra.mxu0 %vm648_vm2, %v1208_v34  ;;  %v5616_v19 = vpop.f32.mrf.mxu1 }
 0x115   : > { %v7206_v23 = vadd.f32 %v1051_v42, %v806_v0  ;;  %5715 = vmatprep.mubr.msk.bf16.mxu0 %vm6553_vm1, %v9214_v63  ;;  %v1214_v42 = vsel %vm1185_vm4, %v1211_v31, %v1213_v2 }
 0x116   : > { %v5529_v47 = vpop.f32.mrf.mxu0  ;;  %v1059_v24 = vpop.f32.mrf.mxu1  ;;  %5802 = vmatmul.mubr.msk.bf16.gmra.mxu1 %vm648_vm2, %v1212_v58 }
 0x117   : > { %9222 = vst [vmem:[#allocation47_spill] sm:$0xff] %v7206_v23  ;;  %5805 = vmatprep.mubr.msk.bf16.mxu1 %vm6553_vm1, %v9214_v63 }
 0x118   : > { %v809_v25 = vpop.f32.mrf.mxu0  ;;  %v5619_v49 = vpop.f32.mrf.mxu1 }
 0x119   : > { %v7214_v8 = vadd.f32 %v1054_v60, %v809_v25  ;;  %v1215_v60 = vrot.slane %v6932_v56, 1 }
 0x11a   : > { %v5530_v34 = vpop.f32.mrf.mxu0  ;;  %v1062_v22 = vpop.f32.mrf.mxu1 }
 0x11b   : > { %9223 = vst [vmem:[#allocation48_spill] sm:$0xff] %v7214_v8 }
 0x11c   : > { %v814_v0 = vpop.f32.mrf.mxu0  ;;  %5716 = vmatmul.mubr.msk.bf16.gmra.mxu0 %vm648_vm2, %v1210_v57  ;;  %v5620_v47 = vpop.f32.mrf.mxu1 }
 0x11d   : > { %v7218_v19 = vadd.f32 %v1059_v24, %v814_v0  ;;  %5719 = vmatprep.mubr.msk.bf16.mxu0 %vm6553_vm1, %v9214_v63  ;;  %v1216_v24 = vsel %vm1185_vm4, %v1213_v2, %v1215_v60 }
 0x11e   : > { %v5533_v23 = vpop.f32.mrf.mxu0  ;;  %v1067_v7 = vpop.f32.mrf.mxu1  ;;  %5806 = vmatmul.mubr.msk.bf16.gmra.mxu1 %vm648_vm2, %v1214_v42 }
 0x11f   : > { %9224 = vst [vmem:[#allocation49_spill] sm:$0xff] %v7218_v19  ;;  %5809 = vmatprep.mubr.msk.bf16.mxu1 %vm6553_vm1, %v9214_v63 }
 0x120   : > { %v817_v25 = vpop.f32.mrf.mxu0  ;;  %v5623_v31 = vpop.f32.mrf.mxu1 }
 0x121   : > { %v7226_v49 = vadd.f32 %v1062_v22, %v817_v25  ;;  %v1217_v22 = vrot.slane %v6952_v13, 1 }
 0x122   : > { %v5534_v57 = vpop.f32.mrf.mxu0  ;;  %v1070_v34 = vpop.f32.mrf.mxu1 }
 0x123   : > { %9225 = vst [vmem:[#allocation50_spill] sm:$0xff] %v7226_v49 }
 0x124   : > { %v822_v0 = vpop.f32.mrf.mxu0  ;;  %5720 = vmatmul.mubr.msk.bf16.gmra.mxu0 %vm648_vm2, %v1212_v58  ;;  %v5624_v23 = vpop.f32.mrf.mxu1 }
 0x125   : > { %v7230_v47 = vadd.f32 %v1067_v7, %v822_v0  ;;  %5723 = vmatprep.mubr.msk.bf16.mxu0 %vm6553_vm1, %v9214_v63  ;;  %v1218_v7 = vsel %vm1185_vm4, %v1215_v60, %v1217_v22 }
 0x126   : > { %v5537_v19 = vpop.f32.mrf.mxu0  ;;  %v1075_v8 = vpop.f32.mrf.mxu1  ;;  %5810 = vmatmul.mubr.msk.bf16.gmra.mxu1 %vm648_vm2, %v1216_v24 }
 0x127   : > { %9226 = vst [vmem:[#allocation51_spill] sm:$0xff] %v7230_v47  ;;  %5813 = vmatprep.mubr.msk.bf16.mxu1 %vm6553_vm1, %v9214_v63 }
 0x128   : > { %v825_v25 = vpop.f32.mrf.mxu0  ;;  %v5627_v2 = vpop.f32.mrf.mxu1 }
 0x129   : > { %v7238_v31 = vadd.f32 %v1070_v34, %v825_v25  ;;  %v1219_v34 = vrot.slane %v6972_v48, 1 }
 0x12a   : > { %v5538_v58 = vpop.f32.mrf.mxu0  ;;  %v1078_v57 = vpop.f32.mrf.mxu1 }
 0x12b   : > { %9227 = vst [vmem:[#allocation52_spill] sm:$0xff] %v7238_v31 }
 0x12c   : > { %v830_v0 = vpop.f32.mrf.mxu0  ;;  %5724 = vmatmul.mubr.msk.bf16.gmra.mxu0 %vm648_vm2, %v1214_v42  ;;  %v5628_v19 = vpop.f32.mrf.mxu1 }
 0x12d   : > { %v7242_v23 = vadd.f32 %v1075_v8, %v830_v0  ;;  %5727 = vmatprep.mubr.msk.bf16.mxu0 %vm6553_vm1, %v9214_v63  ;;  %v1220_v8 = vsel %vm1185_vm4, %v1217_v22, %v1219_v34 }
 0x12e   : > { %v5541_v47 = vpop.f32.mrf.mxu0  ;;  %v1083_v49 = vpop.f32.mrf.mxu1  ;;  %5814 = vmatmul.mubr.msk.bf16.gmra.mxu1 %vm648_vm2, %v1218_v7 }
 0x12f   : > { %9228 = vst [vmem:[#allocation53_spill] sm:$0xff] %v7242_v23  ;;  %5817 = vmatprep.mubr.msk.bf16.mxu1 %vm6553_vm1, %v9214_v63 }
 0x130   : > { %v833_v25 = vpop.f32.mrf.mxu0  ;;  %v5631_v60 = vpop.f32.mrf.mxu1 }
 0x131   : > { %v7250_v2 = vadd.f32 %v1078_v57, %v833_v25  ;;  %v1221_v57 = vrot.slane %v6992_v11, 1 }
 0x132   : > { %v5542_v42 = vpop.f32.mrf.mxu0  ;;  %v1086_v58 = vpop.f32.mrf.mxu1 }
 0x133   : > { %v1222_v42 = vsel %vm1185_vm4, %v1219_v34, %v1221_v57 }
 0x134   : > { %v838_v0 = vpop.f32.mrf.mxu0  ;;  %5728 = vmatmul.mubr.msk.bf16.gmra.mxu0 %vm648_vm2, %v1216_v24  ;;  %v5632_v47 = vpop.f32.mrf.mxu1 }
 0x135   : > { %v7254_v19 = vadd.f32 %v1083_v49, %v838_v0  ;;  %5731 = vmatprep.mubr.msk.bf16.mxu0 %vm6553_vm1, %v9214_v63 }
 0x136   : > { %v5545_v23 = vpop.f32.mrf.mxu0  ;;  %v1091_v31 = vpop.f32.mrf.mxu1  ;;  %5818 = vmatmul.mubr.msk.bf16.gmra.mxu1 %vm648_vm2, %v1220_v8 }
 0x137   : > { %9229 = vst [vmem:[#allocation54_spill] sm:$0xff] %v7254_v19  ;;  %5821 = vmatprep.mubr.msk.bf16.mxu1 %vm6553_vm1, %v9214_v63 }
 0x138   : > { %v841_v25 = vpop.f32.mrf.mxu0  ;;  %v5635_v22 = vpop.f32.mrf.mxu1 }
 0x139   : > { %v7262_v60 = vadd.f32 %v1086_v58, %v841_v25  ;;  %v1223_v58 = vrot.slane %v7012_v1, 1  ;;  %v449_v25 = vld [vmem:[%s6644_s26 + $0x148] sm:$0xff] }
 0x13a   : > { %v5546_v24 = vpop.f32.mrf.mxu0  ;;  %v1094_v49 = vpop.f32.mrf.mxu1 }
 0x13b   : > { %9230 = vst [vmem:[#allocation55_spill] sm:$0xff] %v7262_v60 }
 0x13c   : > { %v846_v0 = vpop.f32.mrf.mxu0  ;;  %5732 = vmatmul.mubr.msk.bf16.gmra.mxu0 %vm648_vm2, %v1218_v7  ;;  %v5636_v23 = vpop.f32.mrf.mxu1 }
 0x13d   : > { %v7266_v47 = vadd.f32 %v1091_v31, %v846_v0  ;;  %5735 = vmatprep.mubr.msk.bf16.mxu0 %vm6553_vm1, %v9214_v63  ;;  %v7278_v0 = vpack.c.bf16 %v449_v25, %v7026_v52 }
 0x13e   : > { %v5549_v19 = vpop.f32.mrf.mxu0  ;;  %v1099_v11 = vpop.f32.mrf.mxu1  ;;  %5822 = vmatmul.mubr.msk.bf16.gmra.mxu1 %vm648_vm2, %v1222_v42 }
 0x13f   : > { %9231 = vst [vmem:[#allocation56_spill] sm:$0xff] %v7266_v47  ;;  %5825 = vmatprep.mubr.msk.bf16.mxu1 %vm6553_vm1, %v9214_v63  ;;  %9233 = vst [vmem:[#allocation58_spill] sm:$0xff] %v7278_v0  ;;  %v1224_v19 = vsel %vm1185_vm4, %v1221_v57, %v1223_v58  ;;  %v1541_v52 = vrot.slane %v7278_v0, 1 }
 0x140   : > { %v849_v34 = vpop.f32.mrf.mxu0  ;;  %v5639_v22 = vpop.f32.mrf.mxu1 }
 0x141   : > { %v7275_v24 = vadd.f32 %v1094_v49, %v849_v34  ;;  %v450_v34 = vld [vmem:[%s6644_s26 + $0x150] sm:$0xff] }
 0x142   : > { %v5550_v7 = vpop.f32.mrf.mxu0  ;;  %v1102_v31 = vpop.f32.mrf.mxu1 }
 0x143   : > { %9232 = vst [vmem:[#allocation57_spill] sm:$0xff] %v7275_v24 }
 0x144   : > { %v854_v23 = vpop.f32.mrf.mxu0  ;;  %5736 = vmatmul.mubr.msk.bf16.gmra.mxu0 %vm648_vm2, %v1220_v8  ;;  %v5640_v47 = vpop.f32.mrf.mxu1 }
 0x145   : > { %v7282_v60 = vadd.f32 %v1099_v11, %v854_v23  ;;  %5739 = vmatprep.mubr.msk.bf16.mxu0 %vm6553_vm1, %v9214_v63  ;;  %v1542_v47 = vsel %vm1185_vm4, %v1223_v58, %v1541_v52  ;;  %v7294_v23 = vpack.c.bf16 %v450_v34, %v450_v34 }
 0x146   : > { %v5553_v22 = vpop.f32.mrf.mxu0  ;;  %v1107_v49 = vpop.f32.mrf.mxu1  ;;  %5826 = vmatmul.mubr.msk.bf16.gmra.mxu1 %vm648_vm2, %v1224_v19 }
 0x147   : > { %9234 = vst [vmem:[#allocation59_spill] sm:$0xff] %v7282_v60  ;;  %5829 = vmatprep.mubr.msk.bf16.mxu1 %vm6553_vm1, %v9214_v63  ;;  %9236 = vst [vmem:[#allocation61_spill] sm:$0xff] %v7294_v23 }
 0x148   : > { %v857_v25 = vpop.f32.mrf.mxu0  ;;  %v5643_v57 = vpop.f32.mrf.mxu1 }
 0x149   : > { %v7291_v7 = vadd.f32 %v1102_v31, %v857_v25  ;;  %v1543_v31 = vrot.slane %v7294_v23, 1 }
 0x14a   : > { %v5554_v8 = vpop.f32.mrf.mxu0  ;;  %v1110_v11 = vpop.f32.mrf.mxu1 }
 0x14b   : > { %9235 = vst [vmem:[#allocation60_spill] sm:$0xff] %v7291_v7 }
 0x14c   : > { %v862_v22 = vpop.f32.mrf.mxu0  ;;  %5740 = vmatmul.mubr.msk.bf16.gmra.mxu0 %vm648_vm2, %v1222_v42  ;;  %v5644_v60 = vpop.f32.mrf.mxu1 }
 0x14d   : > { %v7297_v24 = vadd.f32 %v1107_v49, %v862_v22  ;;  %5743 = vmatprep.mubr.msk.bf16.mxu0 %vm6553_vm1, %v9214_v63  ;;  %v1544_v49 = vsel %vm1185_vm4, %v1541_v52, %v1543_v31 }
 0x14e   : > { %v5557_v0 = vpop.f32.mrf.mxu0  ;;  %v1115_v57 = vpop.f32.mrf.mxu1  ;;  %5830 = vmatmul.mubr.msk.bf16.gmra.mxu1 %vm648_vm2, %v1542_v47  ;;  %v1225_v47 = vrot.slane %v7035_v39, 1 }
 0x14f   : > { %9237 = vst [vmem:[#allocation62_spill] sm:$0xff] %v7297_v24  ;;  %5833 = vmatprep.mubr.msk.bf16.mxu1 %vm6553_vm1, %v9214_v63 }
 0x150   : > { %v865_v25 = vpop.f32.mrf.mxu0  ;;  %v5647_v34 = vpop.f32.mrf.mxu1 }
 0x151   : > { %v7305_v8 = vadd.f32 %v1110_v11, %v865_v25 }
 0x152   : > { %v5558_v42 = vpop.f32.mrf.mxu0  ;;  %v1118_v60 = vpop.f32.mrf.mxu1 }
 0x154   : > { %v870_v22 = vpop.f32.mrf.mxu0  ;;  %5744 = vmatmul.mubr.msk.bf16.gmra.mxu0 %vm648_vm2, %v1224_v19  ;;  %v5648_v0 = vpop.f32.mrf.mxu1  ;;  %v1226_v19 = vsel %vm1185_vm4, %v1223_v58, %v1225_v47  ;;  %v2206_v58 = vrot.slane %v6657_v15, 2 }
 0x155   : > { %v7309_v24 = vadd.f32 %v1115_v57, %v870_v22  ;;  %5747 = vmatprep.mubr.msk.bf16.mxu0 %vm6553_vm1, %v9214_v63 }
 0x156   : > { %v5561_v23 = vpop.f32.mrf.mxu0  ;;  %v1123_v7 = vpop.f32.mrf.mxu1  ;;  %5834 = vmatmul.mubr.msk.bf16.gmra.mxu1 %vm648_vm2, %v1544_v49 }
 0x157   : > { %5837 = vmatprep.mubr.msk.bf16.mxu1 %vm6553_vm1, %v9214_v63 }
 0x158   : > { %v873_v11 = vpop.f32.mrf.mxu0  ;;  %v5651_v52 = vpop.f32.mrf.mxu1 }
 0x159   : > { %v7317_v25 = vadd.f32 %v1118_v60, %v873_v11  ;;  %v2207_v60 = vrot.slane %v6663_v18, 2 }
 0x15a   : > { %v5562_v57 = vpop.f32.mrf.mxu0  ;;  %v1126_v34 = vpop.f32.mrf.mxu1 }
 0x15b   : > { %v5097_v57 = vld [vmem:[%s9083_s2 + $0x18] sm:$0xf] }
 0x15c   : > { %v878_v42 = vpop.f32.mrf.mxu0  ;;  %5748 = vmatmul.mubr.msk.bf16.gmra.mxu0 %vm648_vm2, %v1226_v19  ;;  %v5652_v22 = vpop.f32.mrf.mxu1 }
 0x15d   : > { %v7321_v39 = vadd.f32 %v1123_v7, %v878_v42  ;;  %5751 = vmatprep.mubr.msk.bf16.mxu0 %vm6553_vm1, %v9214_v63 }
 0x15e   : > { %v5565_v23 = vpop.f32.mrf.mxu0  ;;  %v1131_v49 = vpop.f32.mrf.mxu1  ;;  %5838 = vmatmul.mubr.msk.bf16.gmra.mxu1 %vm648_vm2, %v1543_v31  ;;  %v2208_v31 = vsel %vm2205_vm6, %v2206_v58, %v2207_v60 }
 0x15f   : > { %5929 = vmatprep.mubr.msk.bf16.mxu1 %vm6553_vm1, %v9214_v63 }
 0x160   : > { %v881_v0 = vpop.f32.mrf.mxu0  ;;  %v5655_v11 = vpop.f32.mrf.mxu1 }
 0x161   : > { %v7330_v52 = vadd.f32 %v1126_v34, %v881_v0  ;;  %v2558_v0 = vpack.c.bf16 %v5097_v57, %v5097_v57  ;;  %v2209_v11 = vrot.slane %v6686_v35, 2 }
 0x162   : > { %v5566_v7 = vpop.f32.mrf.mxu0  ;;  %v1134_v19 = vpop.f32.mrf.mxu1 }
 0x163   : > { %v7351_v57 = vsel %vm2205_vm6, %v2207_v60, %v2209_v11 }
 0x164   : > { %v886_v42 = vpop.f32.mrf.mxu0  ;;  %5752 = vmatmul.mubr.msk.bf16.gmra.mxu0 %vm648_vm2, %v1225_v47  ;;  %v5656_v22 = vpop.f32.mrf.mxu1  ;;  %v1809_v47 = vrot.slane %v6715_v45, 1 }
 0x165   : > { %v7337_v15 = vadd.f32 %v1131_v49, %v886_v42  ;;  %5843 = vmatprep.mubr.msk.bf16.mxu0 %vm6553_vm1, %v9214_v63  ;;  %v1810_v49 = vrot.slane %v6698_v38, 2  ;;  %v2575_v22 = vsel %vm712_vm0, %v2558_v0, 0 }
 0x166   : > { %v5569_v23 = vpop.f32.mrf.mxu0  ;;  %v1139_v34 = vpop.f32.mrf.mxu1  ;;  %5930 = vmatmul.mubr.msk.bf16.vlgmr.msra.gmra.mxu1 %vm648_vm2, %v2208_v31 }
 0x167   : > { %9238 = vst [vmem:[#allocation63_spill] sm:$0xff] %v7337_v15  ;;  %5933 = vmatprep.mubr.msk.bf16.mxu1 %vm6553_vm1, %v9214_v63 }
 0x168   : > { %v889_v58 = vpop.f32.mrf.mxu0  ;;  %v5659_v7 = vpop.f32.mrf.mxu1 }
 0x169   : > { %v7345_v18 = vadd.f32 %v1134_v19, %v889_v58  ;;  %v1811_v19 = vor.u32 %v1810_v49, %v1809_v47  ;;  %v1813_v47 = vrot.slane %v6735_v53, 1  ;;  %v1814_v49 = vrot.slane %v6718_v46, 2 }
 0x16a   : > { %v5570_v42 = vpop.f32.mrf.mxu0  ;;  %v1142_v23 = vpop.f32.mrf.mxu1 }
 0x16b   : > { %v1812_v0 = vsel %vm1801_vm5, %v7133_v12, %v1811_v19 }
 0x16c   : > { %v894_v31 = vpop.f32.mrf.mxu0  ;;  %5844 = vmatmul.mubr.msk.bf16.vlgmr.msra.gmra.mxu0 %vm648_vm2, %v7142_v6  ;;  %v5660_v35 = vpop.f32.mrf.mxu1  ;;  %v2211_v6 = vrot.slane %v6707_v43, 2 }
 0x16d   : > { %v7355_v15 = vadd.f32 %v1139_v34, %v894_v31  ;;  %6014 = vmatpush3.bf16.msra.mxu0 %v2575_v22  ;;  %5847 = vmatprep.mubr.msk.bf16.mxu0 %vm6553_vm1, %v9214_v63 }
 0x16e   : > { %v5573_v58 = vpop.f32.mrf.mxu0  ;;  %v1147_v7 = vpop.f32.mrf.mxu1  ;;  %5934 = vmatmul.mubr.msk.bf16.gmra.mxu1 %vm648_vm2, %v7351_v57  ;;  %6185 = vmatprep.subr.bf16.mxu0 %v9214_v63  ;;  %v7372_v31 = vsel %vm2205_vm6, %v2209_v11, %v2211_v6  ;;  %v2213_v11 = vrot.slane %v6727_v51, 2 }
 0x16f   : > { %9239 = vst [vmem:[#allocation64_spill] sm:$0xff] %v7355_v15  ;;  %5937 = vmatprep.mubr.msk.bf16.mxu1 %vm6553_vm1, %v9214_v63  ;;  %9240 = vst [vmem:[#allocation65_spill] sm:$0xff] %v7372_v31 }
 0x170   : > { %v897_v35 = vpop.f32.mrf.mxu0  ;;  %v5663_v60 = vpop.f32.mrf.mxu1 }
 0x171   : > { %v7365_v34 = vadd.f32 %v1142_v23, %v897_v35  ;;  %v1815_v23 = vor.u32 %v1814_v49, %v1813_v47  ;;  %v1818_v47 = vrot.slane %v6738_v54, 2 }
 0x172   : > { %v5574_v42 = vpop.f32.mrf.mxu0  ;;  %v1150_v22 = vpop.f32.mrf.mxu1 }
 0x174   : > { %v902_v58 = vpop.f32.mrf.mxu0  ;;  %5848 = vmatmul.mubr.msk.bf16.gmra.mxu0 %vm648_vm2, %v1812_v0  ;;  %v5664_v43 = vpop.f32.mrf.mxu1 }
 0x175   : > { %v7375_v15 = vadd.f32 %v1147_v7, %v902_v58  ;;  %5851 = vmatprep.mubr.msk.bf16.mxu0 %vm6553_vm1, %v9214_v63  ;;  %v1816_v43 = vsel %vm1801_vm5, %v1811_v19, %v1815_v23  ;;  %v1817_v7 = vrot.slane %v6755_v61, 1 }
 0x176   : > { %v5577_v12 = vpop.f32.mrf.mxu0  ;;  %v1155_v35 = vpop.f32.mrf.mxu1  ;;  %5938 = vmatmul.mubr.msk.bf16.gmra.mxu1 %vm648_vm2, %v7372_v31 }
 0x177   : > { %9241 = vst [vmem:[#allocation66_spill] sm:$0xff] %v7375_v15  ;;  %5941 = vmatprep.mubr.msk.bf16.mxu1 %vm6553_vm1, %v9214_v63  ;;  %v7390_v12 = vsel %vm2205_vm6, %v2211_v6, %v2213_v11  ;;  %v2215_v6 = vrot.slane %v6747_v59, 2 }
 0x178   : > { %v905_v60 = vpop.f32.mrf.mxu0  ;;  %v5667_v42 = vpop.f32.mrf.mxu1 }
 0x179   : > { %v7384_v0 = vadd.f32 %v1150_v22, %v905_v60  ;;  %v1819_v22 = vor.u32 %v1818_v47, %v1817_v7  ;;  %v7406_v47 = vsel %vm2205_vm6, %v2213_v11, %v2215_v6  ;;  %v2217_v11 = vrot.slane %v6770_v5, 2 }
 0x17a   : > { %v5578_v49 = vpop.f32.mrf.mxu0  ;;  %v1158_v58 = vpop.f32.mrf.mxu1  ;;  %9243 = vst [vmem:[#allocation68_spill] sm:$0xff] %v7406_v47 }
 0x17c   : > { %v910_v15 = vpop.f32.mrf.mxu0  ;;  %5852 = vmatmul.mubr.msk.bf16.gmra.mxu0 %vm648_vm2, %v1816_v43  ;;  %v5668_v31 = vpop.f32.mrf.mxu1 }
 0x17d   : > { %v7393_v51 = vadd.f32 %v1155_v35, %v910_v15  ;;  %5855 = vmatprep.mubr.msk.bf16.mxu0 %vm6553_vm1, %v9214_v63  ;;  %v1820_v31 = vsel %vm1801_vm5, %v1815_v23, %v1819_v22  ;;  %v1821_v15 = vrot.slane %v6779_v9, 1  ;;  %v1822_v35 = vrot.slane %v6758_v62, 2 }
 0x17e   : > { %v5581_v19 = vpop.f32.mrf.mxu0  ;;  %v1591_v60 = vpop.f32.mrf.mxu1  ;;  %5942 = vmatmul.mubr.msk.bf16.gmra.mxu1 %vm648_vm2, %v7390_v12 }
 0x17f   : > { %9242 = vst [vmem:[#allocation67_spill] sm:$0xff] %v7393_v51  ;;  %5945 = vmatprep.mubr.msk.bf16.mxu1 %vm6553_vm1, %v9214_v63 }
 0x180   : > { %v913_v42 = vpop.f32.mrf.mxu0  ;;  %v5759_v49 = vpop.f32.mrf.mxu1 }
 0x181   : > { %v1823_v42 = vor.u32 %v1822_v35, %v1821_v15  ;;  %v1825_v15 = vrot.slane %v6800_v20, 1  ;;  %v1826_v35 = vrot.slane %v6782_v10, 2 }
 0x182   : > { %v5582_v43 = vpop.f32.mrf.mxu0  ;;  %v1594_v7 = vpop.f32.mrf.mxu1 }
 0x184   : > { %v1327_v58 = vpop.f32.mrf.mxu0  ;;  %5856 = vmatmul.mubr.msk.bf16.gmra.mxu0 %vm648_vm2, %v1820_v31  ;;  %v5760_v19 = vpop.f32.mrf.mxu1 }
 0x185   : > { %v1493_v51 = vadd.f32 %v1327_v58, %v7106_v50  ;;  %5859 = vmatprep.mubr.msk.bf16.mxu0 %vm6553_vm1, %v9214_v63  ;;  %v1824_v58 = vsel %vm1801_vm5, %v1819_v22, %v1823_v42 }
 0x186   : > { %v5673_v23 = vpop.f32.mrf.mxu0  ;;  %v1599_v49 = vpop.f32.mrf.mxu1  ;;  %5946 = vmatmul.mubr.msk.bf16.gmra.mxu1 %vm648_vm2, %v7406_v47 }
 0x187   : > { %v7414_v43 = vadd.f32 %v1591_v60, %v1493_v51  ;;  %5949 = vmatprep.mubr.msk.bf16.mxu1 %vm6553_vm1, %v9214_v63  ;;  %v7426_v51 = vsel %vm2205_vm6, %v2215_v6, %v2217_v11  ;;  %v2823_v6 = vrot.slane %v6695_v37, 2  ;;  %v1829_v37 = vrot.slane %v6820_v32, 1 }
 0x188   : > { %v1330_v31 = vpop.f32.mrf.mxu0  ;;  %v5763_v19 = vpop.f32.mrf.mxu1 }
 0x189   : > { %v1494_v50 = vadd.f32 %v1330_v31, %v7114_v26  ;;  %v1827_v26 = vor.u32 %v1826_v35, %v1825_v15 }
 0x18a   : > { %v5674_v23 = vpop.f32.mrf.mxu0  ;;  %v1602_v59 = vpop.f32.mrf.mxu1 }
 0x18b   : > { %v7423_v47 = vadd.f32 %v1594_v7, %v1494_v50  ;;  %v2824_v7 = vrot.slane %v6674_v27, 3  ;;  %v1828_v27 = vsel %vm1801_vm5, %v1823_v42, %v1827_v26 }
 0x18c   : > { %v1335_v60 = vpop.f32.mrf.mxu0  ;;  %5860 = vmatmul.mubr.msk.bf16.gmra.mxu0 %vm648_vm2, %v1824_v58  ;;  %v5764_v5 = vpop.f32.mrf.mxu1 }
 0x18d   : > { %v1495_v19 = vadd.f32 %v1335_v60, %v7120_v40  ;;  %5863 = vmatprep.mubr.msk.bf16.mxu0 %vm6553_vm1, %v9214_v63  ;;  %v2219_v5 = vrot.slane %v6792_v17, 2  ;;  %v5119_v40 = vld [vmem:[%s9083_s2 + $0x1c] sm:$0xf] }
 0x18e   : > { %v5677_v22 = vpop.f32.mrf.mxu0  ;;  %v1607_v31 = vpop.f32.mrf.mxu1  ;;  %5950 = vmatmul.mubr.msk.bf16.gmra.mxu1 %vm648_vm2, %v7426_v51  ;;  %v2821_v35 = vpack.c.bf16 %v5119_v40, %v5119_v40 }
 0x18f   : > { %v7436_v50 = vadd.f32 %v1599_v49, %v1495_v19  ;;  %5953 = vmatprep.mubr.msk.bf16.mxu1 %vm6553_vm1, %v9214_v63  ;;  %v1830_v49 = vrot.slane %v6803_v21, 2 }
 0x190   : > { %v1338_v58 = vpop.f32.mrf.mxu0  ;;  %v5767_v15 = vpop.f32.mrf.mxu1  ;;  %v2980_v22 = vsel %vm712_vm0, %v2821_v35, 0 }
 0x191   : > { %9244 = vst [vmem:[#allocation69_spill] sm:$0xff] %v7436_v50  ;;  %v1496_v23 = vadd.f32 %v1338_v58, %v7131_v14  ;;  %v7452_v50 = vsel %vm2205_vm6, %v2217_v11, %v2219_v5  ;;  %6100 = vmatpush3.bf16.msra.mxu1 %v2980_v22  ;;  %v7454_v15 = vor.u32 %v2824_v7, %v2823_v6  ;;  %v2221_v7 = vrot.slane %v6812_v30, 2 }
 0x192   : > { %v5678_v60 = vpop.f32.mrf.mxu0  ;;  %v1610_v19 = vpop.f32.mrf.mxu1  ;;  %6271 = vmatprep.subr.bf16.mxu1 %v9214_v63  ;;  %v1831_v58 = vor.u32 %v1830_v49, %v1829_v37  ;;  %v1833_v37 = vrot.slane %v6840_v44, 1  ;;  %v1834_v49 = vrot.slane %v6823_v33, 2 }
 0x193   : > { %v7449_v17 = vadd.f32 %v1602_v59, %v1496_v23 }
 0x194   : > { %v1343_v40 = vpop.f32.mrf.mxu0  ;;  %5864 = vmatmul.mubr.msk.bf16.gmra.mxu0 %vm648_vm2, %v1828_v27  ;;  %v5768_v14 = vpop.f32.mrf.mxu1  ;;  %v1832_v27 = vsel %vm1801_vm5, %v1827_v26, %v1831_v58 }
 0x195   : > { %v1497_v42 = vadd.f32 %v1343_v40, %v7146_v4  ;;  %5867 = vmatprep.mubr.msk.bf16.mxu0 %vm6553_vm1, %v9214_v63 }
 0x196   : > { %v5681_v59 = vpop.f32.mrf.mxu0  ;;  %v1615_v35 = vpop.f32.mrf.mxu1  ;;  %5954 = vmatmul.mubr.msk.bf16.gmra.mxu1 %vm648_vm2, %v7452_v50 }
 0x197   : > { %v7463_v11 = vadd.f32 %v1607_v31, %v1497_v42  ;;  %5957 = vmatprep.mubr.msk.bf16.mxu1 %vm6553_vm1, %v9214_v63  ;;  %v7475_v31 = vsel %vm2205_vm6, %v2219_v5, %v2221_v7  ;;  %v2223_v5 = vrot.slane %v6832_v41, 2 }
 0x198   : > { %v1346_v6 = vpop.f32.mrf.mxu0  ;;  %v5771_v23 = vpop.f32.mrf.mxu1  ;;  %9246 = vst [vmem:[#allocation71_spill] sm:$0xff] %v7475_v31 }
 0x199   : > { %v1498_v4 = vadd.f32 %v1346_v6, %v7154_v29  ;;  %v1835_v29 = vor.u32 %v1834_v49, %v1833_v37  ;;  %v9250_v49 = vld [vmem:[#allocation11_spill] sm:$0xff] }
 0x19a   : > { %v5682_v60 = vpop.f32.mrf.mxu0  ;;  %v1618_v22 = vpop.f32.mrf.mxu1 }
 0x19b   : > { %v7472_v40 = vadd.f32 %v1610_v19, %v1498_v4  ;;  %v1836_v60 = vsel %vm1801_vm5, %v1831_v58, %v1835_v29 }
 0x19c   : > { %v1351_v14 = vpop.f32.mrf.mxu0  ;;  %5868 = vmatmul.mubr.msk.bf16.gmra.mxu0 %vm648_vm2, %v1832_v27  ;;  %v5772_v42 = vpop.f32.mrf.mxu1  ;;  %v9248_v27 = vld [vmem:[#allocation40_spill] sm:$0xff] }
 0x19d   : > { %9245 = vst [vmem:[#allocation70_spill] sm:$0xff] %v7472_v40  ;;  %v1499_v59 = vadd.f32 %v1351_v14, %v7158_v28  ;;  %5871 = vmatprep.mubr.msk.bf16.mxu0 %vm6553_vm1, %v9214_v63  ;;  %v9249_v14 = vld [vmem:[#allocation13_spill] sm:$0xff]  ;;  %v1838_v42 = vrot.slane %v9250_v49, 2 }
 0x19e   : > { %v5685_v26 = vpop.f32.mrf.mxu0  ;;  %v1623_v6 = vpop.f32.mrf.mxu1  ;;  %5958 = vmatmul.mubr.msk.bf16.gmra.mxu1 %vm648_vm2, %v7475_v31  ;;  %v1837_v37 = vrot.slane %v9249_v14, 1 }
 0x19f   : > { %v7483_v19 = vadd.f32 %v1615_v35, %v1499_v59  ;;  %5961 = vmatprep.mubr.msk.bf16.mxu1 %vm6553_vm1, %v9214_v63  ;;  %v7495_v35 = vsel %vm2205_vm6, %v2221_v7, %v2223_v5  ;;  %v2225_v7 = vrot.slane %v6852_v55, 2 }
 0x1a0   : > { %v1354_v23 = vpop.f32.mrf.mxu0  ;;  %v5775_v4 = vpop.f32.mrf.mxu1  ;;  %9252 = vst [vmem:[#allocation13_spill] sm:$0xff] %v7495_v35  ;;  %v1839_v58 = vor.u32 %v1838_v42, %v1837_v37  ;;  %v9257_v42 = vld [vmem:[#allocation14_spill] sm:$0xff] }
 0x1a1   : > { %9247 = vst [vmem:[#allocation72_spill] sm:$0xff] %v7483_v19  ;;  %v1500_v28 = vadd.f32 %v1354_v23, %v9248_v27  ;;  %v9253_v4 = vld [vmem:[#allocation41_spill] sm:$0xff] }
 0x1a2   : > { %v5686_v26 = vpop.f32.mrf.mxu0  ;;  %v1626_v30 = vpop.f32.mrf.mxu1 }
 0x1a3   : > { %v7492_v31 = vadd.f32 %v1618_v22, %v1500_v28 }
 0x1a4   : > { %v1359_v59 = vpop.f32.mrf.mxu0  ;;  %5872 = vmatmul.mubr.msk.bf16.gmra.mxu0 %vm648_vm2, %v1836_v60  ;;  %v5776_v41 = vpop.f32.mrf.mxu1  ;;  %v9255_v60 = vld [vmem:[#allocation42_spill] sm:$0xff] }
 0x1a5   : > { %9251 = vst [vmem:[#allocation40_spill] sm:$0xff] %v7492_v31  ;;  %v1501_v19 = vadd.f32 %v1359_v59, %v9253_v4  ;;  %5875 = vmatprep.mubr.msk.bf16.mxu0 %vm6553_vm1, %v9214_v63  ;;  %v1840_v59 = vsel %vm1801_vm5, %v1835_v29, %v1839_v58  ;;  %v9256_v4 = vld [vmem:[#allocation16_spill] sm:$0xff] }
 0x1a6   : > { %v5689_v23 = vpop.f32.mrf.mxu0  ;;  %v1631_v27 = vpop.f32.mrf.mxu1  ;;  %5962 = vmatmul.mubr.msk.bf16.gmra.mxu1 %vm648_vm2, %v7495_v35  ;;  %v1841_v37 = vrot.slane %v9256_v4, 1 }
 0x1a7   : > { %v7503_v22 = vadd.f32 %v1623_v6, %v1501_v19  ;;  %5965 = vmatprep.mubr.msk.bf16.mxu1 %vm6553_vm1, %v9214_v63  ;;  %v1842_v23 = vrot.slane %v9257_v42, 2  ;;  %v7515_v6 = vsel %vm2205_vm6, %v2223_v5, %v2225_v7 }
 0x1a8   : > { %v1362_v28 = vpop.f32.mrf.mxu0  ;;  %v5779_v41 = vpop.f32.mrf.mxu1  ;;  %9259 = vst [vmem:[#allocation42_spill] sm:$0xff] %v7515_v6 }
 0x1a9   : > { %9254 = vst [vmem:[#allocation11_spill] sm:$0xff] %v7503_v22  ;;  %v1502_v26 = vadd.f32 %v1362_v28, %v9255_v60  ;;  %v9260_v41 = vld [vmem:[#allocation43_spill] sm:$0xff]  ;;  %v1843_v29 = vor.u32 %v1842_v23, %v1841_v37  ;;  %v9264_v23 = vld [vmem:[#allocation17_spill] sm:$0xff] }
 0x1aa   : > { %v5690_v31 = vpop.f32.mrf.mxu0  ;;  %v1634_v40 = vpop.f32.mrf.mxu1 }
 0x1ab   : > { %v7512_v35 = vadd.f32 %v1626_v30, %v1502_v26  ;;  %v2227_v31 = vrot.slane %v6872_v3, 2  ;;  %v9262_v26 = vld [vmem:[#allocation44_spill] sm:$0xff] }
 0x1ac   : > { %v1367_v19 = vpop.f32.mrf.mxu0  ;;  %5876 = vmatmul.mubr.msk.bf16.gmra.mxu0 %vm648_vm2, %v1840_v59  ;;  %v5780_v55 = vpop.f32.mrf.mxu1 }
 0x1ad   : > { %9258 = vst [vmem:[#allocation41_spill] sm:$0xff] %v7512_v35  ;;  %v1503_v22 = vadd.f32 %v1367_v19, %v9260_v41  ;;  %5879 = vmatprep.mubr.msk.bf16.mxu0 %vm6553_vm1, %v9214_v63  ;;  %v1844_v19 = vsel %vm1801_vm5, %v1839_v58, %v1843_v29  ;;  %v9263_v41 = vld [vmem:[#allocation19_spill] sm:$0xff] }
 0x1ae   : > { %v5693_v28 = vpop.f32.mrf.mxu0  ;;  %v1639_v60 = vpop.f32.mrf.mxu1  ;;  %5966 = vmatmul.mubr.msk.bf16.gmra.mxu1 %vm648_vm2, %v7515_v6  ;;  %v1845_v37 = vrot.slane %v9263_v41, 1 }
 0x1af   : > { %v7523_v30 = vadd.f32 %v1631_v27, %v1503_v22  ;;  %5969 = vmatprep.mubr.msk.bf16.mxu1 %vm6553_vm1, %v9214_v63  ;;  %v1846_v28 = vrot.slane %v9264_v23, 2  ;;  %v7535_v27 = vsel %vm2205_vm6, %v2225_v7, %v2227_v31 }
 0x1b0   : > { %v1370_v5 = vpop.f32.mrf.mxu0  ;;  %v5783_v55 = vpop.f32.mrf.mxu1  ;;  %9266 = vst [vmem:[#allocation44_spill] sm:$0xff] %v7535_v27 }
 0x1b1   : > { %9261 = vst [vmem:[#allocation16_spill] sm:$0xff] %v7523_v30  ;;  %v1504_v59 = vadd.f32 %v1370_v5, %v9262_v26  ;;  %v9267_v55 = vld [vmem:[#allocation45_spill] sm:$0xff]  ;;  %v1847_v58 = vor.u32 %v1846_v28, %v1845_v37  ;;  %v9271_v28 = vld [vmem:[#allocation20_spill] sm:$0xff] }
 0x1b2   : > { %v5694_v35 = vpop.f32.mrf.mxu0  ;;  %v1642_v42 = vpop.f32.mrf.mxu1 }
 0x1b3   : > { %v7532_v6 = vadd.f32 %v1634_v40, %v1504_v59  ;;  %v2229_v35 = vrot.slane %v6892_v16, 2  ;;  %v9269_v59 = vld [vmem:[#allocation46_spill] sm:$0xff] }
 0x1b4   : > { %v1375_v22 = vpop.f32.mrf.mxu0  ;;  %5880 = vmatmul.mubr.msk.bf16.gmra.mxu0 %vm648_vm2, %v1844_v19  ;;  %v5784_v3 = vpop.f32.mrf.mxu1 }
 0x1b5   : > { %9265 = vst [vmem:[#allocation43_spill] sm:$0xff] %v7532_v6  ;;  %v1505_v30 = vadd.f32 %v1375_v22, %v9267_v55  ;;  %5883 = vmatprep.mubr.msk.bf16.mxu0 %vm6553_vm1, %v9214_v63  ;;  %v1848_v22 = vsel %vm1801_vm5, %v1843_v29, %v1847_v58  ;;  %v9270_v55 = vld [vmem:[#allocation22_spill] sm:$0xff] }
 0x1b6   : > { %v5697_v5 = vpop.f32.mrf.mxu0  ;;  %v1647_v26 = vpop.f32.mrf.mxu1  ;;  %5970 = vmatmul.mubr.msk.bf16.gmra.mxu1 %vm648_vm2, %v7535_v27  ;;  %v1849_v37 = vrot.slane %v9270_v55, 1 }
 0x1b7   : > { %v7543_v40 = vadd.f32 %v1639_v60, %v1505_v30  ;;  %5973 = vmatprep.mubr.msk.bf16.mxu1 %vm6553_vm1, %v9214_v63  ;;  %v1850_v5 = vrot.slane %v9271_v28, 2  ;;  %v7555_v60 = vsel %vm2205_vm6, %v2227_v31, %v2229_v35 }
 0x1b8   : > { %v1378_v7 = vpop.f32.mrf.mxu0  ;;  %v5787_v3 = vpop.f32.mrf.mxu1  ;;  %9273 = vst [vmem:[#allocation46_spill] sm:$0xff] %v7555_v60 }
 0x1b9   : > { %9268 = vst [vmem:[#allocation19_spill] sm:$0xff] %v7543_v40  ;;  %v1506_v19 = vadd.f32 %v1378_v7, %v9269_v59  ;;  %v9274_v3 = vld [vmem:[#allocation47_spill] sm:$0xff]  ;;  %v1851_v29 = vor.u32 %v1850_v5, %v1849_v37 }
 0x1ba   : > { %v5698_v6 = vpop.f32.mrf.mxu0  ;;  %v1650_v23 = vpop.f32.mrf.mxu1  ;;  %v9278_v5 = vld [vmem:[#allocation23_spill] sm:$0xff] }
 0x1bb   : > { %v7552_v27 = vadd.f32 %v1642_v42, %v1506_v19  ;;  %v2231_v6 = vrot.slane %v6912_v36, 2  ;;  %v9276_v19 = vld [vmem:[#allocation48_spill] sm:$0xff] }
 0x1bc   : > { %v1383_v30 = vpop.f32.mrf.mxu0  ;;  %5884 = vmatmul.mubr.msk.bf16.gmra.mxu0 %vm648_vm2, %v1848_v22  ;;  %v5788_v16 = vpop.f32.mrf.mxu1 }
 0x1bd   : > { %9272 = vst [vmem:[#allocation45_spill] sm:$0xff] %v7552_v27  ;;  %v1507_v40 = vadd.f32 %v1383_v30, %v9274_v3  ;;  %5887 = vmatprep.mubr.msk.bf16.mxu0 %vm6553_vm1, %v9214_v63  ;;  %v1852_v30 = vsel %vm1801_vm5, %v1847_v58, %v1851_v29  ;;  %v9277_v3 = vld [vmem:[#allocation25_spill] sm:$0xff] }
 0x1be   : > { %v5701_v7 = vpop.f32.mrf.mxu0  ;;  %v1655_v59 = vpop.f32.mrf.mxu1  ;;  %5974 = vmatmul.mubr.msk.bf16.gmra.mxu1 %vm648_vm2, %v7555_v60  ;;  %v1853_v37 = vrot.slane %v9277_v3, 1 }
 0x1bf   : > { %v7563_v42 = vadd.f32 %v1647_v26, %v1507_v40  ;;  %5977 = vmatprep.mubr.msk.bf16.mxu1 %vm6553_vm1, %v9214_v63  ;;  %v1854_v7 = vrot.slane %v9278_v5, 2  ;;  %v7575_v26 = vsel %vm2205_vm6, %v2229_v35, %v2231_v6 }
 0x1c0   : > { %v1386_v31 = vpop.f32.mrf.mxu0  ;;  %v5791_v16 = vpop.f32.mrf.mxu1  ;;  %9280 = vst [vmem:[#allocation48_spill] sm:$0xff] %v7575_v26 }
 0x1c1   : > { %9275 = vst [vmem:[#allocation22_spill] sm:$0xff] %v7563_v42  ;;  %v1508_v22 = vadd.f32 %v1386_v31, %v9276_v19  ;;  %v9281_v16 = vld [vmem:[#allocation49_spill] sm:$0xff]  ;;  %v1855_v58 = vor.u32 %v1854_v7, %v1853_v37  ;;  %v9285_v7 = vld [vmem:[#allocation26_spill] sm:$0xff] }
 0x1c2   : > { %v5702_v27 = vpop.f32.mrf.mxu0  ;;  %v1658_v28 = vpop.f32.mrf.mxu1 }
 0x1c3   : > { %v7572_v60 = vadd.f32 %v1650_v23, %v1508_v22  ;;  %v2233_v27 = vrot.slane %v6932_v56, 2  ;;  %v9283_v22 = vld [vmem:[#allocation50_spill] sm:$0xff] }
 0x1c4   : > { %v1391_v40 = vpop.f32.mrf.mxu0  ;;  %5888 = vmatmul.mubr.msk.bf16.gmra.mxu0 %vm648_vm2, %v1852_v30  ;;  %v5792_v36 = vpop.f32.mrf.mxu1 }
 0x1c5   : > { %9279 = vst [vmem:[#allocation47_spill] sm:$0xff] %v7572_v60  ;;  %v1509_v42 = vadd.f32 %v1391_v40, %v9281_v16  ;;  %5891 = vmatprep.mubr.msk.bf16.mxu0 %vm6553_vm1, %v9214_v63  ;;  %v1856_v40 = vsel %vm1801_vm5, %v1851_v29, %v1855_v58  ;;  %v9284_v16 = vld [vmem:[#allocation28_spill] sm:$0xff] }
 0x1c6   : > { %v5705_v31 = vpop.f32.mrf.mxu0  ;;  %v1663_v19 = vpop.f32.mrf.mxu1  ;;  %5978 = vmatmul.mubr.msk.bf16.gmra.mxu1 %vm648_vm2, %v7575_v26  ;;  %v1857_v37 = vrot.slane %v9284_v16, 1 }
 0x1c7   : > { %v7583_v23 = vadd.f32 %v1655_v59, %v1509_v42  ;;  %5981 = vmatprep.mubr.msk.bf16.mxu1 %vm6553_vm1, %v9214_v63  ;;  %v1858_v31 = vrot.slane %v9285_v7, 2  ;;  %v7595_v59 = vsel %vm2205_vm6, %v2231_v6, %v2233_v27 }
 0x1c8   : > { %v1394_v35 = vpop.f32.mrf.mxu0  ;;  %v5795_v36 = vpop.f32.mrf.mxu1  ;;  %9287 = vst [vmem:[#allocation50_spill] sm:$0xff] %v7595_v59 }
 0x1c9   : > { %9282 = vst [vmem:[#allocation25_spill] sm:$0xff] %v7583_v23  ;;  %v1510_v30 = vadd.f32 %v1394_v35, %v9283_v22  ;;  %v9288_v36 = vld [vmem:[#allocation51_spill] sm:$0xff]  ;;  %v1859_v29 = vor.u32 %v1858_v31, %v1857_v37  ;;  %v9292_v31 = vld [vmem:[#allocation29_spill] sm:$0xff] }
 0x1ca   : > { %v5706_v60 = vpop.f32.mrf.mxu0  ;;  %v1666_v5 = vpop.f32.mrf.mxu1 }
 0x1cb   : > { %v7592_v26 = vadd.f32 %v1658_v28, %v1510_v30  ;;  %v2235_v60 = vrot.slane %v6952_v13, 2  ;;  %v9290_v30 = vld [vmem:[#allocation52_spill] sm:$0xff] }
 0x1cc   : > { %v1399_v42 = vpop.f32.mrf.mxu0  ;;  %5892 = vmatmul.mubr.msk.bf16.gmra.mxu0 %vm648_vm2, %v1856_v40  ;;  %v5796_v56 = vpop.f32.mrf.mxu1 }
 0x1cd   : > { %9286 = vst [vmem:[#allocation49_spill] sm:$0xff] %v7592_v26  ;;  %v1511_v23 = vadd.f32 %v1399_v42, %v9288_v36  ;;  %5895 = vmatprep.mubr.msk.bf16.mxu0 %vm6553_vm1, %v9214_v63  ;;  %v1860_v42 = vsel %vm1801_vm5, %v1855_v58, %v1859_v29  ;;  %v9291_v36 = vld [vmem:[#allocation31_spill] sm:$0xff] }
 0x1ce   : > { %v5709_v35 = vpop.f32.mrf.mxu0  ;;  %v1671_v22 = vpop.f32.mrf.mxu1  ;;  %5982 = vmatmul.mubr.msk.bf16.gmra.mxu1 %vm648_vm2, %v7595_v59  ;;  %v1861_v37 = vrot.slane %v9291_v36, 1 }
 0x1cf   : > { %v7603_v28 = vadd.f32 %v1663_v19, %v1511_v23  ;;  %5985 = vmatprep.mubr.msk.bf16.mxu1 %vm6553_vm1, %v9214_v63  ;;  %v1862_v35 = vrot.slane %v9292_v31, 2  ;;  %v7615_v19 = vsel %vm2205_vm6, %v2233_v27, %v2235_v60 }
 0x1d0   : > { %v1402_v6 = vpop.f32.mrf.mxu0  ;;  %v5799_v56 = vpop.f32.mrf.mxu1  ;;  %9294 = vst [vmem:[#allocation52_spill] sm:$0xff] %v7615_v19 }
 0x1d1   : > { %9289 = vst [vmem:[#allocation28_spill] sm:$0xff] %v7603_v28  ;;  %v1512_v40 = vadd.f32 %v1402_v6, %v9290_v30  ;;  %v9295_v56 = vld [vmem:[#allocation53_spill] sm:$0xff]  ;;  %v1863_v58 = vor.u32 %v1862_v35, %v1861_v37  ;;  %v9298_v35 = vld [vmem:[#allocation32_spill] sm:$0xff] }
 0x1d2   : > { %v5710_v26 = vpop.f32.mrf.mxu0  ;;  %v1674_v7 = vpop.f32.mrf.mxu1 }
 0x1d3   : > { %v7612_v59 = vadd.f32 %v1666_v5, %v1512_v40  ;;  %v2237_v26 = vrot.slane %v6972_v48, 2 }
 0x1d4   : > { %v1407_v23 = vpop.f32.mrf.mxu0  ;;  %5896 = vmatmul.mubr.msk.bf16.gmra.mxu0 %vm648_vm2, %v1860_v42  ;;  %v5800_v13 = vpop.f32.mrf.mxu1  ;;  %v1864_v42 = vsel %vm1801_vm5, %v1859_v29, %v1863_v58 }
 0x1d5   : > { %9293 = vst [vmem:[#allocation51_spill] sm:$0xff] %v7612_v59  ;;  %v1513_v28 = vadd.f32 %v1407_v23, %v9295_v56  ;;  %5899 = vmatprep.mubr.msk.bf16.mxu0 %vm6553_vm1, %v9214_v63  ;;  %v9297_v23 = vld [vmem:[#allocation34_spill] sm:$0xff]  ;;  %v1866_v56 = vrot.slane %v9298_v35, 2 }
 0x1d6   : > { %v5713_v6 = vpop.f32.mrf.mxu0  ;;  %v1679_v30 = vpop.f32.mrf.mxu1  ;;  %5986 = vmatmul.mubr.msk.bf16.gmra.mxu1 %vm648_vm2, %v7615_v19  ;;  %v1865_v37 = vrot.slane %v9297_v23, 1 }
 0x1d7   : > { %v7623_v5 = vadd.f32 %v1671_v22, %v1513_v28  ;;  %5989 = vmatprep.mubr.msk.bf16.mxu1 %vm6553_vm1, %v9214_v63  ;;  %v7635_v22 = vsel %vm2205_vm6, %v2235_v60, %v2237_v26  ;;  %v9303_v60 = vld [vmem:[#allocation33_spill] sm:$0xff] }
 0x1d8   : > { %v1410_v27 = vpop.f32.mrf.mxu0  ;;  %v5803_v13 = vpop.f32.mrf.mxu1  ;;  %9300 = vst [vmem:[#allocation53_spill] sm:$0xff] %v7635_v22 }
 0x1d9   : > { %9296 = vst [vmem:[#allocation31_spill] sm:$0xff] %v7623_v5  ;;  %v1514_v40 = vadd.f32 %v1410_v27, %v7250_v2  ;;  %v9301_v13 = vld [vmem:[#allocation54_spill] sm:$0xff]  ;;  %v1867_v2 = vor.u32 %v1866_v56, %v1865_v37  ;;  %v9306_v56 = vld [vmem:[#allocation35_spill] sm:$0xff] }
 0x1da   : > { %v5714_v6 = vpop.f32.mrf.mxu0  ;;  %v1682_v59 = vpop.f32.mrf.mxu1 }
 0x1db   : > { %v7632_v19 = vadd.f32 %v1674_v7, %v1514_v40  ;;  %v2239_v40 = vrot.slane %v9303_v60, 2  ;;  %v9304_v6 = vld [vmem:[#allocation55_spill] sm:$0xff] }
 0x1dc   : > { %v1415_v28 = vpop.f32.mrf.mxu0  ;;  %5900 = vmatmul.mubr.msk.bf16.gmra.mxu0 %vm648_vm2, %v1864_v42  ;;  %v5804_v48 = vpop.f32.mrf.mxu1 }
 0x1dd   : > { %9299 = vst [vmem:[#allocation29_spill] sm:$0xff] %v7632_v19  ;;  %v1515_v5 = vadd.f32 %v1415_v28, %v9301_v13  ;;  %5903 = vmatprep.mubr.msk.bf16.mxu0 %vm6553_vm1, %v9214_v63  ;;  %v1868_v13 = vsel %vm1801_vm5, %v1863_v58, %v1867_v2  ;;  %v9305_v19 = vld [vmem:[#allocation37_spill] sm:$0xff] }
 0x1de   : > { %v5717_v29 = vpop.f32.mrf.mxu0  ;;  %v1687_v27 = vpop.f32.mrf.mxu1  ;;  %5990 = vmatmul.mubr.msk.bf16.gmra.mxu1 %vm648_vm2, %v7635_v22  ;;  %v1869_v37 = vrot.slane %v9305_v19, 1 }
 0x1df   : > { %v7643_v7 = vadd.f32 %v1679_v30, %v1515_v5  ;;  %5993 = vmatprep.mubr.msk.bf16.mxu1 %vm6553_vm1, %v9214_v63  ;;  %v1870_v29 = vrot.slane %v9306_v56, 2  ;;  %v7655_v30 = vsel %vm2205_vm6, %v2237_v26, %v2239_v40  ;;  %v2241_v26 = vrot.slane %v7012_v1, 2 }
 0x1e0   : > { %v1418_v42 = vpop.f32.mrf.mxu0  ;;  %v5807_v48 = vpop.f32.mrf.mxu1  ;;  %9308 = vst [vmem:[#allocation37_spill] sm:$0xff] %v7655_v30 }
 0x1e1   : > { %9302 = vst [vmem:[#allocation54_spill] sm:$0xff] %v7643_v7  ;;  %v1516_v28 = vadd.f32 %v1418_v42, %v9304_v6  ;;  %v9309_v48 = vld [vmem:[#allocation56_spill] sm:$0xff]  ;;  %v1871_v58 = vor.u32 %v1870_v29, %v1869_v37  ;;  %v9313_v29 = vld [vmem:[#allocation38_spill] sm:$0xff] }
 0x1e2   : > { %v5718_v35 = vpop.f32.mrf.mxu0  ;;  %v1690_v23 = vpop.f32.mrf.mxu1 }
 0x1e3   : > { %v7652_v22 = vadd.f32 %v1682_v59, %v1516_v28  ;;  %v9311_v28 = vld [vmem:[#allocation57_spill] sm:$0xff] }
 0x1e4   : > { %v1423_v5 = vpop.f32.mrf.mxu0  ;;  %5904 = vmatmul.mubr.msk.bf16.gmra.mxu0 %vm648_vm2, %v1868_v13  ;;  %v5808_v60 = vpop.f32.mrf.mxu1 }
 0x1e5   : > { %9307 = vst [vmem:[#allocation55_spill] sm:$0xff] %v7652_v22  ;;  %v1517_v7 = vadd.f32 %v1423_v5, %v9309_v48  ;;  %5907 = vmatprep.mubr.msk.bf16.mxu0 %vm6553_vm1, %v9214_v63  ;;  %v1872_v5 = vsel %vm1801_vm5, %v1867_v2, %v1871_v58  ;;  %v9312_v48 = vld [vmem:[#allocation39_spill] sm:$0xff] }
 0x1e6   : > { %v5721_v42 = vpop.f32.mrf.mxu0  ;;  %v1695_v6 = vpop.f32.mrf.mxu1  ;;  %5994 = vmatmul.mubr.msk.bf16.gmra.mxu1 %vm648_vm2, %v7655_v30  ;;  %v1873_v37 = vrot.slane %v9312_v48, 1 }
 0x1e7   : > { %v7663_v59 = vadd.f32 %v1687_v27, %v1517_v7  ;;  %5997 = vmatprep.mubr.msk.bf16.mxu1 %vm6553_vm1, %v9214_v63  ;;  %v1874_v42 = vrot.slane %v9313_v29, 2  ;;  %v7675_v27 = vsel %vm2205_vm6, %v2239_v40, %v2241_v26 }
 0x1e8   : > { %v1426_v35 = vpop.f32.mrf.mxu0  ;;  %v5811_v60 = vpop.f32.mrf.mxu1  ;;  %9315 = vst [vmem:[#allocation73_spill] sm:$0xff] %v7675_v27 }
 0x1e9   : > { %9310 = vst [vmem:[#allocation56_spill] sm:$0xff] %v7663_v59  ;;  %v1518_v13 = vadd.f32 %v1426_v35, %v9311_v28  ;;  %v9316_v60 = vld [vmem:[#allocation59_spill] sm:$0xff]  ;;  %v1875_v2 = vor.u32 %v1874_v42, %v1873_v37  ;;  %v9317_v35 = vld [vmem:[#allocation58_spill] sm:$0xff]  ;;  %v9319_v37 = vld [vmem:[#allocation60_spill] sm:$0xff] }
 0x1ea   : > { %v5722_v22 = vpop.f32.mrf.mxu0  ;;  %v1698_v56 = vpop.f32.mrf.mxu1  ;;  %v9171_v28 = vshrl.u32 %v9317_v35, 16 }
 0x1eb   : > { %v7672_v30 = vadd.f32 %v1690_v23, %v1518_v13  ;;  %v9172_v22 = vshll.u32 %v9317_v35, 16 }
 0x1ec   : > { %v1431_v7 = vpop.f32.mrf.mxu0  ;;  %5908 = vmatmul.mubr.msk.bf16.gmra.mxu0 %vm648_vm2, %v1872_v5  ;;  %v5812_v1 = vpop.f32.mrf.mxu1 }
 0x1ed   : > { %9314 = vst [vmem:[#allocation57_spill] sm:$0xff] %v7672_v30  ;;  %v1519_v59 = vadd.f32 %v1431_v7, %v9316_v60  ;;  %5911 = vmatprep.mubr.msk.bf16.mxu0 %vm6553_vm1, %v9214_v63  ;;  %v7690_v1 = vrot.slane %v9317_v35, 2  ;;  %v1876_v7 = vsel %vm1801_vm5, %v1871_v58, %v1875_v2  ;;  %v1883_v60 = vrot.slane %v9172_v22, 2 }
 0x1ee   : > { %v5725_v29 = vpop.f32.mrf.mxu0  ;;  %v1703_v23 = vpop.f32.mrf.mxu1  ;;  %5998 = vmatmul.mubr.msk.bf16.gmra.mxu1 %vm648_vm2, %v7675_v27 }
 0x1ef   : > { %v7685_v40 = vadd.f32 %v1695_v6, %v1519_v59  ;;  %6001 = vmatprep.mubr.msk.bf16.mxu1 %vm6553_vm1, %v9214_v63  ;;  %v1880_v29 = vrot.slane %v9171_v28, 1  ;;  %v7702_v27 = vsel %vm2205_vm6, %v2241_v26, %v7690_v1  ;;  %v9322_v28 = vld [vmem:[#allocation61_spill] sm:$0xff] }
 0x1f0   : > { %v1434_v13 = vpop.f32.mrf.mxu0  ;;  %v5815_v5 = vpop.f32.mrf.mxu1  ;;  %v1887_v22 = vshrl.u32 %v9322_v28, 16 }
 0x1f1   : > { %9318 = vst [vmem:[#allocation59_spill] sm:$0xff] %v7685_v40  ;;  %v1520_v42 = vadd.f32 %v1434_v13, %v9319_v37  ;;  %v9321_v5 = vld [vmem:[#allocation62_spill] sm:$0xff]  ;;  %v1884_v37 = vor.u32 %v1883_v60, %v1880_v29 }
 0x1f2   : > { %v5726_v6 = vpop.f32.mrf.mxu0  ;;  %v1706_v59 = vpop.f32.mrf.mxu1 }
 0x1f3   : > { %v7698_v40 = vadd.f32 %v1698_v56, %v1520_v42  ;;  %v1890_v6 = vshll.u32 %v9322_v28, 16  ;;  %v1885_v60 = vsel %vm1801_vm5, %v1875_v2, %v1884_v37 }
 0x1f4   : > { %v1439_v30 = vpop.f32.mrf.mxu0  ;;  %5912 = vmatmul.mubr.msk.bf16.gmra.mxu0 %vm648_vm2, %v1876_v7  ;;  %v5816_v13 = vpop.f32.mrf.mxu1 }
 0x1f5   : > { %9320 = vst [vmem:[#allocation60_spill] sm:$0xff] %v7698_v40  ;;  %v1521_v58 = vadd.f32 %v1439_v30, %v9321_v5  ;;  %5915 = vmatprep.mubr.msk.bf16.mxu0 %vm6553_vm1, %v9214_v63  ;;  %v2245_v30 = vrot.slane %v9322_v28, 2  ;;  %v1889_v5 = vrot.slane %v1887_v22, 1  ;;  %v1892_v40 = vrot.slane %v1890_v6, 2 }
 0x1f6   : > { %v5729_v56 = vpop.f32.mrf.mxu0  ;;  %v1711_v42 = vpop.f32.mrf.mxu1  ;;  %6002 = vmatmul.mubr.msk.bf16.gmra.mxu1 %vm648_vm2, %v7702_v27 }
 0x1f7   : > { %v7712_v26 = vadd.f32 %v1703_v23, %v1521_v58  ;;  %6005 = vmatprep.mubr.msk.bf16.mxu1 %vm6553_vm1, %v9214_v63  ;;  %v2246_v23 = vsel %vm2205_vm6, %v7690_v1, %v2245_v30 }
 0x1f8   : > { %v1442_v7 = vpop.f32.mrf.mxu0  ;;  %v5819_v13 = vpop.f32.mrf.mxu1 }
 0x1f9   : > { %9323 = vst [vmem:[#allocation62_spill] sm:$0xff] %v7712_v26  ;;  %v1522_v29 = vadd.f32 %v1442_v7, %v7305_v8  ;;  %v1893_v8 = vor.u32 %v1892_v40, %v1889_v5  ;;  %v2826_v40 = vrot.slane %v6715_v45, 2 }
 0x1fa   : > { %v5730_v56 = vpop.f32.mrf.mxu0  ;;  %v1714_v35 = vpop.f32.mrf.mxu1 }
 0x1fb   : > { %v7719_v48 = vadd.f32 %v1706_v59, %v1522_v29 }
 0x1fc   : > { %v1447_v58 = vpop.f32.mrf.mxu0  ;;  %5916 = vmatmul.mubr.msk.bf16.gmra.mxu0 %vm648_vm2, %v1885_v60  ;;  %v5820_v26 = vpop.f32.mrf.mxu1  ;;  %v2827_v60 = vrot.slane %v6698_v38, 3 }
 0x1fd   : > { %v1523_v28 = vadd.f32 %v1447_v58, %v7309_v24  ;;  %5919 = vmatprep.mubr.msk.bf16.mxu0 %vm6553_vm1, %v9214_v63  ;;  %v1894_v26 = vsel %vm1801_vm5, %v1884_v37, %v1893_v8 }
 0x1fe   : > { %v5733_v2 = vpop.f32.mrf.mxu0  ;;  %v1719_v22 = vpop.f32.mrf.mxu1  ;;  %6006 = vmatmul.mubr.msk.bf16.gmra.mxu1 %vm648_vm2, %v2246_v23  ;;  %v2828_v38 = vor.u32 %v2827_v60, %v2826_v40 }
 0x1ff   : > { %v7728_v6 = vadd.f32 %v1711_v42, %v1523_v28  ;;  %6009 = vmatprep.mubr.msk.bf16.mxu1 %vm6553_vm1, %v9214_v63 }
 0x200   : > { %v1450_v59 = vpop.f32.mrf.mxu0  ;;  %v5823_v7 = vpop.f32.mrf.mxu1 }
 0x201   : > { %v1524_v13 = vadd.f32 %v1450_v59, %v7317_v25  ;;  %v5141_v7 = vld [vmem:[%s9083_s2 + $0x20] sm:$0xf] }
 0x202   : > { %v5734_v24 = vpop.f32.mrf.mxu0  ;;  %v1722_v29 = vpop.f32.mrf.mxu1  ;;  %v3225_v40 = vpack.c.bf16 %v5141_v7, %v5141_v7 }
 0x203   : > { %v7736_v5 = vadd.f32 %v1714_v35, %v1524_v13  ;;  %v2831_v13 = vrot.slane %v6718_v46, 3 }
 0x204   : > { %v1455_v56 = vpop.f32.mrf.mxu0  ;;  %5920 = vmatmul.mubr.msk.bf16.gmra.mxu0 %vm648_vm2, %v1894_v26  ;;  %v5824_v42 = vpop.f32.mrf.mxu1 }
 0x205   : > { %v1525_v23 = vadd.f32 %v1455_v56, %v7321_v39  ;;  %5923 = vmatprep.mubr.msk.bf16.mxu0 %vm6553_vm1, %v9214_v63 }
 0x206   : > { %v5737_v25 = vpop.f32.mrf.mxu0  ;;  %v1727_v58 = vpop.f32.mrf.mxu1  ;;  %6010 = vmatmul.mubr.msk.bf16.gmra.mxu1 %vm648_vm2, %v2245_v30  ;;  %v2829_v30 = vsel %vm2822_vm7, %v7454_v15, %v2828_v38 }
 0x207   : > { %v7743_v37 = vadd.f32 %v1719_v22, %v1525_v23  ;;  %6101 = vmatprep.mubr.msk.bf16.mxu1 %vm6553_vm1, %v9214_v63  ;;  %v2830_v22 = vrot.slane %v6735_v53, 2  ;;  %v3333_v25 = vsel %vm712_vm0, %v3225_v40, 0  ;;  %v2838_v40 = vrot.slane %v6779_v9, 2 }
 0x208   : > { %v1458_v45 = vpop.f32.mrf.mxu0  ;;  %v5827_v35 = vpop.f32.mrf.mxu1 }
 0x209   : > { %v1526_v28 = vadd.f32 %v1458_v45, %v7330_v52  ;;  %v9324_v52 = vld [vmem:[#allocation63_spill] sm:$0xff]  ;;  %v2832_v46 = vor.u32 %v2831_v13, %v2830_v22  ;;  %v9325_v22 = vld [vmem:[#allocation64_spill] sm:$0xff] }
 0x20a   : > { %v5738_v2 = vpop.f32.mrf.mxu0  ;;  %v1730_v39 = vpop.f32.mrf.mxu1 }
 0x20b   : > { %v7748_v59 = vadd.f32 %v1722_v29, %v1526_v28  ;;  %v2833_v28 = vsel %vm2822_vm7, %v2828_v38, %v2832_v46  ;;  %v2834_v2 = vrot.slane %v6755_v61, 2 }
 0x20c   : > { %v1463_v26 = vpop.f32.mrf.mxu0  ;;  %5924 = vmatmul.mubr.msk.bf16.gmra.mxu0 %vm648_vm2, %v1893_v8  ;;  %v5828_v24 = vpop.f32.mrf.mxu1 }
 0x20d   : > { %v1527_v60 = vadd.f32 %v1463_v26, %v9324_v52  ;;  %6015 = vmatprep.mubr.msk.bf16.mxu0 %vm6553_vm1, %v9214_v63 }
 0x20e   : > { %v5741_v29 = vpop.f32.mrf.mxu0  ;;  %v1735_v56 = vpop.f32.mrf.mxu1  ;;  %6102 = vmatmul.mubr.msk.bf16.vlgmr.msra.gmra.mxu1 %vm648_vm2, %v2829_v30 }
 0x20f   : > { %v7762_v42 = vadd.f32 %v1727_v58, %v1527_v60  ;;  %6105 = vmatprep.mubr.msk.bf16.mxu1 %vm6553_vm1, %v9214_v63  ;;  %v2835_v58 = vrot.slane %v6738_v54, 3 }
 0x210   : > { %v1466_v53 = vpop.f32.mrf.mxu0  ;;  %v5831_v15 = vpop.f32.mrf.mxu1 }
 0x211   : > { %v1528_v8 = vadd.f32 %v1466_v53, %v7345_v18  ;;  %v2836_v54 = vor.u32 %v2835_v58, %v2834_v2  ;;  %v2839_v53 = vrot.slane %v6758_v62, 3  ;;  %v9326_v15 = vld [vmem:[#allocation65_spill] sm:$0xff] }
 0x212   : > { %v5742_v23 = vpop.f32.mrf.mxu0  ;;  %v1738_v45 = vpop.f32.mrf.mxu1 }
 0x213   : > { %v7768_v35 = vadd.f32 %v1730_v39, %v1528_v8  ;;  %v2837_v29 = vsel %vm2822_vm7, %v2832_v46, %v2836_v54  ;;  %v9327_v23 = vld [vmem:[#allocation66_spill] sm:$0xff]  ;;  %v2840_v62 = vor.u32 %v2839_v53, %v2838_v40  ;;  %v2846_v53 = vrot.slane %v6820_v32, 2 }
 0x214   : > { %v1471_v7 = vpop.f32.mrf.mxu0  ;;  %6016 = vmatmul.mubr.msk.bf16.vlgmr.msra.gmra.mxu0 %vm648_vm2, %v7351_v57  ;;  %v5832_v30 = vpop.f32.mrf.mxu1 }
 0x215   : > { %v1529_v13 = vadd.f32 %v1471_v7, %v9325_v22  ;;  %6186 = vmatpush3.bf16.msra.mxu0 %v3333_v25  ;;  %6019 = vmatprep.mubr.msk.bf16.mxu0 %vm6553_vm1, %v9214_v63  ;;  %v2841_v22 = vsel %vm2822_vm7, %v2836_v54, %v2840_v62 }
 0x216   : > { %v5745_v18 = vpop.f32.mrf.mxu0  ;;  %v1743_v39 = vpop.f32.mrf.mxu1  ;;  %6106 = vmatmul.mubr.msk.bf16.gmra.mxu1 %vm648_vm2, %v2833_v28  ;;  %6357 = vmatprep.subr.bf16.mxu0 %v9214_v63 }
 0x217   : > { %v7780_v61 = vadd.f32 %v1735_v56, %v1529_v13  ;;  %6109 = vmatprep.mubr.msk.bf16.mxu1 %vm6553_vm1, %v9214_v63  ;;  %v2842_v13 = vrot.slane %v6800_v20, 2  ;;  %v2843_v18 = vrot.slane %v6782_v10, 3 }
 0x218   : > { %v1474_v57 = vpop.f32.mrf.mxu0  ;;  %v5835_v38 = vpop.f32.mrf.mxu1 }
 0x219   : > { %v1530_v26 = vadd.f32 %v1474_v57, %v7365_v34  ;;  %v9328_v38 = vld [vmem:[#allocation67_spill] sm:$0xff]  ;;  %v2844_v10 = vor.u32 %v2843_v18, %v2842_v13  ;;  %v2851_v13 = vrot.slane %v6823_v33, 3 }
 0x21a   : > { %v5746_v24 = vpop.f32.mrf.mxu0  ;;  %v1746_v52 = vpop.f32.mrf.mxu1 }
 0x21b   : > { %v7785_v60 = vadd.f32 %v1738_v45, %v1530_v26  ;;  %v2845_v40 = vsel %vm2822_vm7, %v2840_v62, %v2844_v10 }
 0x21c   : > { %v1479_v56 = vpop.f32.mrf.mxu0  ;;  %6020 = vmatmul.mubr.msk.bf16.gmra.mxu0 %vm648_vm2, %v9326_v15  ;;  %v5836_v8 = vpop.f32.mrf.mxu1 }
 0x21d   : > { %v1531_v25 = vadd.f32 %v1479_v56, %v9327_v23  ;;  %6023 = vmatprep.mubr.msk.bf16.mxu0 %vm6553_vm1, %v9214_v63  ;;  %v2847_v56 = vrot.slane %v6803_v21, 3  ;;  %v9329_v8 = vld [vmem:[#allocation68_spill] sm:$0xff] }
 0x21e   : > { %v5749_v34 = vpop.f32.mrf.mxu0  ;;  %v1751_v28 = vpop.f32.mrf.mxu1  ;;  %6110 = vmatmul.mubr.msk.bf16.gmra.mxu1 %vm648_vm2, %v2837_v29 }
 0x21f   : > { %v7796_v45 = vadd.f32 %v1743_v39, %v1531_v25  ;;  %6113 = vmatprep.mubr.msk.bf16.mxu1 %vm6553_vm1, %v9214_v63  ;;  %v2848_v21 = vor.u32 %v2847_v56, %v2846_v53 }
 0x220   : > { %v1482_v9 = vpop.f32.mrf.mxu0  ;;  %v5839_v46 = vpop.f32.mrf.mxu1 }
 0x221   : > { %v1532_v2 = vadd.f32 %v1482_v9, %v7384_v0 }
 0x222   : > { %v5750_v58 = vpop.f32.mrf.mxu0  ;;  %v1754_v7 = vpop.f32.mrf.mxu1 }
 0x223   : > { %v7801_v30 = vadd.f32 %v1746_v52, %v1532_v2  ;;  %v2849_v7 = vsel %vm2822_vm7, %v2844_v10, %v2848_v21 }
 0x224   : > { %v1487_v39 = vpop.f32.mrf.mxu0  ;;  %6024 = vmatmul.mubr.msk.bf16.gmra.mxu0 %vm648_vm2, %v7390_v12  ;;  %v5840_v57 = vpop.f32.mrf.mxu1 }
 0x225   : > { %v1533_v26 = vadd.f32 %v1487_v39, %v9328_v38  ;;  %6027 = vmatprep.mubr.msk.bf16.mxu0 %vm6553_vm1, %v9214_v63  ;;  %v9330_v57 = vld [vmem:[#allocation69_spill] sm:$0xff] }
 0x226   : > { %v5753_v0 = vpop.f32.mrf.mxu0  ;;  %v2347_v24 = vpop.f32.mrf.mxu1  ;;  %6114 = vmatmul.mubr.msk.bf16.gmra.mxu1 %vm648_vm2, %v2841_v22  ;;  %v2850_v22 = vrot.slane %v6840_v44, 2 }
 0x227   : > { %v7812_v52 = vadd.f32 %v1751_v28, %v1533_v26  ;;  %6117 = vmatprep.mubr.msk.bf16.mxu1 %vm6553_vm1, %v9214_v63 }
 0x228   : > { %v1490_v20 = vpop.f32.mrf.mxu0  ;;  %v5931_v54 = vpop.f32.mrf.mxu1  ;;  %v2852_v33 = vor.u32 %v2851_v13, %v2850_v22  ;;  %v9334_v13 = vld [vmem:[#allocation72_spill] sm:$0xff] }
 0x22a   : > { %v5754_v29 = vpop.f32.mrf.mxu0  ;;  %v2350_v12 = vpop.f32.mrf.mxu1 }
 0x22b   : > { %v2853_v29 = vsel %vm2822_vm7, %v2848_v21, %v2852_v33 }
 0x22c   : > { %v1995_v15 = vpop.f32.mrf.mxu0  ;;  %6028 = vmatmul.mubr.msk.bf16.gmra.mxu0 %vm648_vm2, %v9329_v8  ;;  %v5932_v23 = vpop.f32.mrf.mxu1 }
 0x22d   : > { %v2161_v25 = vadd.f32 %v1995_v15, %v7414_v43  ;;  %6031 = vmatprep.mubr.msk.bf16.mxu0 %vm6553_vm1, %v9214_v63 }
 0x22e   : > { %v5845_v34 = vpop.f32.mrf.mxu0  ;;  %v2355_v28 = vpop.f32.mrf.mxu1  ;;  %6118 = vmatmul.mubr.msk.bf16.gmra.mxu1 %vm648_vm2, %v2845_v40  ;;  %v2855_v40 = vrot.slane %v9250_v49, 3 }
 0x22f   : > { %v7825_v9 = vadd.f32 %v2347_v24, %v2161_v25  ;;  %6121 = vmatprep.mubr.msk.bf16.mxu1 %vm6553_vm1, %v9214_v63  ;;  %v9331_v34 = vld [vmem:[#allocation70_spill] sm:$0xff] }
 0x230   : > { %v1998_v32 = vpop.f32.mrf.mxu0  ;;  %v5935_v62 = vpop.f32.mrf.mxu1 }
 0x231   : > { %v2162_v46 = vadd.f32 %v1998_v32, %v7423_v47  ;;  %v2858_v62 = vrot.slane %v9256_v4, 2 }
 0x232   : > { %v5846_v2 = vpop.f32.mrf.mxu0  ;;  %v2358_v58 = vpop.f32.mrf.mxu1 }
 0x233   : > { %v7830_v43 = vadd.f32 %v2350_v12, %v2162_v46  ;;  %v2854_v12 = vrot.slane %v9249_v14, 2  ;;  %v9332_v46 = vld [vmem:[#allocation14_spill] sm:$0xff] }
 0x234   : > { %v2003_v18 = vpop.f32.mrf.mxu0  ;;  %6032 = vmatmul.mubr.msk.bf16.gmra.mxu0 %vm648_vm2, %v7426_v51  ;;  %v5936_v39 = vpop.f32.mrf.mxu1  ;;  %v2859_v2 = vrot.slane %v9332_v46, 3 }
 0x235   : > { %v2163_v38 = vadd.f32 %v2003_v18, %v9330_v57  ;;  %6035 = vmatprep.mubr.msk.bf16.mxu0 %vm6553_vm1, %v9214_v63  ;;  %v2856_v14 = vor.u32 %v2855_v40, %v2854_v12  ;;  %v9336_v12 = vld [vmem:[#allocation17_spill] sm:$0xff] }
 0x236   : > { %v5849_v47 = vpop.f32.mrf.mxu0  ;;  %v2363_v26 = vpop.f32.mrf.mxu1  ;;  %6122 = vmatmul.mubr.msk.bf16.gmra.mxu1 %vm648_vm2, %v2849_v7  ;;  %v9333_v7 = vld [vmem:[#allocation71_spill] sm:$0xff]  ;;  %v2860_v4 = vor.u32 %v2859_v2, %v2858_v62  ;;  %v2863_v40 = vrot.slane %v9336_v12, 3 }
 0x237   : > { %v7841_v0 = vadd.f32 %v2355_v28, %v2163_v38  ;;  %6125 = vmatprep.mubr.msk.bf16.mxu1 %vm6553_vm1, %v9214_v63  ;;  %v2857_v32 = vsel %vm2822_vm7, %v2852_v33, %v2856_v14  ;;  %v9335_v33 = vld [vmem:[#allocation40_spill] sm:$0xff] }
 0x238   : > { %v2006_v44 = vpop.f32.mrf.mxu0  ;;  %v5939_v24 = vpop.f32.mrf.mxu1 }
 0x239   : > { %v2164_v51 = vadd.f32 %v2006_v44, %v7449_v17 }
 0x23a   : > { %v5850_v10 = vpop.f32.mrf.mxu0  ;;  %v2366_v20 = vpop.f32.mrf.mxu1 }
 0x23b   : > { %v7846_v54 = vadd.f32 %v2358_v58, %v2164_v51 }
 0x23c   : > { %v2011_v53 = vpop.f32.mrf.mxu0  ;;  %6036 = vmatmul.mubr.msk.bf16.gmra.mxu0 %vm648_vm2, %v7452_v50  ;;  %v5940_v56 = vpop.f32.mrf.mxu1 }
 0x23d   : > { %v2165_v15 = vadd.f32 %v2011_v53, %v7463_v11  ;;  %6039 = vmatprep.mubr.msk.bf16.mxu0 %vm6553_vm1, %v9214_v63  ;;  %v9337_v56 = vld [vmem:[#allocation13_spill] sm:$0xff] }
 0x23e   : > { %v5853_v17 = vpop.f32.mrf.mxu0  ;;  %v2371_v8 = vpop.f32.mrf.mxu1  ;;  %6126 = vmatmul.mubr.msk.bf16.gmra.mxu1 %vm648_vm2, %v2853_v29  ;;  %v2862_v29 = vrot.slane %v9263_v41, 2 }
 0x23f   : > { %v7857_v23 = vadd.f32 %v2363_v26, %v2165_v15  ;;  %6129 = vmatprep.mubr.msk.bf16.mxu1 %vm6553_vm1, %v9214_v63  ;;  %v9338_v17 = vld [vmem:[#allocation11_spill] sm:$0xff] }
 0x240   : > { %v2014_v49 = vpop.f32.mrf.mxu0  ;;  %v5943_v25 = vpop.f32.mrf.mxu1  ;;  %v2864_v41 = vor.u32 %v2863_v40, %v2862_v29 }
 0x241   : > { %v2166_v50 = vadd.f32 %v2014_v49, %v9331_v34 }
 0x242   : > { %v5854_v28 = vpop.f32.mrf.mxu0  ;;  %v2374_v21 = vpop.f32.mrf.mxu1  ;;  %v2865_v2 = vsel %vm2822_vm7, %v2860_v4, %v2864_v41 }
 0x243   : > { %v7862_v11 = vadd.f32 %v2366_v20, %v2166_v50  ;;  %v2861_v20 = vsel %vm2822_vm7, %v2856_v14, %v2860_v4  ;;  %v9339_v28 = vld [vmem:[#allocation41_spill] sm:$0xff] }
 0x244   : > { %v2019_v58 = vpop.f32.mrf.mxu0  ;;  %6040 = vmatmul.mubr.msk.bf16.gmra.mxu0 %vm648_vm2, %v9333_v7  ;;  %v5944_v22 = vpop.f32.mrf.mxu1  ;;  %v9340_v7 = vld [vmem:[#allocation20_spill] sm:$0xff] }
 0x245   : > { %v2167_v18 = vadd.f32 %v2019_v58, %v9334_v13  ;;  %6043 = vmatprep.mubr.msk.bf16.mxu0 %vm6553_vm1, %v9214_v63  ;;  %v2866_v58 = vrot.slane %v9270_v55, 2  ;;  %v2867_v22 = vrot.slane %v9340_v7, 3  ;;  %v3887_v7 = vld [vmem:[%s9088_s7] sm:$0xf] }
 0x246   : > { %v5857_v39 = vpop.f32.mrf.mxu0  ;;  %v2379_v57 = vpop.f32.mrf.mxu1  ;;  %6130 = vmatmul.mubr.msk.bf16.gmra.mxu1 %vm648_vm2, %v2857_v32 }
 0x247   : > { %v7873_v38 = vadd.f32 %v2371_v8, %v2167_v18  ;;  %6133 = vmatprep.mubr.msk.bf16.mxu1 %vm6553_vm1, %v9214_v63  ;;  %v9341_v18 = vld [vmem:[#allocation42_spill] sm:$0xff]  ;;  %v2868_v55 = vor.u32 %v2867_v22, %v2866_v58 }
 0x248   : > { %v2022_v47 = vpop.f32.mrf.mxu0  ;;  %v5947_v26 = vpop.f32.mrf.mxu1 }
 0x249   : > { %v2168_v44 = vadd.f32 %v2022_v47, %v9335_v33 }
 0x24a   : > { %v5858_v24 = vpop.f32.mrf.mxu0  ;;  %v2382_v51 = vpop.f32.mrf.mxu1 }
 0x24b   : > { %v7878_v10 = vadd.f32 %v2374_v21, %v2168_v44 }
 0x24c   : > { %v2027_v53 = vpop.f32.mrf.mxu0  ;;  %6044 = vmatmul.mubr.msk.bf16.gmra.mxu0 %vm648_vm2, %v9337_v56  ;;  %v5948_v15 = vpop.f32.mrf.mxu1  ;;  %v2870_v56 = vrot.slane %v9277_v3, 2 }
 0x24d   : > { %v2169_v8 = vadd.f32 %v2027_v53, %v9338_v17  ;;  %6047 = vmatprep.mubr.msk.bf16.mxu0 %vm6553_vm1, %v9214_v63  ;;  %v2869_v53 = vsel %vm2822_vm7, %v2864_v41, %v2868_v55  ;;  %v9344_v15 = vld [vmem:[#allocation23_spill] sm:$0xff] }
 0x24e   : > { %v5861_v49 = vpop.f32.mrf.mxu0  ;;  %v2387_v25 = vpop.f32.mrf.mxu1  ;;  %6134 = vmatmul.mubr.msk.bf16.gmra.mxu1 %vm648_vm2, %v2861_v20  ;;  %v2871_v17 = vrot.slane %v9344_v15, 3 }
 0x24f   : > { %v7889_v34 = vadd.f32 %v2379_v57, %v2169_v8  ;;  %6137 = vmatprep.mubr.msk.bf16.mxu1 %vm6553_vm1, %v9214_v63  ;;  %v9342_v57 = vld [vmem:[#allocation16_spill] sm:$0xff] }
 0x250   : > { %v2030_v14 = vpop.f32.mrf.mxu0  ;;  %v5951_v50 = vpop.f32.mrf.mxu1  ;;  %v9345_v49 = vld [vmem:[#allocation44_spill] sm:$0xff]  ;;  %v2872_v3 = vor.u32 %v2871_v17, %v2870_v56 }
 0x251   : > { %v2170_v21 = vadd.f32 %v2030_v14, %v9339_v28  ;;  %v9346_v14 = vld [vmem:[#allocation19_spill] sm:$0xff] }
 0x252   : > { %v5862_v32 = vpop.f32.mrf.mxu0  ;;  %v2390_v62 = vpop.f32.mrf.mxu1 }
 0x253   : > { %v7894_v46 = vadd.f32 %v2382_v51, %v2170_v21  ;;  %v9343_v51 = vld [vmem:[#allocation43_spill] sm:$0xff] }
 0x254   : > { %v2035_v13 = vpop.f32.mrf.mxu0  ;;  %6048 = vmatmul.mubr.msk.bf16.gmra.mxu0 %vm648_vm2, %v9341_v18  ;;  %v5952_v39 = vpop.f32.mrf.mxu1  ;;  %v3888_v18 = vpack.c.bf16 %v3887_v7, %v3887_v7  ;;  %v9353_v7 = vld [vmem:[#allocation25_spill] sm:$0xff] }
 0x255   : > { %v2171_v47 = vadd.f32 %v2035_v13, %v9342_v57  ;;  %6051 = vmatprep.mubr.msk.bf16.mxu0 %vm6553_vm1, %v9214_v63  ;;  %v2873_v57 = vsel %vm2822_vm7, %v2868_v55, %v2872_v3 }
 0x256   : > { %v5865_v26 = vpop.f32.mrf.mxu0  ;;  %v2395_v33 = vpop.f32.mrf.mxu1  ;;  %6138 = vmatmul.mubr.msk.bf16.gmra.mxu1 %vm648_vm2, %v2865_v2  ;;  %v9347_v2 = vld [vmem:[#allocation45_spill] sm:$0xff] }
 0x257   : > { %v7905_v44 = vadd.f32 %v2387_v25, %v2171_v47  ;;  %6141 = vmatprep.mubr.msk.bf16.mxu1 %vm6553_vm1, %v9214_v63  ;;  %v2874_v47 = vrot.slane %v9284_v16, 2  ;;  %v9348_v26 = vld [vmem:[#allocation26_spill] sm:$0xff] }
 0x258   : > { %v2038_v4 = vpop.f32.mrf.mxu0  ;;  %v5955_v24 = vpop.f32.mrf.mxu1 }
 0x259   : > { %v2172_v20 = vadd.f32 %v2038_v4, %v9343_v51  ;;  %v9349_v24 = vld [vmem:[#allocation46_spill] sm:$0xff] }
 0x25a   : > { %v5866_v29 = vpop.f32.mrf.mxu0  ;;  %v2398_v12 = vpop.f32.mrf.mxu1 }
 0x25b   : > { %v7910_v40 = vadd.f32 %v2390_v62, %v2172_v20  ;;  %v3953_v20 = vsel %vm712_vm0, %v3888_v18, 0  ;;  %v9350_v29 = vld [vmem:[#allocation22_spill] sm:$0xff] }
 0x25c   : > { %v2043_v8 = vpop.f32.mrf.mxu0  ;;  %6052 = vmatmul.mubr.msk.bf16.gmra.mxu0 %vm648_vm2, %v9345_v49  ;;  %v5956_v25 = vpop.f32.mrf.mxu1  ;;  %6272 = vmatpush3.bf16.msra.mxu1 %v3953_v20  ;;  %v9355_v20 = vld [vmem:[#allocation34_spill] sm:$0xff] }
 0x25d   : > { %v2173_v50 = vadd.f32 %v2043_v8, %v9346_v14  ;;  %6055 = vmatprep.mubr.msk.bf16.mxu0 %vm6553_vm1, %v9214_v63  ;;  %6443 = vmatprep.subr.bf16.mxu1 %v9214_v63  ;;  %v9351_v8 = vld [vmem:[#allocation47_spill] sm:$0xff] }
 0x25e   : > { %v5869_v28 = vpop.f32.mrf.mxu0  ;;  %v2403_v21 = vpop.f32.mrf.mxu1  ;;  %6142 = vmatmul.mubr.msk.bf16.gmra.mxu1 %vm648_vm2, %v2869_v53 }
 0x25f   : > { %v7921_v32 = vadd.f32 %v2395_v33, %v2173_v50  ;;  %6145 = vmatprep.mubr.msk.bf16.mxu1 %vm6553_vm1, %v9214_v63  ;;  %v2875_v33 = vrot.slane %v9348_v26, 3 }
 0x260   : > { %v2046_v41 = vpop.f32.mrf.mxu0  ;;  %v5959_v62 = vpop.f32.mrf.mxu1 }
 0x261   : > { %v2174_v58 = vadd.f32 %v2046_v41, %v9347_v2  ;;  %v2876_v55 = vor.u32 %v2875_v33, %v2874_v47  ;;  %v2878_v41 = vrot.slane %v9291_v36, 2  ;;  %v2879_v62 = vrot.slane %v9292_v31, 3  ;;  %v9352_v2 = vld [vmem:[#allocation48_spill] sm:$0xff]  ;;  %v9354_v47 = vld [vmem:[#allocation49_spill] sm:$0xff] }
 0x262   : > { %v5870_v22 = vpop.f32.mrf.mxu0  ;;  %v2406_v13 = vpop.f32.mrf.mxu1 }
 0x263   : > { %v7929_v39 = vadd.f32 %v2398_v12, %v2174_v58  ;;  %v2877_v28 = vsel %vm2822_vm7, %v2872_v3, %v2876_v55  ;;  %v2880_v36 = vor.u32 %v2879_v62, %v2878_v41 }
 0x264   : > { %v2051_v4 = vpop.f32.mrf.mxu0  ;;  %6056 = vmatmul.mubr.msk.bf16.gmra.mxu0 %vm648_vm2, %v9349_v24  ;;  %v5960_v51 = vpop.f32.mrf.mxu1 }
 0x265   : > { %v2175_v53 = vadd.f32 %v2051_v4, %v9350_v29  ;;  %6059 = vmatprep.mubr.msk.bf16.mxu0 %vm6553_vm1, %v9214_v63  ;;  %v2881_v51 = vsel %vm2822_vm7, %v2876_v55, %v2880_v36  ;;  %v2882_v29 = vrot.slane %v9355_v20, 2 }
 0x266   : > { %v5873_v12 = vpop.f32.mrf.mxu0  ;;  %v2411_v56 = vpop.f32.mrf.mxu1  ;;  %6146 = vmatmul.mubr.msk.bf16.gmra.mxu1 %vm648_vm2, %v2873_v57 }
 0x267   : > { %v7942_v16 = vadd.f32 %v2403_v21, %v2175_v53  ;;  %6149 = vmatprep.mubr.msk.bf16.mxu1 %vm6553_vm1, %v9214_v63  ;;  %v9356_v53 = vld [vmem:[#allocation32_spill] sm:$0xff] }
 0x268   : > { %v2054_v15 = vpop.f32.mrf.mxu0  ;;  %v5963_v17 = vpop.f32.mrf.mxu1  ;;  %v2883_v12 = vrot.slane %v9356_v53, 3 }
 0x269   : > { %v2176_v49 = vadd.f32 %v2054_v15, %v9351_v8  ;;  %v9357_v15 = vld [vmem:[#allocation50_spill] sm:$0xff]  ;;  %v9358_v8 = vld [vmem:[#allocation28_spill] sm:$0xff] }
 0x26a   : > { %v5874_v25 = vpop.f32.mrf.mxu0  ;;  %v2414_v14 = vpop.f32.mrf.mxu1  ;;  %v2884_v55 = vor.u32 %v2883_v12, %v2882_v29 }
 0x26b   : > { %v7947_v50 = vadd.f32 %v2406_v13, %v2176_v49 }
 0x26c   : > { %v2059_v21 = vpop.f32.mrf.mxu0  ;;  %6060 = vmatmul.mubr.msk.bf16.gmra.mxu0 %vm648_vm2, %v9352_v2  ;;  %v5964_v58 = vpop.f32.mrf.mxu1 }
 0x26d   : > { %v2177_v22 = vadd.f32 %v2059_v21, %v9353_v7  ;;  %6063 = vmatprep.mubr.msk.bf16.mxu0 %vm6553_vm1, %v9214_v63  ;;  %v9359_v21 = vld [vmem:[#allocation51_spill] sm:$0xff] }
 0x26e   : > { %v5877_v18 = vpop.f32.mrf.mxu0  ;;  %v2419_v57 = vpop.f32.mrf.mxu1  ;;  %6150 = vmatmul.mubr.msk.bf16.gmra.mxu1 %vm648_vm2, %v2877_v28 }
 0x26f   : > { %v7958_v13 = vadd.f32 %v2411_v56, %v2177_v22  ;;  %6153 = vmatprep.mubr.msk.bf16.mxu1 %vm6553_vm1, %v9214_v63  ;;  %v2885_v18 = vsel %vm2822_vm7, %v2880_v36, %v2884_v55 }
 0x270   : > { %v2062_v31 = vpop.f32.mrf.mxu0  ;;  %v5967_v3 = vpop.f32.mrf.mxu1 }
 0x271   : > { %v2178_v26 = vadd.f32 %v2062_v31, %v9354_v47  ;;  %v2886_v31 = vrot.slane %v9305_v19, 2  ;;  %v9360_v3 = vld [vmem:[#allocation35_spill] sm:$0xff] }
 0x272   : > { %v5878_v33 = vpop.f32.mrf.mxu0  ;;  %v2422_v4 = vpop.f32.mrf.mxu1  ;;  %v2887_v47 = vrot.slane %v9360_v3, 3 }
 0x273   : > { %v7963_v24 = vadd.f32 %v2414_v14, %v2178_v26  ;;  %v9361_v26 = vld [vmem:[#allocation52_spill] sm:$0xff] }
 0x274   : > { %v2067_v56 = vpop.f32.mrf.mxu0  ;;  %6064 = vmatmul.mubr.msk.bf16.gmra.mxu0 %vm648_vm2, %v9357_v15  ;;  %v5968_v17 = vpop.f32.mrf.mxu1  ;;  %v2888_v19 = vor.u32 %v2887_v47, %v2886_v31  ;;  %v9367_v31 = vld [vmem:[#allocation54_spill] sm:$0xff] }
 0x275   : > { %v2179_v49 = vadd.f32 %v2067_v56, %v9358_v8  ;;  %6067 = vmatprep.mubr.msk.bf16.mxu0 %vm6553_vm1, %v9214_v63  ;;  %v9363_v56 = vld [vmem:[#allocation29_spill] sm:$0xff] }
 0x276   : > { %v5881_v25 = vpop.f32.mrf.mxu0  ;;  %v2427_v28 = vpop.f32.mrf.mxu1  ;;  %6154 = vmatmul.mubr.msk.bf16.gmra.mxu1 %vm648_vm2, %v2881_v51  ;;  %v9362_v51 = vld [vmem:[#allocation31_spill] sm:$0xff] }
 0x277   : > { %v7974_v14 = vadd.f32 %v2419_v57, %v2179_v49  ;;  %6157 = vmatprep.mubr.msk.bf16.mxu1 %vm6553_vm1, %v9214_v63  ;;  %v2889_v25 = vsel %vm2822_vm7, %v2884_v55, %v2888_v19 }
 0x278   : > { %v2070_v41 = vpop.f32.mrf.mxu0  ;;  %v5971_v62 = vpop.f32.mrf.mxu1 }
 0x279   : > { %v2180_v2 = vadd.f32 %v2070_v41, %v9359_v21  ;;  %v9364_v41 = vld [vmem:[#allocation39_spill] sm:$0xff]  ;;  %v9365_v21 = vld [vmem:[#allocation38_spill] sm:$0xff] }
 0x27a   : > { %v5882_v58 = vpop.f32.mrf.mxu0  ;;  %v2430_v7 = vpop.f32.mrf.mxu1  ;;  %v2890_v62 = vrot.slane %v9364_v41, 2 }
 0x27b   : > { %v7979_v22 = vadd.f32 %v2422_v4, %v2180_v2  ;;  %v9366_v58 = vld [vmem:[#allocation53_spill] sm:$0xff] }
 0x27c   : > { %v2075_v57 = vpop.f32.mrf.mxu0  ;;  %6068 = vmatmul.mubr.msk.bf16.gmra.mxu0 %vm648_vm2, %v9361_v26  ;;  %v5972_v33 = vpop.f32.mrf.mxu1 }
 0x27d   : > { %v2181_v20 = vadd.f32 %v2075_v57, %v9362_v51  ;;  %6071 = vmatprep.mubr.msk.bf16.mxu0 %vm6553_vm1, %v9214_v63  ;;  %v451_v51 = vld [vmem:[%s6644_s26 + $0x158] sm:$0xff] }
 0x27e   : > { %v5885_v29 = vpop.f32.mrf.mxu0  ;;  %v2435_v53 = vpop.f32.mrf.mxu1  ;;  %6158 = vmatmul.mubr.msk.bf16.gmra.mxu1 %vm648_vm2, %v2885_v18 }
 0x27f   : > { %v7990_v4 = vadd.f32 %v2427_v28, %v2181_v20  ;;  %6161 = vmatprep.mubr.msk.bf16.mxu1 %vm6553_vm1, %v9214_v63  ;;  %v2891_v28 = vrot.slane %v9365_v21, 3  ;;  %v9368_v20 = vld [vmem:[#allocation55_spill] sm:$0xff] }
 0x280   : > { %v2078_v36 = vpop.f32.mrf.mxu0  ;;  %v5975_v12 = vpop.f32.mrf.mxu1 }
 0x281   : > { %v2182_v15 = vadd.f32 %v2078_v36, %v9363_v56  ;;  %v2892_v57 = vor.u32 %v2891_v28, %v2890_v62  ;;  %v9369_v56 = vld [vmem:[#allocation58_spill] sm:$0xff]  ;;  %v9372_v28 = vld [vmem:[#allocation37_spill] sm:$0xff] }
 0x282   : > { %v5886_v17 = vpop.f32.mrf.mxu0  ;;  %v2438_v8 = vpop.f32.mrf.mxu1  ;;  %v9371_v41 = vshll.u32 %v9369_v56, 16 }
 0x283   : > { %v7995_v49 = vadd.f32 %v2430_v7, %v2182_v15  ;;  %v9370_v15 = vshrl.u32 %v9369_v56, 16 }
 0x284   : > { %v2083_v2 = vpop.f32.mrf.mxu0  ;;  %6072 = vmatmul.mubr.msk.bf16.gmra.mxu0 %vm648_vm2, %v9366_v58  ;;  %v5976_v18 = vpop.f32.mrf.mxu1  ;;  %v2895_v21 = vrot.slane %v9371_v41, 3  ;;  %v9374_v41 = vld [vmem:[#allocation57_spill] sm:$0xff] }
 0x285   : > { %v2183_v3 = vadd.f32 %v2083_v2, %v9367_v31  ;;  %6075 = vmatprep.mubr.msk.bf16.mxu0 %vm6553_vm1, %v9214_v63  ;;  %v2894_v17 = vrot.slane %v9370_v15, 2  ;;  %v6541_v2 = vld [vmem:[%s6644_s26 + $0x150] sm:$0xff]  ;;  %v453_v15 = vld [vmem:[%s6644_s26 + $0x168] sm:$0x3] }
 0x286   : > { %v5889_v47 = vpop.f32.mrf.mxu0  ;;  %v2443_v7 = vpop.f32.mrf.mxu1  ;;  %6162 = vmatmul.mubr.msk.bf16.gmra.mxu1 %vm648_vm2, %v2889_v25  ;;  %v8020_v58 = vpack.c.bf16 %v451_v51, %v6541_v2  ;;  %v9373_v31 = vld [vmem:[#allocation56_spill] sm:$0xff] }
 0x287   : > { %v8006_v55 = vadd.f32 %v2435_v53, %v2183_v3  ;;  %6165 = vmatprep.mubr.msk.bf16.mxu1 %vm6553_vm1, %v9214_v63  ;;  %v2893_v53 = vsel %vm2822_vm7, %v2888_v19, %v2892_v57  ;;  %v2896_v19 = vor.u32 %v2895_v21, %v2894_v17 }
 0x288   : > { %v2086_v26 = vpop.f32.mrf.mxu0  ;;  %v5979_v33 = vpop.f32.mrf.mxu1  ;;  %v2902_v51 = vshll.u32 %v8020_v58, 16 }
 0x289   : > { %v2184_v29 = vadd.f32 %v2086_v26, %v9368_v20  ;;  %v2899_v33 = vshrl.u32 %v8020_v58, 16 }
 0x28a   : > { %v5890_v36 = vpop.f32.mrf.mxu0  ;;  %v2446_v12 = vpop.f32.mrf.mxu1  ;;  %v2904_v21 = vrot.slane %v2902_v51, 3 }
 0x28b   : > { %v8016_v25 = vadd.f32 %v2438_v8, %v2184_v29  ;;  %v452_v36 = vld [vmem:[%s6644_s26 + $0x160] sm:$0xff] }
 0x28c   : > { %v2091_v62 = vpop.f32.mrf.mxu0  ;;  %6076 = vmatmul.mubr.msk.bf16.gmra.mxu0 %vm648_vm2, %v9372_v28  ;;  %v5980_v18 = vpop.f32.mrf.mxu1 }
 0x28d   : > { %v2185_v3 = vadd.f32 %v2091_v62, %v9373_v31  ;;  %6079 = vmatprep.mubr.msk.bf16.mxu0 %vm6553_vm1, %v9214_v63  ;;  %v8040_v18 = vpack.c.bf16 %v453_v15, %v452_v36 }
 0x28e   : > { %v5893_v47 = vpop.f32.mrf.mxu0  ;;  %v2451_v8 = vpop.f32.mrf.mxu1  ;;  %6166 = vmatmul.mubr.msk.bf16.gmra.mxu1 %vm648_vm2, %v2893_v53  ;;  %v2897_v53 = vsel %vm2822_vm7, %v2892_v57, %v2896_v19 }
 0x28f   : > { %v8028_v26 = vadd.f32 %v2443_v7, %v2185_v3  ;;  %6169 = vmatprep.mubr.msk.bf16.mxu1 %vm6553_vm1, %v9214_v63  ;;  %v2901_v7 = vrot.slane %v2899_v33, 2  ;;  %v9375_v3 = vld [vmem:[#allocation73_spill] sm:$0xff]  ;;  %v2908_v33 = vshrl.u32 %v8040_v18, 16  ;;  %v2911_v51 = vshll.u32 %v8040_v18, 16 }
 0x290   : > { %v2094_v20 = vpop.f32.mrf.mxu0  ;;  %v5983_v29 = vpop.f32.mrf.mxu1 }
 0x291   : > { %v2186_v2 = vadd.f32 %v2094_v20, %v9374_v41  ;;  %v9376_v29 = vld [vmem:[#allocation59_spill] sm:$0xff] }
 0x292   : > { %v5894_v62 = vpop.f32.mrf.mxu0  ;;  %v2454_v28 = vpop.f32.mrf.mxu1 }
 0x293   : > { %v8038_v17 = vadd.f32 %v2446_v12, %v2186_v2  ;;  %v2905_v12 = vor.u32 %v2904_v21, %v2901_v7  ;;  %v9378_v62 = vld [vmem:[#allocation60_spill] sm:$0xff]  ;;  %v9379_v21 = vld [vmem:[#allocation62_spill] sm:$0xff] }
 0x294   : > { %v2099_v31 = vpop.f32.mrf.mxu0  ;;  %6080 = vmatmul.mubr.msk.bf16.gmra.mxu0 %vm648_vm2, %v9375_v3  ;;  %v5984_v47 = vpop.f32.mrf.mxu1 }
 0x295   : > { %v2187_v56 = vadd.f32 %v2099_v31, %v9376_v29  ;;  %6083 = vmatprep.mubr.msk.bf16.mxu0 %vm6553_vm1, %v9214_v63 }
 0x296   : > { %v5897_v20 = vpop.f32.mrf.mxu0  ;;  %v2459_v41 = vpop.f32.mrf.mxu1  ;;  %6170 = vmatmul.mubr.msk.bf16.gmra.mxu1 %vm648_vm2, %v2897_v53  ;;  %v2906_v53 = vsel %vm2822_vm7, %v2896_v19, %v2905_v12 }
 0x297   : > { %v8048_v57 = vadd.f32 %v2451_v8, %v2187_v56  ;;  %6173 = vmatprep.mubr.msk.bf16.mxu1 %vm6553_vm1, %v9214_v63  ;;  %v2910_v56 = vrot.slane %v2908_v33, 2  ;;  %v2913_v8 = vrot.slane %v2911_v51, 3 }
 0x298   : > { %v2102_v15 = vpop.f32.mrf.mxu0  ;;  %v5987_v2 = vpop.f32.mrf.mxu1 }
 0x299   : > { %9377 = vst [vmem:[#allocation61_spill] sm:$0xff] %v8048_v57  ;;  %v2188_v31 = vadd.f32 %v2102_v15, %v9378_v62  ;;  %v2561_v15 = vrot.slane %v8020_v58, 2  ;;  %v2914_v19 = vor.u32 %v2913_v8, %v2910_v56 }
 0x29a   : > { %v5898_v3 = vpop.f32.mrf.mxu0  ;;  %v2462_v47 = vpop.f32.mrf.mxu1 }
 0x29b   : > { %v8055_v29 = vadd.f32 %v2454_v28, %v2188_v31  ;;  %v2562_v31 = vsel %vm2205_vm6, %v7690_v1, %v2561_v15  ;;  %v2555_v3 = vpack.c.bf16 %v452_v36, %v452_v36 }
 0x29c   : > { %v2107_v20 = vpop.f32.mrf.mxu0  ;;  %6084 = vmatmul.mubr.msk.bf16.gmra.mxu0 %vm648_vm2, %v7702_v27  ;;  %v5988_v7 = vpop.f32.mrf.mxu1 }
 0x29d   : > { %v2189_v57 = vadd.f32 %v2107_v20, %v9379_v21  ;;  %6087 = vmatprep.mubr.msk.bf16.mxu0 %vm6553_vm1, %v9214_v63 }
 0x29e   : > { %v5901_v2 = vpop.f32.mrf.mxu0  ;;  %v2467_v62 = vpop.f32.mrf.mxu1  ;;  %6174 = vmatmul.mubr.msk.bf16.gmra.mxu1 %vm648_vm2, %v2906_v53  ;;  %v2915_v53 = vsel %vm2822_vm7, %v2905_v12, %v2914_v19 }
 0x29f   : > { %v8065_v28 = vadd.f32 %v2459_v41, %v2189_v57  ;;  %6177 = vmatprep.mubr.msk.bf16.mxu1 %vm6553_vm1, %v9214_v63 }
 0x2a0   : > { %v2110_v33 = vpop.f32.mrf.mxu0  ;;  %v5991_v27 = vpop.f32.mrf.mxu1 }
 0x2a1   : > { %v2190_v51 = vadd.f32 %v2110_v33, %v7719_v48  ;;  %v2563_v48 = vrot.slane %v2555_v3, 2 }
 0x2a2   : > { %v5902_v20 = vpop.f32.mrf.mxu0  ;;  %v2470_v7 = vpop.f32.mrf.mxu1 }
 0x2a3   : > { %v8072_v21 = vadd.f32 %v2462_v47, %v2190_v51  ;;  %v2564_v33 = vsel %vm2205_vm6, %v2561_v15, %v2563_v48 }
 0x2a4   : > { %v2115_v41 = vpop.f32.mrf.mxu0  ;;  %6088 = vmatmul.mubr.msk.bf16.gmra.mxu0 %vm648_vm2, %v2562_v31  ;;  %v5992_v57 = vpop.f32.mrf.mxu1 }
 0x2a5   : > { %v2191_v56 = vadd.f32 %v2115_v41, %v7728_v6  ;;  %6091 = vmatprep.mubr.msk.bf16.mxu0 %vm6553_vm1, %v9214_v63 }
 0x2a6   : > { %v5905_v8 = vpop.f32.mrf.mxu0  ;;  %v2475_v2 = vpop.f32.mrf.mxu1  ;;  %6178 = vmatmul.mubr.msk.bf16.gmra.mxu1 %vm648_vm2, %v2915_v53 }
 0x2a7   : > { %v8080_v1 = vadd.f32 %v2467_v62, %v2191_v56  ;;  %6181 = vmatprep.mubr.msk.bf16.mxu1 %vm6553_vm1, %v9214_v63 }
 0x2a8   : > { %v2118_v36 = vpop.f32.mrf.mxu0  ;;  %v5995_v12 = vpop.f32.mrf.mxu1 }
 0x2a9   : > { %v2192_v47 = vadd.f32 %v2118_v36, %v7736_v5  ;;  %v9380_v12 = vld [vmem:[#allocation2_spill] sm:$0xff] }
 0x2aa   : > { %v5906_v6 = vpop.f32.mrf.mxu0  ;;  %v2478_v27 = vpop.f32.mrf.mxu1 }
 0x2ab   : > { %v8086_v51 = vadd.f32 %v2470_v7, %v2192_v47  ;;  %v3228_v47 = vrot.slane %v9380_v12, 3 }
 0x2ac   : > { %v2123_v31 = vpop.f32.mrf.mxu0  ;;  %6092 = vmatmul.mubr.msk.bf16.gmra.mxu0 %vm648_vm2, %v2564_v33  ;;  %v5996_v3 = vpop.f32.mrf.mxu1 }
 0x2ad   : > { %v2193_v62 = vadd.f32 %v2123_v31, %v7743_v37  ;;  %6095 = vmatprep.mubr.msk.bf16.mxu0 %vm6553_vm1, %v9214_v63  ;;  %v3864_v37 = vld [vmem:[%s9087_s6] sm:$0xf] }
 0x2ae   : > { %v5909_v20 = vpop.f32.mrf.mxu0  ;;  %v2483_v53 = vpop.f32.mrf.mxu1  ;;  %6182 = vmatmul.mubr.msk.bf16.gmra.mxu1 %vm648_vm2, %v2914_v19  ;;  %v3865_v31 = vpack.c.bf16 %v3864_v37, %v3864_v37 }
 0x2af   : > { %v8093_v5 = vadd.f32 %v2475_v2, %v2193_v62  ;;  %6273 = vmatprep.mubr.msk.bf16.mxu1 %vm6553_vm1, %v9214_v63 }
 0x2b0   : > { %v2126_v15 = vpop.f32.mrf.mxu0  ;;  %v5999_v7 = vpop.f32.mrf.mxu1 }
 0x2b1   : > { %v2194_v41 = vadd.f32 %v2126_v15, %v7748_v59  ;;  %v9381_v59 = vld [vmem:[#allocation3_spill] sm:$0xff] }
 0x2b2   : > { %v5910_v57 = vpop.f32.mrf.mxu0  ;;  %v2486_v56 = vpop.f32.mrf.mxu1  ;;  %v3229_v33 = vrot.slane %v9381_v59, 3 }
 0x2b3   : > { %v8098_v8 = vadd.f32 %v2478_v27, %v2194_v41  ;;  %v4219_v41 = vsel %vm712_vm0, %v3865_v31, 0 }
 0x2b4   : > { %v2131_v36 = vpop.f32.mrf.mxu0  ;;  %6096 = vmatmul.mubr.msk.bf16.gmra.mxu0 %vm648_vm2, %v2563_v48  ;;  %v6000_v19 = vpop.f32.mrf.mxu1  ;;  %v3230_v15 = vsel %vm3227_vm8, %v3228_v47, %v3229_v33 }
 0x2b5   : > { %v2195_v2 = vadd.f32 %v2131_v36, %v7762_v42  ;;  %6187 = vmatprep.mubr.msk.bf16.mxu0 %vm6553_vm1, %v9214_v63 }
 0x2b6   : > { %v5913_v6 = vpop.f32.mrf.mxu0  ;;  %v2491_v27 = vpop.f32.mrf.mxu1 }
 0x2b7   : > { %v8109_v3 = vadd.f32 %v2483_v53, %v2195_v2  ;;  %v9382_v53 = vld [vmem:[#allocation4_spill] sm:$0xff] }
 0x2b8   : > { %v2134_v62 = vpop.f32.mrf.mxu0  ;;  %v6003_v20 = vpop.f32.mrf.mxu1  ;;  %v3231_v2 = vrot.slane %v9382_v53, 3 }
 0x2b9   : > { %v2196_v48 = vadd.f32 %v2134_v62, %v7768_v35 }
 0x2ba   : > { %v5914_v42 = vpop.f32.mrf.mxu0  ;;  %v2494_v7 = vpop.f32.mrf.mxu1  ;;  %v3232_v31 = vsel %vm3227_vm8, %v3229_v33, %v3231_v2 }
 0x2bb   : > { %v8114_v57 = vadd.f32 %v2486_v56, %v2196_v48 }
 0x2bc   : > { %v2139_v36 = vpop.f32.mrf.mxu0  ;;  %6188 = vmatmul.mubr.msk.bf16.vlgmr.msra.gmra.mxu0 %vm648_vm2, %v3230_v15  ;;  %v6004_v19 = vpop.f32.mrf.mxu1 }
 0x2bd   : > { %v2197_v37 = vadd.f32 %v2139_v36, %v7780_v61  ;;  %6191 = vmatprep.mubr.msk.bf16.mxu0 %vm6553_vm1, %v9214_v63  ;;  %6358 = vmatpush3.bf16.msra.mxu0 %v4219_v41 }
 0x2be   : > { %v5917_v35 = vpop.f32.mrf.mxu0  ;;  %v2499_v12 = vpop.f32.mrf.mxu1 }
 0x2bf   : > { %v8121_v47 = vadd.f32 %v2491_v27, %v2197_v37  ;;  %v9383_v27 = vld [vmem:[#allocation5_spill] sm:$0xff] }
 0x2c0   : > { %v2142_v59 = vpop.f32.mrf.mxu0  ;;  %v6007_v6 = vpop.f32.mrf.mxu1  ;;  %v3233_v41 = vrot.slane %v9383_v27, 3 }
 0x2c1   : > { %v2198_v56 = vadd.f32 %v2142_v59, %v7785_v60 }
 0x2c2   : > { %v5918_v62 = vpop.f32.mrf.mxu0  ;;  %v2502_v20 = vpop.f32.mrf.mxu1  ;;  %v3234_v53 = vsel %vm3227_vm8, %v3231_v2, %v3233_v41 }
 0x2c3   : > { %v8125_v48 = vadd.f32 %v2494_v7, %v2198_v56 }
 0x2c4   : > { %v2147_v61 = vpop.f32.mrf.mxu0  ;;  %6192 = vmatmul.mubr.msk.bf16.gmra.mxu0 %vm648_vm2, %v3232_v31  ;;  %v6008_v15 = vpop.f32.mrf.mxu1 }
 0x2c5   : > { %v2199_v42 = vadd.f32 %v2147_v61, %v7796_v45  ;;  %6195 = vmatprep.mubr.msk.bf16.mxu0 %vm6553_vm1, %v9214_v63 }
 0x2c6   : > { %v5921_v36 = vpop.f32.mrf.mxu0  ;;  %v2507_v19 = vpop.f32.mrf.mxu1 }
 0x2c7   : > { %v8132_v60 = vadd.f32 %v2499_v12, %v2199_v42  ;;  %v9384_v12 = vld [vmem:[#allocation6_spill] sm:$0xff] }
 0x2c8   : > { %v2150_v33 = vpop.f32.mrf.mxu0  ;;  %v6011_v37 = vpop.f32.mrf.mxu1  ;;  %v3235_v62 = vrot.slane %v9384_v12, 3 }
 0x2c9   : > { %v2200_v7 = vadd.f32 %v2150_v33, %v7801_v30 }
 0x2ca   : > { %v5922_v35 = vpop.f32.mrf.mxu0  ;;  %v2510_v59 = vpop.f32.mrf.mxu1 }
 0x2cb   : > { %v8136_v6 = vadd.f32 %v2502_v20, %v2200_v7  ;;  %v3236_v20 = vsel %vm3227_vm8, %v3233_v41, %v3235_v62  ;;  %v9385_v7 = vld [vmem:[#allocation7_spill] sm:$0xff] }
 0x2cc   : > { %v2155_v45 = vpop.f32.mrf.mxu0  ;;  %6196 = vmatmul.mubr.msk.bf16.gmra.mxu0 %vm648_vm2, %v3234_v53  ;;  %v6012_v56 = vpop.f32.mrf.mxu1  ;;  %v3237_v53 = vrot.slane %v9385_v7, 3 }
 0x2cd   : > { %v2201_v31 = vadd.f32 %v2155_v45, %v7812_v52  ;;  %6199 = vmatprep.mubr.msk.bf16.mxu0 %vm6553_vm1, %v9214_v63 }
 0x2ce   : > { %v5925_v61 = vpop.f32.mrf.mxu0  ;;  %v3016_v15 = vpop.f32.mrf.mxu1 }
 0x2cf   : > { %v8143_v30 = vadd.f32 %v2507_v19, %v2201_v31  ;;  %v3238_v31 = vsel %vm3227_vm8, %v3235_v62, %v3237_v53 }
 0x2d0   : > { %v2158_v2 = vpop.f32.mrf.mxu0  ;;  %v6103_v42 = vpop.f32.mrf.mxu1 }
 0x2d2   : > { %v5926_v27 = vpop.f32.mrf.mxu0  ;;  %v3019_v36 = vpop.f32.mrf.mxu1 }
 0x2d4   : > { %v2611_v33 = vpop.f32.mrf.mxu0  ;;  %6200 = vmatmul.mubr.msk.bf16.gmra.mxu0 %vm648_vm2, %v3236_v20  ;;  %v6104_v37 = vpop.f32.mrf.mxu1 }
 0x2d5   : > { %v2777_v52 = vadd.f32 %v2611_v33, %v7825_v9  ;;  %6203 = vmatprep.mubr.msk.bf16.mxu0 %vm6553_vm1, %v9214_v63 }
 0x2d6   : > { %v6017_v35 = vpop.f32.mrf.mxu0  ;;  %v3024_v19 = vpop.f32.mrf.mxu1 }
 0x2d7   : > { %v8151_v59 = vadd.f32 %v3016_v15, %v2777_v52  ;;  %v9386_v15 = vld [vmem:[#allocation8_spill] sm:$0xff] }
 0x2d8   : > { %v2614_v45 = vpop.f32.mrf.mxu0  ;;  %v6107_v56 = vpop.f32.mrf.mxu1  ;;  %v3239_v27 = vrot.slane %v9386_v15, 3 }
 0x2d9   : > { %v2778_v41 = vadd.f32 %v2614_v45, %v7830_v43 }
 0x2da   : > { %v6018_v12 = vpop.f32.mrf.mxu0  ;;  %v3027_v61 = vpop.f32.mrf.mxu1  ;;  %v3240_v7 = vsel %vm3227_vm8, %v3237_v53, %v3239_v27 }
 0x2db   : > { %v8155_v2 = vadd.f32 %v3019_v36, %v2778_v41 }
 0x2dc   : > { %v2619_v9 = vpop.f32.mrf.mxu0  ;;  %6204 = vmatmul.mubr.msk.bf16.gmra.mxu0 %vm648_vm2, %v3238_v31  ;;  %v6108_v42 = vpop.f32.mrf.mxu1 }
 0x2dd   : > { %v2779_v20 = vadd.f32 %v2619_v9, %v7841_v0  ;;  %6207 = vmatprep.mubr.msk.bf16.mxu0 %vm6553_vm1, %v9214_v63 }
 0x2de   : > { %v6021_v33 = vpop.f32.mrf.mxu0  ;;  %v3032_v37 = vpop.f32.mrf.mxu1 }
 0x2df   : > { %v8162_v43 = vadd.f32 %v3024_v19, %v2779_v20  ;;  %v9387_v19 = vld [vmem:[#allocation9_spill] sm:$0xff] }
 0x2e0   : > { %v2622_v62 = vpop.f32.mrf.mxu0  ;;  %v6111_v52 = vpop.f32.mrf.mxu1  ;;  %v3241_v12 = vrot.slane %v9387_v19, 3 }
 0x2e1   : > { %v2780_v36 = vadd.f32 %v2622_v62, %v7846_v54 }
 0x2e2   : > { %v6022_v35 = vpop.f32.mrf.mxu0  ;;  %v3035_v45 = vpop.f32.mrf.mxu1  ;;  %v3242_v15 = vsel %vm3227_vm8, %v3239_v27, %v3241_v12 }
 0x2e3   : > { %v8166_v56 = vadd.f32 %v3027_v61, %v2780_v36 }
 0x2e4   : > { %v2627_v0 = vpop.f32.mrf.mxu0  ;;  %6208 = vmatmul.mubr.msk.bf16.gmra.mxu0 %vm648_vm2, %v3240_v7  ;;  %v6112_v41 = vpop.f32.mrf.mxu1 }
 0x2e5   : > { %v2781_v31 = vadd.f32 %v2627_v0, %v7857_v23  ;;  %6211 = vmatprep.mubr.msk.bf16.mxu0 %vm6553_vm1, %v9214_v63 }
 0x2e6   : > { %v6025_v9 = vpop.f32.mrf.mxu0  ;;  %v3040_v42 = vpop.f32.mrf.mxu1 }
 0x2e7   : > { %v8173_v54 = vadd.f32 %v3032_v37, %v2781_v31  ;;  %v9388_v37 = vld [vmem:[#allocation10_spill] sm:$0xff] }
 0x2e8   : > { %v2630_v53 = vpop.f32.mrf.mxu0  ;;  %v6115_v20 = vpop.f32.mrf.mxu1  ;;  %v3243_v35 = vrot.slane %v9388_v37, 3 }
 0x2e9   : > { %v2782_v61 = vadd.f32 %v2630_v53, %v7862_v11 }
 0x2ea   : > { %v6026_v33 = vpop.f32.mrf.mxu0  ;;  %v3043_v62 = vpop.f32.mrf.mxu1  ;;  %v3244_v19 = vsel %vm3227_vm8, %v3241_v12, %v3243_v35 }
 0x2eb   : > { %v8177_v52 = vadd.f32 %v3035_v45, %v2782_v61 }
 0x2ec   : > { %v2635_v23 = vpop.f32.mrf.mxu0  ;;  %6212 = vmatmul.mubr.msk.bf16.gmra.mxu0 %vm648_vm2, %v3242_v15  ;;  %v6116_v36 = vpop.f32.mrf.mxu1 }
 0x2ed   : > { %v2783_v7 = vadd.f32 %v2635_v23, %v7873_v38  ;;  %6215 = vmatprep.mubr.msk.bf16.mxu0 %vm6553_vm1, %v9214_v63 }
 0x2ee   : > { %v6029_v0 = vpop.f32.mrf.mxu0  ;;  %v3048_v41 = vpop.f32.mrf.mxu1 }
 0x2ef   : > { %v8184_v11 = vadd.f32 %v3040_v42, %v2783_v7  ;;  %v9390_v42 = vld [vmem:[#allocation12_spill] sm:$0xff] }
 0x2f0   : > { %v2638_v27 = vpop.f32.mrf.mxu0  ;;  %v6119_v31 = vpop.f32.mrf.mxu1  ;;  %v3245_v33 = vrot.slane %v9390_v42, 3 }
 0x2f1   : > { %v2784_v45 = vadd.f32 %v2638_v27, %v7878_v10  ;;  %v3665_v27 = vld [vmem:[%s8205_s12] sm:$0xff] }
 0x2f2   : > { %v6030_v9 = vpop.f32.mrf.mxu0  ;;  %v3051_v53 = vpop.f32.mrf.mxu1  ;;  %v3246_v37 = vsel %vm3227_vm8, %v3243_v35, %v3245_v33  ;;  %v8212_v31 = vld [vmem:[%s9085_s4] ss:$0 sm:$0xff] }
 0x2f3   : > { %v8188_v38 = vadd.f32 %v3043_v62, %v2784_v45  ;;  %v3713_v35 = vmul.f32 %v8212_v31, %v3665_v27 }
 0x2f4   : > { %v2643_v20 = vpop.f32.mrf.mxu0  ;;  %6216 = vmatmul.mubr.msk.bf16.gmra.mxu0 %vm648_vm2, %v3244_v19  ;;  %v6120_v61 = vpop.f32.mrf.mxu1 }
 0x2f5   : > { %9389 = vst [vmem:[#allocation63_spill] sm:$0xff] %v8188_v38  ;;  %v2785_v15 = vadd.f32 %v2643_v20, %v7889_v34  ;;  %6219 = vmatprep.mubr.msk.bf16.mxu0 %vm6553_vm1, %v9214_v63  ;;  %v8222_v20 = vld [vmem:[%s9086_s5] ss:$0 sm:$0xff]  ;;  %v3668_v38 = vld [vmem:[%s8205_s12 + $0x18] sm:$0xff] }
 0x2f6   : > { %v6033_v23 = vpop.f32.mrf.mxu0  ;;  %v3056_v10 = vpop.f32.mrf.mxu1  ;;  %v3761_v42 = vadd.f32 %v8222_v20, %v3713_v35 }
 0x2f7   : > { %v8195_v36 = vadd.f32 %v3048_v41, %v2785_v15  ;;  %v3666_v41 = vld [vmem:[%s8205_s12 + $0x8] sm:$0xff] }
 0x2f8   : > { %v2646_v12 = vpop.f32.mrf.mxu0  ;;  %v6123_v7 = vpop.f32.mrf.mxu1  ;;  %v3714_v45 = vmul.f32 %v8212_v31, %v3666_v41 }
 0x2f9   : > { %9391 = vst [vmem:[#allocation64_spill] sm:$0xff] %v8195_v36  ;;  %v2786_v62 = vadd.f32 %v2646_v12, %v7894_v46  ;;  %v3667_v36 = vld [vmem:[%s8205_s12 + $0x10] sm:$0xff] }
 0x2fa   : > { %v6034_v34 = vpop.f32.mrf.mxu0  ;;  %v3059_v0 = vpop.f32.mrf.mxu1  ;;  %v3762_v23 = vadd.f32 %v8222_v20, %v3714_v45  ;;  %v3716_v45 = vmul.f32 %v8212_v31, %v3668_v38 }
 0x2fb   : > { %v8214_v46 = vadd.f32 %v3051_v53, %v2786_v62  ;;  %v9393_v53 = vld [vmem:[#allocation15_spill] sm:$0xff] }
 0x2fc   : > { %v2651_v19 = vpop.f32.mrf.mxu0  ;;  %6220 = vmatmul.mubr.msk.bf16.gmra.mxu0 %vm648_vm2, %v3246_v37  ;;  %v6124_v9 = vpop.f32.mrf.mxu1  ;;  %v3247_v15 = vrot.slane %v9393_v53, 3  ;;  %v3802_v37 = vmax.f32 %v3761_v42, 0.0  ;;  %v3803_v34 = vmax.f32 %v3762_v23, 0.0  ;;  %v3764_v38 = vadd.f32 %v8222_v20, %v3716_v45 }
 0x2fd   : > { %9392 = vst [vmem:[#allocation65_spill] sm:$0xff] %v8214_v46  ;;  %v2787_v61 = vadd.f32 %v2651_v19, %v7905_v44  ;;  %6223 = vmatprep.mubr.msk.bf16.mxu0 %vm6553_vm1, %v9214_v63 }
 0x2fe   : > { %v6037_v12 = vpop.f32.mrf.mxu0  ;;  %v3064_v7 = vpop.f32.mrf.mxu1  ;;  %v3248_v19 = vsel %vm3227_vm8, %v3245_v33, %v3247_v15  ;;  %v3866_v9 = vpack.c.bf16 %v3803_v34, %v3802_v37  ;;  %v9394_v33 = vld [vmem:[#allocation18_spill] sm:$0xff]  ;;  %v3805_v34 = vmax.f32 %v3764_v38, 0.0 }
 0x2ff   : > { %v8230_v62 = vadd.f32 %v3056_v10, %v2787_v61  ;;  %v3715_v10 = vmul.f32 %v8212_v31, %v3667_v36 }
 0x300   : > { %v2654_v27 = vpop.f32.mrf.mxu0  ;;  %v6127_v41 = vpop.f32.mrf.mxu1  ;;  %6274 = vmatmul.mubr.msk.bf16.vlgmr.msra.gmra.mxu1 %vm648_vm2, %v3866_v9 }
 0x301   : > { %v2788_v44 = vadd.f32 %v2654_v27, %v7910_v40  ;;  %6277 = vmatprep.mubr.msk.bf16.mxu1 %vm6553_vm1, %v9214_v63  ;;  %v3763_v36 = vadd.f32 %v8222_v20, %v3715_v10 }
 0x302   : > { %v6038_v46 = vpop.f32.mrf.mxu0  ;;  %v3067_v53 = vpop.f32.mrf.mxu1 }
 0x303   : > { %v8236_v35 = vadd.f32 %v3059_v0, %v2788_v44  ;;  %v3249_v0 = vrot.slane %v9394_v33, 3  ;;  %v3804_v37 = vmax.f32 %v3763_v36, 0.0  ;;  %v3670_v33 = vld [vmem:[%s8205_s12 + $0x28] sm:$0xff] }
 0x304   : > { %v2659_v61 = vpop.f32.mrf.mxu0  ;;  %6224 = vmatmul.mubr.msk.bf16.gmra.mxu0 %vm648_vm2, %v3248_v19  ;;  %v6128_v42 = vpop.f32.mrf.mxu1  ;;  %v3718_v45 = vmul.f32 %v8212_v31, %v3670_v33 }
 0x305   : > { %v2789_v40 = vadd.f32 %v2659_v61, %v7921_v32  ;;  %6227 = vmatprep.mubr.msk.bf16.mxu0 %vm6553_vm1, %v9214_v63  ;;  %v3250_v44 = vsel %vm3227_vm8, %v3247_v15, %v3249_v0  ;;  %v3867_v19 = vpack.c.bf16 %v3805_v34, %v3804_v37  ;;  %v3669_v42 = vld [vmem:[%s8205_s12 + $0x20] sm:$0xff]  ;;  %v9395_v15 = vld [vmem:[#allocation21_spill] sm:$0xff] }
 0x306   : > { %v6041_v46 = vpop.f32.mrf.mxu0  ;;  %v3072_v23 = vpop.f32.mrf.mxu1 }
 0x307   : > { %v8250_v12 = vadd.f32 %v3064_v7, %v2789_v40  ;;  %v3717_v7 = vmul.f32 %v8212_v31, %v3669_v42  ;;  %v3766_v46 = vadd.f32 %v8222_v20, %v3718_v45 }
 0x308   : > { %v2662_v27 = vpop.f32.mrf.mxu0  ;;  %v6131_v41 = vpop.f32.mrf.mxu1  ;;  %6278 = vmatmul.mubr.msk.bf16.gmra.mxu1 %vm648_vm2, %v3867_v19 }
 0x309   : > { %v2790_v32 = vadd.f32 %v2662_v27, %v7929_v39  ;;  %6281 = vmatprep.mubr.msk.bf16.mxu1 %vm6553_vm1, %v9214_v63  ;;  %v3765_v38 = vadd.f32 %v8222_v20, %v3717_v7 }
 0x30a   : > { %v6042_v9 = vpop.f32.mrf.mxu0  ;;  %v3075_v61 = vpop.f32.mrf.mxu1 }
 0x30b   : > { %v8256_v10 = vadd.f32 %v3067_v53, %v2790_v32  ;;  %v3251_v53 = vrot.slane %v9395_v15, 3  ;;  %v3806_v41 = vmax.f32 %v3765_v38, 0.0  ;;  %v3807_v32 = vmax.f32 %v3766_v46, 0.0  ;;  %v3672_v15 = vld [vmem:[%s8205_s12 + $0x38] sm:$0xff] }
 0x30c   : > { %v2667_v40 = vpop.f32.mrf.mxu0  ;;  %6228 = vmatmul.mubr.msk.bf16.gmra.mxu0 %vm648_vm2, %v3250_v44  ;;  %v6132_v36 = vpop.f32.mrf.mxu1  ;;  %v3720_v45 = vmul.f32 %v8212_v31, %v3672_v15 }
 0x30d   : > { %v2791_v39 = vadd.f32 %v2667_v40, %v7942_v16  ;;  %6231 = vmatprep.mubr.msk.bf16.mxu0 %vm6553_vm1, %v9214_v63  ;;  %v3252_v9 = vsel %vm3227_vm8, %v3249_v0, %v3251_v53  ;;  %v3868_v42 = vpack.c.bf16 %v3807_v32, %v3806_v41  ;;  %v3671_v36 = vld [vmem:[%s8205_s12 + $0x30] sm:$0xff] }
 0x30e   : > { %v6045_v37 = vpop.f32.mrf.mxu0  ;;  %v3080_v34 = vpop.f32.mrf.mxu1  ;;  %v9396_v0 = vld [vmem:[#allocation24_spill] sm:$0xff] }
 0x30f   : > { %v8270_v27 = vadd.f32 %v3072_v23, %v2791_v39  ;;  %v3719_v23 = vmul.f32 %v8212_v31, %v3671_v36  ;;  %v3768_v37 = vadd.f32 %v8222_v20, %v3720_v45 }
 0x310   : > { %v2670_v44 = vpop.f32.mrf.mxu0  ;;  %v6135_v19 = vpop.f32.mrf.mxu1  ;;  %6282 = vmatmul.mubr.msk.bf16.gmra.mxu1 %vm648_vm2, %v3868_v42 }
 0x311   : > { %v2792_v16 = vadd.f32 %v2670_v44, %v7947_v50  ;;  %6285 = vmatprep.mubr.msk.bf16.mxu1 %vm6553_vm1, %v9214_v63  ;;  %v3767_v46 = vadd.f32 %v8222_v20, %v3719_v23 }
 0x312   : > { %v6046_v33 = vpop.f32.mrf.mxu0  ;;  %v3083_v40 = vpop.f32.mrf.mxu1 }
 0x313   : > { %v8276_v7 = vadd.f32 %v3075_v61, %v2792_v16  ;;  %v3253_v61 = vrot.slane %v9396_v0, 3  ;;  %v3808_v19 = vmax.f32 %v3767_v46, 0.0  ;;  %v3809_v16 = vmax.f32 %v3768_v37, 0.0  ;;  %v3674_v0 = vld [vmem:[%s8205_s12 + $0x48] sm:$0xff] }
 0x314   : > { %v2675_v39 = vpop.f32.mrf.mxu0  ;;  %6232 = vmatmul.mubr.msk.bf16.gmra.mxu0 %vm648_vm2, %v3252_v9  ;;  %v6136_v38 = vpop.f32.mrf.mxu1  ;;  %v3722_v45 = vmul.f32 %v8212_v31, %v3674_v0 }
 0x315   : > { %v2793_v50 = vadd.f32 %v2675_v39, %v7958_v13  ;;  %6235 = vmatprep.mubr.msk.bf16.mxu0 %vm6553_vm1, %v9214_v63  ;;  %v3254_v33 = vsel %vm3227_vm8, %v3251_v53, %v3253_v61  ;;  %v3869_v36 = vpack.c.bf16 %v3809_v16, %v3808_v19  ;;  %v3673_v38 = vld [vmem:[%s8205_s12 + $0x40] sm:$0xff]  ;;  %v9397_v53 = vld [vmem:[#allocation27_spill] sm:$0xff] }
 0x316   : > { %v6049_v41 = vpop.f32.mrf.mxu0  ;;  %v3088_v32 = vpop.f32.mrf.mxu1 }
 0x317   : > { %v8290_v44 = vadd.f32 %v3080_v34, %v2793_v50  ;;  %v3721_v34 = vmul.f32 %v8212_v31, %v3673_v38  ;;  %v3770_v41 = vadd.f32 %v8222_v20, %v3722_v45 }
 0x318   : > { %v2678_v9 = vpop.f32.mrf.mxu0  ;;  %v6139_v42 = vpop.f32.mrf.mxu1  ;;  %6286 = vmatmul.mubr.msk.bf16.gmra.mxu1 %vm648_vm2, %v3869_v36 }
 0x319   : > { %v2794_v13 = vadd.f32 %v2678_v9, %v7963_v24  ;;  %6289 = vmatprep.mubr.msk.bf16.mxu1 %vm6553_vm1, %v9214_v63  ;;  %v3769_v37 = vadd.f32 %v8222_v20, %v3721_v34 }
 0x31a   : > { %v6050_v15 = vpop.f32.mrf.mxu0  ;;  %v3091_v39 = vpop.f32.mrf.mxu1 }
 0x31b   : > { %v8296_v23 = vadd.f32 %v3083_v40, %v2794_v13  ;;  %v3255_v40 = vrot.slane %v9397_v53, 3  ;;  %v3810_v42 = vmax.f32 %v3769_v37, 0.0  ;;  %v3811_v13 = vmax.f32 %v3770_v41, 0.0  ;;  %v3676_v53 = vld [vmem:[%s8205_s12 + $0x58] sm:$0xff] }
 0x31c   : > { %v2683_v50 = vpop.f32.mrf.mxu0  ;;  %6236 = vmatmul.mubr.msk.bf16.gmra.mxu0 %vm648_vm2, %v3254_v33  ;;  %v6140_v46 = vpop.f32.mrf.mxu1  ;;  %v3724_v45 = vmul.f32 %v8212_v31, %v3676_v53 }
 0x31d   : > { %v2795_v24 = vadd.f32 %v2683_v50, %v7974_v14  ;;  %6239 = vmatprep.mubr.msk.bf16.mxu0 %vm6553_vm1, %v9214_v63  ;;  %v3256_v15 = vsel %vm3227_vm8, %v3253_v61, %v3255_v40  ;;  %v3870_v38 = vpack.c.bf16 %v3811_v13, %v3810_v42  ;;  %v3675_v46 = vld [vmem:[%s8205_s12 + $0x50] sm:$0xff]  ;;  %v9398_v61 = vld [vmem:[#allocation30_spill] sm:$0xff] }
 0x31e   : > { %v6053_v19 = vpop.f32.mrf.mxu0  ;;  %v3096_v16 = vpop.f32.mrf.mxu1 }
 0x31f   : > { %v8310_v9 = vadd.f32 %v3088_v32, %v2795_v24  ;;  %v3723_v32 = vmul.f32 %v8212_v31, %v3675_v46  ;;  %v3772_v19 = vadd.f32 %v8222_v20, %v3724_v45 }
 0x320   : > { %v2686_v33 = vpop.f32.mrf.mxu0  ;;  %v6143_v36 = vpop.f32.mrf.mxu1  ;;  %6290 = vmatmul.mubr.msk.bf16.gmra.mxu1 %vm648_vm2, %v3870_v38 }
 0x321   : > { %v2796_v14 = vadd.f32 %v2686_v33, %v7979_v22  ;;  %6293 = vmatprep.mubr.msk.bf16.mxu1 %vm6553_vm1, %v9214_v63  ;;  %v3771_v41 = vadd.f32 %v8222_v20, %v3723_v32 }
 0x322   : > { %v6054_v0 = vpop.f32.mrf.mxu0  ;;  %v3099_v50 = vpop.f32.mrf.mxu1 }
 0x323   : > { %v8316_v34 = vadd.f32 %v3091_v39, %v2796_v14  ;;  %v3257_v39 = vrot.slane %v9398_v61, 3  ;;  %v3812_v36 = vmax.f32 %v3771_v41, 0.0  ;;  %v3813_v14 = vmax.f32 %v3772_v19, 0.0  ;;  %v3678_v61 = vld [vmem:[%s8205_s12 + $0x68] sm:$0xff] }
 0x324   : > { %v2691_v24 = vpop.f32.mrf.mxu0  ;;  %6240 = vmatmul.mubr.msk.bf16.gmra.mxu0 %vm648_vm2, %v3256_v15  ;;  %v6144_v37 = vpop.f32.mrf.mxu1  ;;  %v3726_v45 = vmul.f32 %v8212_v31, %v3678_v61 }
 0x325   : > { %v2797_v22 = vadd.f32 %v2691_v24, %v7990_v4  ;;  %6243 = vmatprep.mubr.msk.bf16.mxu0 %vm6553_vm1, %v9214_v63  ;;  %v3258_v0 = vsel %vm3227_vm8, %v3255_v40, %v3257_v39  ;;  %v3871_v46 = vpack.c.bf16 %v3813_v14, %v3812_v36  ;;  %v3677_v37 = vld [vmem:[%s8205_s12 + $0x60] sm:$0xff]  ;;  %v9399_v40 = vld [vmem:[#allocation33_spill] sm:$0xff] }
 0x326   : > { %v6057_v42 = vpop.f32.mrf.mxu0  ;;  %v3104_v13 = vpop.f32.mrf.mxu1 }
 0x327   : > { %v8330_v33 = vadd.f32 %v3096_v16, %v2797_v22  ;;  %v3725_v16 = vmul.f32 %v8212_v31, %v3677_v37  ;;  %v3774_v42 = vadd.f32 %v8222_v20, %v3726_v45  ;;  %v4531_v37 = vld [vmem:[%s9090_s9] sm:$0xff] }
 0x328   : > { %v2694_v15 = vpop.f32.mrf.mxu0  ;;  %v6147_v38 = vpop.f32.mrf.mxu1  ;;  %6294 = vmatmul.mubr.msk.bf16.gmra.mxu1 %vm648_vm2, %v3871_v46 }
 0x329   : > { %v2798_v4 = vadd.f32 %v2694_v15, %v7995_v49  ;;  %6297 = vmatprep.mubr.msk.bf16.mxu1 %vm6553_vm1, %v9214_v63  ;;  %v3773_v19 = vadd.f32 %v8222_v20, %v3725_v16 }
 0x32a   : > { %v6058_v53 = vpop.f32.mrf.mxu0  ;;  %v3107_v24 = vpop.f32.mrf.mxu1 }
 0x32b   : > { %v8336_v32 = vadd.f32 %v3099_v50, %v2798_v4  ;;  %v3259_v50 = vrot.slane %v9399_v40, 3  ;;  %v3814_v38 = vmax.f32 %v3773_v19, 0.0  ;;  %v3815_v4 = vmax.f32 %v3774_v42, 0.0 }
 0x32c   : > { %v2699_v22 = vpop.f32.mrf.mxu0  ;;  %6244 = vmatmul.mubr.msk.bf16.gmra.mxu0 %vm648_vm2, %v3258_v0  ;;  %v6148_v41 = vpop.f32.mrf.mxu1 }
 0x32d   : > { %v2799_v49 = vadd.f32 %v2699_v22, %v8006_v55  ;;  %6247 = vmatprep.mubr.msk.bf16.mxu0 %vm6553_vm1, %v9214_v63  ;;  %v3260_v53 = vsel %vm3227_vm8, %v3257_v39, %v3259_v50  ;;  %v3872_v61 = vpack.c.bf16 %v3815_v4, %v3814_v38  ;;  %v4532_v22 = vpack.c.bf16 %v4531_v37, %v4531_v37  ;;  %v3679_v41 = vld [vmem:[%s8205_s12 + $0x70] sm:$0xff] }
 0x32e   : > { %v6061_v36 = vpop.f32.mrf.mxu0  ;;  %v3112_v14 = vpop.f32.mrf.mxu1  ;;  %v3727_v40 = vmul.f32 %v8212_v31, %v3679_v41 }
 0x32f   : > { %v8350_v15 = vadd.f32 %v3104_v13, %v2799_v49  ;;  %v3680_v13 = vld [vmem:[%s8205_s12 + $0x78] sm:$0xff]  ;;  %v4606_v42 = vsel %vm4604_vm9, %v4532_v22, 0 }
 0x330   : > { %v2702_v0 = vpop.f32.mrf.mxu0  ;;  %v6151_v46 = vpop.f32.mrf.mxu1  ;;  %6298 = vmatmul.mubr.msk.bf16.gmra.mxu1 %vm648_vm2, %v3872_v61  ;;  %v3775_v4 = vadd.f32 %v8222_v20, %v3727_v40 }
 0x331   : > { %v2800_v55 = vadd.f32 %v2702_v0, %v8016_v25  ;;  %v3728_v25 = vmul.f32 %v8212_v31, %v3680_v13  ;;  %6301 = vmatprep.mubr.msk.bf16.mxu1 %vm6553_vm1, %v9214_v63  ;;  %6444 = vmatpush3.bf16.msra.mxu1 %v4606_v42  ;;  %v3681_v42 = vld [vmem:[%s8205_s12 + $0x80] sm:$0xff] }
 0x332   : > { %v6062_v16 = vpop.f32.mrf.mxu0  ;;  %v3115_v45 = vpop.f32.mrf.mxu1  ;;  %v3816_v37 = vmax.f32 %v3775_v4, 0.0 }
 0x333   : > { %v8359_v49 = vadd.f32 %v3107_v24, %v2800_v55  ;;  %v9400_v24 = vld [vmem:[#allocation36_spill] sm:$0xff]  ;;  %v3776_v0 = vadd.f32 %v8222_v20, %v3728_v25 }
 0x334   : > { %v2707_v39 = vpop.f32.mrf.mxu0  ;;  %6248 = vmatmul.mubr.msk.bf16.gmra.mxu0 %vm648_vm2, %v3260_v53  ;;  %v6152_v19 = vpop.f32.mrf.mxu1  ;;  %v3261_v38 = vrot.slane %v9400_v24, 3  ;;  %v3682_v24 = vld [vmem:[%s8205_s12 + $0x88] sm:$0xff] }
 0x335   : > { %v2801_v36 = vadd.f32 %v2707_v39, %v8028_v26  ;;  %6251 = vmatprep.mubr.msk.bf16.mxu0 %vm6553_vm1, %v9214_v63  ;;  %v3817_v61 = vmax.f32 %v3776_v0, 0.0  ;;  %v3730_v25 = vmul.f32 %v8212_v31, %v3682_v24 }
 0x336   : > { %v6065_v46 = vpop.f32.mrf.mxu0  ;;  %v3120_v55 = vpop.f32.mrf.mxu1  ;;  %v3262_v41 = vsel %vm3227_vm8, %v3259_v50, %v3261_v38 }
 0x337   : > { %v8373_v53 = vadd.f32 %v3112_v14, %v2801_v36  ;;  %v3873_v13 = vpack.c.bf16 %v3817_v61, %v3816_v37  ;;  %v3729_v14 = vmul.f32 %v8212_v31, %v3681_v42  ;;  %v3778_v37 = vadd.f32 %v8222_v20, %v3730_v25 }
 0x338   : > { %v2710_v16 = vpop.f32.mrf.mxu0  ;;  %v6155_v26 = vpop.f32.mrf.mxu1 }
 0x339   : > { %v2802_v22 = vadd.f32 %v2710_v16, %v8038_v17  ;;  %6302 = vmatmul.mubr.msk.bf16.gmra.mxu1 %vm648_vm2, %v3873_v13  ;;  %v9402_v17 = vld [vmem:[#allocation61_spill] sm:$0xff]  ;;  %v3777_v46 = vadd.f32 %v8222_v20, %v3729_v14 }
 0x33a   : > { %v6066_v39 = vpop.f32.mrf.mxu0  ;;  %v3123_v19 = vpop.f32.mrf.mxu1  ;;  %6305 = vmatprep.mubr.msk.bf16.mxu1 %vm6553_vm1, %v9214_v63 }
 0x33b   : > { %v8379_v40 = vadd.f32 %v3115_v45, %v2802_v22  ;;  %v9403_v45 = vld [vmem:[#allocation58_spill] sm:$0xff]  ;;  %v3818_v22 = vmax.f32 %v3777_v46, 0.0 }
 0x33c   : > { %v2715_v36 = vpop.f32.mrf.mxu0  ;;  %6252 = vmatmul.mubr.msk.bf16.gmra.mxu0 %vm648_vm2, %v3262_v41  ;;  %v6156_v4 = vpop.f32.mrf.mxu1  ;;  %v3263_v0 = vrot.slane %v9403_v45, 3  ;;  %v3819_v41 = vmax.f32 %v3778_v37, 0.0  ;;  %v3683_v45 = vld [vmem:[%s8205_s12 + $0x90] sm:$0xff] }
 0x33d   : > { %9401 = vst [vmem:[#allocation66_spill] sm:$0xff] %v8379_v40  ;;  %v2803_v50 = vadd.f32 %v2715_v36, %v9402_v17  ;;  %6255 = vmatprep.mubr.msk.bf16.mxu0 %vm6553_vm1, %v9214_v63  ;;  %v3684_v40 = vld [vmem:[%s8205_s12 + $0x98] sm:$0xff] }
 0x33e   : > { %v6069_v61 = vpop.f32.mrf.mxu0  ;;  %v3128_v16 = vpop.f32.mrf.mxu1  ;;  %v3264_v24 = vsel %vm3227_vm8, %v3261_v38, %v3263_v0  ;;  %v3874_v36 = vpack.c.bf16 %v3819_v41, %v3818_v22  ;;  %v3732_v25 = vmul.f32 %v8212_v31, %v3684_v40  ;;  %v3265_v38 = vrot.slane %v8020_v58, 3 }
 0x33f   : > { %v8393_v26 = vadd.f32 %v3120_v55, %v2803_v50  ;;  %v3731_v55 = vmul.f32 %v8212_v31, %v3683_v45  ;;  %v3685_v45 = vld [vmem:[%s8205_s12 + $0xa0] sm:$0xff] }
 0x340   : > { %v2718_v13 = vpop.f32.mrf.mxu0  ;;  %v6159_v39 = vpop.f32.mrf.mxu1  ;;  %v3780_v40 = vadd.f32 %v8222_v20, %v3732_v25 }
 0x341   : > { %v2804_v42 = vadd.f32 %v2718_v13, %v8055_v29  ;;  %6306 = vmatmul.mubr.msk.bf16.gmra.mxu1 %vm648_vm2, %v3874_v36 }
 0x342   : > { %v6070_v4 = vpop.f32.mrf.mxu0  ;;  %v3131_v17 = vpop.f32.mrf.mxu1  ;;  %6309 = vmatprep.mubr.msk.bf16.mxu1 %vm6553_vm1, %v9214_v63  ;;  %v3821_v13 = vmax.f32 %v3780_v40, 0.0 }
 0x343   : > { %v8399_v14 = vadd.f32 %v3123_v19, %v2804_v42  ;;  %v3779_v19 = vadd.f32 %v8222_v20, %v3731_v55 }
 0x344   : > { %v2723_v50 = vpop.f32.mrf.mxu0  ;;  %6256 = vmatmul.mubr.msk.bf16.gmra.mxu0 %vm648_vm2, %v3264_v24  ;;  %v6160_v46 = vpop.f32.mrf.mxu1  ;;  %v3266_v24 = vsel %vm3227_vm8, %v3263_v0, %v3265_v38  ;;  %v3267_v0 = vrot.slane %v8040_v18, 3 }
 0x345   : > { %v2805_v29 = vadd.f32 %v2723_v50, %v8065_v28  ;;  %6259 = vmatprep.mubr.msk.bf16.mxu0 %vm6553_vm1, %v9214_v63  ;;  %v3820_v41 = vmax.f32 %v3779_v19, 0.0  ;;  %v3686_v50 = vld [vmem:[%s8205_s12 + $0xa8] sm:$0xff] }
 0x346   : > { %v6073_v37 = vpop.f32.mrf.mxu0  ;;  %v3136_v61 = vpop.f32.mrf.mxu1  ;;  %v3734_v25 = vmul.f32 %v8212_v31, %v3686_v50  ;;  %v3688_v50 = vld [vmem:[%s8205_s12 + $0xb8] sm:$0xff] }
 0x347   : > { %v8413_v22 = vadd.f32 %v3128_v16, %v2805_v29  ;;  %v3875_v36 = vpack.c.bf16 %v3821_v13, %v3820_v41  ;;  %v3733_v16 = vmul.f32 %v8212_v31, %v3685_v45  ;;  %v3687_v45 = vld [vmem:[%s8205_s12 + $0xb0] sm:$0xff] }
 0x348   : > { %v2726_v39 = vpop.f32.mrf.mxu0  ;;  %v6163_v42 = vpop.f32.mrf.mxu1  ;;  %v3782_v19 = vadd.f32 %v8222_v20, %v3734_v25  ;;  %v3736_v25 = vmul.f32 %v8212_v31, %v3688_v50 }
 0x349   : > { %v2806_v28 = vadd.f32 %v2726_v39, %v8072_v21  ;;  %6310 = vmatmul.mubr.msk.bf16.gmra.mxu1 %vm648_vm2, %v3875_v36 }
 0x34a   : > { %v6074_v4 = vpop.f32.mrf.mxu0  ;;  %v3139_v58 = vpop.f32.mrf.mxu1  ;;  %6313 = vmatprep.mubr.msk.bf16.mxu1 %vm6553_vm1, %v9214_v63  ;;  %v3823_v39 = vmax.f32 %v3782_v19, 0.0 }
 0x34b   : > { %v8419_v55 = vadd.f32 %v3131_v17, %v2806_v28  ;;  %v3781_v17 = vadd.f32 %v8222_v20, %v3733_v16 }
 0x34c   : > { %v2731_v46 = vpop.f32.mrf.mxu0  ;;  %6260 = vmatmul.mubr.msk.bf16.gmra.mxu0 %vm648_vm2, %v3266_v24  ;;  %v6164_v29 = vpop.f32.mrf.mxu1  ;;  %v3268_v24 = vsel %vm3227_vm8, %v3265_v38, %v3267_v0 }
 0x34d   : > { %v2807_v21 = vadd.f32 %v2731_v46, %v8080_v1  ;;  %6263 = vmatprep.mubr.msk.bf16.mxu0 %vm6553_vm1, %v9214_v63  ;;  %v3822_v13 = vmax.f32 %v3781_v17, 0.0 }
 0x34e   : > { %v6077_v40 = vpop.f32.mrf.mxu0  ;;  %v3144_v37 = vpop.f32.mrf.mxu1 }
 0x34f   : > { %v8433_v41 = vadd.f32 %v3136_v61, %v2807_v21  ;;  %v3876_v36 = vpack.c.bf16 %v3823_v39, %v3822_v13  ;;  %v3735_v61 = vmul.f32 %v8212_v31, %v3687_v45 }
 0x350   : > { %v2734_v42 = vpop.f32.mrf.mxu0  ;;  %v6167_v28 = vpop.f32.mrf.mxu1 }
 0x351   : > { %v2808_v1 = vadd.f32 %v2734_v42, %v8086_v51  ;;  %6314 = vmatmul.mubr.msk.bf16.gmra.mxu1 %vm648_vm2, %v3876_v36  ;;  %v3783_v38 = vadd.f32 %v8222_v20, %v3735_v61  ;;  %v3689_v36 = vld [vmem:[%s8205_s12 + $0xc0] sm:$0xff] }
 0x352   : > { %v6078_v4 = vpop.f32.mrf.mxu0  ;;  %v3147_v18 = vpop.f32.mrf.mxu1  ;;  %6317 = vmatprep.mubr.msk.bf16.mxu1 %vm6553_vm1, %v9214_v63  ;;  %v3737_v50 = vmul.f32 %v8212_v31, %v3689_v36 }
 0x353   : > { %v8439_v16 = vadd.f32 %v3139_v58, %v2808_v1  ;;  %v3784_v58 = vadd.f32 %v8222_v20, %v3736_v25  ;;  %v3824_v40 = vmax.f32 %v3783_v38, 0.0  ;;  %v3690_v4 = vld [vmem:[%s8205_s12 + $0xc8] sm:$0xff] }
 0x354   : > { %v2739_v46 = vpop.f32.mrf.mxu0  ;;  %6264 = vmatmul.mubr.msk.bf16.gmra.mxu0 %vm648_vm2, %v3268_v24  ;;  %v6168_v29 = vpop.f32.mrf.mxu1 }
 0x355   : > { %v2809_v51 = vadd.f32 %v2739_v46, %v8093_v5  ;;  %6267 = vmatprep.mubr.msk.bf16.mxu0 %vm6553_vm1, %v9214_v63  ;;  %v3825_v13 = vmax.f32 %v3784_v58, 0.0 }
 0x356   : > { %v6081_v21 = vpop.f32.mrf.mxu0  ;;  %v3152_v17 = vpop.f32.mrf.mxu1 }
 0x357   : > { %v8452_v19 = vadd.f32 %v3144_v37, %v2809_v51  ;;  %v3877_v1 = vpack.c.bf16 %v3825_v13, %v3824_v40  ;;  %v3738_v37 = vmul.f32 %v8212_v31, %v3690_v4 }
 0x358   : > { %v2742_v39 = vpop.f32.mrf.mxu0  ;;  %v6171_v42 = vpop.f32.mrf.mxu1 }
 0x359   : > { %v2810_v28 = vadd.f32 %v2742_v39, %v8098_v8  ;;  %6318 = vmatmul.mubr.msk.bf16.gmra.mxu1 %vm648_vm2, %v3877_v1  ;;  %v3786_v46 = vadd.f32 %v8222_v20, %v3738_v37  ;;  %v3692_v1 = vld [vmem:[%s8205_s12 + $0xd8] sm:$0xff] }
 0x35a   : > { %v6082_v5 = vpop.f32.mrf.mxu0  ;;  %v3155_v24 = vpop.f32.mrf.mxu1  ;;  %6321 = vmatprep.mubr.msk.bf16.mxu1 %vm6553_vm1, %v9214_v63 }
 0x35b   : > { %v8457_v45 = vadd.f32 %v3147_v18, %v2810_v28  ;;  %v3785_v18 = vadd.f32 %v8222_v20, %v3737_v50  ;;  %v3827_v58 = vmax.f32 %v3786_v46, 0.0  ;;  %v3691_v28 = vld [vmem:[%s8205_s12 + $0xd0] sm:$0xff] }
 0x35c   : > { %v2747_v61 = vpop.f32.mrf.mxu0  ;;  %6268 = vmatmul.mubr.msk.bf16.gmra.mxu0 %vm648_vm2, %v3267_v0  ;;  %v6172_v25 = vpop.f32.mrf.mxu1  ;;  %v3739_v36 = vmul.f32 %v8212_v31, %v3691_v28 }
 0x35d   : > { %v2811_v8 = vadd.f32 %v2747_v61, %v8109_v3  ;;  %6359 = vmatprep.mubr.msk.bf16.mxu0 %vm6553_vm1, %v9214_v63  ;;  %v3826_v0 = vmax.f32 %v3785_v18, 0.0 }
 0x35e   : > { %v6085_v29 = vpop.f32.mrf.mxu0  ;;  %v3160_v51 = vpop.f32.mrf.mxu1  ;;  %v3787_v37 = vadd.f32 %v8222_v20, %v3739_v36 }
 0x35f   : > { %v8470_v38 = vadd.f32 %v3152_v17, %v2811_v8  ;;  %v3878_v39 = vpack.c.bf16 %v3827_v58, %v3826_v0  ;;  %v3740_v17 = vmul.f32 %v8212_v31, %v3692_v1 }
 0x360   : > { %v2750_v21 = vpop.f32.mrf.mxu0  ;;  %v6175_v40 = vpop.f32.mrf.mxu1  ;;  %v3828_v18 = vmax.f32 %v3787_v37, 0.0 }
 0x361   : > { %v2812_v13 = vadd.f32 %v2750_v21, %v8114_v57  ;;  %6322 = vmatmul.mubr.msk.bf16.gmra.mxu1 %vm648_vm2, %v3878_v39  ;;  %v3693_v39 = vld [vmem:[%s8205_s12 + $0xe0] sm:$0xff] }
 0x362   : > { %v6086_v3 = vpop.f32.mrf.mxu0  ;;  %v3163_v42 = vpop.f32.mrf.mxu1  ;;  %6325 = vmatprep.mubr.msk.bf16.mxu1 %vm6553_vm1, %v9214_v63  ;;  %v3741_v28 = vmul.f32 %v8212_v31, %v3693_v39 }
 0x363   : > { %v8475_v5 = vadd.f32 %v3155_v24, %v2812_v13  ;;  %v3788_v24 = vadd.f32 %v8222_v20, %v3740_v17  ;;  %v3694_v3 = vld [vmem:[%s8205_s12 + $0xe8] sm:$0xff] }
 0x364   : > { %v2755_v4 = vpop.f32.mrf.mxu0  ;;  %v6176_v50 = vpop.f32.mrf.mxu1  ;;  %v3789_v17 = vadd.f32 %v8222_v20, %v3741_v28 }
 0x365   : > { %v2813_v57 = vadd.f32 %v2755_v4, %v8121_v47  ;;  %v3829_v46 = vmax.f32 %v3788_v24, 0.0 }
 0x366   : > { %v6089_v61 = vpop.f32.mrf.mxu0  ;;  %v3168_v25 = vpop.f32.mrf.mxu1  ;;  %v3830_v37 = vmax.f32 %v3789_v17, 0.0 }
 0x367   : > { %v8485_v8 = vadd.f32 %v3160_v51, %v2813_v57  ;;  %v3879_v21 = vpack.c.bf16 %v3829_v46, %v3828_v18  ;;  %v3742_v51 = vmul.f32 %v8212_v31, %v3694_v3 }
 0x368   : > { %v2758_v29 = vpop.f32.mrf.mxu0  ;;  %v6179_v0 = vpop.f32.mrf.mxu1 }
 0x369   : > { %v2814_v58 = vadd.f32 %v2758_v29, %v8125_v48  ;;  %6326 = vmatmul.mubr.msk.bf16.gmra.mxu1 %vm648_vm2, %v3879_v21  ;;  %v3696_v21 = vld [vmem:[%s8205_s12 + $0xf8] sm:$0xff] }
 0x36a   : > { %v6090_v40 = vpop.f32.mrf.mxu0  ;;  %v3171_v13 = vpop.f32.mrf.mxu1  ;;  %6329 = vmatprep.mubr.msk.bf16.mxu1 %vm6553_vm1, %v9214_v63 }
 0x36b   : > { %v8490_v47 = vadd.f32 %v3163_v42, %v2814_v58  ;;  %v3790_v42 = vadd.f32 %v8222_v20, %v3742_v51  ;;  %v3695_v58 = vld [vmem:[%s8205_s12 + $0xf0] sm:$0xff] }
 0x36c   : > { %v2763_v1 = vpop.f32.mrf.mxu0  ;;  %v6180_v36 = vpop.f32.mrf.mxu1  ;;  %v3743_v39 = vmul.f32 %v8212_v31, %v3695_v58 }
 0x36d   : > { %v2815_v48 = vadd.f32 %v2763_v1, %v8132_v60  ;;  %v3831_v24 = vmax.f32 %v3790_v42, 0.0 }
 0x36e   : > { %v6093_v4 = vpop.f32.mrf.mxu0  ;;  %v3176_v50 = vpop.f32.mrf.mxu1  ;;  %v3791_v51 = vadd.f32 %v8222_v20, %v3743_v39 }
 0x36f   : > { %v8500_v57 = vadd.f32 %v3168_v25, %v2815_v48  ;;  %v3880_v29 = vpack.c.bf16 %v3831_v24, %v3830_v37  ;;  %v3744_v25 = vmul.f32 %v8212_v31, %v3696_v21  ;;  %v3697_v24 = vld [vmem:[%s8205_s12 + $0x100] sm:$0xff] }
 0x370   : > { %v2766_v61 = vpop.f32.mrf.mxu0  ;;  %v6183_v18 = vpop.f32.mrf.mxu1  ;;  %v3832_v48 = vmax.f32 %v3791_v51, 0.0 }
 0x371   : > { %v2816_v46 = vadd.f32 %v2766_v61, %v8136_v6  ;;  %6330 = vmatmul.mubr.msk.bf16.gmra.mxu1 %vm648_vm2, %v3880_v29  ;;  %v3698_v61 = vld [vmem:[%s8205_s12 + $0x108] sm:$0xff]  ;;  %v3745_v18 = vmul.f32 %v8212_v31, %v3697_v24  ;;  %v8528_v29 = vld [vmem:[%s9084_s3] ss:$0 sm:$0xff] }
 0x372   : > { %v6094_v0 = vpop.f32.mrf.mxu0  ;;  %v3179_v40 = vpop.f32.mrf.mxu1  ;;  %6333 = vmatprep.mubr.msk.bf16.mxu1 %vm6553_vm1, %v9214_v63 }
 0x373   : > { %v8505_v60 = vadd.f32 %v3171_v13, %v2816_v46  ;;  %v3792_v13 = vadd.f32 %v8222_v20, %v3744_v25  ;;  %v3793_v0 = vadd.f32 %v8222_v20, %v3745_v18 }
 0x374   : > { %v2771_v3 = vpop.f32.mrf.mxu0  ;;  %v6184_v6 = vpop.f32.mrf.mxu1 }
 0x375   : > { %v2817_v28 = vadd.f32 %v2771_v3, %v8143_v30  ;;  %v3833_v17 = vmax.f32 %v3792_v13, 0.0  ;;  %v3746_v30 = vmul.f32 %v8212_v31, %v3698_v61  ;;  %v3834_v40 = vmax.f32 %v3793_v0, 0.0  ;;  %v3700_v13 = vld [vmem:[%s8205_s12 + $0x118] sm:$0xff] }
 0x376   : > { %v6097_v1 = vpop.f32.mrf.mxu0 }
 0x377   : > { %v8515_v36 = vadd.f32 %v3176_v50, %v2817_v28  ;;  %v3881_v4 = vpack.c.bf16 %v3833_v17, %v3832_v48  ;;  %v3794_v58 = vadd.f32 %v8222_v20, %v3746_v30  ;;  %v3748_v17 = vmul.f32 %v8212_v31, %v3700_v13 }
 0x378   : > { %v2774_v42 = vpop.f32.mrf.mxu0 }
 0x379   : > { %6334 = vmatmul.mubr.msk.bf16.gmra.mxu1 %vm648_vm2, %v3881_v4  ;;  %v3835_v39 = vmax.f32 %v3794_v58, 0.0  ;;  %v3796_v61 = vadd.f32 %v8222_v20, %v3748_v17 }
 0x37a   : > { %v6098_v37 = vpop.f32.mrf.mxu0  ;;  %6337 = vmatprep.mubr.msk.bf16.mxu1 %vm6553_vm1, %v9214_v63 }
 0x37b   : > { %v3882_v28 = vpack.c.bf16 %v3835_v39, %v3834_v40 }
 0x37c   : > { %v3369_v46 = vpop.f32.mrf.mxu0 }
 0x37d   : > { %v3535_v50 = vadd.f32 %v3369_v46, %v8151_v59  ;;  %v3699_v59 = vld [vmem:[%s8205_s12 + $0x110] sm:$0xff] }
 0x37e   : > { %v6189_v21 = vpop.f32.mrf.mxu0  ;;  %v3747_v48 = vmul.f32 %v8212_v31, %v3699_v59 }
 0x37f   : > { %v3583_v25 = vadd.f32 %v8528_v29, %v3535_v50  ;;  %v3837_v50 = vmax.f32 %v3796_v61, 0.0 }
 0x380   : > { %v3372_v3 = vpop.f32.mrf.mxu0  ;;  %v3795_v24 = vadd.f32 %v8222_v20, %v3747_v48 }
 0x381   : > { %v3536_v6 = vadd.f32 %v3372_v3, %v8155_v2  ;;  %6338 = vmatmul.mubr.msk.bf16.gmra.mxu1 %vm648_vm2, %v3882_v28  ;;  %v3624_v42 = vmax.f32 %v3583_v25, 0.0  ;;  %v3702_v25 = vld [vmem:[%s8205_s12 + $0x128] sm:$0xff] }
 0x382   : > { %v6190_v51 = vpop.f32.mrf.mxu0  ;;  %6341 = vmatprep.mubr.msk.bf16.mxu1 %vm6553_vm1, %v9214_v63  ;;  %v3836_v46 = vmax.f32 %v3795_v24, 0.0  ;;  %v3750_v28 = vmul.f32 %v8212_v31, %v3702_v25 }
 0x383   : > { %v3584_v1 = vadd.f32 %v8528_v29, %v3536_v6 }
 0x384   : > { %v3377_v4 = vpop.f32.mrf.mxu0  ;;  %v3883_v40 = vpack.c.bf16 %v3837_v50, %v3836_v46  ;;  %v3798_v48 = vadd.f32 %v8222_v20, %v3750_v28  ;;  %v3704_v46 = vld [vmem:[%s8205_s12 + $0x138] sm:$0xff] }
 0x385   : > { %v3625_v37 = vmax.f32 %v3584_v1, 0.0  ;;  %v3537_v2 = vadd.f32 %v3377_v4, %v8162_v43  ;;  %v3701_v43 = vld [vmem:[%s8205_s12 + $0x120] sm:$0xff] }
 0x386   : > { %v6193_v18 = vpop.f32.mrf.mxu0  ;;  %v3749_v6 = vmul.f32 %v8212_v31, %v3701_v43 }
 0x387   : > { %v3843_v30 = vpack.c.bf16 %v3625_v37, %v3624_v42  ;;  %v3585_v0 = vadd.f32 %v8528_v29, %v3537_v2  ;;  %v3839_v37 = vmax.f32 %v3798_v48, 0.0 }
 0x388   : > { %v3380_v58 = vpop.f32.mrf.mxu0  ;;  %v3797_v1 = vadd.f32 %v8222_v20, %v3749_v6 }
 0x389   : > { %v3538_v21 = vadd.f32 %v3380_v58, %v8166_v56  ;;  %6360 = vmatmul.mubr.msk.bf16.vlgmr.msra.gmra.mxu0 %vm648_vm2, %v3843_v30  ;;  %6342 = vmatmul.mubr.msk.bf16.gmra.mxu1 %vm648_vm2, %v3883_v40  ;;  %v3626_v51 = vmax.f32 %v3585_v0, 0.0  ;;  %v3752_v58 = vmul.f32 %v8212_v31, %v3704_v46 }
 0x38a   : > { %v6194_v39 = vpop.f32.mrf.mxu0  ;;  %6363 = vmatprep.mubr.msk.bf16.mxu0 %vm6553_vm1, %v9214_v63  ;;  %6345 = vmatprep.mubr.msk.bf16.mxu1 %vm6553_vm1, %v9214_v63  ;;  %v3838_v4 = vmax.f32 %v3797_v1, 0.0 }
 0x38b   : > { %v3586_v3 = vadd.f32 %v8528_v29, %v3538_v21  ;;  %v3800_v25 = vadd.f32 %v8222_v20, %v3752_v58  ;;  %v6543_v58 = vld [vmem:[%s9086_s5] ss:$0 sm:$0xff] }
 0x38c   : > { %v3385_v59 = vpop.f32.mrf.mxu0  ;;  %v3884_v18 = vpack.c.bf16 %v3839_v37, %v3838_v4  ;;  %v9405_v4 = vld [vmem:[#allocation64_spill] sm:$0xff] }
 0x38d   : > { %v3627_v56 = vmax.f32 %v3586_v3, 0.0  ;;  %v3539_v13 = vadd.f32 %v3385_v59, %v8173_v54  ;;  %v3703_v54 = vld [vmem:[%s8205_s12 + $0x130] sm:$0xff] }
 0x38e   : > { %v6197_v17 = vpop.f32.mrf.mxu0  ;;  %v3751_v0 = vmul.f32 %v8212_v31, %v3703_v54 }
 0x38f   : > { %v3844_v42 = vpack.c.bf16 %v3627_v56, %v3626_v51  ;;  %v3587_v2 = vadd.f32 %v8528_v29, %v3539_v13  ;;  %v3841_v51 = vmax.f32 %v3800_v25, 0.0  ;;  %v9404_v56 = vld [vmem:[#allocation63_spill] sm:$0xff] }
 0x390   : > { %v3388_v24 = vpop.f32.mrf.mxu0  ;;  %v3799_v43 = vadd.f32 %v8222_v20, %v3751_v0 }
 0x391   : > { %v3540_v61 = vadd.f32 %v3388_v24, %v8177_v52  ;;  %6364 = vmatmul.mubr.msk.bf16.gmra.mxu0 %vm648_vm2, %v3844_v42  ;;  %6346 = vmatmul.mubr.msk.bf16.gmra.mxu1 %vm648_vm2, %v3884_v18  ;;  %v3628_v21 = vmax.f32 %v3587_v2, 0.0  ;;  %v3705_v24 = vld [vmem:[%s8205_s12 + $0x140] sm:$0xf] }
 0x392   : > { %v6198_v30 = vpop.f32.mrf.mxu0  ;;  %6367 = vmatprep.mubr.msk.bf16.mxu0 %vm6553_vm1, %v9214_v63  ;;  %6349 = vmatprep.mubr.msk.bf16.mxu1 %vm6553_vm1, %v9214_v63  ;;  %v3840_v28 = vmax.f32 %v3799_v43, 0.0  ;;  %v6542_v18 = vld [vmem:[%s9085_s4] ss:$0 sm:$0xff] }
 0x393   : > { %v3588_v50 = vadd.f32 %v8528_v29, %v3540_v61  ;;  %v3753_v30 = vmul.f32 %v6542_v18, %v3705_v24 }
 0x394   : > { %v3393_v40 = vpop.f32.mrf.mxu0  ;;  %v3885_v1 = vpack.c.bf16 %v3841_v51, %v3840_v28 }
 0x395   : > { %v3629_v52 = vmax.f32 %v3588_v50, 0.0  ;;  %v3541_v39 = vadd.f32 %v3393_v40, %v8184_v11  ;;  %v9406_v50 = vld [vmem:[#allocation65_spill] sm:$0xff] }
 0x396   : > { %v6201_v3 = vpop.f32.mrf.mxu0 }
 0x397   : > { %v3845_v6 = vpack.c.bf16 %v3629_v52, %v3628_v21  ;;  %v3589_v31 = vadd.f32 %v8528_v29, %v3541_v39  ;;  %v3801_v21 = vadd.f32 %v6543_v58, %v3753_v30 }
 0x398   : > { %v3396_v59 = vpop.f32.mrf.mxu0 }
 0x399   : > { %v3542_v13 = vadd.f32 %v3396_v59, %v9404_v56  ;;  %6368 = vmatmul.mubr.msk.bf16.gmra.mxu0 %vm648_vm2, %v3845_v6  ;;  %6350 = vmatmul.mubr.msk.bf16.gmra.mxu1 %vm648_vm2, %v3885_v1  ;;  %v3630_v17 = vmax.f32 %v3589_v31, 0.0  ;;  %v3842_v39 = vmax.f32 %v3801_v21, 0.0 }
 0x39a   : > { %v6202_v48 = vpop.f32.mrf.mxu0  ;;  %6371 = vmatprep.mubr.msk.bf16.mxu0 %vm6553_vm1, %v9214_v63  ;;  %6353 = vmatprep.mubr.msk.bf16.mxu1 %vm6553_vm1, %v9214_v63 }
 0x39b   : > { %v3590_v11 = vadd.f32 %v8528_v29, %v3542_v13  ;;  %v3886_v28 = vpack.c.bf16 %v3842_v39, %v3842_v39 }
 0x39c   : > { %v3401_v20 = vpop.f32.mrf.mxu0 }
 0x39d   : > { %v3631_v42 = vmax.f32 %v3590_v11, 0.0  ;;  %v3543_v37 = vadd.f32 %v3401_v20, %v9405_v4 }
 0x39e   : > { %v6205_v2 = vpop.f32.mrf.mxu0 }
 0x39f   : > { %v3846_v61 = vpack.c.bf16 %v3631_v42, %v3630_v17  ;;  %v3591_v46 = vadd.f32 %v8528_v29, %v3543_v37 }
 0x3a0   : > { %v3404_v54 = vpop.f32.mrf.mxu0 }
 0x3a1   : > { %v3544_v0 = vadd.f32 %v3404_v54, %v9406_v50  ;;  %6372 = vmatmul.mubr.msk.bf16.gmra.mxu0 %vm648_vm2, %v3846_v61  ;;  %v3632_v25 = vmax.f32 %v3591_v46, 0.0  ;;  %6354 = vmatmul.mubr.msk.bf16.gmra.mxu1 %vm648_vm2, %v3886_v28 }
 0x3a2   : > { %v6206_v40 = vpop.f32.mrf.mxu0  ;;  %6375 = vmatprep.mubr.msk.bf16.mxu0 %vm6553_vm1, %v9214_v63  ;;  %6445 = vmatprep.mubr.msk.bf16.mxu1 %vm6553_vm1, %v9214_v63 }
 0x3a3   : > { %v3592_v52 = vadd.f32 %v8528_v29, %v3544_v0 }
 0x3a4   : > { %v3409_v43 = vpop.f32.mrf.mxu0 }
 0x3a5   : > { %v3633_v3 = vmax.f32 %v3592_v52, 0.0  ;;  %v3545_v6 = vadd.f32 %v3409_v43, %v8230_v62 }
 0x3a6   : > { %v6209_v51 = vpop.f32.mrf.mxu0 }
 0x3a7   : > { %v3847_v59 = vpack.c.bf16 %v3633_v3, %v3632_v25  ;;  %v3593_v56 = vadd.f32 %v8528_v29, %v3545_v6 }
 0x3a8   : > { %v3412_v31 = vpop.f32.mrf.mxu0 }
 0x3a9   : > { %v3546_v13 = vadd.f32 %v3412_v31, %v8236_v35  ;;  %6376 = vmatmul.mubr.msk.bf16.gmra.mxu0 %vm648_vm2, %v3847_v59  ;;  %v3634_v11 = vmax.f32 %v3593_v56, 0.0 }
 0x3aa   : > { %v6210_v1 = vpop.f32.mrf.mxu0  ;;  %6379 = vmatprep.mubr.msk.bf16.mxu0 %vm6553_vm1, %v9214_v63 }
 0x3ab   : > { %v3594_v62 = vadd.f32 %v8528_v29, %v3546_v13 }
 0x3ac   : > { %v3417_v48 = vpop.f32.mrf.mxu0 }
 0x3ad   : > { %v3635_v20 = vmax.f32 %v3594_v62, 0.0  ;;  %v3547_v17 = vadd.f32 %v3417_v48, %v8250_v12 }
 0x3ae   : > { %v6213_v42 = vpop.f32.mrf.mxu0 }
 0x3af   : > { %v3848_v4 = vpack.c.bf16 %v3635_v20, %v3634_v11  ;;  %v3595_v2 = vadd.f32 %v8528_v29, %v3547_v17 }
 0x3b0   : > { %v3420_v37 = vpop.f32.mrf.mxu0 }
 0x3b1   : > { %v3548_v35 = vadd.f32 %v3420_v37, %v8256_v10  ;;  %6380 = vmatmul.mubr.msk.bf16.gmra.mxu0 %vm648_vm2, %v3848_v4  ;;  %v3636_v30 = vmax.f32 %v3595_v2, 0.0 }
 0x3b2   : > { %v6214_v24 = vpop.f32.mrf.mxu0  ;;  %6383 = vmatprep.mubr.msk.bf16.mxu0 %vm6553_vm1, %v9214_v63 }
 0x3b3   : > { %v3596_v61 = vadd.f32 %v8528_v29, %v3548_v35 }
 0x3b4   : > { %v3425_v18 = vpop.f32.mrf.mxu0 }
 0x3b5   : > { %v3637_v54 = vmax.f32 %v3596_v61, 0.0  ;;  %v3549_v12 = vadd.f32 %v3425_v18, %v8270_v27 }
 0x3b6   : > { %v6217_v46 = vpop.f32.mrf.mxu0 }
 0x3b7   : > { %v3849_v50 = vpack.c.bf16 %v3637_v54, %v3636_v30  ;;  %v3597_v58 = vadd.f32 %v8528_v29, %v3549_v12 }
 0x3b8   : > { %v3428_v0 = vpop.f32.mrf.mxu0 }
 0x3b9   : > { %v3550_v10 = vadd.f32 %v3428_v0, %v8276_v7  ;;  %6384 = vmatmul.mubr.msk.bf16.gmra.mxu0 %vm648_vm2, %v3849_v50  ;;  %v3638_v39 = vmax.f32 %v3597_v58, 0.0 }
 0x3ba   : > { %v6218_v21 = vpop.f32.mrf.mxu0  ;;  %6387 = vmatprep.mubr.msk.bf16.mxu0 %vm6553_vm1, %v9214_v63 }
 0x3bb   : > { %v3598_v40 = vadd.f32 %v8528_v29, %v3550_v10 }
 0x3bc   : > { %v3433_v52 = vpop.f32.mrf.mxu0 }
 0x3bd   : > { %v3639_v43 = vmax.f32 %v3598_v40, 0.0  ;;  %v3551_v27 = vadd.f32 %v3433_v52, %v8290_v44 }
 0x3be   : > { %v6221_v25 = vpop.f32.mrf.mxu0 }
 0x3bf   : > { %v3850_v3 = vpack.c.bf16 %v3639_v43, %v3638_v39  ;;  %v3599_v28 = vadd.f32 %v8528_v29, %v3551_v27 }
 0x3c0   : > { %v3436_v6 = vpop.f32.mrf.mxu0  ;;  %v8631_v31 = vpop.f32.mrf.mxu1 }
 0x3c1   : > { %v3552_v7 = vadd.f32 %v3436_v6, %v8296_v23  ;;  %6388 = vmatmul.mubr.msk.bf16.gmra.mxu0 %vm648_vm2, %v3850_v3  ;;  %v3640_v13 = vmax.f32 %v3599_v28, 0.0 }
 0x3c2   : > { %v6222_v51 = vpop.f32.mrf.mxu0  ;;  %6391 = vmatprep.mubr.msk.bf16.mxu0 %vm6553_vm1, %v9214_v63  ;;  %v6275_v62 = vpop.f32.mrf.mxu1 }
 0x3c3   : > { %v3600_v59 = vadd.f32 %v8528_v29, %v3552_v7 }
 0x3c4   : > { %v3441_v56 = vpop.f32.mrf.mxu0  ;;  %v8634_v20 = vpop.f32.mrf.mxu1 }
 0x3c5   : > { %v3641_v44 = vmax.f32 %v3600_v59, 0.0  ;;  %v3553_v1 = vadd.f32 %v3441_v56, %v8310_v9 }
 0x3c6   : > { %v6225_v48 = vpop.f32.mrf.mxu0  ;;  %v6276_v4 = vpop.f32.mrf.mxu1 }
 0x3c7   : > { %v3851_v11 = vpack.c.bf16 %v3641_v44, %v3640_v13  ;;  %v3601_v17 = vadd.f32 %v8528_v29, %v3553_v1  ;;  %v9407_v4 = vld [vmem:[#allocation66_spill] sm:$0xff] }
 0x3c8   : > { %v3444_v23 = vpop.f32.mrf.mxu0  ;;  %v8642_v9 = vpop.f32.mrf.mxu1 }
 0x3c9   : > { %v3554_v42 = vadd.f32 %v3444_v23, %v8316_v34  ;;  %6392 = vmatmul.mubr.msk.bf16.gmra.mxu0 %vm648_vm2, %v3851_v11  ;;  %v3642_v24 = vmax.f32 %v3601_v17, 0.0 }
 0x3ca   : > { %v6226_v37 = vpop.f32.mrf.mxu0  ;;  %6395 = vmatprep.mubr.msk.bf16.mxu0 %vm6553_vm1, %v9214_v63  ;;  %v6279_v30 = vpop.f32.mrf.mxu1 }
 0x3cb   : > { %v3602_v2 = vadd.f32 %v8528_v29, %v3554_v42 }
 0x3cc   : > { %v3449_v35 = vpop.f32.mrf.mxu0  ;;  %v8645_v34 = vpop.f32.mrf.mxu1 }
 0x3cd   : > { %v3643_v61 = vmax.f32 %v3602_v2, 0.0  ;;  %v3555_v18 = vadd.f32 %v3449_v35, %v8330_v33 }
 0x3ce   : > { %v6229_v54 = vpop.f32.mrf.mxu0  ;;  %v6280_v58 = vpop.f32.mrf.mxu1 }
 0x3cf   : > { %v3852_v12 = vpack.c.bf16 %v3643_v61, %v3642_v24  ;;  %v3603_v50 = vadd.f32 %v8528_v29, %v3555_v18 }
 0x3d0   : > { %v3452_v46 = vpop.f32.mrf.mxu0  ;;  %v8653_v33 = vpop.f32.mrf.mxu1 }
 0x3d1   : > { %v3556_v0 = vadd.f32 %v3452_v46, %v8336_v32  ;;  %6396 = vmatmul.mubr.msk.bf16.gmra.mxu0 %vm648_vm2, %v3852_v12  ;;  %v3644_v52 = vmax.f32 %v3603_v50, 0.0 }
 0x3d2   : > { %v6230_v10 = vpop.f32.mrf.mxu0  ;;  %6399 = vmatprep.mubr.msk.bf16.mxu0 %vm6553_vm1, %v9214_v63  ;;  %v6283_v27 = vpop.f32.mrf.mxu1 }
 0x3d3   : > { %v3604_v21 = vadd.f32 %v8528_v29, %v3556_v0 }
 0x3d4   : > { %v3457_v40 = vpop.f32.mrf.mxu0  ;;  %v8656_v32 = vpop.f32.mrf.mxu1 }
 0x3d5   : > { %v3645_v39 = vmax.f32 %v3604_v21, 0.0  ;;  %v3557_v43 = vadd.f32 %v3457_v40, %v8350_v15 }
 0x3d6   : > { %v6233_v25 = vpop.f32.mrf.mxu0  ;;  %v6284_v51 = vpop.f32.mrf.mxu1 }
 0x3d7   : > { %v3853_v3 = vpack.c.bf16 %v3645_v39, %v3644_v52  ;;  %v3605_v28 = vadd.f32 %v8528_v29, %v3557_v43 }
 0x3d8   : > { %v3460_v6 = vpop.f32.mrf.mxu0  ;;  %v8664_v15 = vpop.f32.mrf.mxu1 }
 0x3d9   : > { %v3558_v7 = vadd.f32 %v3460_v6, %v8359_v49  ;;  %6400 = vmatmul.mubr.msk.bf16.gmra.mxu0 %vm648_vm2, %v3853_v3  ;;  %v3646_v44 = vmax.f32 %v3605_v28, 0.0 }
 0x3da   : > { %v6234_v59 = vpop.f32.mrf.mxu0  ;;  %6403 = vmatprep.mubr.msk.bf16.mxu0 %vm6553_vm1, %v9214_v63  ;;  %v6287_v48 = vpop.f32.mrf.mxu1 }
 0x3db   : > { %v3606_v56 = vadd.f32 %v8528_v29, %v3558_v7 }
 0x3dc   : > { %v3465_v13 = vpop.f32.mrf.mxu0  ;;  %v8667_v49 = vpop.f32.mrf.mxu1 }
 0x3dd   : > { %v3647_v1 = vmax.f32 %v3606_v56, 0.0  ;;  %v3559_v62 = vadd.f32 %v3465_v13, %v8373_v53 }
 0x3de   : > { %v6237_v11 = vpop.f32.mrf.mxu0  ;;  %v6288_v2 = vpop.f32.mrf.mxu1 }
 0x3df   : > { %v3854_v23 = vpack.c.bf16 %v3647_v1, %v3646_v44  ;;  %v3607_v42 = vadd.f32 %v8528_v29, %v3559_v62 }
 0x3e0   : > { %v3468_v17 = vpop.f32.mrf.mxu0  ;;  %v8675_v53 = vpop.f32.mrf.mxu1 }
 0x3e1   : > { %v3560_v37 = vadd.f32 %v3468_v17, %v9407_v4  ;;  %6404 = vmatmul.mubr.msk.bf16.gmra.mxu0 %vm648_vm2, %v3854_v23  ;;  %v3648_v18 = vmax.f32 %v3607_v42, 0.0 }
 0x3e2   : > { %v6238_v35 = vpop.f32.mrf.mxu0  ;;  %6407 = vmatprep.mubr.msk.bf16.mxu0 %vm6553_vm1, %v9214_v63  ;;  %v6291_v12 = vpop.f32.mrf.mxu1 }
 0x3e3   : > { %v3608_v24 = vadd.f32 %v8528_v29, %v3560_v37 }
 0x3e4   : > { %v3473_v61 = vpop.f32.mrf.mxu0  ;;  %v8678_v0 = vpop.f32.mrf.mxu1 }
 0x3e5   : > { %v3649_v30 = vmax.f32 %v3608_v24, 0.0  ;;  %v3561_v54 = vadd.f32 %v3473_v61, %v8393_v26 }
 0x3e6   : > { %v6241_v46 = vpop.f32.mrf.mxu0  ;;  %v6292_v40 = vpop.f32.mrf.mxu1 }
 0x3e7   : > { %v3855_v50 = vpack.c.bf16 %v3649_v30, %v3648_v18  ;;  %v3609_v10 = vadd.f32 %v8528_v29, %v3561_v54 }
 0x3e8   : > { %v3476_v58 = vpop.f32.mrf.mxu0  ;;  %v8686_v26 = vpop.f32.mrf.mxu1 }
 0x3e9   : > { %v3562_v21 = vadd.f32 %v3476_v58, %v8399_v14  ;;  %6408 = vmatmul.mubr.msk.bf16.gmra.mxu0 %vm648_vm2, %v3855_v50  ;;  %v3650_v27 = vmax.f32 %v3609_v10, 0.0 }
 0x3ea   : > { %v6242_v52 = vpop.f32.mrf.mxu0  ;;  %6411 = vmatprep.mubr.msk.bf16.mxu0 %vm6553_vm1, %v9214_v63  ;;  %v6295_v6 = vpop.f32.mrf.mxu1 }
 0x3eb   : > { %v3610_v39 = vadd.f32 %v8528_v29, %v3562_v21 }
 0x3ec   : > { %v3481_v43 = vpop.f32.mrf.mxu0  ;;  %v8689_v14 = vpop.f32.mrf.mxu1 }
 0x3ed   : > { %v3651_v25 = vmax.f32 %v3610_v39, 0.0  ;;  %v3563_v3 = vadd.f32 %v3481_v43, %v8413_v22 }
 0x3ee   : > { %v6245_v28 = vpop.f32.mrf.mxu0  ;;  %v6296_v13 = vpop.f32.mrf.mxu1 }
 0x3ef   : > { %v3856_v7 = vpack.c.bf16 %v3651_v25, %v3650_v27  ;;  %v3611_v59 = vadd.f32 %v8528_v29, %v3563_v3 }
 0x3f0   : > { %v3484_v51 = vpop.f32.mrf.mxu0  ;;  %v8697_v22 = vpop.f32.mrf.mxu1 }
 0x3f1   : > { %v3564_v56 = vadd.f32 %v3484_v51, %v8419_v55  ;;  %6412 = vmatmul.mubr.msk.bf16.gmra.mxu0 %vm648_vm2, %v3856_v7  ;;  %v3652_v48 = vmax.f32 %v3611_v59, 0.0 }
 0x3f2   : > { %v6246_v44 = vpop.f32.mrf.mxu0  ;;  %6415 = vmatprep.mubr.msk.bf16.mxu0 %vm6553_vm1, %v9214_v63  ;;  %v6299_v17 = vpop.f32.mrf.mxu1 }
 0x3f3   : > { %v3612_v1 = vadd.f32 %v8528_v29, %v3564_v56 }
 0x3f4   : > { %v3489_v62 = vpop.f32.mrf.mxu0  ;;  %v8700_v55 = vpop.f32.mrf.mxu1 }
 0x3f5   : > { %v3653_v11 = vmax.f32 %v3612_v1, 0.0  ;;  %v3565_v23 = vadd.f32 %v3489_v62, %v8433_v41 }
 0x3f6   : > { %v6249_v42 = vpop.f32.mrf.mxu0  ;;  %v6300_v24 = vpop.f32.mrf.mxu1 }
 0x3f7   : > { %v3857_v4 = vpack.c.bf16 %v3653_v11, %v3652_v48  ;;  %v3613_v2 = vadd.f32 %v8528_v29, %v3565_v23 }
 0x3f8   : > { %v3492_v37 = vpop.f32.mrf.mxu0 }
 0x3f9   : > { %v3566_v35 = vadd.f32 %v3492_v37, %v8439_v16  ;;  %6416 = vmatmul.mubr.msk.bf16.gmra.mxu0 %vm648_vm2, %v3857_v4  ;;  %v8708_v41 = vpop.f32.mrf.mxu1  ;;  %v3654_v54 = vmax.f32 %v3613_v2, 0.0 }
 0x3fa   : > { %v6250_v61 = vpop.f32.mrf.mxu0  ;;  %6419 = vmatprep.mubr.msk.bf16.mxu0 %vm6553_vm1, %v9214_v63 }
 0x3fb   : > { %v3614_v18 = vadd.f32 %v8528_v29, %v3566_v35  ;;  %v6303_v50 = vpop.f32.mrf.mxu1 }
 0x3fc   : > { %v3497_v30 = vpop.f32.mrf.mxu0 }
 0x3fd   : > { %v3655_v12 = vmax.f32 %v3614_v18, 0.0  ;;  %v3567_v46 = vadd.f32 %v3497_v30, %v8452_v19  ;;  %v8711_v16 = vpop.f32.mrf.mxu1 }
 0x3fe   : > { %v6253_v58 = vpop.f32.mrf.mxu0 }
 0x3ff   : > { %v3858_v10 = vpack.c.bf16 %v3655_v12, %v3654_v54  ;;  %v3615_v40 = vadd.f32 %v8528_v29, %v3567_v46  ;;  %v6304_v39 = vpop.f32.mrf.mxu1 }
 0x400   : > { %v3500_v21 = vpop.f32.mrf.mxu0 }
 0x401   : > { %v3568_v52 = vadd.f32 %v3500_v21, %v8457_v45  ;;  %6420 = vmatmul.mubr.msk.bf16.gmra.mxu0 %vm648_vm2, %v3858_v10  ;;  %v8719_v19 = vpop.f32.mrf.mxu1  ;;  %v3656_v3 = vmax.f32 %v3615_v40, 0.0 }
 0x402   : > { %v6254_v43 = vpop.f32.mrf.mxu0  ;;  %6423 = vmatprep.mubr.msk.bf16.mxu0 %vm6553_vm1, %v9214_v63 }
 0x403   : > { %v3616_v27 = vadd.f32 %v8528_v29, %v3568_v52  ;;  %v6307_v7 = vpop.f32.mrf.mxu1 }
 0x404   : > { %v3505_v25 = vpop.f32.mrf.mxu0 }
 0x405   : > { %v3657_v6 = vmax.f32 %v3616_v27, 0.0  ;;  %v3569_v28 = vadd.f32 %v3505_v25, %v8470_v38  ;;  %v8722_v45 = vpop.f32.mrf.mxu1 }
 0x406   : > { %v6257_v51 = vpop.f32.mrf.mxu0 }
 0x407   : > { %v3859_v59 = vpack.c.bf16 %v3657_v6, %v3656_v3  ;;  %v3617_v13 = vadd.f32 %v8528_v29, %v3569_v28  ;;  %v6308_v1 = vpop.f32.mrf.mxu1 }
 0x408   : > { %v3508_v56 = vpop.f32.mrf.mxu0 }
 0x409   : > { %v3570_v44 = vadd.f32 %v3508_v56, %v8475_v5  ;;  %6424 = vmatmul.mubr.msk.bf16.gmra.mxu0 %vm648_vm2, %v3859_v59  ;;  %v8730_v38 = vpop.f32.mrf.mxu1  ;;  %v3658_v23 = vmax.f32 %v3617_v13, 0.0 }
 0x40a   : > { %v6258_v62 = vpop.f32.mrf.mxu0  ;;  %6427 = vmatprep.mubr.msk.bf16.mxu0 %vm6553_vm1, %v9214_v63 }
 0x40b   : > { %v3618_v48 = vadd.f32 %v8528_v29, %v3570_v44  ;;  %v6311_v4 = vpop.f32.mrf.mxu1 }
 0x40c   : > { %v3513_v11 = vpop.f32.mrf.mxu0 }
 0x40d   : > { %v3659_v17 = vmax.f32 %v3618_v48, 0.0  ;;  %v3571_v42 = vadd.f32 %v3513_v11, %v8485_v8  ;;  %v8733_v5 = vpop.f32.mrf.mxu1 }
 0x40e   : > { %v6261_v37 = vpop.f32.mrf.mxu0 }
 0x40f   : > { %v3860_v2 = vpack.c.bf16 %v3659_v17, %v3658_v23  ;;  %v3619_v24 = vadd.f32 %v8528_v29, %v3571_v42  ;;  %v6312_v18 = vpop.f32.mrf.mxu1 }
 0x410   : > { %v3516_v35 = vpop.f32.mrf.mxu0 }
 0x411   : > { %v3572_v61 = vadd.f32 %v3516_v35, %v8490_v47  ;;  %6428 = vmatmul.mubr.msk.bf16.gmra.mxu0 %vm648_vm2, %v3860_v2  ;;  %v8741_v8 = vpop.f32.mrf.mxu1  ;;  %v3660_v46 = vmax.f32 %v3619_v24, 0.0 }
 0x412   : > { %v6262_v30 = vpop.f32.mrf.mxu0  ;;  %6431 = vmatprep.mubr.msk.bf16.mxu0 %vm6553_vm1, %v9214_v63 }
 0x413   : > { %v3620_v54 = vadd.f32 %v8528_v29, %v3572_v61  ;;  %v6315_v10 = vpop.f32.mrf.mxu1 }
 0x414   : > { %v3521_v12 = vpop.f32.mrf.mxu0 }
 0x415   : > { %v3661_v50 = vmax.f32 %v3620_v54, 0.0  ;;  %v3573_v58 = vadd.f32 %v3521_v12, %v8500_v57  ;;  %v8744_v47 = vpop.f32.mrf.mxu1 }
 0x416   : > { %v6265_v21 = vpop.f32.mrf.mxu0 }
 0x417   : > { %v3861_v40 = vpack.c.bf16 %v3661_v50, %v3660_v46  ;;  %v3621_v39 = vadd.f32 %v8528_v29, %v3573_v58  ;;  %v6316_v27 = vpop.f32.mrf.mxu1 }
 0x418   : > { %v3524_v52 = vpop.f32.mrf.mxu0 }
 0x419   : > { %v3574_v43 = vadd.f32 %v3524_v52, %v8505_v60  ;;  %6432 = vmatmul.mubr.msk.bf16.gmra.mxu0 %vm648_vm2, %v3861_v40  ;;  %v8752_v57 = vpop.f32.mrf.mxu1  ;;  %v3662_v28 = vmax.f32 %v3621_v39, 0.0 }
 0x41a   : > { %v6266_v25 = vpop.f32.mrf.mxu0  ;;  %6435 = vmatprep.mubr.msk.bf16.mxu0 %vm6553_vm1, %v9214_v63 }
 0x41b   : > { %v3622_v3 = vadd.f32 %v8528_v29, %v3574_v43  ;;  %v6319_v59 = vpop.f32.mrf.mxu1  ;;  %v8786_v43 = vld [vmem:[%s9089_s8] ss:$0 sm:$0xff] }
 0x41c   : > { %v3529_v6 = vpop.f32.mrf.mxu0 }
 0x41d   : > { %v3663_v7 = vmax.f32 %v3622_v3, 0.0  ;;  %v3575_v51 = vadd.f32 %v3529_v6, %v8515_v36  ;;  %v8756_v44 = vpop.f32.mrf.mxu1 }
 0x41e   : > { %v6269_v56 = vpop.f32.mrf.mxu0 }
 0x41f   : > { %v3862_v13 = vpack.c.bf16 %v3663_v7, %v3662_v28  ;;  %v3623_v60 = vadd.f32 %v8528_v29, %v3575_v51  ;;  %v6320_v62 = vpop.f32.mrf.mxu1 }
 0x420   : > { %v3532_v1 = vpop.f32.mrf.mxu0 }
 0x421   : > { %6436 = vmatmul.mubr.msk.bf16.gmra.mxu0 %vm648_vm2, %v3862_v13  ;;  %v3664_v11 = vmax.f32 %v3623_v60, 0.0  ;;  %v8761_v23 = vpop.f32.mrf.mxu1 }
 0x422   : > { %v6270_v48 = vpop.f32.mrf.mxu0  ;;  %6439 = vmatprep.mubr.msk.bf16.mxu0 %vm6553_vm1, %v9214_v63 }
 0x423   : > { %v6323_v17 = vpop.f32.mrf.mxu1  ;;  %v3863_v36 = vpack.c.bf16 %v3664_v11, %v3664_v11 }
 0x425   : > { %v8763_v42 = vpop.f32.mrf.mxu1 }
 0x427   : > { %v6324_v29 = vpop.f32.mrf.mxu1 }
 0x429   : > { %6440 = vmatmul.mubr.msk.bf16.gmra.mxu0 %vm648_vm2, %v3863_v36  ;;  %v8766_v4 = vpop.f32.mrf.mxu1 }
 0x42b   : > { %v6327_v37 = vpop.f32.mrf.mxu1 }
 0x42d   : > { %v8768_v2 = vpop.f32.mrf.mxu1 }
 0x42f   : > { %v6328_v35 = vpop.f32.mrf.mxu1 }
 0x431   : > { %v8770_v24 = vpop.f32.mrf.mxu1 }
 0x433   : > { %v6331_v61 = vpop.f32.mrf.mxu1 }
 0x435   : > { %v8772_v18 = vpop.f32.mrf.mxu1 }
 0x437   : > { %v6332_v30 = vpop.f32.mrf.mxu1 }
 0x439   : > { %v8774_v54 = vpop.f32.mrf.mxu1 }
 0x43b   : > { %v6335_v12 = vpop.f32.mrf.mxu1 }
 0x43d   : > { %v8776_v46 = vpop.f32.mrf.mxu1 }
 0x43f   : > { %v6336_v50 = vpop.f32.mrf.mxu1 }
 0x441   : > { %v8778_v58 = vpop.f32.mrf.mxu1 }
 0x443   : > { %v6339_v10 = vpop.f32.mrf.mxu1 }
 0x445   : > { %v8780_v21 = vpop.f32.mrf.mxu1 }
 0x447   : > { %v6340_v52 = vpop.f32.mrf.mxu1 }
 0x449   : > { %v4255_v40 = vpop.f32.mrf.mxu0  ;;  %v8788_v25 = vpop.f32.mrf.mxu1 }
 0x44a   : > { %v4256_v39 = vadd.f32 %v4255_v40, %v8631_v31 }
 0x44b   : > { %v6361_v27 = vpop.f32.mrf.mxu0  ;;  %v6343_v6 = vpop.f32.mrf.mxu1 }
 0x44c   : > { %v4428_v28 = vadd.f32 %v8786_v43, %v4256_v39 }
 0x44d   : > { %v4258_v3 = vpop.f32.mrf.mxu0  ;;  %v8792_v59 = vpop.f32.mrf.mxu1 }
 0x44e   : > { %v4259_v7 = vadd.f32 %v4258_v3, %v8634_v20  ;;  %v4469_v60 = vmax.f32 %v4428_v28, 0.0 }
 0x44f   : > { %v6362_v51 = vpop.f32.mrf.mxu0  ;;  %v6344_v13 = vpop.f32.mrf.mxu1 }
 0x450   : > { %v4429_v56 = vadd.f32 %v8786_v43, %v4259_v7 }
 0x451   : > { %v4263_v31 = vpop.f32.mrf.mxu0  ;;  %v8796_v11 = vpop.f32.mrf.mxu1 }
 0x452   : > { %v4470_v1 = vmax.f32 %v4429_v56, 0.0  ;;  %v4264_v62 = vadd.f32 %v4263_v31, %v8642_v9 }
 0x453   : > { %v6365_v48 = vpop.f32.mrf.mxu0  ;;  %v6347_v29 = vpop.f32.mrf.mxu1 }
 0x454   : > { %v4510_v17 = vpack.c.bf16 %v4470_v1, %v4469_v60  ;;  %v4430_v20 = vadd.f32 %v8786_v43, %v4264_v62 }
 0x455   : > { %v4266_v36 = vpop.f32.mrf.mxu0  ;;  %v8803_v61 = vpop.f32.mrf.mxu1 }
 0x456   : > { %v4267_v37 = vadd.f32 %v4266_v36, %v8645_v34  ;;  %6446 = vmatmul.mubr.msk.bf16.vlgmr.msra.gmra.mxu1 %vm4540_vm10, %v4510_v17  ;;  %v4471_v50 = vmax.f32 %v4430_v20, 0.0 }
 0x457   : > { %v6366_v35 = vpop.f32.mrf.mxu0  ;;  %6449 = vmatprep.mubr.msk.bf16.mxu1 %vm6553_vm1, %v9214_v63  ;;  %v6348_v12 = vpop.f32.mrf.mxu1 }
 0x458   : > { %v4431_v9 = vadd.f32 %v8786_v43, %v4267_v37 }
 0x459   : > { %v4271_v30 = vpop.f32.mrf.mxu0  ;;  %v8807_v39 = vpop.f32.mrf.mxu1 }
 0x45a   : > { %v4472_v10 = vmax.f32 %v4431_v9, 0.0  ;;  %v4272_v40 = vadd.f32 %v4271_v30, %v8653_v33 }
 0x45b   : > { %v6369_v52 = vpop.f32.mrf.mxu0  ;;  %v6351_v3 = vpop.f32.mrf.mxu1 }
 0x45c   : > { %v4511_v34 = vpack.c.bf16 %v4472_v10, %v4471_v50  ;;  %v4432_v6 = vadd.f32 %v8786_v43, %v4272_v40 }
 0x45d   : > { %v4274_v27 = vpop.f32.mrf.mxu0  ;;  %v8814_v51 = vpop.f32.mrf.mxu1 }
 0x45e   : > { %v4275_v28 = vadd.f32 %v4274_v27, %v8656_v32  ;;  %6450 = vmatmul.mubr.msk.bf16.gmra.mxu1 %vm4540_vm10, %v4511_v34  ;;  %v4473_v13 = vmax.f32 %v4432_v6, 0.0 }
 0x45f   : > { %v6370_v7 = vpop.f32.mrf.mxu0  ;;  %6453 = vmatprep.mubr.msk.bf16.mxu1 %vm6553_vm1, %v9214_v63  ;;  %v6352_v31 = vpop.f32.mrf.mxu1 }
 0x460   : > { %v4433_v33 = vadd.f32 %v8786_v43, %v4275_v28 }
 0x461   : > { %v4279_v56 = vpop.f32.mrf.mxu0  ;;  %v8823_v20 = vpop.f32.mrf.mxu1 }
 0x462   : > { %v4474_v60 = vmax.f32 %v4433_v33, 0.0  ;;  %v4280_v1 = vadd.f32 %v4279_v56, %v8664_v15 }
 0x463   : > { %v6373_v62 = vpop.f32.mrf.mxu0  ;;  %v6355_v9 = vpop.f32.mrf.mxu1 }
 0x464   : > { %v4512_v48 = vpack.c.bf16 %v4474_v60, %v4473_v13  ;;  %v4434_v32 = vadd.f32 %v8786_v43, %v4280_v1 }
 0x465   : > { %v4282_v17 = vpop.f32.mrf.mxu0  ;;  %v4152_v10 = vpop.f32.mrf.mxu1 }
 0x466   : > { %v4283_v36 = vadd.f32 %v4282_v17, %v8667_v49  ;;  %6454 = vmatmul.mubr.msk.bf16.gmra.mxu1 %vm4540_vm10, %v4512_v48  ;;  %v4475_v15 = vmax.f32 %v4434_v32, 0.0 }
 0x467   : > { %v6374_v29 = vpop.f32.mrf.mxu0  ;;  %6457 = vmatprep.mubr.msk.bf16.mxu1 %vm6553_vm1, %v9214_v63  ;;  %v6356_v52 = vpop.f32.mrf.mxu1 }
 0x468   : > { %v4435_v37 = vadd.f32 %v8786_v43, %v4283_v36 }
 0x469   : > { %v4287_v35 = vpop.f32.mrf.mxu0 }
 0x46a   : > { %v4476_v30 = vmax.f32 %v4435_v37, 0.0  ;;  %v4288_v12 = vadd.f32 %v4287_v35, %v8675_v53 }
 0x46b   : > { %v6377_v50 = vpop.f32.mrf.mxu0 }
 0x46c   : > { %v4513_v40 = vpack.c.bf16 %v4476_v30, %v4475_v15  ;;  %v4436_v34 = vadd.f32 %v8786_v43, %v4288_v12 }
 0x46d   : > { %v4290_v49 = vpop.f32.mrf.mxu0 }
 0x46e   : > { %v4291_v27 = vadd.f32 %v4290_v49, %v8678_v0  ;;  %6458 = vmatmul.mubr.msk.bf16.gmra.mxu1 %vm4540_vm10, %v4513_v40  ;;  %v4477_v7 = vmax.f32 %v4436_v34, 0.0 }
 0x46f   : > { %v6378_v3 = vpop.f32.mrf.mxu0  ;;  %6461 = vmatprep.mubr.msk.bf16.mxu1 %vm6553_vm1, %v9214_v63 }
 0x470   : > { %v4437_v6 = vadd.f32 %v8786_v43, %v4291_v27 }
 0x471   : > { %v4295_v28 = vpop.f32.mrf.mxu0 }
 0x472   : > { %v4478_v53 = vmax.f32 %v4437_v6, 0.0  ;;  %v4296_v33 = vadd.f32 %v4295_v28, %v8686_v26 }
 0x473   : > { %v6381_v56 = vpop.f32.mrf.mxu0 }
 0x474   : > { %v4514_v31 = vpack.c.bf16 %v4478_v53, %v4477_v7  ;;  %v4438_v60 = vadd.f32 %v8786_v43, %v4296_v33 }
 0x475   : > { %v4298_v13 = vpop.f32.mrf.mxu0 }
 0x476   : > { %v4299_v0 = vadd.f32 %v4298_v13, %v8689_v14  ;;  %6462 = vmatmul.mubr.msk.bf16.gmra.mxu1 %vm4540_vm10, %v4514_v31  ;;  %v4479_v17 = vmax.f32 %v4438_v60, 0.0 }
 0x477   : > { %v6382_v1 = vpop.f32.mrf.mxu0  ;;  %6465 = vmatprep.mubr.msk.bf16.mxu1 %vm6553_vm1, %v9214_v63 }
 0x478   : > { %v4439_v62 = vadd.f32 %v8786_v43, %v4299_v0 }
 0x479   : > { %v4303_v48 = vpop.f32.mrf.mxu0 }
 0x47a   : > { %v4480_v32 = vmax.f32 %v4439_v62, 0.0  ;;  %v4304_v26 = vadd.f32 %v4303_v48, %v8697_v22 }
 0x47b   : > { %v6385_v36 = vpop.f32.mrf.mxu0 }
 0x47c   : > { %v4515_v29 = vpack.c.bf16 %v4480_v32, %v4479_v17  ;;  %v4440_v35 = vadd.f32 %v8786_v43, %v4304_v26 }
 0x47d   : > { %v4306_v37 = vpop.f32.mrf.mxu0 }
 0x47e   : > { %v4307_v14 = vadd.f32 %v4306_v37, %v8700_v55  ;;  %6466 = vmatmul.mubr.msk.bf16.gmra.mxu1 %vm4540_vm10, %v4515_v29  ;;  %v4481_v12 = vmax.f32 %v4440_v35, 0.0 }
 0x47f   : > { %v6386_v9 = vpop.f32.mrf.mxu0  ;;  %6469 = vmatprep.mubr.msk.bf16.mxu1 %vm6553_vm1, %v9214_v63 }
 0x480   : > { %v4441_v15 = vadd.f32 %v8786_v43, %v4307_v14 }
 0x481   : > { %v4311_v30 = vpop.f32.mrf.mxu0 }
 0x482   : > { %v4482_v50 = vmax.f32 %v4441_v15, 0.0  ;;  %v4312_v22 = vadd.f32 %v4311_v30, %v8708_v41 }
 0x483   : > { %v6389_v10 = vpop.f32.mrf.mxu0 }
 0x484   : > { %v4516_v40 = vpack.c.bf16 %v4482_v50, %v4481_v12  ;;  %v4442_v52 = vadd.f32 %v8786_v43, %v4312_v22 }
 0x485   : > { %v4314_v49 = vpop.f32.mrf.mxu0 }
 0x486   : > { %v4315_v55 = vadd.f32 %v4314_v49, %v8711_v16  ;;  %6470 = vmatmul.mubr.msk.bf16.gmra.mxu1 %vm4540_vm10, %v4516_v40  ;;  %v4483_v6 = vmax.f32 %v4442_v52, 0.0 }
 0x487   : > { %v6390_v34 = vpop.f32.mrf.mxu0  ;;  %6473 = vmatprep.mubr.msk.bf16.mxu1 %vm6553_vm1, %v9214_v63 }
 0x488   : > { %v4443_v27 = vadd.f32 %v8786_v43, %v4315_v55 }
 0x489   : > { %v4319_v3 = vpop.f32.mrf.mxu0 }
 0x48a   : > { %v4484_v28 = vmax.f32 %v4443_v27, 0.0  ;;  %v4320_v41 = vadd.f32 %v4319_v3, %v8719_v19 }
 0x48b   : > { %v6393_v7 = vpop.f32.mrf.mxu0 }
 0x48c   : > { %v4517_v53 = vpack.c.bf16 %v4484_v28, %v4483_v6  ;;  %v4444_v56 = vadd.f32 %v8786_v43, %v4320_v41 }
 0x48d   : > { %v4322_v33 = vpop.f32.mrf.mxu0 }
 0x48e   : > { %v4323_v16 = vadd.f32 %v4322_v33, %v8722_v45  ;;  %6474 = vmatmul.mubr.msk.bf16.gmra.mxu1 %vm4540_vm10, %v4517_v53  ;;  %v4485_v0 = vmax.f32 %v4444_v56, 0.0 }
 0x48f   : > { %v6394_v31 = vpop.f32.mrf.mxu0  ;;  %6477 = vmatprep.mubr.msk.bf16.mxu1 %vm6553_vm1, %v9214_v63 }
 0x490   : > { %v4445_v13 = vadd.f32 %v8786_v43, %v4323_v16 }
 0x491   : > { %v4327_v60 = vpop.f32.mrf.mxu0 }
 0x492   : > { %v4486_v1 = vmax.f32 %v4445_v13, 0.0  ;;  %v4328_v19 = vadd.f32 %v4327_v60, %v8730_v38 }
 0x493   : > { %v6397_v62 = vpop.f32.mrf.mxu0 }
 0x494   : > { %v4518_v48 = vpack.c.bf16 %v4486_v1, %v4485_v0  ;;  %v4446_v32 = vadd.f32 %v8786_v43, %v4328_v19 }
 0x495   : > { %v4330_v17 = vpop.f32.mrf.mxu0 }
 0x496   : > { %v4331_v45 = vadd.f32 %v4330_v17, %v8733_v5  ;;  %6478 = vmatmul.mubr.msk.bf16.gmra.mxu1 %vm4540_vm10, %v4518_v48  ;;  %v4487_v37 = vmax.f32 %v4446_v32, 0.0 }
 0x497   : > { %v6398_v26 = vpop.f32.mrf.mxu0  ;;  %6481 = vmatprep.mubr.msk.bf16.mxu1 %vm6553_vm1, %v9214_v63 }
 0x498   : > { %v4447_v36 = vadd.f32 %v8786_v43, %v4331_v45 }
 0x499   : > { %v4335_v29 = vpop.f32.mrf.mxu0 }
 0x49a   : > { %v4488_v35 = vmax.f32 %v4447_v36, 0.0  ;;  %v4336_v38 = vadd.f32 %v4335_v29, %v8741_v8 }
 0x49b   : > { %v6401_v14 = vpop.f32.mrf.mxu0 }
 0x49c   : > { %v4519_v9 = vpack.c.bf16 %v4488_v35, %v4487_v37  ;;  %v4448_v30 = vadd.f32 %v8786_v43, %v4336_v38 }
 0x49d   : > { %v4338_v15 = vpop.f32.mrf.mxu0 }
 0x49e   : > { %v4339_v5 = vadd.f32 %v4338_v15, %v8744_v47  ;;  %6482 = vmatmul.mubr.msk.bf16.gmra.mxu1 %vm4540_vm10, %v4519_v9  ;;  %v4489_v10 = vmax.f32 %v4448_v30, 0.0 }
 0x49f   : > { %v6402_v12 = vpop.f32.mrf.mxu0  ;;  %6485 = vmatprep.mubr.msk.bf16.mxu1 %vm6553_vm1, %v9214_v63 }
 0x4a0   : > { %v4449_v50 = vadd.f32 %v8786_v43, %v4339_v5 }
 0x4a1   : > { %v4343_v22 = vpop.f32.mrf.mxu0 }
 0x4a2   : > { %v4490_v40 = vmax.f32 %v4449_v50, 0.0  ;;  %v4344_v8 = vadd.f32 %v4343_v22, %v8752_v57 }
 0x4a3   : > { %v6405_v49 = vpop.f32.mrf.mxu0 }
 0x4a4   : > { %v4520_v52 = vpack.c.bf16 %v4490_v40, %v4489_v10  ;;  %v4450_v34 = vadd.f32 %v8786_v43, %v4344_v8 }
 0x4a5   : > { %v4346_v55 = vpop.f32.mrf.mxu0 }
 0x4a6   : > { %v4347_v47 = vadd.f32 %v4346_v55, %v8756_v44  ;;  %6486 = vmatmul.mubr.msk.bf16.gmra.mxu1 %vm4540_vm10, %v4520_v52  ;;  %v4491_v28 = vmax.f32 %v4450_v34, 0.0 }
 0x4a7   : > { %v6406_v27 = vpop.f32.mrf.mxu0  ;;  %6489 = vmatprep.mubr.msk.bf16.mxu1 %vm6553_vm1, %v9214_v63 }
 0x4a8   : > { %v4451_v3 = vadd.f32 %v8786_v43, %v4347_v47 }
 0x4a9   : > { %v4351_v6 = vpop.f32.mrf.mxu0 }
 0x4aa   : > { %v4492_v41 = vmax.f32 %v4451_v3, 0.0  ;;  %v4352_v57 = vadd.f32 %v4351_v6, %v8761_v23 }
 0x4ab   : > { %v6409_v7 = vpop.f32.mrf.mxu0 }
 0x4ac   : > { %v4521_v53 = vpack.c.bf16 %v4492_v41, %v4491_v28  ;;  %v4452_v56 = vadd.f32 %v8786_v43, %v4352_v57 }
 0x4ad   : > { %v4354_v33 = vpop.f32.mrf.mxu0 }
 0x4ae   : > { %v4355_v44 = vadd.f32 %v4354_v33, %v8763_v42  ;;  %6490 = vmatmul.mubr.msk.bf16.gmra.mxu1 %vm4540_vm10, %v4521_v53  ;;  %v4493_v60 = vmax.f32 %v4452_v56, 0.0 }
 0x4af   : > { %v6410_v16 = vpop.f32.mrf.mxu0  ;;  %6493 = vmatprep.mubr.msk.bf16.mxu1 %vm6553_vm1, %v9214_v63 }
 0x4b0   : > { %v4453_v31 = vadd.f32 %v8786_v43, %v4355_v44 }
 0x4b1   : > { %v4359_v13 = vpop.f32.mrf.mxu0 }
 0x4b2   : > { %v4494_v0 = vmax.f32 %v4453_v31, 0.0  ;;  %v4360_v23 = vadd.f32 %v4359_v13, %v8766_v4 }
 0x4b3   : > { %v6413_v1 = vpop.f32.mrf.mxu0 }
 0x4b4   : > { %v4522_v19 = vpack.c.bf16 %v4494_v0, %v4493_v60  ;;  %v4454_v48 = vadd.f32 %v8786_v43, %v4360_v23 }
 0x4b5   : > { %v4362_v62 = vpop.f32.mrf.mxu0 }
 0x4b6   : > { %v4363_v42 = vadd.f32 %v4362_v62, %v8768_v2  ;;  %6494 = vmatmul.mubr.msk.bf16.gmra.mxu1 %vm4540_vm10, %v4522_v19  ;;  %v4495_v26 = vmax.f32 %v4454_v48, 0.0 }
 0x4b7   : > { %v6414_v17 = vpop.f32.mrf.mxu0  ;;  %6497 = vmatprep.mubr.msk.bf16.mxu1 %vm6553_vm1, %v9214_v63 }
 0x4b8   : > { %v4455_v32 = vadd.f32 %v8786_v43, %v4363_v42 }
 0x4b9   : > { %v4367_v45 = vpop.f32.mrf.mxu0 }
 0x4ba   : > { %v4496_v36 = vmax.f32 %v4455_v32, 0.0  ;;  %v4368_v4 = vadd.f32 %v4367_v45, %v8770_v24 }
 0x4bb   : > { %v6417_v29 = vpop.f32.mrf.mxu0 }
 0x4bc   : > { %v4523_v37 = vpack.c.bf16 %v4496_v36, %v4495_v26  ;;  %v4456_v38 = vadd.f32 %v8786_v43, %v4368_v4 }
 0x4bd   : > { %v4370_v35 = vpop.f32.mrf.mxu0 }
 0x4be   : > { %v4371_v2 = vadd.f32 %v4370_v35, %v8772_v18  ;;  %6498 = vmatmul.mubr.msk.bf16.gmra.mxu1 %vm4540_vm10, %v4523_v37  ;;  %v4497_v30 = vmax.f32 %v4456_v38, 0.0 }
 0x4bf   : > { %v6418_v14 = vpop.f32.mrf.mxu0  ;;  %6501 = vmatprep.mubr.msk.bf16.mxu1 %vm6553_vm1, %v9214_v63 }
 0x4c0   : > { %v4457_v9 = vadd.f32 %v8786_v43, %v4371_v2 }
 0x4c1   : > { %v4375_v15 = vpop.f32.mrf.mxu0 }
 0x4c2   : > { %v4498_v5 = vmax.f32 %v4457_v9, 0.0  ;;  %v4376_v24 = vadd.f32 %v4375_v15, %v8774_v54 }
 0x4c3   : > { %v6421_v12 = vpop.f32.mrf.mxu0 }
 0x4c4   : > { %v4524_v50 = vpack.c.bf16 %v4498_v5, %v4497_v30  ;;  %v4458_v10 = vadd.f32 %v8786_v43, %v4376_v24 }
 0x4c5   : > { %v4378_v22 = vpop.f32.mrf.mxu0 }
 0x4c6   : > { %v4379_v18 = vadd.f32 %v4378_v22, %v8776_v46  ;;  %6502 = vmatmul.mubr.msk.bf16.gmra.mxu1 %vm4540_vm10, %v4524_v50  ;;  %v4499_v52 = vmax.f32 %v4458_v10, 0.0  ;;  %v8947_v50 = vld [vmem:[%s9091_s10] ss:$0 sm:$0xff] }
 0x4c7   : > { %v6422_v40 = vpop.f32.mrf.mxu0  ;;  %6505 = vmatprep.mubr.msk.bf16.mxu1 %vm6553_vm1, %v9214_v63 }
 0x4c8   : > { %v4459_v8 = vadd.f32 %v8786_v43, %v4379_v18 }
 0x4c9   : > { %v4383_v49 = vpop.f32.mrf.mxu0 }
 0x4ca   : > { %v4500_v55 = vmax.f32 %v4459_v8, 0.0  ;;  %v4384_v54 = vadd.f32 %v4383_v49, %v8778_v58 }
 0x4cb   : > { %v6425_v34 = vpop.f32.mrf.mxu0 }
 0x4cc   : > { %v4525_v47 = vpack.c.bf16 %v4500_v55, %v4499_v52  ;;  %v4460_v3 = vadd.f32 %v8786_v43, %v4384_v54 }
 0x4cd   : > { %v4386_v27 = vpop.f32.mrf.mxu0 }
 0x4ce   : > { %v4387_v46 = vadd.f32 %v4386_v27, %v8780_v21  ;;  %6506 = vmatmul.mubr.msk.bf16.gmra.mxu1 %vm4540_vm10, %v4525_v47  ;;  %v4501_v57 = vmax.f32 %v4460_v3, 0.0 }
 0x4cf   : > { %v6426_v6 = vpop.f32.mrf.mxu0  ;;  %6509 = vmatprep.mubr.msk.bf16.mxu1 %vm6553_vm1, %v9214_v63 }
 0x4d0   : > { %v4461_v28 = vadd.f32 %v8786_v43, %v4387_v46 }
 0x4d1   : > { %v4391_v41 = vpop.f32.mrf.mxu0 }
 0x4d2   : > { %v4502_v7 = vmax.f32 %v4461_v28, 0.0  ;;  %v4392_v58 = vadd.f32 %v4391_v41, %v8788_v25 }
 0x4d3   : > { %v6429_v53 = vpop.f32.mrf.mxu0 }
 0x4d4   : > { %v4526_v33 = vpack.c.bf16 %v4502_v7, %v4501_v57  ;;  %v4462_v44 = vadd.f32 %v8786_v43, %v4392_v58 }
 0x4d5   : > { %v4394_v56 = vpop.f32.mrf.mxu0 }
 0x4d6   : > { %v4395_v21 = vadd.f32 %v4394_v56, %v8792_v59  ;;  %6510 = vmatmul.mubr.msk.bf16.gmra.mxu1 %vm4540_vm10, %v4526_v33  ;;  %v4503_v60 = vmax.f32 %v4462_v44, 0.0 }
 0x4d7   : > { %v6430_v16 = vpop.f32.mrf.mxu0  ;;  %6513 = vmatprep.mubr.msk.bf16.mxu1 %vm6553_vm1, %v9214_v63 }
 0x4d8   : > { %v4463_v31 = vadd.f32 %v8786_v43, %v4395_v21 }
 0x4d9   : > { %v4399_v13 = vpop.f32.mrf.mxu0 }
 0x4da   : > { %v4504_v0 = vmax.f32 %v4463_v31, 0.0  ;;  %v4400_v25 = vadd.f32 %v4399_v13, %v8796_v11 }
 0x4db   : > { %v6433_v23 = vpop.f32.mrf.mxu0 }
 0x4dc   : > { %v4527_v1 = vpack.c.bf16 %v4504_v0, %v4503_v60  ;;  %v4464_v62 = vadd.f32 %v8786_v43, %v4400_v25 }
 0x4dd   : > { %v4402_v19 = vpop.f32.mrf.mxu0 }
 0x4de   : > { %v4403_v59 = vadd.f32 %v4402_v19, %v8803_v61  ;;  %6514 = vmatmul.mubr.msk.bf16.gmra.mxu1 %vm4540_vm10, %v4527_v1  ;;  %v4505_v32 = vmax.f32 %v4464_v62, 0.0 }
 0x4df   : > { %v6434_v48 = vpop.f32.mrf.mxu0  ;;  %6517 = vmatprep.mubr.msk.bf16.mxu1 %vm6553_vm1, %v9214_v63 }
 0x4e0   : > { %v4465_v42 = vadd.f32 %v8786_v43, %v4403_v59 }
 0x4e1   : > { %v4407_v17 = vpop.f32.mrf.mxu0 }
 0x4e2   : > { %v4506_v45 = vmax.f32 %v4465_v42, 0.0  ;;  %v4408_v11 = vadd.f32 %v4407_v17, %v8807_v39 }
 0x4e3   : > { %v6437_v26 = vpop.f32.mrf.mxu0 }
 0x4e4   : > { %v4528_v36 = vpack.c.bf16 %v4506_v45, %v4505_v32  ;;  %v4466_v29 = vadd.f32 %v8786_v43, %v4408_v11 }
 0x4e5   : > { %v4410_v4 = vpop.f32.mrf.mxu0 }
 0x4e6   : > { %v4411_v61 = vadd.f32 %v4410_v4, %v8814_v51  ;;  %6518 = vmatmul.mubr.msk.bf16.gmra.mxu1 %vm4540_vm10, %v4528_v36  ;;  %v4507_v2 = vmax.f32 %v4466_v29, 0.0 }
 0x4e7   : > { %v6438_v37 = vpop.f32.mrf.mxu0  ;;  %6521 = vmatprep.mubr.msk.bf16.mxu1 %vm6553_vm1, %v9214_v63 }
 0x4e8   : > { %v4467_v35 = vadd.f32 %v8786_v43, %v4411_v61 }
 0x4e9   : > { %v4415_v38 = vpop.f32.mrf.mxu0 }
 0x4ea   : > { %v4508_v14 = vmax.f32 %v4467_v35, 0.0  ;;  %v4416_v39 = vadd.f32 %v4415_v38, %v8823_v20 }
 0x4eb   : > { %v6441_v9 = vpop.f32.mrf.mxu0 }
 0x4ec   : > { %v4529_v15 = vpack.c.bf16 %v4508_v14, %v4507_v2  ;;  %v4468_v30 = vadd.f32 %v8786_v43, %v4416_v39 }
 0x4ed   : > { %v4418_v5 = vpop.f32.mrf.mxu0 }
 0x4ee   : > { %6522 = vmatmul.mubr.msk.bf16.gmra.mxu1 %vm4540_vm10, %v4529_v15  ;;  %v4509_v24 = vmax.f32 %v4468_v30, 0.0 }
 0x4ef   : > { %v6442_v51 = vpop.f32.mrf.mxu0  ;;  %6525 = vmatprep.mubr.msk.bf16.mxu1 %vm6553_vm1, %v9214_v63 }
 0x4f0   : > { %v4530_v12 = vpack.c.bf16 %v4509_v24, %v4509_v24 }
 0x4f6   : > { %6526 = vmatmul.mubr.msk.bf16.gmra.mxu1 %vm4540_vm10, %v4530_v12 }
 0x516   : > { %v4642_v20 = vpop.f32.mrf.mxu1 }
 0x517   : > { %v4643_v22 = vadd.f32 %v8947_v50, %v4642_v20 }
 0x518   : > { %v6447_v63 = vpop.f32.mrf.mxu1 }
 0x519   : > { %v4808_v43 = vmax.f32 %v4643_v22, 0.0 }
 0x51a   : > { %v4645_v10 = vpop.f32.mrf.mxu1 }
 0x51b   : > { %4849 = vst.msk [vmem:[%s8955_s15] sm:$0xff] %vm4540_vm10, %v4808_v43  ;;  %v4646_v18 = vadd.f32 %v8947_v50, %v4645_v10 }
 0x51c   : > { %v6448_v40 = vpop.f32.mrf.mxu1 }
 0x51d   : > { %v4809_v8 = vmax.f32 %v4646_v18, 0.0 }
 0x51e   : > { %v4650_v49 = vpop.f32.mrf.mxu1 }
 0x51f   : > { %4850 = vst.msk [vmem:[%s8955_s15 + $0x8] sm:$0xff] %vm4540_vm10, %v4809_v8  ;;  %v4651_v52 = vadd.f32 %v8947_v50, %v4650_v49 }
 0x520   : > { %v6451_v55 = vpop.f32.mrf.mxu1 }
 0x521   : > { %v4810_v54 = vmax.f32 %v4651_v52, 0.0 }
 0x522   : > { %v4653_v34 = vpop.f32.mrf.mxu1 }
 0x523   : > { %4851 = vst.msk [vmem:[%s8955_s15 + $0x10] sm:$0xff] %vm4540_vm10, %v4810_v54  ;;  %v4654_v47 = vadd.f32 %v8947_v50, %v4653_v34 }
 0x524   : > { %v6452_v27 = vpop.f32.mrf.mxu1 }
 0x525   : > { %v4811_v3 = vmax.f32 %v4654_v47, 0.0 }
 0x526   : > { %v4658_v46 = vpop.f32.mrf.mxu1 }
 0x527   : > { %4852 = vst.msk [vmem:[%s8955_s15 + $0x18] sm:$0xff] %vm4540_vm10, %v4811_v3  ;;  %v4659_v6 = vadd.f32 %v8947_v50, %v4658_v46 }
 0x528   : > { %v6455_v28 = vpop.f32.mrf.mxu1 }
 0x529   : > { %v4812_v41 = vmax.f32 %v4659_v6, 0.0 }
 0x52a   : > { %v4661_v57 = vpop.f32.mrf.mxu1 }
 0x52b   : > { %4853 = vst.msk [vmem:[%s8955_s15 + $0x20] sm:$0xff] %vm4540_vm10, %v4812_v41  ;;  %v4662_v7 = vadd.f32 %v8947_v50, %v4661_v57 }
 0x52c   : > { %v6456_v58 = vpop.f32.mrf.mxu1 }
 0x52d   : > { %v4813_v53 = vmax.f32 %v4662_v7, 0.0 }
 0x52e   : > { %v4666_v33 = vpop.f32.mrf.mxu1 }
 0x52f   : > { %4854 = vst.msk [vmem:[%s8955_s15 + $0x28] sm:$0xff] %vm4540_vm10, %v4813_v53  ;;  %v4667_v56 = vadd.f32 %v8947_v50, %v4666_v33 }
 0x530   : > { %v6459_v44 = vpop.f32.mrf.mxu1 }
 0x531   : > { %v4814_v21 = vmax.f32 %v4667_v56, 0.0 }
 0x532   : > { %v4669_v16 = vpop.f32.mrf.mxu1 }
 0x533   : > { %4855 = vst.msk [vmem:[%s8955_s15 + $0x30] sm:$0xff] %vm4540_vm10, %v4814_v21  ;;  %v4670_v31 = vadd.f32 %v8947_v50, %v4669_v16 }
 0x534   : > { %v6460_v13 = vpop.f32.mrf.mxu1 }
 0x535   : > { %v4815_v60 = vmax.f32 %v4670_v31, 0.0 }
 0x536   : > { %v4674_v0 = vpop.f32.mrf.mxu1 }
 0x537   : > { %4856 = vst.msk [vmem:[%s8955_s15 + $0x38] sm:$0xff] %vm4540_vm10, %v4815_v60  ;;  %v4675_v25 = vadd.f32 %v8947_v50, %v4674_v0 }
 0x538   : > { %v6463_v23 = vpop.f32.mrf.mxu1 }
 0x539   : > { %v4816_v1 = vmax.f32 %v4675_v25, 0.0 }
 0x53a   : > { %v4677_v19 = vpop.f32.mrf.mxu1 }
 0x53b   : > { %4857 = vst.msk [vmem:[%s8955_s15 + $0x40] sm:$0xff] %vm4540_vm10, %v4816_v1  ;;  %v4678_v62 = vadd.f32 %v8947_v50, %v4677_v19 }
 0x53c   : > { %v6464_v59 = vpop.f32.mrf.mxu1 }
 0x53d   : > { %v4817_v48 = vmax.f32 %v4678_v62, 0.0 }
 0x53e   : > { %v4682_v42 = vpop.f32.mrf.mxu1 }
 0x53f   : > { %4858 = vst.msk [vmem:[%s8955_s15 + $0x48] sm:$0xff] %vm4540_vm10, %v4817_v48  ;;  %v4683_v17 = vadd.f32 %v8947_v50, %v4682_v42 }
 0x540   : > { %v6467_v32 = vpop.f32.mrf.mxu1 }
 0x541   : > { %v4818_v45 = vmax.f32 %v4683_v17, 0.0 }
 0x542   : > { %v4685_v11 = vpop.f32.mrf.mxu1 }
 0x543   : > { %4859 = vst.msk [vmem:[%s8955_s15 + $0x50] sm:$0xff] %vm4540_vm10, %v4818_v45  ;;  %v4686_v26 = vadd.f32 %v8947_v50, %v4685_v11 }
 0x544   : > { %v6468_v36 = vpop.f32.mrf.mxu1 }
 0x545   : > { %v4819_v4 = vmax.f32 %v4686_v26, 0.0 }
 0x546   : > { %v4690_v29 = vpop.f32.mrf.mxu1 }
 0x547   : > { %4860 = vst.msk [vmem:[%s8955_s15 + $0x58] sm:$0xff] %vm4540_vm10, %v4819_v4  ;;  %v4691_v61 = vadd.f32 %v8947_v50, %v4690_v29 }
 0x548   : > { %v6471_v37 = vpop.f32.mrf.mxu1 }
 0x549   : > { %v4820_v35 = vmax.f32 %v4691_v61, 0.0 }
 0x54a   : > { %v4693_v38 = vpop.f32.mrf.mxu1 }
 0x54b   : > { %4861 = vst.msk [vmem:[%s8955_s15 + $0x60] sm:$0xff] %vm4540_vm10, %v4820_v35  ;;  %v4694_v2 = vadd.f32 %v8947_v50, %v4693_v38 }
 0x54c   : > { %v6472_v14 = vpop.f32.mrf.mxu1 }
 0x54d   : > { %v4821_v39 = vmax.f32 %v4694_v2, 0.0 }
 0x54e   : > { %v4698_v9 = vpop.f32.mrf.mxu1 }
 0x54f   : > { %4862 = vst.msk [vmem:[%s8955_s15 + $0x68] sm:$0xff] %vm4540_vm10, %v4821_v39  ;;  %v4699_v15 = vadd.f32 %v8947_v50, %v4698_v9 }
 0x550   : > { %v6475_v30 = vpop.f32.mrf.mxu1 }
 0x551   : > { %v4822_v5 = vmax.f32 %v4699_v15, 0.0 }
 0x552   : > { %v4701_v51 = vpop.f32.mrf.mxu1 }
 0x553   : > { %4863 = vst.msk [vmem:[%s8955_s15 + $0x70] sm:$0xff] %vm4540_vm10, %v4822_v5  ;;  %v4702_v24 = vadd.f32 %v8947_v50, %v4701_v51 }
 0x554   : > { %v6476_v12 = vpop.f32.mrf.mxu1 }
 0x555   : > { %v4823_v20 = vmax.f32 %v4702_v24, 0.0 }
 0x556   : > { %v4706_v22 = vpop.f32.mrf.mxu1 }
 0x557   : > { %4864 = vst.msk [vmem:[%s8955_s15 + $0x78] sm:$0xff] %vm4540_vm10, %v4823_v20  ;;  %v4707_v63 = vadd.f32 %v8947_v50, %v4706_v22 }
 0x558   : > { %v6479_v43 = vpop.f32.mrf.mxu1 }
 0x559   : > { %v4824_v10 = vmax.f32 %v4707_v63, 0.0 }
 0x55a   : > { %v4709_v18 = vpop.f32.mrf.mxu1 }
 0x55b   : > { %4865 = vst.msk [vmem:[%s8955_s15 + $0x80] sm:$0xff] %vm4540_vm10, %v4824_v10  ;;  %v4710_v40 = vadd.f32 %v8947_v50, %v4709_v18 }
 0x55c   : > { %v6480_v8 = vpop.f32.mrf.mxu1 }
 0x55d   : > { %v4825_v49 = vmax.f32 %v4710_v40, 0.0 }
 0x55e   : > { %v4714_v52 = vpop.f32.mrf.mxu1 }
 0x55f   : > { %4866 = vst.msk [vmem:[%s8955_s15 + $0x88] sm:$0xff] %vm4540_vm10, %v4825_v49  ;;  %v4715_v55 = vadd.f32 %v8947_v50, %v4714_v52 }
 0x560   : > { %v6483_v54 = vpop.f32.mrf.mxu1 }
 0x561   : > { %v4826_v34 = vmax.f32 %v4715_v55, 0.0 }
 0x562   : > { %v4717_v47 = vpop.f32.mrf.mxu1 }
 0x563   : > { %4867 = vst.msk [vmem:[%s8955_s15 + $0x90] sm:$0xff] %vm4540_vm10, %v4826_v34  ;;  %v4718_v27 = vadd.f32 %v8947_v50, %v4717_v47 }
 0x564   : > { %v6484_v3 = vpop.f32.mrf.mxu1 }
 0x565   : > { %v4827_v46 = vmax.f32 %v4718_v27, 0.0 }
 0x566   : > { %v4722_v6 = vpop.f32.mrf.mxu1 }
 0x567   : > { %4868 = vst.msk [vmem:[%s8955_s15 + $0x98] sm:$0xff] %vm4540_vm10, %v4827_v46  ;;  %v4723_v28 = vadd.f32 %v8947_v50, %v4722_v6 }
 0x568   : > { %v6487_v41 = vpop.f32.mrf.mxu1 }
 0x569   : > { %v4828_v57 = vmax.f32 %v4723_v28, 0.0 }
 0x56a   : > { %v4725_v7 = vpop.f32.mrf.mxu1 }
 0x56b   : > { %4869 = vst.msk [vmem:[%s8955_s15 + $0xa0] sm:$0xff] %vm4540_vm10, %v4828_v57  ;;  %v4726_v58 = vadd.f32 %v8947_v50, %v4725_v7 }
 0x56c   : > { %v6488_v53 = vpop.f32.mrf.mxu1 }
 0x56d   : > { %v4829_v33 = vmax.f32 %v4726_v58, 0.0 }
 0x56e   : > { %v4730_v56 = vpop.f32.mrf.mxu1 }
 0x56f   : > { %4870 = vst.msk [vmem:[%s8955_s15 + $0xa8] sm:$0xff] %vm4540_vm10, %v4829_v33  ;;  %v4731_v44 = vadd.f32 %v8947_v50, %v4730_v56 }
 0x570   : > { %v6491_v21 = vpop.f32.mrf.mxu1 }
 0x571   : > { %v4830_v16 = vmax.f32 %v4731_v44, 0.0 }
 0x572   : > { %v4733_v31 = vpop.f32.mrf.mxu1 }
 0x573   : > { %4871 = vst.msk [vmem:[%s8955_s15 + $0xb0] sm:$0xff] %vm4540_vm10, %v4830_v16  ;;  %v4734_v13 = vadd.f32 %v8947_v50, %v4733_v31 }
 0x574   : > { %v6492_v60 = vpop.f32.mrf.mxu1 }
 0x575   : > { %v4831_v0 = vmax.f32 %v4734_v13, 0.0 }
 0x576   : > { %v4738_v25 = vpop.f32.mrf.mxu1 }
 0x577   : > { %4872 = vst.msk [vmem:[%s8955_s15 + $0xb8] sm:$0xff] %vm4540_vm10, %v4831_v0  ;;  %v4739_v23 = vadd.f32 %v8947_v50, %v4738_v25 }
 0x578   : > { %v6495_v1 = vpop.f32.mrf.mxu1 }
 0x579   : > { %v4832_v19 = vmax.f32 %v4739_v23, 0.0 }
 0x57a   : > { %v4741_v62 = vpop.f32.mrf.mxu1 }
 0x57b   : > { %4873 = vst.msk [vmem:[%s8955_s15 + $0xc0] sm:$0xff] %vm4540_vm10, %v4832_v19  ;;  %v4742_v59 = vadd.f32 %v8947_v50, %v4741_v62 }
 0x57c   : > { %v6496_v48 = vpop.f32.mrf.mxu1 }
 0x57d   : > { %v4833_v42 = vmax.f32 %v4742_v59, 0.0 }
 0x57e   : > { %v4746_v17 = vpop.f32.mrf.mxu1 }
 0x57f   : > { %4874 = vst.msk [vmem:[%s8955_s15 + $0xc8] sm:$0xff] %vm4540_vm10, %v4833_v42  ;;  %v4747_v32 = vadd.f32 %v8947_v50, %v4746_v17 }
 0x580   : > { %v6499_v45 = vpop.f32.mrf.mxu1 }
 0x581   : > { %v4834_v11 = vmax.f32 %v4747_v32, 0.0 }
 0x582   : > { %v4749_v26 = vpop.f32.mrf.mxu1 }
 0x583   : > { %4875 = vst.msk [vmem:[%s8955_s15 + $0xd0] sm:$0xff] %vm4540_vm10, %v4834_v11  ;;  %v4750_v36 = vadd.f32 %v8947_v50, %v4749_v26 }
 0x584   : > { %v6500_v4 = vpop.f32.mrf.mxu1 }
 0x585   : > { %v4835_v29 = vmax.f32 %v4750_v36, 0.0 }
 0x586   : > { %v4754_v61 = vpop.f32.mrf.mxu1 }
 0x587   : > { %4876 = vst.msk [vmem:[%s8955_s15 + $0xd8] sm:$0xff] %vm4540_vm10, %v4835_v29  ;;  %v4755_v37 = vadd.f32 %v8947_v50, %v4754_v61 }
 0x588   : > { %v6503_v35 = vpop.f32.mrf.mxu1 }
 0x589   : > { %v4836_v38 = vmax.f32 %v4755_v37, 0.0 }
 0x58a   : > { %v4757_v2 = vpop.f32.mrf.mxu1 }
 0x58b   : > { %4877 = vst.msk [vmem:[%s8955_s15 + $0xe0] sm:$0xff] %vm4540_vm10, %v4836_v38  ;;  %v4758_v14 = vadd.f32 %v8947_v50, %v4757_v2 }
 0x58c   : > { %v6504_v39 = vpop.f32.mrf.mxu1 }
 0x58d   : > { %v4837_v9 = vmax.f32 %v4758_v14, 0.0 }
 0x58e   : > { %v4762_v15 = vpop.f32.mrf.mxu1 }
 0x58f   : > { %4878 = vst.msk [vmem:[%s8955_s15 + $0xe8] sm:$0xff] %vm4540_vm10, %v4837_v9  ;;  %v4763_v30 = vadd.f32 %v8947_v50, %v4762_v15 }
 0x590   : > { %v6507_v5 = vpop.f32.mrf.mxu1 }
 0x591   : > { %v4838_v51 = vmax.f32 %v4763_v30, 0.0 }
 0x592   : > { %v4765_v24 = vpop.f32.mrf.mxu1 }
 0x593   : > { %4879 = vst.msk [vmem:[%s8955_s15 + $0xf0] sm:$0xff] %vm4540_vm10, %v4838_v51  ;;  %v4766_v12 = vadd.f32 %v8947_v50, %v4765_v24 }
 0x594   : > { %v6508_v20 = vpop.f32.mrf.mxu1 }
 0x595   : > { %v4839_v22 = vmax.f32 %v4766_v12, 0.0 }
 0x596   : > { %v4770_v63 = vpop.f32.mrf.mxu1 }
 0x597   : > { %4880 = vst.msk [vmem:[%s8955_s15 + $0xf8] sm:$0xff] %vm4540_vm10, %v4839_v22  ;;  %v4771_v43 = vadd.f32 %v8947_v50, %v4770_v63 }
 0x598   : > { %v6511_v10 = vpop.f32.mrf.mxu1 }
 0x599   : > { %v4840_v18 = vmax.f32 %v4771_v43, 0.0 }
 0x59a   : > { %v4773_v40 = vpop.f32.mrf.mxu1 }
 0x59b   : > { %4881 = vst.msk [vmem:[%s8955_s15 + $0x100] sm:$0xff] %vm4540_vm10, %v4840_v18  ;;  %v4774_v8 = vadd.f32 %v8947_v50, %v4773_v40 }
 0x59c   : > { %v6512_v49 = vpop.f32.mrf.mxu1 }
 0x59d   : > { %v4841_v52 = vmax.f32 %v4774_v8, 0.0 }
 0x59e   : > { %v4778_v55 = vpop.f32.mrf.mxu1 }
 0x59f   : > { %4882 = vst.msk [vmem:[%s8955_s15 + $0x108] sm:$0xff] %vm4540_vm10, %v4841_v52  ;;  %v4779_v54 = vadd.f32 %v8947_v50, %v4778_v55 }
 0x5a0   : > { %v6515_v34 = vpop.f32.mrf.mxu1 }
 0x5a1   : > { %v4842_v47 = vmax.f32 %v4779_v54, 0.0 }
 0x5a2   : > { %v4781_v27 = vpop.f32.mrf.mxu1 }
 0x5a3   : > { %4883 = vst.msk [vmem:[%s8955_s15 + $0x110] sm:$0xff] %vm4540_vm10, %v4842_v47  ;;  %v4782_v3 = vadd.f32 %v8947_v50, %v4781_v27 }
 0x5a4   : > { %v6516_v46 = vpop.f32.mrf.mxu1 }
 0x5a5   : > { %v4843_v6 = vmax.f32 %v4782_v3, 0.0 }
 0x5a6   : > { %v4786_v28 = vpop.f32.mrf.mxu1 }
 0x5a7   : > { %4884 = vst.msk [vmem:[%s8955_s15 + $0x118] sm:$0xff] %vm4540_vm10, %v4843_v6  ;;  %v4787_v41 = vadd.f32 %v8947_v50, %v4786_v28 }
 0x5a8   : > { %v6519_v57 = vpop.f32.mrf.mxu1 }
 0x5a9   : > { %v4844_v7 = vmax.f32 %v4787_v41, 0.0 }
 0x5aa   : > { %v4789_v58 = vpop.f32.mrf.mxu1 }
 0x5ab   : > { %4885 = vst.msk [vmem:[%s8955_s15 + $0x120] sm:$0xff] %vm4540_vm10, %v4844_v7  ;;  %v4790_v53 = vadd.f32 %v8947_v50, %v4789_v58 }
 0x5ac   : > { %v6520_v33 = vpop.f32.mrf.mxu1 }
 0x5ad   : > { %v4845_v56 = vmax.f32 %v4790_v53, 0.0 }
 0x5ae   : > { %v4794_v44 = vpop.f32.mrf.mxu1 }
 0x5af   : > { %4886 = vst.msk [vmem:[%s8955_s15 + $0x128] sm:$0xff] %vm4540_vm10, %v4845_v56  ;;  %v4795_v21 = vadd.f32 %v8947_v50, %v4794_v44 }
 0x5b0   : > { %v6523_v16 = vpop.f32.mrf.mxu1 }
 0x5b1   : > { %v4846_v31 = vmax.f32 %v4795_v21, 0.0 }
 0x5b2   : > { %v4797_v13 = vpop.f32.mrf.mxu1 }
 0x5b3   : > { %4887 = vst.msk [vmem:[%s8955_s15 + $0x130] sm:$0xff] %vm4540_vm10, %v4846_v31  ;;  %v4798_v60 = vadd.f32 %v8947_v50, %v4797_v13 }
 0x5b4   : > { %v6524_v0 = vpop.f32.mrf.mxu1 }
 0x5b5   : > { %v4847_v25 = vmax.f32 %v4798_v60, 0.0 }
 0x5b6   : > { %v4802_v23 = vpop.f32.mrf.mxu1 }
 0x5b7   : > { %4888 = vst.msk [vmem:[%s8955_s15 + $0x138] sm:$0xff] %vm4540_vm10, %v4847_v25  ;;  %v4803_v1 = vadd.f32 %v8947_v50, %v4802_v23 }
 0x5b8   : > { %v6527_v19 = vpop.f32.mrf.mxu1 }
 0x5b9   : > { %v4848_v62 = vmax.f32 %v4803_v1, 0.0 }
 0x5ba   : > { %v4805_v59 = vpop.f32.mrf.mxu1 }
 0x5bb   : > { %4890 = vst.msk [vmem:[%s8955_s15 + $0x140] sm:$0xf] %vm4889_vm11, %v4848_v62 }
 0x5bc   : > { %v6528_v48 = vpop.f32.mrf.mxu1 }
 0x5bd PF: > { %s21_s17 = sadd.s32 1, %s6550_s17  }
 0x5be   : > { %p18_p4 = scmp.ge.s32.totalorder %s21_s17, 4  }
 0x5c0   :  { %20 = sbr.rel (!%p18_p4) target bundleno = 1 (0x1), region = 105 }

// kernel: _lambda_.10
= control target key start
LH: loop header
LB: loop body
LE: loop exit
PB: predicated region body
PF: predicated region fallthrough
CT: control target
= control target key end

     0   :  { %s555_s12 = smov 0   ;;  %s557_s13 = smov 0   ;;  %s637_s0 = inlined_call_operand.vmem [shape: f32[2,64,72], index: 0, kind: input, shape index: {}]   ;;  %s638_s1 = inlined_call_operand.vmem [shape: f32[72,16], index: 1, kind: input, shape index: {}]   ;;  %s639_s2 = inlined_call_operand.vmem [shape: f32[1,16], index: 2, kind: input, shape index: {}]   ;;  %s640_s3 = inlined_call_operand.vmem [shape: f32[2,64,16], index: 3, kind: output, shape index: {}]  }
   0x1   :  { %s559_s14 = smov 0  }
   0x2 LB: > { %s25_s15 = sadd.s32 1, %s529_s13  ;;  %p434_p0 = scmp.ge.s32.totalorder %s533_s14, 1  ;;  %s533_s14 = sphi %s559_s14, %s13_s14   ;;  %s529_s13 = sphi %s557_s13, %s642_s13   ;;  %s525_s12 = sphi %s555_s12, %s641_s12  }
   0x3   : > { %p27_p1 = scmp.ge.s32.totalorder %s25_s15, 2  ;;  %p158_p2 = scmp.lt.s32.totalorder %s533_s14, 3 }
   0x5   : > { %s644_s15 = smov (%p27_p1, %s25_s15), 0  ;;  %p159_p3 = pnand %p434_p0, %p158_p2 }
   0x6   : > { %p191_p4 = scmp.lt.s32.totalorder (!%p159_p3), %s525_s12, 1 }
   0x7   : > { %162 = sbr.rel (%p159_p3) target bundleno = 239 (0xef), region = 32 }
   0xc   : > { %v231_v0 = vld [vmem:[%s638_s1 + $0x40] sm:$0xff]  ;;  %vm257_vm0 = vcmask 1043456   ;;  %v229_v1 = vld [vmem:[%s638_s1 + $0x30] sm:$0xff]  ;;  %v230_v2 = vld [vmem:[%s638_s1 + $0x38] sm:$0xff]  ;;  %s646_s12 = smov (!%p191_p4, %s525_s12), 1  ;;  %vm244_vm1 = vcmask 588800  }
   0xd   : > { %v236_v3 = vpack.c.bf16 %v231_v0, %v231_v0  ;;  %v235_v4 = vpack.c.bf16 %v230_v2, %v229_v1  ;;  %v227_v5 = vld [vmem:[%s638_s1 + $0x20] sm:$0xff]  ;;  %v228_v6 = vld [vmem:[%s638_s1 + $0x28] sm:$0xff]  ;;  %s446_s26 = sshll.u32 %s646_s12, 6  ;;  %v225_v9 = vld [vmem:[%s638_s1 + $0x10] sm:$0xff]  ;;  %vm334_vm2 = vcmask 130048  }
   0xe   : > { %v234_v8 = vpack.c.bf16 %v228_v6, %v227_v5  ;;  %v226_v10 = vld [vmem:[%s638_s1 + $0x18] sm:$0xff]  ;;  %s198_s6 = scalar_lea.vmem %s637_s0, %s446_s26  ;;  %v223_v18 = vld [vmem:[%s638_s1] sm:$0xff]  ;;  %v224_v19 = vld [vmem:[%s638_s1 + $0x8] sm:$0xff]  ;;  %s208_s19 = scalar_lea.vmem %s640_s3, %s446_s26 }
   0xf   : > { %485 = vmatprep.subr.msk.bf16.mxu0 %vm257_vm0, %v236_v3  ;;  %486 = vmatprep.subr.msk.bf16.mxu1 %vm257_vm0, %v236_v3  ;;  %v259_v7 = vsel %vm257_vm0, %v236_v3, 0  ;;  %v211_v11 = vld [vmem:[%s198_s6] sm:$0xff]  ;;  %v212_v12 = vld [vmem:[%s198_s6 + $0x8] sm:$0xff]  ;;  %v233_v17 = vpack.c.bf16 %v226_v10, %v225_v9  ;;  %v232_v20 = vpack.c.bf16 %v224_v19, %v223_v18  ;;  %v213_v21 = vld [vmem:[%s198_s6 + $0x10] sm:$0xff] }
  0x10   : > { %458 = vmatpush3.bf16.msra.mxu0 %v259_v7  ;;  %480 = vmatpush3.bf16.msra.mxu1 %v259_v7  ;;  %v215_v13 = vld [vmem:[%s198_s6 + $0x20] sm:$0xff]  ;;  %v219_v14 = vpack.c.bf16 %v212_v12, %v211_v11  ;;  %v216_v15 = vld [vmem:[%s198_s6 + $0x28] sm:$0xff]  ;;  %v214_v22 = vld [vmem:[%s198_s6 + $0x18] sm:$0xff] }
  0x11   : > { %459 = vmatprep.subr.bf16.mxu0 %v235_v4  ;;  %476 = vmatprep.subr.bf16.mxu1 %v235_v4  ;;  %v221_v16 = vpack.c.bf16 %v216_v15, %v215_v13  ;;  %v217_v23 = vld [vmem:[%s198_s6 + $0x30] sm:$0xff]  ;;  %v218_v24 = vld [vmem:[%s198_s6 + $0x38] sm:$0xff]  ;;  %v220_v25 = vpack.c.bf16 %v214_v22, %v213_v21  ;;  %v439_v27 = vld [vmem:[%s639_s2] ss:$0 sm:$0xff] }
  0x12   : > { %467 = vmatprep.mubr.msk.bf16.mxu0 %vm244_vm1, %v219_v14  ;;  %v222_v26 = vpack.c.bf16 %v218_v24, %v217_v23 }
  0x13   : > { %471 = vmatprep.mubr.msk.bf16.mxu1 %vm244_vm1, %v221_v16 }
  0x14   : > { %460 = vmatpush3.bf16.msra.mxu0 %v235_v4  ;;  %481 = vmatpush3.bf16.msra.mxu1 %v235_v4 }
  0x15   : > { %461 = vmatprep.subr.bf16.mxu0 %v234_v8  ;;  %477 = vmatprep.subr.bf16.mxu1 %v234_v8 }
  0x18   : > { %462 = vmatpush3.bf16.msra.mxu0 %v234_v8  ;;  %482 = vmatpush3.bf16.msra.mxu1 %v234_v8 }
  0x19   : > { %463 = vmatprep.subr.bf16.mxu0 %v233_v17  ;;  %478 = vmatprep.subr.bf16.mxu1 %v233_v17 }
  0x1c   : > { %464 = vmatpush3.bf16.msra.mxu0 %v233_v17  ;;  %483 = vmatpush3.bf16.msra.mxu1 %v233_v17 }
  0x1d   : > { %465 = vmatprep.subr.bf16.mxu0 %v232_v20  ;;  %479 = vmatprep.subr.bf16.mxu1 %v232_v20 }
  0x20   : > { %466 = vmatpush3.bf16.msra.mxu0 %v232_v20  ;;  %484 = vmatpush3.bf16.msra.mxu1 %v232_v20 }
  0x23   : > { %468 = vmatmul.mubr.msk.bf16.vlgmr.msra.gmra.mxu0 %vm244_vm1, %v220_v25  ;;  %472 = vmatmul.mubr.msk.bf16.vlgmr.msra.gmra.mxu1 %vm244_vm1, %v222_v26 }
  0xe3   : > { %v469_v28 = vpop.f32.mrf.mxu0  ;;  %v473_v29 = vpop.f32.mrf.mxu1 }
  0xe4   : > { %v304_v30 = vadd.f32 %v469_v28, %v439_v27  ;;  %v320_v31 = vadd.f32 %v473_v29, %v439_v27 }
  0xe5   : > { %v295_v32 = vpop.f32.mrf.mxu0  ;;  %v311_v33 = vpop.f32.mrf.mxu1 }
  0xe6   : > { %v328_v34 = vmax.f32 %v304_v30, 0.0  ;;  %v332_v35 = vmax.f32 %v320_v31, 0.0  ;;  %v296_v36 = vadd.f32 %v439_v27, %v295_v32  ;;  %v312_v37 = vadd.f32 %v439_v27, %v311_v33 }
  0xe7   : > { %v470_v38 = vpop.f32.mrf.mxu0  ;;  %v474_v39 = vpop.f32.mrf.mxu1 }
  0xe8   : > { %337 = vst.msk [vmem:[%s208_s19 + $0x10] sm:$0xff] %vm334_vm2, %v328_v34  ;;  %341 = vst.msk [vmem:[%s208_s19 + $0x30] sm:$0xff] %vm334_vm2, %v332_v35  ;;  %v326_v40 = vmax.f32 %v296_v36, 0.0  ;;  %v330_v41 = vmax.f32 %v312_v37, 0.0  ;;  %v307_v42 = vadd.f32 %v470_v38, %v439_v27  ;;  %v323_v43 = vadd.f32 %v474_v39, %v439_v27 }
  0xe9   : > { %v298_v44 = vpop.f32.mrf.mxu0  ;;  %v314_v45 = vpop.f32.mrf.mxu1 }
  0xea   : > { %335 = vst.msk [vmem:[%s208_s19] sm:$0xff] %vm334_vm2, %v326_v40  ;;  %339 = vst.msk [vmem:[%s208_s19 + $0x20] sm:$0xff] %vm334_vm2, %v330_v41  ;;  %v329_v46 = vmax.f32 %v307_v42, 0.0  ;;  %v333_v47 = vmax.f32 %v323_v43, 0.0  ;;  %v299_v48 = vadd.f32 %v439_v27, %v298_v44  ;;  %v315_v49 = vadd.f32 %v439_v27, %v314_v45 }
  0xec   : > { %338 = vst.msk [vmem:[%s208_s19 + $0x18] sm:$0xff] %vm334_vm2, %v329_v46  ;;  %342 = vst.msk [vmem:[%s208_s19 + $0x38] sm:$0xff] %vm334_vm2, %v333_v47  ;;  %v327_v50 = vmax.f32 %v299_v48, 0.0  ;;  %v331_v51 = vmax.f32 %v315_v49, 0.0 }
  0xee   : > { %336 = vst.msk [vmem:[%s208_s19 + $0x8] sm:$0xff] %vm334_vm2, %v327_v50  ;;  %340 = vst.msk [vmem:[%s208_s19 + $0x28] sm:$0xff] %vm334_vm2, %v331_v51 }
  0xef PF: > { %s13_s14 = sadd.s32 1, %s533_s14   ;;  %s641_s12 = smov %s529_s13 }
  0xf0   : > { %p10_p5 = scmp.ge.s32.totalorder %s13_s14, 4   ;;  %s642_s13 = smov %s644_s15 }
  0xf2   :  { %12 = sbr.rel (!%p10_p5) target bundleno = 2 (0x2), region = 62 }

// kernel: _lambda_.12
= control target key start
LH: loop header
LB: loop body
LE: loop exit
PB: predicated region body
PF: predicated region fallthrough
CT: control target
= control target key end

     0   :  { %s479_s12 = smov 0   ;;  %s481_s13 = smov 0   ;;  %s579_s0 = inlined_call_operand.vmem [shape: f32[2,16,144], index: 0, kind: input, shape index: {}]   ;;  %s580_s1 = inlined_call_operand.vmem [shape: f32[144,32], index: 1, kind: input, shape index: {}]   ;;  %s581_s2 = inlined_call_operand.vmem [shape: f32[1,32], index: 2, kind: input, shape index: {}]   ;;  %s582_s3 = inlined_call_operand.vmem [shape: f32[2,16,32], index: 3, kind: output, shape index: {}]  }
   0x1   :  { %s483_s14 = smov 0  }
   0x2 LB: > { %s25_s15 = sadd.s32 1, %s452_s13  ;;  %p398_p0 = scmp.ge.s32.totalorder %s456_s14, 1  ;;  %s456_s14 = sphi %s483_s14, %s13_s14   ;;  %s452_s13 = sphi %s481_s13, %s584_s13   ;;  %s448_s12 = sphi %s479_s12, %s583_s12  }
   0x3   : > { %p27_p1 = scmp.ge.s32.totalorder %s25_s15, 2  ;;  %p159_p2 = scmp.lt.s32.totalorder %s456_s14, 3 }
   0x5   : > { %s586_s15 = smov (%p27_p1, %s25_s15), 0  ;;  %p160_p3 = pnand %p398_p0, %p159_p2 }
   0x6   : > { %p193_p4 = scmp.lt.s32.totalorder (!%p160_p3), %s448_s12, 1 }
   0x7   : > { %163 = sbr.rel (%p160_p3) target bundleno = 252 (0xfc), region = 32 }
   0xc   : > { %v234_v0 = vld [vmem:[%s580_s1 + $0x70] sm:$0xff]  ;;  %v235_v1 = vld [vmem:[%s580_s1 + $0x78] sm:$0xff]  ;;  %v232_v2 = vld [vmem:[%s580_s1 + $0x60] sm:$0xff]  ;;  %v458_v3 = vmov 0   ;;  %s588_s12 = smov (!%p193_p4, %s448_s12), 1  ;;  %vm254_vm0 = vcmask 130048  }
   0xd   : > { %258 = vmatprep.subr.bf16.mxu0 %v458_v3  ;;  %v245_v4 = vpack.c.bf16 %v235_v1, %v234_v0  ;;  %v233_v5 = vld [vmem:[%s580_s1 + $0x68] sm:$0xff]  ;;  %v230_v7 = vld [vmem:[%s580_s1 + $0x50] sm:$0xff]  ;;  %v231_v8 = vld [vmem:[%s580_s1 + $0x58] sm:$0xff]  ;;  %s407_s28 = sshll.u32 %s588_s12, 5  ;;  %s408_s9 = sshll.u32 %s588_s12, 4  ;;  %vm301_vm1 = vcmask 261120  }
   0xe   : > { %v244_v6 = vpack.c.bf16 %v233_v5, %v232_v2  ;;  %s521_s4 = scalar_lea.vmem %s579_s0, %s407_s28  ;;  %v243_v11 = vpack.c.bf16 %v231_v8, %v230_v7  ;;  %v228_v13 = vld [vmem:[%s580_s1 + $0x40] sm:$0xff]  ;;  %v229_v14 = vld [vmem:[%s580_s1 + $0x48] sm:$0xff]  ;;  %v226_v16 = vld [vmem:[%s580_s1 + $0x30] sm:$0xff]  ;;  %s211_s16 = scalar_lea.vmem %s582_s3, %s408_s9 }
   0xf   : > { %259 = vmatpush1.bf16.msra.mxu0 %v245_v4  ;;  %v215_v9 = vld [vmem:[%s521_s4 + $0x8] sm:$0xff]  ;;  %v217_v10 = vld [vmem:[%s521_s4 + $0x18] sm:$0xff]  ;;  %v242_v15 = vpack.c.bf16 %v229_v14, %v228_v13  ;;  %v224_v19 = vld [vmem:[%s580_s1 + $0x20] sm:$0xff] }
  0x10   : > { %260 = vmatprep.subr.bf16.mxu0 %v458_v3  ;;  %v219_v12 = vpack.c.bf16 %v217_v10, %v215_v9  ;;  %v227_v17 = vld [vmem:[%s580_s1 + $0x38] sm:$0xff]  ;;  %v225_v20 = vld [vmem:[%s580_s1 + $0x28] sm:$0xff]  ;;  %v222_v22 = vld [vmem:[%s580_s1 + $0x10] sm:$0xff] }
  0x11   : > { %v241_v18 = vpack.c.bf16 %v227_v17, %v226_v16  ;;  %v240_v21 = vpack.c.bf16 %v225_v20, %v224_v19  ;;  %v223_v23 = vld [vmem:[%s580_s1 + $0x18] sm:$0xff]  ;;  %v220_v25 = vld [vmem:[%s580_s1] sm:$0xff]  ;;  %v221_v26 = vld [vmem:[%s580_s1 + $0x8] sm:$0xff] }
  0x12   : > { %404 = vmatprep.mubr.msk.bf16.mxu0 %vm254_vm0, %v219_v12  ;;  %v239_v24 = vpack.c.bf16 %v223_v23, %v222_v22  ;;  %v238_v27 = vpack.c.bf16 %v221_v26, %v220_v25  ;;  %v236_v28 = vld [vmem:[%s580_s1 + $0x80] sm:$0xff]  ;;  %v237_v29 = vld [vmem:[%s580_s1 + $0x88] sm:$0xff]  ;;  %v216_v32 = vld [vmem:[%s521_s4 + $0x10] sm:$0xff] }
  0x13   : > { %261 = vmatpush1.bf16.msra.mxu0 %v244_v6  ;;  %v246_v30 = vpack.c.bf16 %v237_v29, %v236_v28  ;;  %v214_v31 = vld [vmem:[%s521_s4] sm:$0xff] }
  0x14   : > { %262 = vmatprep.subr.bf16.mxu0 %v458_v3  ;;  %v218_v33 = vpack.c.bf16 %v216_v32, %v214_v31  ;;  %v403_v34 = vld [vmem:[%s581_s2] ss:$0 sm:$0xff] }
  0x17   : > { %263 = vmatpush1.bf16.msra.mxu0 %v243_v11 }
  0x18   : > { %264 = vmatprep.subr.bf16.mxu0 %v458_v3 }
  0x1b   : > { %265 = vmatpush1.bf16.msra.mxu0 %v242_v15 }
  0x1c   : > { %266 = vmatprep.subr.bf16.mxu0 %v458_v3 }
  0x1f   : > { %267 = vmatpush1.bf16.msra.mxu0 %v241_v18 }
  0x20   : > { %268 = vmatprep.subr.bf16.mxu0 %v458_v3 }
  0x23   : > { %269 = vmatpush1.bf16.msra.mxu0 %v240_v21 }
  0x24   : > { %270 = vmatprep.subr.bf16.mxu0 %v458_v3 }
  0x27   : > { %271 = vmatpush1.bf16.msra.mxu0 %v239_v24 }
  0x28   : > { %272 = vmatprep.subr.bf16.mxu0 %v458_v3 }
  0x2b   : > { %273 = vmatpush1.bf16.msra.mxu0 %v238_v27 }
  0x2c   : > { %288 = vmatprep.subr.bf16.mxu0 %v458_v3 }
  0x2f   : > { %289 = vmatpush2.bf16.msra.mxu0 %v246_v30 }
  0x32   : > { %291 = vmatmul.mubr.bf16.vlgmr.msra.gmra.mxu0 %v218_v33 }
  0xf2   : > { %v292_v35 = vpop.f32.mrf.mxu0 }
  0xf3   : > { %v293_v36 = vadd.f32 %v403_v34, %v292_v35 }
  0xf4   : > { %v294_v37 = vpop.f32.mrf.mxu0 }
  0xf5   : > { %v299_v38 = vmax.f32 %v293_v36, 0.0 }
  0xf6   : > { %v295_v39 = vpop.f32.mrf.mxu0 }
  0xf7   : > { %302 = vst.msk [vmem:[%s211_s16] sm:$0xff] %vm301_vm1, %v299_v38  ;;  %v296_v40 = vadd.f32 %v403_v34, %v295_v39 }
  0xf8   : > { %v297_v41 = vpop.f32.mrf.mxu0 }
  0xf9   : > { %v300_v42 = vmax.f32 %v296_v40, 0.0 }
  0xfb   : > { %303 = vst.msk [vmem:[%s211_s16 + $0x8] sm:$0xff] %vm301_vm1, %v300_v42 }
  0xfc PF: > { %s13_s14 = sadd.s32 1, %s456_s14   ;;  %s583_s12 = smov %s452_s13 }
  0xfd   : > { %p10_p5 = scmp.ge.s32.totalorder %s13_s14, 4   ;;  %s584_s13 = smov %s586_s15 }
  0xff   :  { %12 = sbr.rel (!%p10_p5) target bundleno = 2 (0x2), region = 62 }

// kernel: _lambda_.11
= control target key start
LH: loop header
LB: loop body
LE: loop exit
PB: predicated region body
PF: predicated region fallthrough
CT: control target
= control target key end

     0   :  { %s3044_s17 = smov 0   ;;  %s3991_s0 = inlined_call_operand.vmem [shape: f32[2,122,8], index: 0, kind: input, shape index: {}]   ;;  %s3992_s1 = inlined_call_operand.vmem [shape: f32[2,100,8], index: 1, kind: input, shape index: {}]   ;;  %s3993_s2 = inlined_call_operand.vmem [shape: f32[9,8,8], index: 2, kind: input, shape index: {}]   ;;  %s3994_s3 = inlined_call_operand.vmem [shape: f32[1,8], index: 3, kind: input, shape index: {}]   ;;  %s3995_s4 = inlined_call_operand.vmem [shape: f32[1,8], index: 4, kind: input, shape index: {}]   ;;  %s3996_s5 = inlined_call_operand.vmem [shape: f32[1,8], index: 5, kind: input, shape index: {}]   ;;  %s3997_s6 = inlined_call_operand.vmem [shape: f32[8,16], index: 6, kind: input, shape index: {}]   ;;  %s3998_s7 = inlined_call_operand.vmem [shape: f32[8,16], index: 7, kind: input, shape index: {}]   ;;  %s3999_s8 = inlined_call_operand.vmem [shape: f32[1,16], index: 8, kind: input, shape index: {}]   ;;  %s4000_s9 = inlined_call_operand.vmem [shape: f32[16,16], index: 9, kind: input, shape index: {}]   ;;  %s4001_s10 = inlined_call_operand.vmem [shape: f32[1,16], index: 10, kind: input, shape index: {}]   ;;  %s4002_s11 = inlined_call_operand.vmem [shape: f32[2,100,16], index: 11, kind: output, shape index: {}]  }
   0x1 LB: > { %s2398_s18 = sadd.s32 4294967295, %s2980_s17   ;;  %p2402_p0 = scmp.ge.s32.totalorder %s2980_s17, 1  ;;  %s2980_s17 = sphi %s3044_s17, %s21_s17  }
   0x2   : > { %p347_p1 = scmp.lt.s32.totalorder %s2980_s17, 3 }
   0x4   : > { %p348_p2 = pnand %p2402_p0, %p347_p1 }
   0x5   : > { %p392_p3 = scmp.lt.s32.totalorder (!%p348_p2), %s2398_s18, 1 }
   0x6   : > { %351 = sbr.rel (%p348_p2) target bundleno = 906 (0x38a), region = 64 }
   0xb   : > { %v2407_v0 = vld [vmem:[%s3993_s2 + $0x8] sm:$0xff]  ;;  %vm514_vm0 = vcmask 1043456   ;;  %v431_v1 = vld [vmem:[%s3993_s2] sm:$0xff]  ;;  %v2982_v2 = vmov 0.0   ;;  %v2430_v5 = vld [vmem:[%s3993_s2 + $0x18] sm:$0xff]  ;;  %vm2983_vm1 = vmmov 0  }
   0xc   : > { %2603 = vmatprep.subr.bf16.mxu0 %v2982_v2  ;;  %v435_v3 = vpack.c.bf16 %v2407_v0, %v2407_v0  ;;  %2633 = vmatprep.subr.bf16.mxu1 %v2982_v2  ;;  %v432_v4 = vpack.c.bf16 %v431_v1, %v431_v1  ;;  %s4004_s18 = smov (!%p392_p3, %s2398_s18), 1  ;;  %v869_v8 = vpack.c.bf16 %v2430_v5, %v2430_v5  ;;  %v2422_v9 = vld [vmem:[%s3993_s2 + $0x10] sm:$0xff]  ;;  %vm492_vm2 = vcmask 64512  }
   0xd   : > { %2605 = vmatprep.mubr.msk.bf16.mxu0 %vm2983_vm1, %v2982_v2  ;;  %2635 = vmatprep.mubr.msk.bf16.mxu1 %vm2983_vm1, %v2982_v2  ;;  %s2506_s25 = sshll.u32 %s4004_s18, 7  ;;  %v713_v23 = vpack.c.bf16 %v2422_v9, %v2422_v9  ;;  %vm436_vm3 = vsmask.f32 7424  ;;  %vm1497_vm4 = vsmask.f32 5376  ;;  %vm721_vm5 = vcmask 1046528  }
   0xe   : > { %v516_v6 = vsel %vm514_vm0, %v435_v3, 0  ;;  %v621_v7 = vsel %vm514_vm0, %v432_v4, 0  ;;  %s3076_s28 = scalar_lea.vmem %s3991_s0, %s2506_s25  ;;  %v912_v17 = vsel %vm514_vm0, %v869_v8, 0  ;;  %vm1209_vm6 = vcmask 1045504  }
   0xf   : > { %2604 = vmatpush3.bf16.msra.mxu0 %v516_v6  ;;  %2634 = vmatpush3.bf16.msra.mxu1 %v621_v7  ;;  %v408_v10 = vld [vmem:[%s3076_s28] sm:$0xff]  ;;  %v3084_v11 = vld [vmem:[%s3076_s28 + $0x8] sm:$0xff]  ;;  %v3087_v12 = vld [vmem:[%s3076_s28 + $0x10] sm:$0xff]  ;;  %v757_v29 = vsel %vm514_vm0, %v713_v23, 0  ;;  %vm1018_vm7 = vsmask.f32 6400 }
  0x10   : > { %2663 = vmatprep.subr.bf16.mxu0 %v2982_v2  ;;  %2693 = vmatprep.subr.bf16.mxu1 %v2982_v2  ;;  %v3090_v13 = vld [vmem:[%s3076_s28 + $0x18] sm:$0xff]  ;;  %v3093_v14 = vpack.c.bf16 %v3084_v11, %v408_v10  ;;  %v3096_v15 = vld [vmem:[%s3076_s28 + $0x20] sm:$0xff]  ;;  %v3099_v16 = vld [vmem:[%s3076_s28 + $0x28] sm:$0xff]  ;;  %v3222_v6 = vpack.c.bf16 %v3087_v12, %v3084_v11  ;;  %vm1664_vm8 = vcmask 1044480   ;;  %vm2194_vm9 = vcmask 130048  }
  0x11   : > { %v3104_v18 = vpack.c.bf16 %v3090_v13, %v3087_v12  ;;  %v3112_v21 = vpack.c.bf16 %v3099_v16, %v3096_v15  ;;  %v3124_v30 = vld [vmem:[%s3076_s28 + $0x30] sm:$0xff]  ;;  %v3127_v31 = vld [vmem:[%s3076_s28 + $0x38] sm:$0xff]  ;;  %v3146_v39 = vld [vmem:[%s3076_s28 + $0x40] sm:$0xff]  ;;  %v3226_v7 = vpack.c.bf16 %v3096_v15, %v3090_v13  ;;  %vm2329_vm10 = vcmask 125952  }
  0x12   : > { %v438_v19 = vshrl.u32 %v3093_v14, 16  ;;  %v440_v20 = vshll.u32 %v3093_v14, 16  ;;  %2636 = vmatmul.mubr.msk.bf16.vlgmr.msra.gmra.mxu1 %vm492_vm2, %v3093_v14  ;;  %v3135_v35 = vpack.c.bf16 %v3127_v31, %v3124_v30  ;;  %v3149_v40 = vld [vmem:[%s3076_s28 + $0x48] sm:$0xff]  ;;  %v3168_v47 = vld [vmem:[%s3076_s28 + $0x50] sm:$0xff]  ;;  %v3171_v48 = vld [vmem:[%s3076_s28 + $0x58] sm:$0xff]  ;;  %v877_v12 = vrot.slane %v3222_v6, 1 }
  0x13   : > { %v445_v22 = vshll.u32 %v3104_v18, 16  ;;  %2639 = vmatprep.mubr.msk.bf16.mxu1 %vm2983_vm1, %v2982_v2  ;;  %2694 = vmatpush3.bf16.msra.mxu1 %v912_v17  ;;  %v449_v27 = vshrl.u32 %v3104_v18, 16  ;;  %v453_v28 = vshll.u32 %v3112_v21, 16  ;;  %v457_v37 = vshrl.u32 %v3112_v21, 16  ;;  %v3190_v55 = vld [vmem:[%s3076_s28 + $0x60] sm:$0xff]  ;;  %v2446_v17 = vld [vmem:[%s3993_s2 + $0x28] sm:$0xff] }
  0x14   : > { %v442_v24 = vrot.slane %v440_v20, 1  ;;  %2753 = vmatprep.subr.bf16.mxu1 %v2982_v2  ;;  %v461_v38 = vshll.u32 %v3135_v35, 16  ;;  %v3158_v43 = vpack.c.bf16 %v3149_v40, %v3146_v39  ;;  %v465_v45 = vshrl.u32 %v3135_v35, 16  ;;  %v2438_v23 = vld [vmem:[%s3993_s2 + $0x20] sm:$0xff] }
  0x15   : > { %v447_v25 = vrot.slane %v445_v22, 1  ;;  %v455_v34 = vrot.slane %v453_v28, 1  ;;  %v3180_v51 = vpack.c.bf16 %v3171_v48, %v3168_v47  ;;  %v3199_v58 = vpack.c.bf16 %v3190_v55, %v3190_v55 }
  0x16   : > { %v443_v26 = vor.u32 %v442_v24, %v438_v19  ;;  %v463_v42 = vrot.slane %v461_v38, 1  ;;  %v469_v46 = vshll.u32 %v3158_v43, 16  ;;  %v473_v53 = vshrl.u32 %v3158_v43, 16 }
  0x17   : > { %v451_v33 = vor.u32 %v449_v27, %v447_v25  ;;  %v459_v41 = vor.u32 %v457_v37, %v455_v34  ;;  %v477_v54 = vshll.u32 %v3180_v51, 16  ;;  %v481_v60 = vshrl.u32 %v3180_v51, 16 }
  0x18   : > { %v448_v32 = vsel %vm436_vm3, %v443_v26, %v447_v25  ;;  %v467_v49 = vor.u32 %v465_v45, %v463_v42  ;;  %v471_v50 = vrot.slane %v469_v46, 1  ;;  %v485_v61 = vshll.u32 %v3199_v58, 16 }
  0x19   : > { %2606 = vmatmul.mubr.msk.bf16.vlgmr.msra.gmra.mxu0 %vm492_vm2, %v448_v32  ;;  %v456_v36 = vsel %vm436_vm3, %v451_v33, %v455_v34  ;;  %v464_v44 = vsel %vm436_vm3, %v459_v41, %v463_v42  ;;  %v479_v57 = vrot.slane %v477_v54, 1  ;;  %v1499_v0 = vrot.slane %v445_v22, 3 }
  0x1a   : > { %2664 = vmatpush3.bf16.msra.mxu0 %v757_v29  ;;  %2609 = vmatprep.mubr.msk.bf16.mxu0 %vm2983_vm1, %v2982_v2  ;;  %v472_v52 = vsel %vm436_vm3, %v467_v49, %v471_v50  ;;  %v475_v56 = vor.u32 %v473_v53, %v471_v50  ;;  %v487_v63 = vrot.slane %v485_v61, 1  ;;  %v1498_v1 = vrot.slane %v449_v27, 2 }
  0x1b   : > { %2640 = vmatmul.mubr.msk.bf16.gmra.mxu1 %vm492_vm2, %v3104_v18  ;;  %2723 = vmatprep.subr.bf16.mxu0 %v2982_v2  ;;  %v483_v62 = vor.u32 %v481_v60, %v479_v57  ;;  %v1502_v3 = vrot.slane %v453_v28, 3  ;;  %v1501_v4 = vrot.slane %v457_v37, 2  ;;  %v489_v10 = vshrl.u32 %v3199_v58, 16 }
  0x1c   : > { %2643 = vmatprep.mubr.msk.bf16.mxu1 %vm2983_vm1, %v2982_v2  ;;  %v480_v59 = vsel %vm436_vm3, %v475_v56, %v479_v57  ;;  %v1500_v8 = vor.u32 %v1499_v0, %v1498_v1  ;;  %v878_v13 = vrot.slane %v3226_v7, 1  ;;  %v1208_v19 = vpack.c.bf16 %v2446_v17, %v2446_v17  ;;  %v421_v56 = vld [vmem:[%s3076_s28 + $0x68] sm:$0xff] }
  0x1d   : > { %v488_v5 = vsel %vm436_vm3, %v483_v62, %v487_v63  ;;  %v1503_v9 = vor.u32 %v1502_v3, %v1501_v4  ;;  %v491_v15 = vor.u32 %v489_v10, %v487_v63  ;;  %v1505_v20 = vrot.slane %v465_v45, 2 }
  0x1e   : > { %v1506_v22 = vrot.slane %v461_v38, 3  ;;  %v879_v24 = vsel %vm721_vm5, %v877_v12, %v878_v13  ;;  %v3252_v25 = vpack.c.bf16 %v3124_v30, %v3099_v16  ;;  %v1245_v27 = vsel %vm514_vm0, %v1208_v19, 0 }
  0x1f   : > { %v3236_v11 = vsel %vm1497_vm4, %v1500_v8, %v1503_v9  ;;  %v722_v28 = vrot.slane %v3093_v14, 1  ;;  %v723_v29 = vrot.slane %v3104_v18, 1  ;;  %v1017_v33 = vpack.c.bf16 %v2438_v23, %v2438_v23 }
  0x20   : > { %v1507_v26 = vor.u32 %v1506_v22, %v1505_v20  ;;  %v880_v16 = vrot.slane %v3252_v25, 1  ;;  %v1509_v34 = vrot.slane %v473_v53, 2  ;;  %v1510_v14 = vrot.slane %v469_v46, 3 }
  0x21   : > { %2610 = vmatmul.mubr.msk.bf16.gmra.mxu0 %vm492_vm2, %v456_v36  ;;  %v724_v30 = vsel %vm721_vm5, %v722_v28, %v723_v29  ;;  %v1103_v36 = vsel %vm514_vm0, %v1017_v33, 0  ;;  %v3275_v38 = vpack.c.bf16 %v3146_v39, %v3127_v31  ;;  %v725_v42 = vrot.slane %v3112_v21, 1 }
  0x22   : > { %2613 = vmatprep.mubr.msk.bf16.mxu0 %vm2983_vm1, %v2982_v2  ;;  %v3261_v32 = vsel %vm1497_vm4, %v1503_v9, %v1507_v26  ;;  %v881_v37 = vsel %vm721_vm5, %v878_v13, %v880_v16  ;;  %v1511_v41 = vor.u32 %v1510_v14, %v1509_v34  ;;  %v1513_v45 = vrot.slane %v481_v60, 2 }
  0x23   : > { %2644 = vmatmul.mubr.msk.bf16.gmra.mxu1 %vm492_vm2, %v3112_v21  ;;  %v882_v31 = vrot.slane %v3275_v38, 1  ;;  %v726_v39 = vsel %vm721_vm5, %v723_v29, %v725_v42  ;;  %v1514_v46 = vrot.slane %v477_v54, 3  ;;  %v3297_v50 = vpack.c.bf16 %v3168_v47, %v3149_v40 }
  0x24   : > { %2647 = vmatprep.mubr.msk.bf16.mxu1 %vm2983_vm1, %v2982_v2  ;;  %v727_v53 = vrot.slane %v3135_v35, 1  ;;  %v3308_v54 = vpack.c.bf16 %v421_v56, %v3190_v55  ;;  %v1362_v61 = vrot.slane %v3180_v51, 2  ;;  %v3322_v3 = vpack.c.bf16 %v3190_v55, %v3171_v48  ;;  %v3341_v48 = vld [vmem:[%s3076_s28 + $0x70] sm:$0xff] }
  0x25   : > { %v883_v49 = vsel %vm721_vm5, %v880_v16, %v882_v31  ;;  %v884_v40 = vrot.slane %v3297_v50, 1  ;;  %v729_v8 = vrot.slane %v3158_v43, 1  ;;  %v1349_v10 = vpack.c.bf16 %v3341_v48, %v3341_v48  ;;  %v2462_v16 = vld [vmem:[%s3993_s2 + $0x38] sm:$0xff] }
  0x26   : > { %v1518_v47 = vshrl.u32 %v3308_v54, 16  ;;  %v728_v60 = vsel %vm721_vm5, %v725_v42, %v727_v53  ;;  %v1364_v62 = vrot.slane %v3308_v54, 2  ;;  %v886_v55 = vrot.slane %v3322_v3, 1 }
  0x27   : > { %v885_v1 = vsel %vm721_vm5, %v882_v31, %v884_v40  ;;  %v730_v17 = vsel %vm721_vm5, %v727_v53, %v729_v8  ;;  %v3349_v12 = vrot.slane %v1349_v10, 2  ;;  %v731_v20 = vrot.slane %v3180_v51, 1  ;;  %v2454_v31 = vld [vmem:[%s3993_s2 + $0x30] sm:$0xff] }
  0x28   : > { %v1520_v63 = vrot.slane %v1518_v47, 2  ;;  %v3327_v4 = vsel %vm1209_vm6, %v1362_v61, %v1364_v62  ;;  %v887_v13 = vsel %vm721_vm5, %v884_v40, %v886_v55  ;;  %v1020_v28 = vshrl.u32 %v3222_v6, 16 }
  0x29   : > { %2614 = vmatmul.mubr.msk.bf16.gmra.mxu0 %vm492_vm2, %v464_v44  ;;  %v3282_v44 = vsel %vm1497_vm4, %v1507_v26, %v1511_v41  ;;  %v3356_v19 = vsel %vm1209_vm6, %v1364_v62, %v3349_v12  ;;  %v732_v23 = vsel %vm721_vm5, %v729_v8, %v731_v20  ;;  %v733_v26 = vrot.slane %v3199_v58, 1 }
  0x2a   : > { %2617 = vmatprep.mubr.msk.bf16.mxu0 %vm2983_vm1, %v2982_v2  ;;  %v1023_v29 = vshll.u32 %v3222_v6, 16  ;;  %v1028_v33 = vshrl.u32 %v3226_v7, 16  ;;  %v1211_v34 = vrot.slane %v3226_v7, 2  ;;  %v1496_v14 = vpack.c.bf16 %v2462_v16, %v2462_v16 }
  0x2b   : > { %2648 = vmatmul.mubr.msk.bf16.gmra.mxu1 %vm492_vm2, %v3135_v35  ;;  %v1213_v53 = vrot.slane %v3252_v25, 2 }
  0x2c   : > { %2651 = vmatprep.mubr.msk.bf16.mxu1 %vm2983_vm1, %v2982_v2 }
  0x31   : > { %2618 = vmatmul.mubr.msk.bf16.gmra.mxu0 %vm492_vm2, %v472_v52  ;;  %v1515_v52 = vor.u32 %v1514_v46, %v1513_v45  ;;  %v1557_v45 = vsel %vm514_vm0, %v1496_v14, 0  ;;  %v1037_v46 = vshrl.u32 %v3252_v25, 16  ;;  %v1674_v14 = vrot.slane %v3308_v54, 3 }
  0x32   : > { %2621 = vmatprep.mubr.msk.bf16.mxu0 %vm2983_vm1, %v2982_v2 }
  0x33   : > { %2652 = vmatmul.mubr.msk.bf16.gmra.mxu1 %vm492_vm2, %v3158_v43  ;;  %v3305_v57 = vsel %vm1497_vm4, %v1511_v41, %v1515_v52  ;;  %v1030_v41 = vrot.slane %v1028_v33, 1  ;;  %v1039_v40 = vrot.slane %v1037_v46, 1  ;;  %v1067_v33 = vshll.u32 %v3322_v3, 16 }
  0x34   : > { %2655 = vmatprep.mubr.msk.bf16.mxu1 %vm2983_vm1, %v2982_v2 }
  0x39   : > { %2622 = vmatmul.mubr.msk.bf16.gmra.mxu0 %vm492_vm2, %v480_v59  ;;  %v1521_v59 = vshll.u32 %v3308_v54, 16 }
  0x3a   : > { %2625 = vmatprep.mubr.msk.bf16.mxu0 %vm2983_vm1, %v2982_v2 }
  0x3b   : > { %2656 = vmatmul.mubr.msk.bf16.gmra.mxu1 %vm492_vm2, %v3180_v51  ;;  %v1523_v0 = vrot.slane %v1521_v59, 3 }
  0x3c   : > { %2659 = vmatprep.mubr.msk.bf16.mxu1 %vm2983_vm1, %v2982_v2 }
  0x41   : > { %2626 = vmatmul.mubr.msk.bf16.gmra.mxu0 %vm492_vm2, %v488_v5  ;;  %v3329_v5 = vor.u32 %v1523_v0, %v1520_v63  ;;  %v1049_v63 = vshll.u32 %v3275_v38, 16  ;;  %v1215_v0 = vrot.slane %v3275_v38, 2 }
  0x42   : > { %2629 = vmatprep.mubr.msk.bf16.mxu0 %vm2983_vm1, %v2982_v2 }
  0x43   : > { %2660 = vmatmul.mubr.msk.bf16.gmra.mxu1 %vm492_vm2, %v3199_v58  ;;  %v3337_v9 = vsel %vm1497_vm4, %v1515_v52, %v3329_v5  ;;  %v1031_v58 = vshll.u32 %v3226_v7, 16  ;;  %v1352_v52 = vpack.c.bf16 %v2454_v31, %v2454_v31  ;;  %v1216_v10 = vsel %vm1209_vm6, %v1213_v53, %v1215_v0 }
  0x44   : > { %2695 = vmatprep.mubr.msk.bf16.mxu1 %vm2983_vm1, %v2982_v2 }
  0x45   : > { %v1033_v42 = vrot.slane %v1031_v58, 2  ;;  %v1390_v59 = vsel %vm514_vm0, %v1352_v52, 0  ;;  %v1355_v52 = vrot.slane %v3104_v18, 2 }
  0x47   : > { %v1034_v7 = vor.u32 %v1033_v42, %v1030_v41 }
  0x49   : > { %2630 = vmatmul.mubr.msk.bf16.gmra.mxu0 %vm492_vm2, %v491_v15  ;;  %v3352_v15 = vpack.c.bf16 %v421_v56, %v421_v56 }
  0x4a   : > { %2665 = vmatprep.mubr.msk.bf16.mxu0 %vm2983_vm1, %v2982_v2 }
  0x4b   : > { %2696 = vmatmul.mubr.msk.bf16.vlgmr.msra.gmra.mxu1 %vm492_vm2, %v879_v24  ;;  %v888_v22 = vrot.slane %v3352_v15, 1  ;;  %v1073_v41 = vshrl.u32 %v3352_v15, 16  ;;  %v1076_v42 = vshll.u32 %v3352_v15, 16  ;;  %v1221_v31 = vrot.slane %v3352_v15, 2  ;;  %v2470_v15 = vld [vmem:[%s3993_s2 + $0x40] sm:$0xff] }
  0x4c   : > { %2699 = vmatprep.mubr.msk.bf16.mxu1 %vm2983_vm1, %v2982_v2  ;;  %2754 = vmatpush3.bf16.msra.mxu1 %v1245_v27  ;;  %v734_v27 = vsel %vm721_vm5, %v731_v20, %v733_v26  ;;  %v1058_v20 = vshll.u32 %v3297_v50, 16 }
  0x4d   : > { %2813 = vmatprep.subr.bf16.mxu1 %v2982_v2  ;;  %v889_v24 = vsel %vm721_vm5, %v886_v55, %v888_v22  ;;  %v1051_v55 = vrot.slane %v1049_v63, 2 }
  0x51   : > { %2666 = vmatmul.mubr.msk.bf16.vlgmr.msra.gmra.mxu0 %vm492_vm2, %v724_v30  ;;  %v1210_v30 = vrot.slane %v3222_v6, 2 }
  0x52   : > { %2724 = vmatpush3.bf16.msra.mxu0 %v1103_v36  ;;  %2669 = vmatprep.mubr.msk.bf16.mxu0 %vm2983_vm1, %v2982_v2  ;;  %v1022_v36 = vrot.slane %v1020_v28, 1  ;;  %v423_v28 = vld [vmem:[%s3076_s28 + $0x78] sm:$0x3]  ;;  %s2963_s28 = smul.u32 104, %s4004_s18 }
  0x53   : > { %2700 = vmatmul.mubr.msk.bf16.gmra.mxu1 %vm492_vm2, %v881_v37  ;;  %2783 = vmatprep.subr.bf16.mxu0 %v2982_v2  ;;  %v1025_v37 = vrot.slane %v1023_v29, 2  ;;  %v3443_v58 = vpack.c.bf16 %v423_v28, %v3341_v48 }
  0x54   : > { %2703 = vmatprep.mubr.msk.bf16.mxu1 %vm2983_vm1, %v2982_v2  ;;  %s3657_s12 = scalar_lea.vmem %s3992_s1, %s2963_s28  ;;  %s3949_s13 = scalar_lea.vmem %s4002_s11, %s2963_s28 }
  0x55   : > { %v1026_v6 = vor.u32 %v1025_v37, %v1022_v36  ;;  %v1676_v36 = vrot.slane %v3443_v58, 3  ;;  %v1530_v63 = vshll.u32 %v3443_v58, 16 }
  0x57   : > { %v1035_v56 = vsel %vm1018_vm7, %v1026_v6, %v1034_v7  ;;  %v1078_v6 = vrot.slane %v1076_v42, 2 }
  0x59   : > { %2670 = vmatmul.mubr.msk.bf16.gmra.mxu0 %vm492_vm2, %v726_v39  ;;  %v1212_v39 = vsel %vm1209_vm6, %v1210_v30, %v1211_v34 }
  0x5a   : > { %2673 = vmatprep.mubr.msk.bf16.mxu0 %vm2983_vm1, %v2982_v2 }
  0x5b   : > { %2704 = vmatmul.mubr.msk.bf16.gmra.mxu1 %vm492_vm2, %v883_v49  ;;  %v1040_v49 = vshll.u32 %v3252_v25, 16  ;;  %v1046_v25 = vshrl.u32 %v3275_v38, 16  ;;  %v1217_v38 = vrot.slane %v3297_v50, 2 }
  0x5c   : > { %2707 = vmatprep.mubr.msk.bf16.mxu1 %vm2983_vm1, %v2982_v2 }
  0x5d   : > { %v1042_v47 = vrot.slane %v1040_v49, 2  ;;  %v1048_v8 = vrot.slane %v1046_v25, 1 }
  0x5f   : > { %v1043_v62 = vor.u32 %v1042_v47, %v1039_v40 }
  0x61   : > { %2674 = vmatmul.mubr.msk.bf16.gmra.mxu0 %vm492_vm2, %v728_v60  ;;  %v1214_v60 = vsel %vm1209_vm6, %v1211_v34, %v1213_v53  ;;  %v1069_v34 = vrot.slane %v1067_v33, 2  ;;  %v1356_v53 = vrot.slane %v3112_v21, 2 }
  0x62   : > { %2677 = vmatprep.mubr.msk.bf16.mxu0 %vm2983_vm1, %v2982_v2 }
  0x63   : > { %2708 = vmatmul.mubr.msk.bf16.gmra.mxu1 %vm492_vm2, %v885_v1  ;;  %v1044_v1 = vsel %vm1018_vm7, %v1034_v7, %v1043_v62  ;;  %v1357_v40 = vsel %vm1209_vm6, %v1355_v52, %v1356_v53  ;;  %v1665_v52 = vrot.slane %v3104_v18, 3  ;;  %v1668_v18 = vrot.slane %v3135_v35, 3 }
  0x64   : > { %2711 = vmatprep.mubr.msk.bf16.mxu1 %vm2983_vm1, %v2982_v2 }
  0x69   : > { %2678 = vmatmul.mubr.msk.bf16.gmra.mxu0 %vm492_vm2, %v730_v17  ;;  %v1052_v17 = vor.u32 %v1051_v55, %v1048_v8 }
  0x6a   : > { %2681 = vmatprep.mubr.msk.bf16.mxu0 %vm2983_vm1, %v2982_v2 }
  0x6b   : > { %2712 = vmatmul.mubr.msk.bf16.gmra.mxu1 %vm492_vm2, %v887_v13  ;;  %v1055_v13 = vshrl.u32 %v3297_v50, 16  ;;  %v1219_v50 = vrot.slane %v3322_v3, 2 }
  0x6c   : > { %2715 = vmatprep.mubr.msk.bf16.mxu1 %vm2983_vm1, %v2982_v2 }
  0x6d   : > { %v1220_v37 = vsel %vm1209_vm6, %v1217_v38, %v1219_v50  ;;  %v1222_v7 = vsel %vm1209_vm6, %v1219_v50, %v1221_v31 }
  0x71   : > { %2682 = vmatmul.mubr.msk.bf16.gmra.mxu0 %vm492_vm2, %v732_v23  ;;  %v1057_v23 = vrot.slane %v1055_v13, 1 }
  0x72   : > { %2685 = vmatprep.mubr.msk.bf16.mxu0 %vm2983_vm1, %v2982_v2 }
  0x73   : > { %2716 = vmatmul.mubr.msk.bf16.gmra.mxu1 %vm492_vm2, %v889_v24  ;;  %v1060_v24 = vrot.slane %v1058_v20, 2 }
  0x74   : > { %2719 = vmatprep.mubr.msk.bf16.mxu1 %vm2983_vm1, %v2982_v2 }
  0x75   : > { %v1061_v29 = vor.u32 %v1060_v24, %v1057_v23 }
  0x77   : > { %v1062_v30 = vsel %vm1018_vm7, %v1052_v17, %v1061_v29 }
  0x79   : > { %2686 = vmatmul.mubr.msk.bf16.gmra.mxu0 %vm492_vm2, %v734_v27  ;;  %v1064_v27 = vshrl.u32 %v3322_v3, 16  ;;  %v3454_v3 = vsel %vm1664_vm8, %v1674_v14, %v1676_v36 }
  0x7a   : > { %2689 = vmatprep.mubr.msk.bf16.mxu0 %vm2983_vm1, %v2982_v2 }
  0x7b   : > { %2720 = vmatmul.mubr.msk.bf16.gmra.mxu1 %vm492_vm2, %v888_v22  ;;  %v1053_v22 = vsel %vm1018_vm7, %v1043_v62, %v1052_v17  ;;  %v1066_v16 = vrot.slane %v1064_v27, 1 }
  0x7c   : > { %2755 = vmatprep.mubr.msk.bf16.mxu1 %vm2983_vm1, %v2982_v2 }
  0x7d   : > { %v1070_v48 = vor.u32 %v1069_v34, %v1066_v16 }
  0x81   : > { %2690 = vmatmul.mubr.msk.bf16.gmra.mxu0 %vm492_vm2, %v733_v26  ;;  %v1218_v26 = vsel %vm1209_vm6, %v1215_v0, %v1217_v38 }
  0x82   : > { %2725 = vmatprep.mubr.msk.bf16.mxu0 %vm2983_vm1, %v2982_v2 }
  0x83   : > { %2756 = vmatmul.mubr.msk.bf16.vlgmr.msra.gmra.mxu1 %vm492_vm2, %v1212_v39  ;;  %v1071_v39 = vsel %vm1018_vm7, %v1061_v29, %v1070_v48 }
  0x84   : > { %2759 = vmatprep.mubr.msk.bf16.mxu1 %vm2983_vm1, %v2982_v2  ;;  %2814 = vmatpush3.bf16.msra.mxu1 %v1557_v45  ;;  %v1075_v45 = vrot.slane %v1073_v41, 1 }
  0x85   : > { %2873 = vmatprep.subr.bf16.mxu1 %v2982_v2 }
  0x86   : > { %v1079_v46 = vor.u32 %v1078_v6, %v1075_v45 }
  0x88   : > { %v1080_v49 = vsel %vm1018_vm7, %v1070_v48, %v1079_v46 }
  0x89   : > { %2726 = vmatmul.mubr.msk.bf16.vlgmr.msra.gmra.mxu0 %vm492_vm2, %v1035_v56  ;;  %v1662_v56 = vpack.c.bf16 %v2470_v15, %v2470_v15 }
  0x8a   : > { %2784 = vmatpush3.bf16.msra.mxu0 %v1390_v59  ;;  %2729 = vmatprep.mubr.msk.bf16.mxu0 %vm2983_vm1, %v2982_v2  ;;  %v1358_v59 = vrot.slane %v3135_v35, 2  ;;  %v1670_v35 = vrot.slane %v3158_v43, 3 }
  0x8b   : > { %2760 = vmatmul.mubr.msk.bf16.gmra.mxu1 %vm492_vm2, %v1214_v60  ;;  %2843 = vmatprep.subr.bf16.mxu0 %v2982_v2  ;;  %v1700_v47 = vsel %vm514_vm0, %v1662_v56, 0  ;;  %v1360_v60 = vrot.slane %v3158_v43, 2  ;;  %v1672_v43 = vrot.slane %v3180_v51, 3 }
  0x8c   : > { %2763 = vmatprep.mubr.msk.bf16.mxu1 %vm2983_vm1, %v2982_v2 }
  0x8d   : > { %v1363_v0 = vsel %vm1209_vm6, %v1360_v60, %v1362_v61 }
  0x91   : > { %2730 = vmatmul.mubr.msk.bf16.gmra.mxu0 %vm492_vm2, %v1044_v1 }
  0x92   : > { %2733 = vmatprep.mubr.msk.bf16.mxu0 %vm2983_vm1, %v2982_v2 }
  0x93   : > { %2764 = vmatmul.mubr.msk.bf16.gmra.mxu1 %vm492_vm2, %v1216_v10  ;;  %v1532_v10 = vrot.slane %v1530_v63, 3 }
  0x94   : > { %2767 = vmatprep.mubr.msk.bf16.mxu1 %vm2983_vm1, %v2982_v2 }
  0x99   : > { %2734 = vmatmul.mubr.msk.bf16.gmra.mxu0 %vm492_vm2, %v1053_v22 }
  0x9a   : > { %2737 = vmatprep.mubr.msk.bf16.mxu0 %vm2983_vm1, %v2982_v2 }
  0x9b   : > { %2768 = vmatmul.mubr.msk.bf16.gmra.mxu1 %vm492_vm2, %v1218_v26 }
  0x9c   : > { %2771 = vmatprep.mubr.msk.bf16.mxu1 %vm2983_vm1, %v2982_v2 }
  0xa1   : > { %2738 = vmatmul.mubr.msk.bf16.gmra.mxu0 %vm492_vm2, %v1062_v30 }
  0xa2   : > { %2741 = vmatprep.mubr.msk.bf16.mxu0 %vm2983_vm1, %v2982_v2 }
  0xa3   : > { %2772 = vmatmul.mubr.msk.bf16.gmra.mxu1 %vm492_vm2, %v1220_v37 }
  0xa4   : > { %2775 = vmatprep.mubr.msk.bf16.mxu1 %vm2983_vm1, %v2982_v2 }
  0xa9   : > { %2742 = vmatmul.mubr.msk.bf16.gmra.mxu0 %vm492_vm2, %v1071_v39 }
  0xaa   : > { %2745 = vmatprep.mubr.msk.bf16.mxu0 %vm2983_vm1, %v2982_v2 }
  0xab   : > { %2776 = vmatmul.mubr.msk.bf16.gmra.mxu1 %vm492_vm2, %v1222_v7 }
  0xac   : > { %2779 = vmatprep.mubr.msk.bf16.mxu1 %vm2983_vm1, %v2982_v2 }
  0xb1   : > { %2746 = vmatmul.mubr.msk.bf16.gmra.mxu0 %vm492_vm2, %v1080_v49 }
  0xb2   : > { %2749 = vmatprep.mubr.msk.bf16.mxu0 %vm2983_vm1, %v2982_v2 }
  0xb3   : > { %2780 = vmatmul.mubr.msk.bf16.gmra.mxu1 %vm492_vm2, %v1221_v31 }
  0xb4   : > { %2815 = vmatprep.mubr.msk.bf16.mxu1 %vm2983_vm1, %v2982_v2 }
  0xb9   : > { %2750 = vmatmul.mubr.msk.bf16.gmra.mxu0 %vm492_vm2, %v1079_v46 }
  0xba   : > { %2785 = vmatprep.mubr.msk.bf16.mxu0 %vm2983_vm1, %v2982_v2 }
  0xbb   : > { %2816 = vmatmul.mubr.msk.bf16.vlgmr.msra.gmra.mxu1 %vm492_vm2, %v3236_v11  ;;  %v1359_v11 = vsel %vm1209_vm6, %v1356_v53, %v1358_v59  ;;  %v1666_v53 = vrot.slane %v3112_v21, 3 }
  0xbc   : > { %2819 = vmatprep.mubr.msk.bf16.mxu1 %vm2983_vm1, %v2982_v2 }
  0xc1   : > { %2786 = vmatmul.mubr.msk.bf16.vlgmr.msra.gmra.mxu0 %vm492_vm2, %v1357_v40 }
  0xc2   : > { %2844 = vmatpush3.bf16.msra.mxu0 %v1700_v47  ;;  %2789 = vmatprep.mubr.msk.bf16.mxu0 %vm2983_vm1, %v2982_v2 }
  0xc3   : > { %2820 = vmatmul.mubr.msk.bf16.gmra.mxu1 %vm492_vm2, %v3261_v32  ;;  %2903 = vmatprep.subr.bf16.mxu0 %v2982_v2  ;;  %v1361_v32 = vsel %vm1209_vm6, %v1358_v59, %v1360_v60  ;;  %v1667_v60 = vsel %vm1664_vm8, %v1665_v52, %v1666_v53 }
  0xc4   : > { %2823 = vmatprep.mubr.msk.bf16.mxu1 %vm2983_vm1, %v2982_v2 }
  0xc9   : > { %2790 = vmatmul.mubr.msk.bf16.gmra.mxu0 %vm492_vm2, %v1359_v11 }
  0xca   : > { %2793 = vmatprep.mubr.msk.bf16.mxu0 %vm2983_vm1, %v2982_v2 }
  0xcb   : > { %2824 = vmatmul.mubr.msk.bf16.gmra.mxu1 %vm492_vm2, %v3282_v44  ;;  %v1527_v44 = vshrl.u32 %v3443_v58, 16 }
  0xcc   : > { %2827 = vmatprep.mubr.msk.bf16.mxu1 %vm2983_vm1, %v2982_v2 }
  0xcd   : > { %v1529_v55 = vrot.slane %v1527_v44, 2 }
  0xcf   : > { %v1533_v61 = vor.u32 %v1532_v10, %v1529_v55  ;;  %v1669_v55 = vsel %vm1664_vm8, %v1666_v53, %v1668_v18 }
  0xd1   : > { %2794 = vmatmul.mubr.msk.bf16.gmra.mxu0 %vm492_vm2, %v1361_v32  ;;  %v1534_v27 = vsel %vm1497_vm4, %v3329_v5, %v1533_v61 }
  0xd2   : > { %2797 = vmatprep.mubr.msk.bf16.mxu0 %vm2983_vm1, %v2982_v2  ;;  %v657_v62 = vpop.f32.mrf.mxu1 }
  0xd3   : > { %2828 = vmatmul.mubr.msk.bf16.gmra.mxu1 %vm492_vm2, %v3305_v57 }
  0xd4   : > { %v2637_v25 = vpop.f32.mrf.mxu1  ;;  %2831 = vmatprep.mubr.msk.bf16.mxu1 %vm2983_vm1, %v2982_v2 }
  0xd6   : > { %v660_v1 = vpop.f32.mrf.mxu1 }
  0xd8   : > { %v2638_v8 = vpop.f32.mrf.mxu1 }
  0xd9   : > { %v552_v17 = vpop.f32.mrf.mxu0  ;;  %2798 = vmatmul.mubr.msk.bf16.gmra.mxu0 %vm492_vm2, %v1363_v0 }
  0xda   : > { %v3526_v57 = vadd.f32 %v657_v62, %v552_v17  ;;  %2801 = vmatprep.mubr.msk.bf16.mxu0 %vm2983_vm1, %v2982_v2 }
  0xdb   : > { %v2607_v13 = vpop.f32.mrf.mxu0  ;;  %v665_v20 = vpop.f32.mrf.mxu1  ;;  %2832 = vmatmul.mubr.msk.bf16.gmra.mxu1 %vm492_vm2, %v3337_v9 }
  0xdc   : > { %2835 = vmatprep.mubr.msk.bf16.mxu1 %vm2983_vm1, %v2982_v2 }
  0xdd   : > { %v555_v38 = vpop.f32.mrf.mxu0  ;;  %v2641_v22 = vpop.f32.mrf.mxu1 }
  0xde   : > { %v3534_v23 = vadd.f32 %v660_v1, %v555_v38 }
  0xdf   : > { %v2608_v24 = vpop.f32.mrf.mxu0  ;;  %v668_v26 = vpop.f32.mrf.mxu1 }
  0xe1   : > { %v560_v28 = vpop.f32.mrf.mxu0  ;;  %2802 = vmatmul.mubr.msk.bf16.gmra.mxu0 %vm492_vm2, %v3327_v4  ;;  %v2642_v29 = vpop.f32.mrf.mxu1 }
  0xe2   : > { %v3540_v33 = vadd.f32 %v665_v20, %v560_v28  ;;  %2805 = vmatprep.mubr.msk.bf16.mxu0 %vm2983_vm1, %v2982_v2  ;;  %v1671_v28 = vsel %vm1664_vm8, %v1668_v18, %v1670_v35 }
  0xe3   : > { %v2611_v9 = vpop.f32.mrf.mxu0  ;;  %v673_v50 = vpop.f32.mrf.mxu1  ;;  %2836 = vmatmul.mubr.msk.bf16.gmra.mxu1 %vm492_vm2, %v1534_v27 }
  0xe4   : > { %2839 = vmatprep.mubr.msk.bf16.mxu1 %vm2983_vm1, %v2982_v2 }
  0xe5   : > { %v563_v16 = vpop.f32.mrf.mxu0  ;;  %v2645_v30 = vpop.f32.mrf.mxu1 }
  0xe6   : > { %v3547_v5 = vadd.f32 %v668_v26, %v563_v16 }
  0xe7   : > { %v2612_v34 = vpop.f32.mrf.mxu0  ;;  %v676_v37 = vpop.f32.mrf.mxu1 }
  0xe9   : > { %v568_v4 = vpop.f32.mrf.mxu0  ;;  %2806 = vmatmul.mubr.msk.bf16.gmra.mxu0 %vm492_vm2, %v3356_v19  ;;  %v2646_v48 = vpop.f32.mrf.mxu1 }
  0xea   : > { %v3551_v41 = vadd.f32 %v673_v50, %v568_v4  ;;  %2809 = vmatprep.mubr.msk.bf16.mxu0 %vm2983_vm1, %v2982_v2 }
  0xeb   : > { %v2615_v42 = vpop.f32.mrf.mxu0  ;;  %v681_v31 = vpop.f32.mrf.mxu1  ;;  %2840 = vmatmul.mubr.msk.bf16.gmra.mxu1 %vm492_vm2, %v1533_v61 }
  0xec   : > { %2875 = vmatprep.mubr.msk.bf16.mxu1 %vm2983_vm1, %v2982_v2  ;;  %v1673_v42 = vsel %vm1664_vm8, %v1670_v35, %v1672_v43 }
  0xed   : > { %v571_v39 = vpop.f32.mrf.mxu0  ;;  %v2649_v45 = vpop.f32.mrf.mxu1 }
  0xee   : > { %v3558_v6 = vadd.f32 %v676_v37, %v571_v39  ;;  %v1909_v39 = vld [vmem:[%s3997_s6] sm:$0xff] }
  0xef   : > { %v2616_v7 = vpop.f32.mrf.mxu0  ;;  %v684_v46 = vpop.f32.mrf.mxu1 }
  0xf1   : > { %v576_v19 = vpop.f32.mrf.mxu0  ;;  %2810 = vmatmul.mubr.msk.bf16.gmra.mxu0 %vm492_vm2, %v3349_v12  ;;  %v2650_v49 = vpop.f32.mrf.mxu1 }
  0xf2   : > { %v3562_v15 = vadd.f32 %v681_v31, %v576_v19  ;;  %2845 = vmatprep.mubr.msk.bf16.mxu0 %vm2983_vm1, %v2982_v2  ;;  %v1918_v31 = vld [vmem:[%s3998_s7] sm:$0xff]  ;;  %v1910_v19 = vpack.c.bf16 %v1909_v39, %v1909_v39 }
  0xf3   : > { %v2619_v56 = vpop.f32.mrf.mxu0  ;;  %v689_v40 = vpop.f32.mrf.mxu1 }
  0xf4   : > { %v2054_v53 = vsel %vm514_vm0, %v1910_v19, 0 }
  0xf5   : > { %v579_v47 = vpop.f32.mrf.mxu0  ;;  %v2653_v59 = vpop.f32.mrf.mxu1 }
  0xf6   : > { %v3568_v11 = vadd.f32 %v684_v46, %v579_v47  ;;  %v1919_v46 = vpack.c.bf16 %v1918_v31, %v1918_v31 }
  0xf7   : > { %v2620_v32 = vpop.f32.mrf.mxu0  ;;  %v692_v12 = vpop.f32.mrf.mxu1 }
  0xf8   : > { %v1942_v52 = vsel %vm514_vm0, %v1919_v46, 0 }
  0xf9   : > { %v584_v62 = vpop.f32.mrf.mxu0  ;;  %2846 = vmatmul.mubr.msk.bf16.vlgmr.msra.gmra.mxu0 %vm492_vm2, %v1667_v60  ;;  %v2654_v25 = vpop.f32.mrf.mxu1  ;;  %2874 = vmatpush3.bf16.msra.mxu1 %v1942_v52 }
  0xfa   : > { %v3572_v44 = vadd.f32 %v689_v40, %v584_v62  ;;  %2849 = vmatprep.mubr.msk.bf16.mxu0 %vm2983_vm1, %v2982_v2  ;;  %2904 = vmatpush3.bf16.msra.mxu0 %v2054_v53  ;;  %v1675_v62 = vsel %vm1664_vm8, %v1672_v43, %v1674_v14 }
  0xfb   : > { %v2623_v21 = vpop.f32.mrf.mxu0  ;;  %v697_v63 = vpop.f32.mrf.mxu1  ;;  %2933 = vmatprep.subr.bf16.mxu1 %v2982_v2 }
  0xfd   : > { %v587_v0 = vpop.f32.mrf.mxu0  ;;  %v2657_v1 = vpop.f32.mrf.mxu1 }
  0xfe   : > { %v3577_v8 = vadd.f32 %v692_v12, %v587_v0 }
  0xff   : > { %v2624_v10 = vpop.f32.mrf.mxu0  ;;  %v700_v17 = vpop.f32.mrf.mxu1 }
 0x101   : > { %v592_v13 = vpop.f32.mrf.mxu0  ;;  %2850 = vmatmul.mubr.msk.bf16.gmra.mxu0 %vm492_vm2, %v1669_v55  ;;  %v2658_v20 = vpop.f32.mrf.mxu1 }
 0x102   : > { %v3581_v61 = vadd.f32 %v697_v63, %v592_v13  ;;  %2853 = vmatprep.mubr.msk.bf16.mxu0 %vm2983_vm1, %v2982_v2 }
 0x103   : > { %v2627_v38 = vpop.f32.mrf.mxu0  ;;  %v705_v22 = vpop.f32.mrf.mxu1 }
 0x105   : > { %v595_v24 = vpop.f32.mrf.mxu0  ;;  %v2661_v26 = vpop.f32.mrf.mxu1 }
 0x106   : > { %v3586_v27 = vadd.f32 %v700_v17, %v595_v24 }
 0x107   : > { %v2628_v29 = vpop.f32.mrf.mxu0  ;;  %v708_v9 = vpop.f32.mrf.mxu1 }
 0x109   : > { %v600_v50 = vpop.f32.mrf.mxu0  ;;  %2854 = vmatmul.mubr.msk.bf16.gmra.mxu0 %vm492_vm2, %v1671_v28  ;;  %v2662_v16 = vpop.f32.mrf.mxu1 }
 0x10a   : > { %v3590_v30 = vadd.f32 %v705_v22, %v600_v50  ;;  %2857 = vmatprep.mubr.msk.bf16.mxu0 %vm2983_vm1, %v2982_v2 }
 0x10b   : > { %v2631_v34 = vpop.f32.mrf.mxu0  ;;  %v948_v37 = vpop.f32.mrf.mxu1 }
 0x10d   : > { %v603_v4 = vpop.f32.mrf.mxu0  ;;  %v2697_v48 = vpop.f32.mrf.mxu1 }
 0x10f   : > { %v2632_v45 = vpop.f32.mrf.mxu0  ;;  %v951_v7 = vpop.f32.mrf.mxu1 }
 0x111   : > { %v793_v49 = vpop.f32.mrf.mxu0  ;;  %2858 = vmatmul.mubr.msk.bf16.gmra.mxu0 %vm492_vm2, %v1673_v42  ;;  %v2698_v51 = vpop.f32.mrf.mxu1 }
 0x112   : > { %v847_v56 = vadd.f32 %v793_v49, %v3526_v57  ;;  %2861 = vmatprep.mubr.msk.bf16.mxu0 %vm2983_vm1, %v2982_v2 }
 0x113   : > { %v2667_v40 = vpop.f32.mrf.mxu0  ;;  %v956_v47 = vpop.f32.mrf.mxu1 }
 0x114   : > { %v3609_v59 = vadd.f32 %v948_v37, %v847_v56  ;;  %v1837_v56 = vld [vmem:[%s3657_s12 + $0x8] sm:$0xff]  ;;  %v3664_v40 = vld [vmem:[%s3995_s4] ss:$0 sm:$0xff] }
 0x115   : > { %v796_v60 = vpop.f32.mrf.mxu0  ;;  %v2701_v32 = vpop.f32.mrf.mxu1 }
 0x116   : > { %v848_v12 = vadd.f32 %v796_v60, %v3534_v23  ;;  %v1857_v60 = vmul.f32 %v3664_v40, %v1837_v56 }
 0x117   : > { %v2668_v57 = vpop.f32.mrf.mxu0  ;;  %v959_v25 = vpop.f32.mrf.mxu1 }
 0x118   : > { %v3615_v18 = vadd.f32 %v951_v7, %v848_v12 }
 0x119   : > { %v801_v21 = vpop.f32.mrf.mxu0  ;;  %2862 = vmatmul.mubr.msk.bf16.gmra.mxu0 %vm492_vm2, %v1675_v62  ;;  %v2702_v63 = vpop.f32.mrf.mxu1  ;;  %v3673_v62 = vld [vmem:[%s3996_s5] ss:$0 sm:$0xff] }
 0x11a   : > { %v849_v0 = vadd.f32 %v801_v21, %v3540_v33  ;;  %2865 = vmatprep.mubr.msk.bf16.mxu0 %vm2983_vm1, %v2982_v2  ;;  %v1877_v21 = vadd.f32 %v3673_v62, %v1857_v60 }
 0x11b   : > { %v2671_v1 = vpop.f32.mrf.mxu0  ;;  %v964_v55 = vpop.f32.mrf.mxu1 }
 0x11c   : > { %v3621_v23 = vadd.f32 %v956_v47, %v849_v0 }
 0x11d   : > { %v804_v54 = vpop.f32.mrf.mxu0  ;;  %v2705_v10 = vpop.f32.mrf.mxu1 }
 0x11e   : > { %v850_v14 = vadd.f32 %v804_v54, %v3547_v5  ;;  %v1890_v54 = vmax.f32 %v1877_v21, 0.0 }
 0x11f   : > { %v2672_v17 = vpop.f32.mrf.mxu0  ;;  %v967_v13 = vpop.f32.mrf.mxu1 }
 0x120   : > { %v3624_v20 = vadd.f32 %v959_v25, %v850_v14 }
 0x121   : > { %v809_v35 = vpop.f32.mrf.mxu0  ;;  %2866 = vmatmul.mubr.msk.bf16.gmra.mxu0 %vm492_vm2, %v3454_v3  ;;  %v2706_v33 = vpop.f32.mrf.mxu1 }
 0x122   : > { %v851_v38 = vadd.f32 %v809_v35, %v3551_v41  ;;  %2869 = vmatprep.mubr.msk.bf16.mxu0 %vm2983_vm1, %v2982_v2 }
 0x123   : > { %v2675_v22 = vpop.f32.mrf.mxu0  ;;  %v972_v24 = vpop.f32.mrf.mxu1 }
 0x124   : > { %v3631_v26 = vadd.f32 %v964_v55, %v851_v38  ;;  %v1838_v38 = vld [vmem:[%s3657_s12 + $0x10] sm:$0xff]  ;;  %v1839_v22 = vld [vmem:[%s3657_s12 + $0x18] sm:$0xff] }
 0x125   : > { %v812_v28 = vpop.f32.mrf.mxu0  ;;  %v2709_v5 = vpop.f32.mrf.mxu1 }
 0x126   : > { %v852_v29 = vadd.f32 %v812_v28, %v3558_v6  ;;  %v1859_v28 = vmul.f32 %v3664_v40, %v1839_v22 }
 0x127   : > { %v2676_v9 = vpop.f32.mrf.mxu0  ;;  %v975_v50 = vpop.f32.mrf.mxu1 }
 0x128   : > { %v3634_v16 = vadd.f32 %v967_v13, %v852_v29 }
 0x129   : > { %v817_v43 = vpop.f32.mrf.mxu0  ;;  %2870 = vmatmul.mubr.msk.bf16.gmra.mxu0 %vm492_vm2, %v1676_v36  ;;  %v2710_v3 = vpop.f32.mrf.mxu1 }
 0x12a   : > { %v853_v41 = vadd.f32 %v817_v43, %v3562_v15  ;;  %2905 = vmatprep.mubr.msk.bf16.mxu0 %vm2983_vm1, %v2982_v2 }
 0x12b   : > { %v2679_v34 = vpop.f32.mrf.mxu0  ;;  %v980_v37 = vpop.f32.mrf.mxu1 }
 0x12c   : > { %v3642_v4 = vadd.f32 %v972_v24, %v853_v41  ;;  %v1858_v24 = vmul.f32 %v3664_v40, %v1838_v38 }
 0x12d   : > { %v820_v6 = vpop.f32.mrf.mxu0  ;;  %v2713_v48 = vpop.f32.mrf.mxu1 }
 0x12e   : > { %v854_v42 = vadd.f32 %v820_v6, %v3568_v11  ;;  %v1878_v9 = vadd.f32 %v3673_v62, %v1858_v24 }
 0x12f   : > { %v2680_v31 = vpop.f32.mrf.mxu0  ;;  %v983_v58 = vpop.f32.mrf.mxu1 }
 0x130   : > { %v3645_v39 = vadd.f32 %v975_v50, %v854_v42  ;;  %v1879_v50 = vadd.f32 %v3673_v62, %v1859_v28  ;;  %v1891_v34 = vmax.f32 %v1878_v9, 0.0 }
 0x131   : > { %v825_v36 = vpop.f32.mrf.mxu0  ;;  %v2714_v45 = vpop.f32.mrf.mxu1 }
 0x132   : > { %v855_v15 = vadd.f32 %v825_v36, %v3572_v44  ;;  %v1836_v44 = vld [vmem:[%s3657_s12] sm:$0xff]  ;;  %v1841_v45 = vld [vmem:[%s3657_s12 + $0x28] sm:$0xff] }
 0x133   : > { %v2683_v7 = vpop.f32.mrf.mxu0  ;;  %v988_v46 = vpop.f32.mrf.mxu1  ;;  %v1840_v36 = vld [vmem:[%s3657_s12 + $0x20] sm:$0xff] }
 0x134   : > { %v3648_v19 = vadd.f32 %v980_v37, %v855_v15  ;;  %v1892_v37 = vmax.f32 %v1879_v50, 0.0  ;;  %v1861_v15 = vmul.f32 %v3664_v40, %v1841_v45 }
 0x135   : > { %v828_v49 = vpop.f32.mrf.mxu0  ;;  %v2717_v51 = vpop.f32.mrf.mxu1 }
 0x136   : > { %v856_v52 = vadd.f32 %v828_v49, %v3577_v8  ;;  %v1856_v8 = vmul.f32 %v3664_v40, %v1836_v44  ;;  %v1912_v42 = vpack.c.bf16 %v1892_v37, %v1891_v34 }
 0x137   : > { %v2684_v11 = vpop.f32.mrf.mxu0  ;;  %v991_v53 = vpop.f32.mrf.mxu1 }
 0x138   : > { %v3666_v47 = vadd.f32 %v983_v58, %v856_v52  ;;  %v1876_v25 = vadd.f32 %v3673_v62, %v1856_v8  ;;  %v1881_v52 = vadd.f32 %v3673_v62, %v1861_v15 }
 0x139   : > { %v833_v32 = vpop.f32.mrf.mxu0  ;;  %v2718_v12 = vpop.f32.mrf.mxu1 }
 0x13a   : > { %v857_v57 = vadd.f32 %v833_v32, %v3581_v61  ;;  %v1889_v55 = vmax.f32 %v1876_v25, 0.0  ;;  %v1894_v8 = vmax.f32 %v1881_v52, 0.0 }
 0x13b   : > { %v2687_v63 = vpop.f32.mrf.mxu0  ;;  %v996_v0 = vpop.f32.mrf.mxu1 }
 0x13c   : > { %v3678_v1 = vadd.f32 %v988_v46, %v857_v57  ;;  %v1911_v13 = vpack.c.bf16 %v1890_v54, %v1889_v55  ;;  %v1842_v63 = vld [vmem:[%s3657_s12 + $0x30] sm:$0xff] }
 0x13d   : > { %v836_v10 = vpop.f32.mrf.mxu0  ;;  %v2721_v14 = vpop.f32.mrf.mxu1  ;;  %v1862_v55 = vmul.f32 %v3664_v40, %v1842_v63 }
 0x13e   : > { %v858_v17 = vadd.f32 %v836_v10, %v3586_v27  ;;  %2876 = vmatmul.mubr.msk.bf16.vlgmr.msra.gmra.mxu1 %vm492_vm2, %v1911_v13 }
 0x13f   : > { %v2688_v35 = vpop.f32.mrf.mxu0  ;;  %v999_v33 = vpop.f32.mrf.mxu1  ;;  %2879 = vmatprep.mubr.msk.bf16.mxu1 %vm2983_vm1, %v2982_v2 }
 0x140   : > { %v3683_v61 = vadd.f32 %v991_v53, %v858_v17  ;;  %v1882_v17 = vadd.f32 %v3673_v62, %v1862_v55 }
 0x141   : > { %v841_v5 = vpop.f32.mrf.mxu0  ;;  %v2722_v29 = vpop.f32.mrf.mxu1 }
 0x142   : > { %v859_v27 = vadd.f32 %v841_v5, %v3590_v30  ;;  %v1860_v30 = vmul.f32 %v3664_v40, %v1840_v36  ;;  %v1895_v22 = vmax.f32 %v1882_v17, 0.0 }
 0x143   : > { %v2691_v43 = vpop.f32.mrf.mxu0  ;;  %v1281_v3 = vpop.f32.mrf.mxu1 }
 0x144   : > { %v3693_v41 = vadd.f32 %v996_v0, %v859_v27  ;;  %v1880_v51 = vadd.f32 %v3673_v62, %v1860_v30  ;;  %v1843_v0 = vld [vmem:[%s3657_s12 + $0x38] sm:$0xff]  ;;  %v1844_v43 = vld [vmem:[%s3657_s12 + $0x40] sm:$0xff] }
 0x145   : > { %v844_v6 = vpop.f32.mrf.mxu0  ;;  %v2757_v48 = vpop.f32.mrf.mxu1  ;;  %v1863_v54 = vmul.f32 %v3664_v40, %v1843_v0  ;;  %v1864_v34 = vmul.f32 %v3664_v40, %v1844_v43 }
 0x146   : > { %2880 = vmatmul.mubr.msk.bf16.gmra.mxu1 %vm492_vm2, %v1912_v42  ;;  %v1893_v56 = vmax.f32 %v1880_v51, 0.0 }
 0x147   : > { %v2692_v31 = vpop.f32.mrf.mxu0  ;;  %v1284_v58 = vpop.f32.mrf.mxu1  ;;  %2883 = vmatprep.mubr.msk.bf16.mxu1 %vm2983_vm1, %v2982_v2  ;;  %v1883_v13 = vadd.f32 %v3673_v62, %v1863_v54  ;;  %v1884_v42 = vadd.f32 %v3673_v62, %v1864_v34 }
 0x148   : > { %v1913_v57 = vpack.c.bf16 %v1894_v8, %v1893_v56  ;;  %v1847_v56 = vld [vmem:[%s3657_s12 + $0x58] sm:$0xff] }
 0x149   : > { %v1139_v7 = vpop.f32.mrf.mxu0  ;;  %v2758_v46 = vpop.f32.mrf.mxu1  ;;  %v1896_v24 = vmax.f32 %v1883_v13, 0.0  ;;  %v1897_v30 = vmax.f32 %v1884_v42, 0.0 }
 0x14a   : > { %v1193_v49 = vadd.f32 %v1139_v7, %v3609_v59 }
 0x14b   : > { %v2727_v11 = vpop.f32.mrf.mxu0  ;;  %v1289_v53 = vpop.f32.mrf.mxu1  ;;  %v1914_v27 = vpack.c.bf16 %v1896_v24, %v1895_v22 }
 0x14c   : > { %v3705_v44 = vadd.f32 %v1281_v3, %v1193_v49  ;;  %v1845_v3 = vld [vmem:[%s3657_s12 + $0x48] sm:$0xff] }
 0x14d   : > { %v1142_v60 = vpop.f32.mrf.mxu0  ;;  %v2761_v32 = vpop.f32.mrf.mxu1  ;;  %v1865_v37 = vmul.f32 %v3664_v40, %v1845_v3 }
 0x14e   : > { %v1194_v12 = vadd.f32 %v1142_v60, %v3615_v18  ;;  %2884 = vmatmul.mubr.msk.bf16.gmra.mxu1 %vm492_vm2, %v1913_v57  ;;  %v1867_v60 = vmul.f32 %v3664_v40, %v1847_v56 }
 0x14f   : > { %v2728_v25 = vpop.f32.mrf.mxu0  ;;  %v1292_v21 = vpop.f32.mrf.mxu1  ;;  %2887 = vmatprep.mubr.msk.bf16.mxu1 %vm2983_vm1, %v2982_v2  ;;  %v1885_v31 = vadd.f32 %v3673_v62, %v1865_v37 }
 0x150   : > { %v3710_v59 = vadd.f32 %v1284_v58, %v1194_v12  ;;  %v1887_v25 = vadd.f32 %v3673_v62, %v1867_v60 }
 0x151   : > { %v1147_v10 = vpop.f32.mrf.mxu0  ;;  %v2762_v14 = vpop.f32.mrf.mxu1  ;;  %v1898_v15 = vmax.f32 %v1885_v31, 0.0 }
 0x152   : > { %v1195_v18 = vadd.f32 %v1147_v10, %v3621_v23  ;;  %v1900_v54 = vmax.f32 %v1887_v25, 0.0 }
 0x153   : > { %v2731_v35 = vpop.f32.mrf.mxu0  ;;  %v1297_v33 = vpop.f32.mrf.mxu1  ;;  %v1915_v51 = vpack.c.bf16 %v1898_v15, %v1897_v30  ;;  %v2184_v15 = vld [vmem:[%s4000_s9] sm:$0xff] }
 0x154   : > { %v3720_v38 = vadd.f32 %v1289_v53, %v1195_v18  ;;  %v1846_v53 = vld [vmem:[%s3657_s12 + $0x50] sm:$0xff] }
 0x155   : > { %v1150_v28 = vpop.f32.mrf.mxu0  ;;  %v2765_v5 = vpop.f32.mrf.mxu1  ;;  %v1866_v8 = vmul.f32 %v3664_v40, %v1846_v53 }
 0x156   : > { %v1196_v29 = vadd.f32 %v1150_v28, %v3624_v20  ;;  %2888 = vmatmul.mubr.msk.bf16.gmra.mxu1 %vm492_vm2, %v1914_v27 }
 0x157   : > { %v2732_v9 = vpop.f32.mrf.mxu0  ;;  %v1300_v50 = vpop.f32.mrf.mxu1  ;;  %2891 = vmatprep.mubr.msk.bf16.mxu1 %vm2983_vm1, %v2982_v2  ;;  %v1886_v57 = vadd.f32 %v3673_v62, %v1866_v8 }
 0x158   : > { %v3725_v23 = vadd.f32 %v1292_v21, %v1196_v29  ;;  %v1848_v29 = vld [vmem:[%s3657_s12 + $0x60] sm:$0xf] }
 0x159   : > { %v1155_v6 = vpop.f32.mrf.mxu0  ;;  %v2766_v48 = vpop.f32.mrf.mxu1  ;;  %v1899_v55 = vmax.f32 %v1886_v57, 0.0 }
 0x15a   : > { %v1197_v20 = vadd.f32 %v1155_v6, %v3631_v26 }
 0x15b   : > { %v2735_v58 = vpop.f32.mrf.mxu0  ;;  %v1305_v36 = vpop.f32.mrf.mxu1  ;;  %v1916_v17 = vpack.c.bf16 %v1900_v54, %v1899_v55 }
 0x15c   : > { %v3735_v45 = vadd.f32 %v1297_v33, %v1197_v20 }
 0x15d   : > { %v1158_v7 = vpop.f32.mrf.mxu0  ;;  %v2769_v46 = vpop.f32.mrf.mxu1 }
 0x15e   : > { %v1198_v49 = vadd.f32 %v1158_v7, %v3634_v16  ;;  %2892 = vmatmul.mubr.msk.bf16.gmra.mxu1 %vm492_vm2, %v1915_v51 }
 0x15f   : > { %v2736_v52 = vpop.f32.mrf.mxu0  ;;  %v1308_v11 = vpop.f32.mrf.mxu1  ;;  %2895 = vmatprep.mubr.msk.bf16.mxu1 %vm2983_vm1, %v2982_v2 }
 0x160   : > { %v3740_v26 = vadd.f32 %v1300_v50, %v1198_v49 }
 0x161   : > { %v1163_v32 = vpop.f32.mrf.mxu0  ;;  %v2770_v12 = vpop.f32.mrf.mxu1 }
 0x162   : > { %v1199_v16 = vadd.f32 %v1163_v32, %v3642_v4 }
 0x163   : > { %v2739_v21 = vpop.f32.mrf.mxu0  ;;  %v1313_v63 = vpop.f32.mrf.mxu1 }
 0x164   : > { %v3750_v0 = vadd.f32 %v1305_v36, %v1199_v16 }
 0x165   : > { %v1166_v10 = vpop.f32.mrf.mxu0  ;;  %v2773_v14 = vpop.f32.mrf.mxu1 }
 0x166   : > { %v1200_v18 = vadd.f32 %v1166_v10, %v3645_v39  ;;  %2896 = vmatmul.mubr.msk.bf16.gmra.mxu1 %vm492_vm2, %v1916_v17  ;;  %v1868_v39 = vmul.f32 %v3664_v40, %v1848_v29 }
 0x167   : > { %v2740_v13 = vpop.f32.mrf.mxu0  ;;  %v1316_v35 = vpop.f32.mrf.mxu1  ;;  %2899 = vmatprep.mubr.msk.bf16.mxu1 %vm2983_vm1, %v2982_v2 }
 0x168   : > { %v3753_v33 = vadd.f32 %v1308_v11, %v1200_v18  ;;  %v1888_v3 = vadd.f32 %v3673_v62, %v1868_v39 }
 0x169   : > { %v1171_v4 = vpop.f32.mrf.mxu0  ;;  %v2774_v22 = vpop.f32.mrf.mxu1 }
 0x16a   : > { %v1201_v24 = vadd.f32 %v1171_v4, %v3648_v19  ;;  %v1901_v48 = vmax.f32 %v1888_v3, 0.0 }
 0x16b   : > { %v2743_v28 = vpop.f32.mrf.mxu0  ;;  %v1321_v5 = vpop.f32.mrf.mxu1 }
 0x16c   : > { %v3760_v27 = vadd.f32 %v1313_v63, %v1201_v24  ;;  %v1917_v31 = vpack.c.bf16 %v1901_v48, %v1901_v48 }
 0x16d   : > { %v1174_v9 = vpop.f32.mrf.mxu0  ;;  %v2777_v50 = vpop.f32.mrf.mxu1 }
 0x16e   : > { %v1202_v43 = vadd.f32 %v1174_v9, %v3666_v47  ;;  %2900 = vmatmul.mubr.msk.bf16.gmra.mxu1 %vm492_vm2, %v1917_v31 }
 0x16f   : > { %v2744_v34 = vpop.f32.mrf.mxu0  ;;  %v1324_v37 = vpop.f32.mrf.mxu1  ;;  %2935 = vmatprep.mubr.msk.bf16.mxu1 %vm2983_vm1, %v2982_v2 }
 0x170   : > { %v3765_v6 = vadd.f32 %v1316_v35, %v1202_v43 }
 0x171   : > { %v1179_v20 = vpop.f32.mrf.mxu0  ;;  %v2778_v19 = vpop.f32.mrf.mxu1 }
 0x172   : > { %v1203_v42 = vadd.f32 %v1179_v20, %v3678_v1  ;;  %v2185_v1 = vld [vmem:[%s4000_s9 + $0x8] sm:$0xff] }
 0x173   : > { %v2747_v58 = vpop.f32.mrf.mxu0  ;;  %v1329_v36 = vpop.f32.mrf.mxu1  ;;  %v2186_v49 = vpack.c.bf16 %v2185_v1, %v2184_v15 }
 0x174   : > { %v3768_v30 = vadd.f32 %v1321_v5, %v1203_v42 }
 0x175   : > { %v1182_v40 = vpop.f32.mrf.mxu0  ;;  %v2781_v47 = vpop.f32.mrf.mxu1  ;;  %2934 = vmatpush3.bf16.msra.mxu1 %v2186_v49 }
 0x176   : > { %v1204_v62 = vadd.f32 %v1182_v40, %v3683_v61 }
 0x177   : > { %v2748_v7 = vpop.f32.mrf.mxu0  ;;  %v1332_v46 = vpop.f32.mrf.mxu1 }
 0x178   : > { %v3780_v51 = vadd.f32 %v1324_v37, %v1204_v62 }
 0x179   : > { %v1187_v52 = vpop.f32.mrf.mxu0  ;;  %v2782_v11 = vpop.f32.mrf.mxu1 }
 0x17a   : > { %v1205_v53 = vadd.f32 %v1187_v52, %v3693_v41 }
 0x17b   : > { %v2751_v56 = vpop.f32.mrf.mxu0  ;;  %v1593_v61 = vpop.f32.mrf.mxu1 }
 0x17c   : > { %v3783_v8 = vadd.f32 %v1329_v36, %v1205_v53 }
 0x17d   : > { %v1190_v60 = vpop.f32.mrf.mxu0  ;;  %v2817_v32 = vpop.f32.mrf.mxu1 }
 0x17f   : > { %v2752_v12 = vpop.f32.mrf.mxu0  ;;  %v3785_v16 = vpop.f32.mrf.mxu1 }
 0x181   : > { %v1426_v57 = vpop.f32.mrf.mxu0  ;;  %v2818_v25 = vpop.f32.mrf.mxu1 }
 0x182   : > { %v1480_v21 = vadd.f32 %v1426_v57, %v3705_v44 }
 0x183   : > { %v2787_v63 = vpop.f32.mrf.mxu0  ;;  %v1601_v55 = vpop.f32.mrf.mxu1 }
 0x184   : > { %v3788_v54 = vadd.f32 %v1593_v61, %v1480_v21 }
 0x185   : > { %v1429_v10 = vpop.f32.mrf.mxu0  ;;  %v2821_v14 = vpop.f32.mrf.mxu1 }
 0x187   : > { %v2788_v41 = vpop.f32.mrf.mxu0  ;;  %v3790_v18 = vpop.f32.mrf.mxu1 }
 0x189   : > { %v1434_v17 = vpop.f32.mrf.mxu0  ;;  %v2822_v13 = vpop.f32.mrf.mxu1 }
 0x18a   : > { %v1482_v35 = vadd.f32 %v1434_v17, %v3720_v38 }
 0x18b   : > { %v2791_v4 = vpop.f32.mrf.mxu0  ;;  %v1609_v22 = vpop.f32.mrf.mxu1 }
 0x18c   : > { %v3793_v24 = vadd.f32 %v1601_v55, %v1482_v35 }
 0x18d   : > { %v1437_v28 = vpop.f32.mrf.mxu0  ;;  %v2825_v5 = vpop.f32.mrf.mxu1 }
 0x18f   : > { %v2792_v44 = vpop.f32.mrf.mxu0  ;;  %v3795_v29 = vpop.f32.mrf.mxu1 }
 0x191   : > { %v1442_v39 = vpop.f32.mrf.mxu0  ;;  %v2826_v9 = vpop.f32.mrf.mxu1 }
 0x192   : > { %v1484_v50 = vadd.f32 %v1442_v39, %v3735_v45  ;;  %v3831_v9 = vld [vmem:[%s3994_s3] ss:$0 sm:$0xff] }
 0x193   : > { %v2795_v43 = vpop.f32.mrf.mxu0  ;;  %v1617_v3 = vpop.f32.mrf.mxu1 }
 0x194   : > { %v3798_v34 = vadd.f32 %v1609_v22, %v1484_v50 }
 0x195   : > { %v3800_v37 = vpop.f32.mrf.mxu0  ;;  %v2829_v38 = vpop.f32.mrf.mxu1 }
 0x197   : > { %v2796_v48 = vpop.f32.mrf.mxu0  ;;  %v3802_v20 = vpop.f32.mrf.mxu1 }
 0x199   : > { %v1450_v19 = vpop.f32.mrf.mxu0  ;;  %v2830_v42 = vpop.f32.mrf.mxu1 }
 0x19a   : > { %v1486_v31 = vadd.f32 %v1450_v19, %v3750_v0  ;;  %v1483_v19 = vadd.f32 %v1437_v28, %v3725_v23  ;;  %v1485_v23 = vadd.f32 %v3800_v37, %v3740_v26 }
 0x19b   : > { %v2799_v58 = vpop.f32.mrf.mxu0  ;;  %v1625_v36 = vpop.f32.mrf.mxu1 }
 0x19c   : > { %v3805_v40 = vadd.f32 %v1617_v3, %v1486_v31 }
 0x19d   : > { %v3807_v47 = vpop.f32.mrf.mxu0  ;;  %v2833_v45 = vpop.f32.mrf.mxu1 }
 0x19e   : > { %v1487_v26 = vadd.f32 %v3807_v47, %v3753_v33 }
 0x19f   : > { %v2800_v62 = vpop.f32.mrf.mxu0  ;;  %v3809_v15 = vpop.f32.mrf.mxu1 }
 0x1a1   : > { %v1458_v1 = vpop.f32.mrf.mxu0  ;;  %v2834_v7 = vpop.f32.mrf.mxu1 }
 0x1a2   : > { %v1488_v46 = vadd.f32 %v1458_v1, %v3760_v27 }
 0x1a3   : > { %v2803_v49 = vpop.f32.mrf.mxu0  ;;  %v1633_v52 = vpop.f32.mrf.mxu1 }
 0x1a4   : > { %v3812_v11 = vadd.f32 %v1625_v36, %v1488_v46  ;;  %v1650_v36 = vadd.f32 %v3790_v18, %v1483_v19 }
 0x1a5   : > { %v3814_v53 = vpop.f32.mrf.mxu0  ;;  %v2837_v0 = vpop.f32.mrf.mxu1 }
 0x1a6   : > { %v1652_v0 = vadd.f32 %v3795_v29, %v1485_v23  ;;  %v1489_v33 = vadd.f32 %v3814_v53, %v3765_v6 }
 0x1a7   : > { %v2804_v56 = vpop.f32.mrf.mxu0  ;;  %v3816_v61 = vpop.f32.mrf.mxu1 }
 0x1a9   : > { %v1466_v60 = vpop.f32.mrf.mxu0  ;;  %v2838_v32 = vpop.f32.mrf.mxu1 }
 0x1aa   : > { %v1490_v12 = vadd.f32 %v1466_v60, %v3768_v30  ;;  %v1481_v30 = vadd.f32 %v1429_v10, %v3710_v59 }
 0x1ab   : > { %v2807_v57 = vpop.f32.mrf.mxu0  ;;  %v1641_v25 = vpop.f32.mrf.mxu1 }
 0x1ac   : > { %v3819_v21 = vadd.f32 %v1633_v52, %v1490_v12  ;;  %v1648_v43 = vadd.f32 %v3785_v16, %v1481_v30 }
 0x1ad   : > { %v3821_v63 = vpop.f32.mrf.mxu0  ;;  %v2841_v27 = vpop.f32.mrf.mxu1 }
 0x1ae   : > { %v1491_v6 = vadd.f32 %v3821_v63, %v3780_v51 }
 0x1af   : > { %v2808_v55 = vpop.f32.mrf.mxu0  ;;  %v1644_v14 = vpop.f32.mrf.mxu1 }
 0x1b0   : > { %v1654_v14 = vadd.f32 %v3802_v20, %v1487_v26 }
 0x1b1   : > { %v1474_v41 = vpop.f32.mrf.mxu0  ;;  %v2842_v17 = vpop.f32.mrf.mxu1 }
 0x1b2   : > { %v1492_v13 = vadd.f32 %v1474_v41, %v3783_v8 }
 0x1b3   : > { %v2811_v35 = vpop.f32.mrf.mxu0 }
 0x1b4   : > { %v3824_v4 = vadd.f32 %v1641_v25, %v1492_v13 }
 0x1b5   : > { %v1477_v22 = vpop.f32.mrf.mxu0 }
 0x1b7   : > { %v2812_v5 = vpop.f32.mrf.mxu0 }
 0x1b9   : > { %v1736_v44 = vpop.f32.mrf.mxu0 }
 0x1ba   : > { %v1790_v39 = vadd.f32 %v1736_v44, %v3788_v54 }
 0x1bb   : > { %v2847_v50 = vpop.f32.mrf.mxu0 }
 0x1bc   : > { %v1810_v8 = vadd.f32 %v3831_v9, %v1790_v39  ;;  %v1656_v39 = vadd.f32 %v3809_v15, %v1489_v33 }
 0x1bd   : > { %v1739_v3 = vpop.f32.mrf.mxu0 }
 0x1be   : > { %v1791_v38 = vadd.f32 %v1739_v3, %v1648_v43  ;;  %v1823_v42 = vmax.f32 %v1810_v8, 0.0 }
 0x1bf   : > { %v2848_v48 = vpop.f32.mrf.mxu0 }
 0x1c0   : > { %v1811_v59 = vadd.f32 %v3831_v9, %v1791_v38 }
 0x1c1   : > { %v1744_v10 = vpop.f32.mrf.mxu0 }
 0x1c2   : > { %v1824_v54 = vmax.f32 %v1811_v59, 0.0  ;;  %v1792_v31 = vadd.f32 %v1744_v10, %v3793_v24  ;;  %v1658_v10 = vadd.f32 %v3816_v61, %v1491_v6 }
 0x1c3   : > { %v2851_v58 = vpop.f32.mrf.mxu0 }
 0x1c4   : > { %v1902_v45 = vpack.c.bf16 %v1824_v54, %v1823_v42  ;;  %v1812_v16 = vadd.f32 %v3831_v9, %v1792_v31 }
 0x1c5   : > { %v1747_v62 = vpop.f32.mrf.mxu0 }
 0x1c6   : > { %v1793_v1 = vadd.f32 %v1747_v62, %v1650_v36  ;;  %2906 = vmatmul.mubr.msk.bf16.vlgmr.msra.gmra.mxu0 %vm492_vm2, %v1902_v45  ;;  %v1825_v46 = vmax.f32 %v1812_v16, 0.0 }
 0x1c7   : > { %v2852_v7 = vpop.f32.mrf.mxu0  ;;  %2909 = vmatprep.mubr.msk.bf16.mxu0 %vm2983_vm1, %v2982_v2 }
 0x1c8   : > { %v1813_v28 = vadd.f32 %v3831_v9, %v1793_v1 }
 0x1c9   : > { %v1752_v24 = vpop.f32.mrf.mxu0 }
 0x1ca   : > { %v1826_v49 = vmax.f32 %v1813_v28, 0.0  ;;  %v1794_v18 = vadd.f32 %v1752_v24, %v3798_v34 }
 0x1cb   : > { %v2855_v52 = vpop.f32.mrf.mxu0 }
 0x1cc   : > { %v1903_v56 = vpack.c.bf16 %v1826_v49, %v1825_v46  ;;  %v1814_v32 = vadd.f32 %v3831_v9, %v1794_v18 }
 0x1cd   : > { %v1755_v60 = vpop.f32.mrf.mxu0 }
 0x1ce   : > { %v1795_v12 = vadd.f32 %v1755_v60, %v1652_v0  ;;  %2910 = vmatmul.mubr.msk.bf16.gmra.mxu0 %vm492_vm2, %v1903_v56  ;;  %v1827_v25 = vmax.f32 %v1814_v32, 0.0 }
 0x1cf   : > { %v2856_v57 = vpop.f32.mrf.mxu0  ;;  %2913 = vmatprep.mubr.msk.bf16.mxu0 %vm2983_vm1, %v2982_v2 }
 0x1d0   : > { %v1815_v37 = vadd.f32 %v3831_v9, %v1795_v12 }
 0x1d1   : > { %v1760_v34 = vpop.f32.mrf.mxu0 }
 0x1d2   : > { %v1828_v27 = vmax.f32 %v1815_v37, 0.0  ;;  %v1796_v29 = vadd.f32 %v1760_v34, %v3805_v40 }
 0x1d3   : > { %v2859_v55 = vpop.f32.mrf.mxu0 }
 0x1d4   : > { %v1904_v41 = vpack.c.bf16 %v1828_v27, %v1827_v25  ;;  %v1816_v13 = vadd.f32 %v3831_v9, %v1796_v29 }
 0x1d5   : > { %v1763_v17 = vpop.f32.mrf.mxu0 }
 0x1d6   : > { %v1797_v35 = vadd.f32 %v1763_v17, %v1654_v14  ;;  %2914 = vmatmul.mubr.msk.bf16.gmra.mxu0 %vm492_vm2, %v1904_v41  ;;  %v1829_v5 = vmax.f32 %v1816_v13, 0.0 }
 0x1d7   : > { %v2860_v22 = vpop.f32.mrf.mxu0  ;;  %2917 = vmatprep.mubr.msk.bf16.mxu0 %vm2983_vm1, %v2982_v2 }
 0x1d8   : > { %v1817_v47 = vadd.f32 %v3831_v9, %v1797_v35 }
 0x1d9   : > { %v1768_v40 = vpop.f32.mrf.mxu0 }
 0x1da   : > { %v1830_v30 = vmax.f32 %v1817_v47, 0.0  ;;  %v1798_v20 = vadd.f32 %v1768_v40, %v3812_v11 }
 0x1db   : > { %v2863_v44 = vpop.f32.mrf.mxu0 }
 0x1dc   : > { %v1905_v50 = vpack.c.bf16 %v1830_v30, %v1829_v5  ;;  %v1818_v3 = vadd.f32 %v3831_v9, %v1798_v20  ;;  %v3899_v20 = vld [vmem:[%s3999_s8] ss:$0 sm:$0xff] }
 0x1dd   : > { %v1771_v43 = vpop.f32.mrf.mxu0 }
 0x1de   : > { %v1799_v8 = vadd.f32 %v1771_v43, %v1656_v39  ;;  %2918 = vmatmul.mubr.msk.bf16.gmra.mxu0 %vm492_vm2, %v1905_v50  ;;  %v1831_v48 = vmax.f32 %v1818_v3, 0.0 }
 0x1df   : > { %v2864_v38 = vpop.f32.mrf.mxu0  ;;  %2921 = vmatprep.mubr.msk.bf16.mxu0 %vm2983_vm1, %v2982_v2 }
 0x1e0   : > { %v1819_v53 = vadd.f32 %v3831_v9, %v1799_v8 }
 0x1e1   : > { %v1776_v11 = vpop.f32.mrf.mxu0 }
 0x1e2   : > { %v1832_v19 = vmax.f32 %v1819_v53, 0.0  ;;  %v1800_v15 = vadd.f32 %v1776_v11, %v3819_v21 }
 0x1e3   : > { %v2867_v59 = vpop.f32.mrf.mxu0 }
 0x1e4   : > { %v1906_v42 = vpack.c.bf16 %v1832_v19, %v1831_v48  ;;  %v1820_v31 = vadd.f32 %v3831_v9, %v1800_v15 }
 0x1e5   : > { %v1779_v54 = vpop.f32.mrf.mxu0 }
 0x1e6   : > { %v1801_v58 = vadd.f32 %v1779_v54, %v1658_v10  ;;  %2922 = vmatmul.mubr.msk.bf16.gmra.mxu0 %vm492_vm2, %v1906_v42  ;;  %v1833_v45 = vmax.f32 %v1820_v31, 0.0 }
 0x1e7   : > { %v2868_v36 = vpop.f32.mrf.mxu0  ;;  %2925 = vmatprep.mubr.msk.bf16.mxu0 %vm2983_vm1, %v2982_v2 }
 0x1e8   : > { %v1821_v51 = vadd.f32 %v3831_v9, %v1801_v58 }
 0x1e9   : > { %v1784_v63 = vpop.f32.mrf.mxu0 }
 0x1ea   : > { %v1834_v62 = vmax.f32 %v1821_v51, 0.0  ;;  %v1802_v21 = vadd.f32 %v1784_v63, %v3824_v4 }
 0x1eb   : > { %v2871_v16 = vpop.f32.mrf.mxu0 }
 0x1ec   : > { %v1907_v61 = vpack.c.bf16 %v1834_v62, %v1833_v45  ;;  %v1822_v1 = vadd.f32 %v3831_v9, %v1802_v21 }
 0x1ed   : > { %v1787_v7 = vpop.f32.mrf.mxu0 }
 0x1ee   : > { %2926 = vmatmul.mubr.msk.bf16.gmra.mxu0 %vm492_vm2, %v1907_v61  ;;  %v1835_v28 = vmax.f32 %v1822_v1, 0.0 }
 0x1ef   : > { %v2872_v23 = vpop.f32.mrf.mxu0  ;;  %2929 = vmatprep.mubr.msk.bf16.mxu0 %vm2983_vm1, %v2982_v2 }
 0x1f0   : > { %v1908_v24 = vpack.c.bf16 %v1835_v28, %v1835_v28 }
 0x1f6   : > { %2930 = vmatmul.mubr.msk.bf16.gmra.mxu0 %vm492_vm2, %v1908_v24 }
 0x1fe   : > { %v1978_v46 = vpop.f32.mrf.mxu1 }
 0x200   : > { %v2877_v49 = vpop.f32.mrf.mxu1 }
 0x202   : > { %v1981_v18 = vpop.f32.mrf.mxu1 }
 0x204   : > { %v2878_v52 = vpop.f32.mrf.mxu1 }
 0x206   : > { %v1986_v4 = vpop.f32.mrf.mxu1 }
 0x208   : > { %v2881_v0 = vpop.f32.mrf.mxu1 }
 0x20a   : > { %v1989_v56 = vpop.f32.mrf.mxu1 }
 0x20c   : > { %v2882_v60 = vpop.f32.mrf.mxu1 }
 0x20e   : > { %v1994_v9 = vpop.f32.mrf.mxu1 }
 0x210   : > { %v2885_v32 = vpop.f32.mrf.mxu1 }
 0x212   : > { %v1997_v12 = vpop.f32.mrf.mxu1 }
 0x214   : > { %v2886_v57 = vpop.f32.mrf.mxu1 }
 0x216   : > { %v2002_v26 = vpop.f32.mrf.mxu1 }
 0x218   : > { %v2889_v37 = vpop.f32.mrf.mxu1 }
 0x21a   : > { %v2005_v34 = vpop.f32.mrf.mxu1 }
 0x21c   : > { %v2890_v25 = vpop.f32.mrf.mxu1 }
 0x21e   : > { %v3886_v27 = vpop.f32.mrf.mxu1 }
 0x220   : > { %v2893_v29 = vpop.f32.mrf.mxu1 }
 0x222   : > { %v3888_v55 = vpop.f32.mrf.mxu1 }
 0x224   : > { %v2894_v14 = vpop.f32.mrf.mxu1 }
 0x226   : > { %v3890_v41 = vpop.f32.mrf.mxu1 }
 0x228   : > { %v2897_v17 = vpop.f32.mrf.mxu1 }
 0x22a   : > { %v3892_v13 = vpop.f32.mrf.mxu1 }
 0x22c   : > { %v2898_v35 = vpop.f32.mrf.mxu1 }
 0x22e   : > { %v3894_v22 = vpop.f32.mrf.mxu1 }
 0x230   : > { %v2901_v33 = vpop.f32.mrf.mxu1 }
 0x232   : > { %v2029_v47 = vpop.f32.mrf.mxu1 }
 0x234   : > { %v2902_v40 = vpop.f32.mrf.mxu1 }
 0x286   : > { %v2090_v5 = vpop.f32.mrf.mxu0 }
 0x287   : > { %v2091_v30 = vadd.f32 %v2090_v5, %v1978_v46 }
 0x288   : > { %v2907_v44 = vpop.f32.mrf.mxu0 }
 0x289   : > { %v2151_v50 = vadd.f32 %v3899_v20, %v2091_v30 }
 0x28a   : > { %v2093_v39 = vpop.f32.mrf.mxu0 }
 0x28b   : > { %v2094_v43 = vadd.f32 %v2093_v39, %v1981_v18  ;;  %v2164_v6 = vmax.f32 %v2151_v50, 0.0 }
 0x28c   : > { %v2908_v3 = vpop.f32.mrf.mxu0 }
 0x28d   : > { %v2152_v8 = vadd.f32 %v3899_v20, %v2094_v43 }
 0x28e   : > { %v2098_v38 = vpop.f32.mrf.mxu0 }
 0x28f   : > { %v2165_v53 = vmax.f32 %v2152_v8, 0.0  ;;  %v2099_v11 = vadd.f32 %v2098_v38, %v1986_v4 }
 0x290   : > { %v2911_v48 = vpop.f32.mrf.mxu0 }
 0x291   : > { %v2177_v19 = vpack.c.bf16 %v2165_v53, %v2164_v6  ;;  %v2153_v59 = vadd.f32 %v3899_v20, %v2099_v11 }
 0x292   : > { %v2101_v15 = vpop.f32.mrf.mxu0 }
 0x293   : > { %v2102_v10 = vadd.f32 %v2101_v15, %v1989_v56  ;;  %2936 = vmatmul.mubr.msk.bf16.vlgmr.msra.gmra.mxu1 %vm2194_vm9, %v2177_v19  ;;  %v2166_v58 = vmax.f32 %v2153_v59, 0.0  ;;  %v3941_v19 = vld [vmem:[%s4001_s10] ss:$0 sm:$0xff] }
 0x294   : > { %v2912_v42 = vpop.f32.mrf.mxu0  ;;  %2939 = vmatprep.mubr.msk.bf16.mxu1 %vm2983_vm1, %v2982_v2 }
 0x295   : > { %v2154_v54 = vadd.f32 %v3899_v20, %v2102_v10 }
 0x296   : > { %v2106_v31 = vpop.f32.mrf.mxu0 }
 0x297   : > { %v2167_v36 = vmax.f32 %v2154_v54, 0.0  ;;  %v2107_v51 = vadd.f32 %v2106_v31, %v1994_v9 }
 0x298   : > { %v2915_v63 = vpop.f32.mrf.mxu0 }
 0x299   : > { %v2178_v45 = vpack.c.bf16 %v2167_v36, %v2166_v58  ;;  %v2155_v21 = vadd.f32 %v3899_v20, %v2107_v51 }
 0x29a   : > { %v2109_v62 = vpop.f32.mrf.mxu0 }
 0x29b   : > { %v2110_v16 = vadd.f32 %v2109_v62, %v1997_v12  ;;  %2940 = vmatmul.mubr.msk.bf16.gmra.mxu1 %vm2194_vm9, %v2178_v45  ;;  %v2168_v23 = vmax.f32 %v2155_v21, 0.0 }
 0x29c   : > { %v2916_v61 = vpop.f32.mrf.mxu0  ;;  %2943 = vmatprep.mubr.msk.bf16.mxu1 %vm2983_vm1, %v2982_v2 }
 0x29d   : > { %v2156_v1 = vadd.f32 %v3899_v20, %v2110_v16 }
 0x29e   : > { %v2114_v7 = vpop.f32.mrf.mxu0 }
 0x29f   : > { %v2169_v28 = vmax.f32 %v2156_v1, 0.0  ;;  %v2115_v24 = vadd.f32 %v2114_v7, %v2002_v26 }
 0x2a0   : > { %v2919_v46 = vpop.f32.mrf.mxu0 }
 0x2a1   : > { %v2179_v49 = vpack.c.bf16 %v2169_v28, %v2168_v23  ;;  %v2157_v52 = vadd.f32 %v3899_v20, %v2115_v24 }
 0x2a2   : > { %v2117_v18 = vpop.f32.mrf.mxu0 }
 0x2a3   : > { %v2118_v4 = vadd.f32 %v2117_v18, %v2005_v34  ;;  %2944 = vmatmul.mubr.msk.bf16.gmra.mxu1 %vm2194_vm9, %v2179_v49  ;;  %v2170_v9 = vmax.f32 %v2157_v52, 0.0 }
 0x2a4   : > { %v2920_v0 = vpop.f32.mrf.mxu0  ;;  %2947 = vmatprep.mubr.msk.bf16.mxu1 %vm2983_vm1, %v2982_v2 }
 0x2a5   : > { %v2158_v56 = vadd.f32 %v3899_v20, %v2118_v4 }
 0x2a6   : > { %v2122_v60 = vpop.f32.mrf.mxu0 }
 0x2a7   : > { %v2171_v32 = vmax.f32 %v2158_v56, 0.0  ;;  %v2123_v12 = vadd.f32 %v2122_v60, %v3886_v27 }
 0x2a8   : > { %v2923_v57 = vpop.f32.mrf.mxu0 }
 0x2a9   : > { %v2180_v26 = vpack.c.bf16 %v2171_v32, %v2170_v9  ;;  %v2159_v25 = vadd.f32 %v3899_v20, %v2123_v12 }
 0x2aa   : > { %v2125_v37 = vpop.f32.mrf.mxu0 }
 0x2ab   : > { %v2126_v34 = vadd.f32 %v2125_v37, %v3888_v55  ;;  %2948 = vmatmul.mubr.msk.bf16.gmra.mxu1 %vm2194_vm9, %v2180_v26  ;;  %v2172_v35 = vmax.f32 %v2159_v25, 0.0 }
 0x2ac   : > { %v2924_v29 = vpop.f32.mrf.mxu0  ;;  %2951 = vmatprep.mubr.msk.bf16.mxu1 %vm2983_vm1, %v2982_v2 }
 0x2ad   : > { %v2160_v14 = vadd.f32 %v3899_v20, %v2126_v34 }
 0x2ae   : > { %v2130_v17 = vpop.f32.mrf.mxu0 }
 0x2af   : > { %v2173_v33 = vmax.f32 %v2160_v14, 0.0  ;;  %v2131_v27 = vadd.f32 %v2130_v17, %v3890_v41 }
 0x2b0   : > { %v2927_v47 = vpop.f32.mrf.mxu0 }
 0x2b1   : > { %v2181_v40 = vpack.c.bf16 %v2173_v33, %v2172_v35  ;;  %v2161_v30 = vadd.f32 %v3899_v20, %v2131_v27 }
 0x2b2   : > { %v2133_v5 = vpop.f32.mrf.mxu0 }
 0x2b3   : > { %v2134_v55 = vadd.f32 %v2133_v5, %v3892_v13  ;;  %2952 = vmatmul.mubr.msk.bf16.gmra.mxu1 %vm2194_vm9, %v2181_v40  ;;  %v2174_v43 = vmax.f32 %v2161_v30, 0.0 }
 0x2b4   : > { %v2928_v44 = vpop.f32.mrf.mxu0  ;;  %2955 = vmatprep.mubr.msk.bf16.mxu1 %vm2983_vm1, %v2982_v2 }
 0x2b5   : > { %v2162_v39 = vadd.f32 %v3899_v20, %v2134_v55 }
 0x2b6   : > { %v2138_v50 = vpop.f32.mrf.mxu0 }
 0x2b7   : > { %v2175_v3 = vmax.f32 %v2162_v39, 0.0  ;;  %v2139_v41 = vadd.f32 %v2138_v50, %v3894_v22 }
 0x2b8   : > { %v2931_v8 = vpop.f32.mrf.mxu0 }
 0x2b9   : > { %v2182_v38 = vpack.c.bf16 %v2175_v3, %v2174_v43  ;;  %v2163_v6 = vadd.f32 %v3899_v20, %v2139_v41 }
 0x2ba   : > { %v2141_v53 = vpop.f32.mrf.mxu0 }
 0x2bb   : > { %2956 = vmatmul.mubr.msk.bf16.gmra.mxu1 %vm2194_vm9, %v2182_v38  ;;  %v2176_v11 = vmax.f32 %v2163_v6, 0.0 }
 0x2bc   : > { %v2932_v13 = vpop.f32.mrf.mxu0  ;;  %2959 = vmatprep.mubr.msk.bf16.mxu1 %vm2983_vm1, %v2982_v2 }
 0x2bd   : > { %v2183_v48 = vpack.c.bf16 %v2176_v11, %v2176_v11 }
 0x2c3   : > { %2960 = vmatmul.mubr.msk.bf16.gmra.mxu1 %vm2194_vm9, %v2183_v48 }
 0x353   : > { %v2250_v22 = vpop.f32.mrf.mxu1 }
 0x354   : > { %v2251_v15 = vadd.f32 %v3941_v19, %v2250_v22 }
 0x355   : > { %v2937_v2 = vpop.f32.mrf.mxu1 }
 0x356   : > { %v2304_v20 = vmax.f32 %v2251_v15, 0.0 }
 0x357   : > { %v2253_v59 = vpop.f32.mrf.mxu1 }
 0x358   : > { %2317 = vst.msk [vmem:[%s3949_s13] sm:$0xff] %vm2194_vm9, %v2304_v20  ;;  %v2254_v10 = vadd.f32 %v3941_v19, %v2253_v59 }
 0x359   : > { %v2938_v42 = vpop.f32.mrf.mxu1 }
 0x35a   : > { %v2305_v54 = vmax.f32 %v2254_v10, 0.0 }
 0x35b   : > { %v2258_v31 = vpop.f32.mrf.mxu1 }
 0x35c   : > { %2318 = vst.msk [vmem:[%s3949_s13 + $0x8] sm:$0xff] %vm2194_vm9, %v2305_v54  ;;  %v2259_v58 = vadd.f32 %v3941_v19, %v2258_v31 }
 0x35d   : > { %v2941_v36 = vpop.f32.mrf.mxu1 }
 0x35e   : > { %v2306_v51 = vmax.f32 %v2259_v58, 0.0 }
 0x35f   : > { %v2261_v63 = vpop.f32.mrf.mxu1 }
 0x360   : > { %2319 = vst.msk [vmem:[%s3949_s13 + $0x10] sm:$0xff] %vm2194_vm9, %v2306_v51  ;;  %v2262_v45 = vadd.f32 %v3941_v19, %v2261_v63 }
 0x361   : > { %v2942_v62 = vpop.f32.mrf.mxu1 }
 0x362   : > { %v2307_v21 = vmax.f32 %v2262_v45, 0.0 }
 0x363   : > { %v2266_v16 = vpop.f32.mrf.mxu1 }
 0x364   : > { %2320 = vst.msk [vmem:[%s3949_s13 + $0x18] sm:$0xff] %vm2194_vm9, %v2307_v21  ;;  %v2267_v61 = vadd.f32 %v3941_v19, %v2266_v16 }
 0x365   : > { %v2945_v1 = vpop.f32.mrf.mxu1 }
 0x366   : > { %v2308_v7 = vmax.f32 %v2267_v61, 0.0 }
 0x367   : > { %v2269_v23 = vpop.f32.mrf.mxu1 }
 0x368   : > { %2321 = vst.msk [vmem:[%s3949_s13 + $0x20] sm:$0xff] %vm2194_vm9, %v2308_v7  ;;  %v2270_v28 = vadd.f32 %v3941_v19, %v2269_v23 }
 0x369   : > { %v2946_v24 = vpop.f32.mrf.mxu1 }
 0x36a   : > { %v2309_v46 = vmax.f32 %v2270_v28, 0.0 }
 0x36b   : > { %v2274_v49 = vpop.f32.mrf.mxu1 }
 0x36c   : > { %2322 = vst.msk [vmem:[%s3949_s13 + $0x28] sm:$0xff] %vm2194_vm9, %v2309_v46  ;;  %v2275_v18 = vadd.f32 %v3941_v19, %v2274_v49 }
 0x36d   : > { %v2949_v52 = vpop.f32.mrf.mxu1 }
 0x36e   : > { %v2310_v4 = vmax.f32 %v2275_v18, 0.0 }
 0x36f   : > { %v2277_v0 = vpop.f32.mrf.mxu1 }
 0x370   : > { %2323 = vst.msk [vmem:[%s3949_s13 + $0x30] sm:$0xff] %vm2194_vm9, %v2310_v4  ;;  %v2278_v56 = vadd.f32 %v3941_v19, %v2277_v0 }
 0x371   : > { %v2950_v60 = vpop.f32.mrf.mxu1 }
 0x372   : > { %v2311_v9 = vmax.f32 %v2278_v56, 0.0 }
 0x373   : > { %v2282_v32 = vpop.f32.mrf.mxu1 }
 0x374   : > { %2324 = vst.msk [vmem:[%s3949_s13 + $0x38] sm:$0xff] %vm2194_vm9, %v2311_v9  ;;  %v2283_v12 = vadd.f32 %v3941_v19, %v2282_v32 }
 0x375   : > { %v2953_v57 = vpop.f32.mrf.mxu1 }
 0x376   : > { %v2312_v26 = vmax.f32 %v2283_v12, 0.0 }
 0x377   : > { %v2285_v37 = vpop.f32.mrf.mxu1 }
 0x378   : > { %2325 = vst.msk [vmem:[%s3949_s13 + $0x40] sm:$0xff] %vm2194_vm9, %v2312_v26  ;;  %v2286_v25 = vadd.f32 %v3941_v19, %v2285_v37 }
 0x379   : > { %v2954_v34 = vpop.f32.mrf.mxu1 }
 0x37a   : > { %v2313_v29 = vmax.f32 %v2286_v25, 0.0 }
 0x37b   : > { %v2290_v14 = vpop.f32.mrf.mxu1 }
 0x37c   : > { %2326 = vst.msk [vmem:[%s3949_s13 + $0x48] sm:$0xff] %vm2194_vm9, %v2313_v29  ;;  %v2291_v17 = vadd.f32 %v3941_v19, %v2290_v14 }
 0x37d   : > { %v2957_v35 = vpop.f32.mrf.mxu1 }
 0x37e   : > { %v2314_v33 = vmax.f32 %v2291_v17, 0.0 }
 0x37f   : > { %v2293_v27 = vpop.f32.mrf.mxu1 }
 0x380   : > { %2327 = vst.msk [vmem:[%s3949_s13 + $0x50] sm:$0xff] %vm2194_vm9, %v2314_v33  ;;  %v2294_v47 = vadd.f32 %v3941_v19, %v2293_v27 }
 0x381   : > { %v2958_v40 = vpop.f32.mrf.mxu1 }
 0x382   : > { %v2315_v5 = vmax.f32 %v2294_v47, 0.0 }
 0x383   : > { %v2298_v30 = vpop.f32.mrf.mxu1 }
 0x384   : > { %2328 = vst.msk [vmem:[%s3949_s13 + $0x58] sm:$0xff] %vm2194_vm9, %v2315_v5  ;;  %v2299_v55 = vadd.f32 %v3941_v19, %v2298_v30 }
 0x385   : > { %v2961_v44 = vpop.f32.mrf.mxu1 }
 0x386   : > { %v2316_v39 = vmax.f32 %v2299_v55, 0.0 }
 0x387   : > { %v2301_v50 = vpop.f32.mrf.mxu1 }
 0x388   : > { %2330 = vst.msk [vmem:[%s3949_s13 + $0x60] sm:$0xf] %vm2329_vm10, %v2316_v39 }
 0x389   : > { %v2962_v43 = vpop.f32.mrf.mxu1 }
 0x38a PF: > { %s21_s17 = sadd.s32 1, %s2980_s17  }
 0x38b   : > { %p18_p4 = scmp.ge.s32.totalorder %s21_s17, 4  }
 0x38d   :  { %20 = sbr.rel (!%p18_p4) target bundleno = 1 (0x1), region = 105 }

// kernel: _lambda_.13
= control target key start
LH: loop header
LB: loop body
LE: loop exit
PB: predicated region body
PF: predicated region fallthrough
CT: control target
= control target key end

     0   :  { %s1911_s17 = smov 0   ;;  %s2275_s0 = inlined_call_operand.vmem [shape: f32[2,50,16], index: 0, kind: input, shape index: {}]   ;;  %s2276_s1 = inlined_call_operand.vmem [shape: f32[2,36,16], index: 1, kind: input, shape index: {}]   ;;  %s2277_s2 = inlined_call_operand.vmem [shape: f32[9,16,16], index: 2, kind: input, shape index: {}]   ;;  %s2278_s3 = inlined_call_operand.vmem [shape: f32[1,16], index: 3, kind: input, shape index: {}]   ;;  %s2279_s4 = inlined_call_operand.vmem [shape: f32[1,16], index: 4, kind: input, shape index: {}]   ;;  %s2280_s5 = inlined_call_operand.vmem [shape: f32[1,16], index: 5, kind: input, shape index: {}]   ;;  %s2281_s6 = inlined_call_operand.vmem [shape: f32[16,32], index: 6, kind: input, shape index: {}]   ;;  %s2282_s7 = inlined_call_operand.vmem [shape: f32[16,32], index: 7, kind: input, shape index: {}]   ;;  %s2283_s8 = inlined_call_operand.vmem [shape: f32[1,32], index: 8, kind: input, shape index: {}]   ;;  %s2284_s9 = inlined_call_operand.vmem [shape: f32[32,32], index: 9, kind: input, shape index: {}]   ;;  %s2285_s10 = inlined_call_operand.vmem [shape: f32[1,32], index: 10, kind: input, shape index: {}]   ;;  %s2286_s11 = inlined_call_operand.vmem [shape: f32[2,36,32], index: 11, kind: output, shape index: {}]  }
   0x1 LB: > { %s1543_s18 = sadd.s32 4294967295, %s1847_s17   ;;  %p1547_p0 = scmp.ge.s32.totalorder %s1847_s17, 1  ;;  %s1847_s17 = sphi %s1911_s17, %s21_s17  }
   0x2   : > { %p347_p1 = scmp.lt.s32.totalorder %s1847_s17, 3 }
   0x4   : > { %p348_p2 = pnand %p1547_p0, %p347_p1 }
   0x5   : > { %p392_p3 = scmp.lt.s32.totalorder (!%p348_p2), %s1543_s18, 1 }
   0x6   : > { %351 = sbr.rel (%p348_p2) target bundleno = 746 (0x2ea), region = 64 }
   0xb   : > { %v1551_v0 = vld [vmem:[%s2277_s2 + $0x10] sm:$0xff]  ;;  %v1552_v1 = vld [vmem:[%s2277_s2 + $0x18] sm:$0xff]  ;;  %v418_v2 = vld [vmem:[%s2277_s2] sm:$0xff]  ;;  %v1849_v3 = vmov 0.0   ;;  %vm1850_vm0 = vmmov 0   ;;  %s2288_s18 = smov (!%p392_p3, %s1543_s18), 1 }
   0xc   : > { %1659 = vmatprep.subr.bf16.mxu0 %v1849_v3  ;;  %v424_v4 = vpack.c.bf16 %v1552_v1, %v1551_v0  ;;  %1673 = vmatprep.subr.bf16.mxu1 %v1849_v3  ;;  %v419_v5 = vld [vmem:[%s2277_s2 + $0x8] sm:$0xff]  ;;  %s1829_s27 = smul.u32 56, %s2288_s18  ;;  %v1564_v7 = vld [vmem:[%s2277_s2 + $0x30] sm:$0xff]  ;;  %v1565_v8 = vld [vmem:[%s2277_s2 + $0x38] sm:$0xff]  ;;  %vm449_vm1 = vcmask 130048   ;;  %vm666_vm3 = vcmask 1044480  }
   0xd   : > { %v420_v6 = vpack.c.bf16 %v419_v5, %v418_v2  ;;  %1661 = vmatprep.mubr.msk.bf16.mxu0 %vm1850_vm0, %v1849_v3  ;;  %1675 = vmatprep.mubr.msk.bf16.mxu1 %vm1850_vm0, %v1849_v3  ;;  %v664_v12 = vpack.c.bf16 %v1565_v8, %v1564_v7  ;;  %v1559_v21 = vld [vmem:[%s2277_s2 + $0x20] sm:$0xff]  ;;  %v1560_v22 = vld [vmem:[%s2277_s2 + $0x28] sm:$0xff]  ;;  %vm425_vm2 = vsmask.f32 7424  ;;  %v1574_v44 = vld [vmem:[%s2277_s2 + $0x50] sm:$0xff]  ;;  %vm584_vm4 = vcmask 1046528  }
   0xe   : > { %1660 = vmatpush3.bf16.msra.mxu0 %v424_v4  ;;  %s1951_s15 = scalar_lea.vmem %s2275_s0, %s1829_s27  ;;  %v580_v26 = vpack.c.bf16 %v1560_v22, %v1559_v21  ;;  %v1575_v45 = vld [vmem:[%s2277_s2 + $0x58] sm:$0xff]  ;;  %v1569_v51 = vld [vmem:[%s2277_s2 + $0x40] sm:$0xff]  ;;  %v1570_v52 = vld [vmem:[%s2277_s2 + $0x48] sm:$0xff]  ;;  %vm746_vm5 = vsmask.f32 4352  ;;  %vm917_vm7 = vcmask 1045504  }
   0xf   : > { %1674 = vmatpush3.bf16.msra.mxu1 %v420_v6  ;;  %1687 = vmatprep.subr.bf16.mxu0 %v1849_v3  ;;  %v408_v9 = vld [vmem:[%s1951_s15] sm:$0xff]  ;;  %v1955_v10 = vld [vmem:[%s1951_s15 + $0x8] sm:$0xff]  ;;  %v1958_v11 = vld [vmem:[%s1951_s15 + $0x10] sm:$0xff]  ;;  %v839_v48 = vpack.c.bf16 %v1575_v45, %v1574_v44  ;;  %v745_v55 = vpack.c.bf16 %v1570_v52, %v1569_v51  ;;  %vm998_vm6 = vsmask.f32 5376  ;;  %s1830_s14 = smul.u32 40, %s2288_s18 }
  0x10   : > { %1701 = vmatprep.subr.bf16.mxu1 %v1849_v3  ;;  %v411_v13 = vld [vmem:[%s1951_s15 + $0x18] sm:$0xff]  ;;  %v1962_v14 = vpack.c.bf16 %v1955_v10, %v408_v9  ;;  %v412_v15 = vld [vmem:[%s1951_s15 + $0x20] sm:$0xff]  ;;  %v414_v32 = vld [vmem:[%s1951_s15 + $0x30] sm:$0x3]  ;;  %v2088_v1 = vpack.c.bf16 %v1958_v11, %v1955_v10  ;;  %vm1399_vm8 = vcmask 261120   ;;  %vm1474_vm9 = vcmask 257024  }
  0x11   : > { %v1966_v16 = vpack.c.bf16 %v411_v13, %v1958_v11  ;;  %v1972_v19 = vpack.c.bf16 %v412_v15, %v412_v15  ;;  %v2005_v33 = vld [vmem:[%s1951_s15 + $0x28] sm:$0xff]  ;;  %v2008_v35 = vpack.c.bf16 %v412_v15, %v411_v13  ;;  %v1584_v59 = vld [vmem:[%s2277_s2 + $0x70] sm:$0xff]  ;;  %v1585_v60 = vld [vmem:[%s2277_s2 + $0x78] sm:$0xff]  ;;  %s401_s19 = scalar_lea.vmem %s2276_s1, %s1830_s14  ;;  %s406_s24 = scalar_lea.vmem %s2286_s11, %s1830_s14 }
  0x12   : > { %v427_v17 = vshrl.u32 %v1962_v14, 16  ;;  %v429_v18 = vshll.u32 %v1962_v14, 16  ;;  %1676 = vmatmul.mubr.msk.bf16.vlgmr.msra.gmra.mxu1 %vm449_vm1, %v1962_v14  ;;  %v2011_v36 = vpack.c.bf16 %v414_v32, %v2005_v33  ;;  %v667_v41 = vrot.slane %v1962_v14, 3  ;;  %v1579_v8 = vld [vmem:[%s2277_s2 + $0x60] sm:$0xff]  ;;  %v1580_v9 = vld [vmem:[%s2277_s2 + $0x68] sm:$0xff] }
  0x13   : > { %v434_v20 = vshll.u32 %v1966_v16, 16  ;;  %1679 = vmatprep.mubr.msk.bf16.mxu1 %vm1850_vm0, %v1849_v3  ;;  %1702 = vmatpush3.bf16.msra.mxu1 %v664_v12  ;;  %v438_v27 = vshrl.u32 %v1966_v16, 16  ;;  %v442_v28 = vshll.u32 %v1972_v19, 16  ;;  %v1099_v37 = vrot.slane %v2008_v35, 3  ;;  %v1191_v51 = vld [vmem:[%s401_s19 + $0x8] sm:$0xff] }
  0x14   : > { %v431_v23 = vrot.slane %v429_v18, 1  ;;  %1729 = vmatprep.subr.bf16.mxu1 %v1849_v3  ;;  %v1101_v38 = vrot.slane %v2011_v36, 3  ;;  %v446_v39 = vshrl.u32 %v1972_v19, 16  ;;  %v668_v42 = vrot.slane %v1966_v16, 3  ;;  %v1595_v52 = vld [vmem:[%s2279_s4] ss:$0 sm:$0xff] }
  0x15   : > { %v436_v24 = vrot.slane %v434_v20, 1  ;;  %v444_v31 = vrot.slane %v442_v28, 1  ;;  %v660_v47 = vpack.c.bf16 %v2005_v33, %v412_v15  ;;  %v585_v49 = vrot.slane %v1962_v14, 1 }
  0x16   : > { %v432_v25 = vor.u32 %v431_v23, %v427_v17  ;;  %v2024_v40 = vsel %vm666_vm3, %v1099_v37, %v1101_v38  ;;  %v669_v46 = vsel %vm666_vm3, %v667_v41, %v668_v42  ;;  %v586_v50 = vrot.slane %v1966_v16, 1 }
  0x17   : > { %v440_v30 = vor.u32 %v438_v27, %v436_v24  ;;  %v448_v43 = vor.u32 %v446_v39, %v444_v31  ;;  %v670_v53 = vrot.slane %v660_v47, 3  ;;  %v588_v57 = vrot.slane %v1972_v19, 1  ;;  %v1590_v39 = vld [vmem:[%s2277_s2 + $0x88] sm:$0xff] }
  0x18   : > { %v437_v29 = vsel %vm425_vm2, %v432_v25, %v436_v24  ;;  %v587_v54 = vsel %vm584_vm4, %v585_v49, %v586_v50  ;;  %v747_v61 = vrot.slane %v427_v17, 3  ;;  %v748_v62 = vrot.slane %v429_v18, 4 }
  0x19   : > { %1662 = vmatmul.mubr.msk.bf16.vlgmr.msra.gmra.mxu0 %vm449_vm1, %v437_v29  ;;  %v445_v34 = vsel %vm425_vm2, %v440_v30, %v444_v31  ;;  %v671_v56 = vsel %vm666_vm3, %v668_v42, %v670_v53  ;;  %v589_v58 = vsel %vm584_vm4, %v586_v50, %v588_v57  ;;  %v751_v63 = vrot.slane %v434_v20, 4  ;;  %v1190_v50 = vld [vmem:[%s401_s19] sm:$0xff] }
  0x1a   : > { %1688 = vmatpush3.bf16.msra.mxu0 %v580_v26  ;;  %1665 = vmatprep.mubr.msk.bf16.mxu0 %vm1850_vm0, %v1849_v3  ;;  %v750_v0 = vrot.slane %v438_v27, 3  ;;  %v997_v2 = vpack.c.bf16 %v1585_v60, %v1584_v59  ;;  %v749_v4 = vor.u32 %v748_v62, %v747_v61  ;;  %v755_v6 = vshrl.u32 %v660_v47, 16  ;;  %v1192_v61 = vld [vmem:[%s401_s19 + $0x10] sm:$0xff]  ;;  %v1193_v62 = vld [vmem:[%s401_s19 + $0x18] sm:$0xff] }
  0x1b   : > { %1680 = vmatmul.mubr.msk.bf16.gmra.mxu1 %vm449_vm1, %v1966_v16  ;;  %1715 = vmatprep.subr.bf16.mxu0 %v1849_v3  ;;  %v758_v7 = vshll.u32 %v660_v47, 16  ;;  %v913_v11 = vpack.c.bf16 %v1580_v9, %v1579_v8  ;;  %v999_v15 = vshrl.u32 %v2088_v1, 16  ;;  %v1002_v16 = vshll.u32 %v2088_v1, 16 }
  0x1c   : > { %1683 = vmatprep.mubr.msk.bf16.mxu1 %vm1850_vm0, %v1849_v3  ;;  %v752_v5 = vor.u32 %v751_v63, %v750_v0  ;;  %v757_v12 = vrot.slane %v755_v6, 3  ;;  %v1006_v17 = vshrl.u32 %v2008_v35, 16  ;;  %v1009_v18 = vshll.u32 %v2008_v35, 16 }
  0x1d   : > { %v760_v13 = vrot.slane %v758_v7, 4  ;;  %v835_v20 = vpack.c.bf16 %v2005_v33, %v2005_v33  ;;  %v1001_v21 = vrot.slane %v999_v15, 2  ;;  %v1004_v22 = vrot.slane %v1002_v16, 3  ;;  %v1194_v7 = vld [vmem:[%s401_s19 + $0x20] sm:$0xf]  ;;  %v1388_v15 = vld [vmem:[%s2284_s9 + $0x10] sm:$0xff] }
  0x1e   : > { %v753_v10 = vsel %vm746_vm5, %v749_v4, %v752_v5  ;;  %v1008_v23 = vrot.slane %v1006_v17, 2  ;;  %v1011_v24 = vrot.slane %v1009_v18, 3  ;;  %v1015_v27 = vshrl.u32 %v2011_v36, 16  ;;  %v1389_v16 = vld [vmem:[%s2284_s9 + $0x18] sm:$0xff] }
  0x1f   : > { %v761_v14 = vor.u32 %v760_v13, %v757_v12  ;;  %v1005_v25 = vor.u32 %v1004_v22, %v1001_v21  ;;  %v1018_v28 = vshll.u32 %v2011_v36, 16  ;;  %v918_v32 = vrot.slane %v2088_v1, 2  ;;  %v1228_v36 = vld [vmem:[%s2281_s6 + $0x8] sm:$0xff] }
  0x20   : > { %v1012_v26 = vor.u32 %v1011_v24, %v1008_v23  ;;  %v1017_v30 = vrot.slane %v1015_v27, 2  ;;  %v919_v33 = vrot.slane %v2008_v35, 2  ;;  %v921_v45 = vrot.slane %v835_v20, 2 }
  0x21   : > { %1666 = vmatmul.mubr.msk.bf16.gmra.mxu0 %vm449_vm1, %v445_v34  ;;  %v1020_v31 = vrot.slane %v1018_v28, 3  ;;  %v1589_v34 = vld [vmem:[%s2277_s2 + $0x80] sm:$0xff]  ;;  %v1098_v47 = vrot.slane %v2088_v1, 3  ;;  %v1204_v63 = vmul.f32 %v1595_v52, %v1192_v61  ;;  %v1205_v0 = vmul.f32 %v1595_v52, %v1193_v62 }
  0x22   : > { %1669 = vmatprep.mubr.msk.bf16.mxu0 %vm1850_vm0, %v1849_v3  ;;  %v1013_v29 = vsel %vm998_vm6, %v1005_v25, %v1012_v26  ;;  %v920_v42 = vsel %vm917_vm7, %v918_v32, %v919_v33  ;;  %v1206_v8 = vmul.f32 %v1595_v52, %v1194_v7  ;;  %v1391_v17 = vpack.c.bf16 %v1389_v16, %v1388_v15 }
  0x23   : > { %1684 = vmatmul.mubr.msk.bf16.gmra.mxu1 %vm449_vm1, %v1972_v19  ;;  %v762_v19 = vsel %vm746_vm5, %v752_v5, %v761_v14  ;;  %v1021_v41 = vor.u32 %v1020_v31, %v1017_v30 }
  0x24   : > { %1703 = vmatprep.mubr.msk.bf16.mxu1 %vm1850_vm0, %v1849_v3 }
  0x25   : > { %v1022_v44 = vsel %vm998_vm6, %v1012_v26, %v1021_v41 }
  0x29   : > { %1670 = vmatmul.mubr.msk.bf16.gmra.mxu0 %vm449_vm1, %v448_v43  ;;  %v1096_v43 = vpack.c.bf16 %v1590_v39, %v1589_v34 }
  0x2a   : > { %1689 = vmatprep.mubr.msk.bf16.mxu0 %vm1850_vm0, %v1849_v3 }
  0x2b   : > { %1704 = vmatmul.mubr.msk.bf16.vlgmr.msra.gmra.mxu1 %vm449_vm1, %v669_v46  ;;  %v922_v46 = vsel %vm917_vm7, %v919_v33, %v921_v45 }
  0x2c   : > { %1707 = vmatprep.mubr.msk.bf16.mxu1 %vm1850_vm0, %v1849_v3  ;;  %1730 = vmatpush3.bf16.msra.mxu1 %v839_v48  ;;  %v1100_v48 = vsel %vm666_vm3, %v1098_v47, %v1099_v37  ;;  %v1234_v37 = vld [vmem:[%s2282_s7 + $0x8] sm:$0xff] }
  0x2d   : > { %1757 = vmatprep.subr.bf16.mxu1 %v1849_v3 }
  0x31   : > { %1690 = vmatmul.mubr.msk.bf16.vlgmr.msra.gmra.mxu0 %vm449_vm1, %v587_v54  ;;  %v1203_v54 = vmul.f32 %v1595_v52, %v1191_v51 }
  0x32   : > { %1716 = vmatpush3.bf16.msra.mxu0 %v745_v55  ;;  %1693 = vmatprep.mubr.msk.bf16.mxu0 %vm1850_vm0, %v1849_v3  ;;  %v1596_v55 = vld [vmem:[%s2280_s5] ss:$0 sm:$0xff] }
  0x33   : > { %1708 = vmatmul.mubr.msk.bf16.gmra.mxu1 %vm449_vm1, %v671_v56  ;;  %1743 = vmatprep.subr.bf16.mxu0 %v1849_v3  ;;  %v1218_v9 = vadd.f32 %v1596_v55, %v1206_v8 }
  0x34   : > { %1711 = vmatprep.mubr.msk.bf16.mxu1 %vm1850_vm0, %v1849_v3 }
  0x39   : > { %1694 = vmatmul.mubr.msk.bf16.gmra.mxu0 %vm449_vm1, %v589_v58 }
  0x3a   : > { %1697 = vmatprep.mubr.msk.bf16.mxu0 %vm1850_vm0, %v1849_v3 }
  0x3b   : > { %1712 = vmatmul.mubr.msk.bf16.gmra.mxu1 %vm449_vm1, %v670_v53  ;;  %v1202_v53 = vmul.f32 %v1595_v52, %v1190_v50 }
  0x3c   : > { %1731 = vmatprep.mubr.msk.bf16.mxu1 %vm1850_vm0, %v1849_v3 }
  0x3d   : > { %v1214_v56 = vadd.f32 %v1596_v55, %v1202_v53 }
  0x3f   : > { %v1219_v58 = vmax.f32 %v1214_v56, 0.0 }
  0x41   : > { %1698 = vmatmul.mubr.msk.bf16.gmra.mxu0 %vm449_vm1, %v588_v57  ;;  %v1215_v57 = vadd.f32 %v1596_v55, %v1203_v54 }
  0x42   : > { %1717 = vmatprep.mubr.msk.bf16.mxu0 %vm1850_vm0, %v1849_v3 }
  0x43   : > { %1732 = vmatmul.mubr.msk.bf16.vlgmr.msra.gmra.mxu1 %vm449_vm1, %v2088_v1  ;;  %v1220_v59 = vmax.f32 %v1215_v57, 0.0  ;;  %v1216_v1 = vadd.f32 %v1596_v55, %v1204_v63 }
  0x44   : > { %1735 = vmatprep.mubr.msk.bf16.mxu1 %vm1850_vm0, %v1849_v3  ;;  %1758 = vmatpush3.bf16.msra.mxu1 %v997_v2  ;;  %v1217_v2 = vadd.f32 %v1596_v55, %v1205_v0 }
  0x45   : > { %1785 = vmatprep.subr.bf16.mxu1 %v1849_v3  ;;  %v1230_v60 = vpack.c.bf16 %v1220_v59, %v1219_v58  ;;  %v1221_v4 = vmax.f32 %v1216_v1, 0.0 }
  0x46   : > { %v1222_v5 = vmax.f32 %v1217_v2, 0.0 }
  0x48   : > { %v1231_v6 = vpack.c.bf16 %v1222_v5, %v1221_v4 }
  0x49   : > { %1718 = vmatmul.mubr.msk.bf16.vlgmr.msra.gmra.mxu0 %vm449_vm1, %v753_v10  ;;  %v1223_v10 = vmax.f32 %v1218_v9, 0.0 }
  0x4a   : > { %1744 = vmatpush3.bf16.msra.mxu0 %v913_v11  ;;  %1721 = vmatprep.mubr.msk.bf16.mxu0 %vm1850_vm0, %v1849_v3 }
  0x4b   : > { %1736 = vmatmul.mubr.msk.bf16.gmra.mxu1 %vm449_vm1, %v2008_v35  ;;  %1771 = vmatprep.subr.bf16.mxu0 %v1849_v3  ;;  %v1233_v35 = vld [vmem:[%s2282_s7] sm:$0xff]  ;;  %v1232_v12 = vpack.c.bf16 %v1223_v10, %v1223_v10 }
  0x4c   : > { %1739 = vmatprep.mubr.msk.bf16.mxu1 %vm1850_vm0, %v1849_v3  ;;  %v1235_v49 = vpack.c.bf16 %v1234_v37, %v1233_v35 }
  0x51   : > { %1722 = vmatmul.mubr.msk.bf16.gmra.mxu0 %vm449_vm1, %v762_v19 }
  0x52   : > { %1725 = vmatprep.mubr.msk.bf16.mxu0 %vm1850_vm0, %v1849_v3 }
  0x53   : > { %1740 = vmatmul.mubr.msk.bf16.gmra.mxu1 %vm449_vm1, %v835_v20 }
  0x54   : > { %1759 = vmatprep.mubr.msk.bf16.mxu1 %vm1850_vm0, %v1849_v3 }
  0x59   : > { %1726 = vmatmul.mubr.msk.bf16.gmra.mxu0 %vm449_vm1, %v761_v14 }
  0x5a   : > { %1745 = vmatprep.mubr.msk.bf16.mxu0 %vm1850_vm0, %v1849_v3 }
  0x5b   : > { %1760 = vmatmul.mubr.msk.bf16.vlgmr.msra.gmra.mxu1 %vm449_vm1, %v1013_v29 }
  0x5c   : > { %1763 = vmatprep.mubr.msk.bf16.mxu1 %vm1850_vm0, %v1849_v3  ;;  %1786 = vmatpush3.bf16.msra.mxu1 %v1235_v49 }
  0x5d   : > { %1813 = vmatprep.subr.bf16.mxu1 %v1849_v3 }
  0x61   : > { %1746 = vmatmul.mubr.msk.bf16.vlgmr.msra.gmra.mxu0 %vm449_vm1, %v920_v42 }
  0x62   : > { %1772 = vmatpush3.bf16.msra.mxu0 %v1096_v43  ;;  %1749 = vmatprep.mubr.msk.bf16.mxu0 %vm1850_vm0, %v1849_v3 }
  0x63   : > { %1764 = vmatmul.mubr.msk.bf16.gmra.mxu1 %vm449_vm1, %v1022_v44  ;;  %1799 = vmatprep.subr.bf16.mxu0 %v1849_v3 }
  0x64   : > { %1767 = vmatprep.mubr.msk.bf16.mxu1 %vm1850_vm0, %v1849_v3 }
  0x69   : > { %1750 = vmatmul.mubr.msk.bf16.gmra.mxu0 %vm449_vm1, %v922_v46 }
  0x6a   : > { %1753 = vmatprep.mubr.msk.bf16.mxu0 %vm1850_vm0, %v1849_v3 }
  0x6b   : > { %1768 = vmatmul.mubr.msk.bf16.gmra.mxu1 %vm449_vm1, %v1021_v41 }
  0x6c   : > { %1787 = vmatprep.mubr.msk.bf16.mxu1 %vm1850_vm0, %v1849_v3 }
  0x71   : > { %1754 = vmatmul.mubr.msk.bf16.gmra.mxu0 %vm449_vm1, %v921_v45 }
  0x72   : > { %1773 = vmatprep.mubr.msk.bf16.mxu0 %vm1850_vm0, %v1849_v3 }
  0x73   : > { %1788 = vmatmul.mubr.msk.bf16.vlgmr.msra.gmra.mxu1 %vm449_vm1, %v1230_v60 }
  0x74   : > { %1791 = vmatprep.mubr.msk.bf16.mxu1 %vm1850_vm0, %v1849_v3  ;;  %1814 = vmatpush3.bf16.msra.mxu1 %v1391_v17 }
  0x75   : > { %1815 = vmatprep.subr.bf16.mxu1 %v1849_v3 }
  0x79   : > { %1774 = vmatmul.mubr.msk.bf16.vlgmr.msra.gmra.mxu0 %vm449_vm1, %v1100_v48 }
  0x7a   : > { %1777 = vmatprep.mubr.msk.bf16.mxu0 %vm1850_vm0, %v1849_v3 }
  0x7b   : > { %1792 = vmatmul.mubr.msk.bf16.gmra.mxu1 %vm449_vm1, %v1231_v6 }
  0x7c   : > { %1795 = vmatprep.mubr.msk.bf16.mxu1 %vm1850_vm0, %v1849_v3 }
  0x81   : > { %1778 = vmatmul.mubr.msk.bf16.gmra.mxu0 %vm449_vm1, %v2024_v40  ;;  %v1227_v40 = vld [vmem:[%s2281_s6] sm:$0xff] }
  0x82   : > { %1781 = vmatprep.mubr.msk.bf16.mxu0 %vm1850_vm0, %v1849_v3 }
  0x83   : > { %1796 = vmatmul.mubr.msk.bf16.gmra.mxu1 %vm449_vm1, %v1232_v12 }
  0x84   : > { %1817 = vmatprep.mubr.msk.bf16.mxu1 %vm1850_vm0, %v1849_v3 }
  0x89   : > { %1782 = vmatmul.mubr.msk.bf16.gmra.mxu0 %vm449_vm1, %v1101_v38  ;;  %v1229_v38 = vpack.c.bf16 %v1228_v36, %v1227_v40 }
  0x8a   : > { %1801 = vmatprep.mubr.msk.bf16.mxu0 %vm1850_vm0, %v1849_v3 }
  0x8b   : > { %1800 = vmatpush3.bf16.msra.mxu0 %v1229_v38 }
  0xd2   : > { %v555_v11 = vpop.f32.mrf.mxu1 }
  0xd4   : > { %v1677_v13 = vpop.f32.mrf.mxu1 }
  0xd6   : > { %v558_v14 = vpop.f32.mrf.mxu1 }
  0xd8   : > { %v1678_v18 = vpop.f32.mrf.mxu1 }
  0xd9   : > { %v493_v19 = vpop.f32.mrf.mxu0 }
  0xda   : > { %v556_v20 = vadd.f32 %v555_v11, %v493_v19 }
  0xdb   : > { %v1663_v21 = vpop.f32.mrf.mxu0  ;;  %v563_v22 = vpop.f32.mrf.mxu1 }
  0xdd   : > { %v496_v23 = vpop.f32.mrf.mxu0  ;;  %v1681_v24 = vpop.f32.mrf.mxu1 }
  0xde   : > { %v559_v25 = vadd.f32 %v558_v14, %v496_v23 }
  0xdf   : > { %v1664_v26 = vpop.f32.mrf.mxu0  ;;  %v566_v27 = vpop.f32.mrf.mxu1 }
  0xe1   : > { %v501_v28 = vpop.f32.mrf.mxu0  ;;  %v1682_v29 = vpop.f32.mrf.mxu1 }
  0xe2   : > { %v564_v30 = vadd.f32 %v563_v22, %v501_v28 }
  0xe3   : > { %v1667_v31 = vpop.f32.mrf.mxu0  ;;  %v571_v32 = vpop.f32.mrf.mxu1 }
  0xe5   : > { %v504_v33 = vpop.f32.mrf.mxu0  ;;  %v1685_v34 = vpop.f32.mrf.mxu1 }
  0xe6   : > { %v567_v39 = vadd.f32 %v566_v27, %v504_v33 }
  0xe7   : > { %v1668_v41 = vpop.f32.mrf.mxu0  ;;  %v574_v42 = vpop.f32.mrf.mxu1 }
  0xe9   : > { %v509_v43 = vpop.f32.mrf.mxu0  ;;  %v1686_v44 = vpop.f32.mrf.mxu1 }
  0xea   : > { %v572_v45 = vadd.f32 %v571_v32, %v509_v43 }
  0xeb   : > { %v1671_v46 = vpop.f32.mrf.mxu0  ;;  %v715_v47 = vpop.f32.mrf.mxu1 }
  0xed   : > { %v512_v48 = vpop.f32.mrf.mxu0  ;;  %v1705_v35 = vpop.f32.mrf.mxu1 }
  0xef   : > { %v1672_v37 = vpop.f32.mrf.mxu0  ;;  %v718_v40 = vpop.f32.mrf.mxu1 }
  0xf1   : > { %v633_v49 = vpop.f32.mrf.mxu0  ;;  %v1706_v36 = vpop.f32.mrf.mxu1 }
  0xf2   : > { %v655_v38 = vadd.f32 %v633_v49, %v556_v20 }
  0xf3   : > { %v1691_v50 = vpop.f32.mrf.mxu0  ;;  %v723_v51 = vpop.f32.mrf.mxu1 }
  0xf4   : > { %v2219_v52 = vadd.f32 %v715_v47, %v655_v38 }
  0xf5   : > { %v636_v53 = vpop.f32.mrf.mxu0  ;;  %v1709_v54 = vpop.f32.mrf.mxu1 }
  0xf6   : > { %v656_v55 = vadd.f32 %v636_v53, %v559_v25 }
  0xf7   : > { %v1692_v56 = vpop.f32.mrf.mxu0  ;;  %v726_v57 = vpop.f32.mrf.mxu1 }
  0xf8   : > { %v2221_v58 = vadd.f32 %v718_v40, %v656_v55 }
  0xf9   : > { %v641_v59 = vpop.f32.mrf.mxu0  ;;  %v1710_v60 = vpop.f32.mrf.mxu1 }
  0xfa   : > { %v657_v61 = vadd.f32 %v641_v59, %v564_v30 }
  0xfb   : > { %v1695_v62 = vpop.f32.mrf.mxu0  ;;  %v731_v63 = vpop.f32.mrf.mxu1 }
  0xfc   : > { %v2223_v0 = vadd.f32 %v723_v51, %v657_v61 }
  0xfd   : > { %v644_v1 = vpop.f32.mrf.mxu0  ;;  %v1713_v2 = vpop.f32.mrf.mxu1 }
  0xfe   : > { %v658_v4 = vadd.f32 %v644_v1, %v567_v39 }
  0xff   : > { %v1696_v5 = vpop.f32.mrf.mxu0  ;;  %v734_v6 = vpop.f32.mrf.mxu1 }
 0x100   : > { %v2225_v7 = vadd.f32 %v726_v57, %v658_v4 }
 0x101   : > { %v649_v8 = vpop.f32.mrf.mxu0  ;;  %v1714_v9 = vpop.f32.mrf.mxu1 }
 0x102   : > { %v659_v10 = vadd.f32 %v649_v8, %v572_v45 }
 0x103   : > { %v1699_v11 = vpop.f32.mrf.mxu0  ;;  %v883_v12 = vpop.f32.mrf.mxu1 }
 0x104   : > { %v2227_v13 = vadd.f32 %v731_v63, %v659_v10 }
 0x105   : > { %v652_v14 = vpop.f32.mrf.mxu0  ;;  %v1733_v15 = vpop.f32.mrf.mxu1 }
 0x107   : > { %v1700_v16 = vpop.f32.mrf.mxu0  ;;  %v886_v17 = vpop.f32.mrf.mxu1 }
 0x109   : > { %v806_v18 = vpop.f32.mrf.mxu0  ;;  %v1734_v19 = vpop.f32.mrf.mxu1 }
 0x10a   : > { %v828_v57 = vadd.f32 %v806_v18, %v2219_v52 }
 0x10b   : > { %v1719_v20 = vpop.f32.mrf.mxu0  ;;  %v891_v21 = vpop.f32.mrf.mxu1 }
 0x10c   : > { %v905_v63 = vadd.f32 %v883_v12, %v828_v57  ;;  %v1594_v12 = vld [vmem:[%s2278_s3] ss:$0 sm:$0xff] }
 0x10d   : > { %v809_v22 = vpop.f32.mrf.mxu0  ;;  %v1737_v23 = vpop.f32.mrf.mxu1 }
 0x10e   : > { %v829_v1 = vadd.f32 %v809_v22, %v2221_v58 }
 0x10f   : > { %v1720_v24 = vpop.f32.mrf.mxu0  ;;  %v894_v25 = vpop.f32.mrf.mxu1 }
 0x110   : > { %v906_v6 = vadd.f32 %v886_v17, %v829_v1 }
 0x111   : > { %v814_v26 = vpop.f32.mrf.mxu0  ;;  %v1738_v27 = vpop.f32.mrf.mxu1 }
 0x112   : > { %v830_v8 = vadd.f32 %v814_v26, %v2223_v0 }
 0x113   : > { %v1723_v28 = vpop.f32.mrf.mxu0  ;;  %v899_v29 = vpop.f32.mrf.mxu1 }
 0x114   : > { %v907_v15 = vadd.f32 %v891_v21, %v830_v8 }
 0x115   : > { %v817_v30 = vpop.f32.mrf.mxu0  ;;  %v1741_v31 = vpop.f32.mrf.mxu1 }
 0x116   : > { %v831_v52 = vadd.f32 %v817_v30, %v2225_v7 }
 0x117   : > { %v1724_v32 = vpop.f32.mrf.mxu0  ;;  %v902_v33 = vpop.f32.mrf.mxu1 }
 0x118   : > { %v908_v22 = vadd.f32 %v894_v25, %v831_v52 }
 0x119   : > { %v822_v34 = vpop.f32.mrf.mxu0  ;;  %v1742_v39 = vpop.f32.mrf.mxu1 }
 0x11a   : > { %v832_v17 = vadd.f32 %v822_v34, %v2227_v13 }
 0x11b   : > { %v1727_v41 = vpop.f32.mrf.mxu0  ;;  %v1066_v42 = vpop.f32.mrf.mxu1 }
 0x11c   : > { %v909_v7 = vadd.f32 %v899_v29, %v832_v17 }
 0x11d   : > { %v825_v43 = vpop.f32.mrf.mxu0  ;;  %v1761_v44 = vpop.f32.mrf.mxu1 }
 0x11f   : > { %v1728_v45 = vpop.f32.mrf.mxu0  ;;  %v1069_v46 = vpop.f32.mrf.mxu1 }
 0x121   : > { %v966_v47 = vpop.f32.mrf.mxu0  ;;  %v1762_v48 = vpop.f32.mrf.mxu1 }
 0x122   : > { %v988_v4 = vadd.f32 %v966_v47, %v905_v63 }
 0x123   : > { %v1747_v35 = vpop.f32.mrf.mxu0  ;;  %v1074_v37 = vpop.f32.mrf.mxu1 }
 0x124   : > { %v1088_v10 = vadd.f32 %v1066_v42, %v988_v4 }
 0x125   : > { %v969_v40 = vpop.f32.mrf.mxu0  ;;  %v1765_v49 = vpop.f32.mrf.mxu1 }
 0x126   : > { %v989_v11 = vadd.f32 %v969_v40, %v906_v6 }
 0x127   : > { %v1748_v36 = vpop.f32.mrf.mxu0  ;;  %v1077_v38 = vpop.f32.mrf.mxu1 }
 0x128   : > { %v1089_v58 = vadd.f32 %v1069_v46, %v989_v11 }
 0x129   : > { %v974_v50 = vpop.f32.mrf.mxu0  ;;  %v1766_v51 = vpop.f32.mrf.mxu1 }
 0x12a   : > { %v990_v19 = vadd.f32 %v974_v50, %v907_v15 }
 0x12b   : > { %v1751_v53 = vpop.f32.mrf.mxu0  ;;  %v1082_v54 = vpop.f32.mrf.mxu1 }
 0x12c   : > { %v1090_v26 = vadd.f32 %v1074_v37, %v990_v19 }
 0x12d   : > { %v977_v55 = vpop.f32.mrf.mxu0  ;;  %v1769_v56 = vpop.f32.mrf.mxu1 }
 0x12e   : > { %v991_v27 = vadd.f32 %v977_v55, %v908_v22 }
 0x12f   : > { %v1752_v59 = vpop.f32.mrf.mxu0  ;;  %v1085_v60 = vpop.f32.mrf.mxu1 }
 0x130   : > { %v1091_v39 = vadd.f32 %v1077_v38, %v991_v27  ;;  %v1386_v59 = vld [vmem:[%s2284_s9] sm:$0xff]  ;;  %v1387_v60 = vld [vmem:[%s2284_s9 + $0x8] sm:$0xff] }
 0x131   : > { %v982_v61 = vpop.f32.mrf.mxu0  ;;  %v1770_v62 = vpop.f32.mrf.mxu1 }
 0x132   : > { %v992_v41 = vadd.f32 %v982_v61, %v909_v7  ;;  %v1390_v61 = vpack.c.bf16 %v1387_v60, %v1386_v59 }
 0x133   : > { %v1755_v2 = vpop.f32.mrf.mxu0  ;;  %v1279_v51 = vpop.f32.mrf.mxu1 }
 0x134   : > { %v1092_v34 = vadd.f32 %v1082_v54, %v992_v41  ;;  %1816 = vmatpush3.bf16.msra.mxu1 %v1390_v61 }
 0x135   : > { %v985_v5 = vpop.f32.mrf.mxu0  ;;  %v1789_v53 = vpop.f32.mrf.mxu1 }
 0x137   : > { %v1756_v9 = vpop.f32.mrf.mxu0  ;;  %v1282_v54 = vpop.f32.mrf.mxu1 }
 0x138   : > { %v1603_v9 = vld [vmem:[%s2283_s8] ss:$0 sm:$0xff] }
 0x139   : > { %v1146_v14 = vpop.f32.mrf.mxu0  ;;  %v1790_v55 = vpop.f32.mrf.mxu1 }
 0x13a   : > { %v1168_v16 = vadd.f32 %v1146_v14, %v1088_v10 }
 0x13b   : > { %v1775_v18 = vpop.f32.mrf.mxu0  ;;  %v1287_v56 = vpop.f32.mrf.mxu1 }
 0x13c   : > { %v1180_v0 = vadd.f32 %v1594_v12, %v1168_v16 }
 0x13d   : > { %v1149_v20 = vpop.f32.mrf.mxu0  ;;  %v1793_v57 = vpop.f32.mrf.mxu1 }
 0x13e   : > { %v1169_v23 = vadd.f32 %v1149_v20, %v1089_v58  ;;  %v1185_v30 = vmax.f32 %v1180_v0, 0.0 }
 0x13f   : > { %v1776_v24 = vpop.f32.mrf.mxu0  ;;  %v1290_v62 = vpop.f32.mrf.mxu1 }
 0x140   : > { %v1181_v21 = vadd.f32 %v1594_v12, %v1169_v23 }
 0x141   : > { %v1154_v28 = vpop.f32.mrf.mxu0  ;;  %v1794_v63 = vpop.f32.mrf.mxu1 }
 0x142   : > { %v1186_v31 = vmax.f32 %v1181_v21, 0.0  ;;  %v1170_v32 = vadd.f32 %v1154_v28, %v1090_v26 }
 0x143   : > { %v1779_v33 = vpop.f32.mrf.mxu0  ;;  %v1295_v1 = vpop.f32.mrf.mxu1 }
 0x144   : > { %v1224_v42 = vpack.c.bf16 %v1186_v31, %v1185_v30  ;;  %v1182_v44 = vadd.f32 %v1594_v12, %v1170_v32 }
 0x145   : > { %v1157_v43 = vpop.f32.mrf.mxu0  ;;  %v1797_v2 = vpop.f32.mrf.mxu1 }
 0x146   : > { %v1171_v25 = vadd.f32 %v1157_v43, %v1091_v39  ;;  %1802 = vmatmul.mubr.msk.bf16.vlgmr.msra.gmra.mxu0 %vm449_vm1, %v1224_v42  ;;  %v1187_v29 = vmax.f32 %v1182_v44, 0.0  ;;  %v1604_v43 = vld [vmem:[%s2285_s10] ss:$0 sm:$0xff] }
 0x147   : > { %v1780_v13 = vpop.f32.mrf.mxu0  ;;  %1805 = vmatprep.mubr.msk.bf16.mxu0 %vm1850_vm0, %v1849_v3  ;;  %v1298_v4 = vpop.f32.mrf.mxu1 }
 0x148   : > { %v1183_v45 = vadd.f32 %v1594_v12, %v1171_v25 }
 0x149   : > { %v1162_v46 = vpop.f32.mrf.mxu0  ;;  %v1798_v5 = vpop.f32.mrf.mxu1 }
 0x14a   : > { %v1188_v47 = vmax.f32 %v1183_v45, 0.0  ;;  %v1172_v48 = vadd.f32 %v1162_v46, %v1092_v34 }
 0x14b   : > { %v1783_v35 = vpop.f32.mrf.mxu0 }
 0x14c   : > { %v1225_v37 = vpack.c.bf16 %v1188_v47, %v1187_v29  ;;  %v1184_v40 = vadd.f32 %v1594_v12, %v1172_v48 }
 0x14d   : > { %v1165_v49 = vpop.f32.mrf.mxu0 }
 0x14e   : > { %1806 = vmatmul.mubr.msk.bf16.gmra.mxu0 %vm449_vm1, %v1225_v37  ;;  %v1189_v38 = vmax.f32 %v1184_v40, 0.0 }
 0x14f   : > { %v1784_v36 = vpop.f32.mrf.mxu0  ;;  %1809 = vmatprep.mubr.msk.bf16.mxu0 %vm1850_vm0, %v1849_v3 }
 0x150   : > { %v1226_v50 = vpack.c.bf16 %v1189_v38, %v1189_v38 }
 0x156   : > { %1810 = vmatmul.mubr.msk.bf16.gmra.mxu0 %vm449_vm1, %v1226_v50 }
 0x206   : > { %v1344_v6 = vpop.f32.mrf.mxu0 }
 0x207   : > { %v1345_v8 = vadd.f32 %v1344_v6, %v1279_v51 }
 0x208   : > { %v1803_v10 = vpop.f32.mrf.mxu0 }
 0x209   : > { %v1373_v14 = vadd.f32 %v1603_v9, %v1345_v8 }
 0x20a   : > { %v1347_v11 = vpop.f32.mrf.mxu0 }
 0x20b   : > { %v1348_v15 = vadd.f32 %v1347_v11, %v1282_v54  ;;  %v1378_v18 = vmax.f32 %v1373_v14, 0.0 }
 0x20c   : > { %v1804_v52 = vpop.f32.mrf.mxu0 }
 0x20d   : > { %v1374_v16 = vadd.f32 %v1603_v9, %v1348_v15 }
 0x20e   : > { %v1352_v12 = vpop.f32.mrf.mxu0 }
 0x20f   : > { %v1379_v58 = vmax.f32 %v1374_v16, 0.0  ;;  %v1353_v19 = vadd.f32 %v1352_v12, %v1287_v56 }
 0x210   : > { %v1807_v20 = vpop.f32.mrf.mxu0 }
 0x211   : > { %v1383_v22 = vpack.c.bf16 %v1379_v58, %v1378_v18  ;;  %v1375_v0 = vadd.f32 %v1603_v9, %v1353_v19 }
 0x212   : > { %v1355_v17 = vpop.f32.mrf.mxu0 }
 0x213   : > { %v1356_v23 = vadd.f32 %v1355_v17, %v1290_v62  ;;  %1818 = vmatmul.mubr.msk.bf16.vlgmr.msra.gmra.mxu1 %vm1399_vm8, %v1383_v22  ;;  %v1380_v21 = vmax.f32 %v1375_v0, 0.0 }
 0x214   : > { %v1808_v24 = vpop.f32.mrf.mxu0  ;;  %1821 = vmatprep.mubr.msk.bf16.mxu1 %vm1850_vm0, %v1849_v3 }
 0x215   : > { %v1376_v26 = vadd.f32 %v1603_v9, %v1356_v23 }
 0x216   : > { %v1360_v27 = vpop.f32.mrf.mxu0 }
 0x217   : > { %v1381_v28 = vmax.f32 %v1376_v26, 0.0  ;;  %v1361_v7 = vadd.f32 %v1360_v27, %v1295_v1 }
 0x218   : > { %v1811_v30 = vpop.f32.mrf.mxu0 }
 0x219   : > { %v1384_v31 = vpack.c.bf16 %v1381_v28, %v1380_v21  ;;  %v1377_v32 = vadd.f32 %v1603_v9, %v1361_v7 }
 0x21a   : > { %v1363_v33 = vpop.f32.mrf.mxu0 }
 0x21b   : > { %1822 = vmatmul.mubr.msk.bf16.gmra.mxu1 %vm1399_vm8, %v1384_v31  ;;  %v1382_v41 = vmax.f32 %v1377_v32, 0.0 }
 0x21c   : > { %v1812_v39 = vpop.f32.mrf.mxu0  ;;  %1825 = vmatprep.mubr.msk.bf16.mxu1 %vm1850_vm0, %v1849_v3 }
 0x21d   : > { %v1385_v42 = vpack.c.bf16 %v1382_v41, %v1382_v41 }
 0x223   : > { %1826 = vmatmul.mubr.msk.bf16.gmra.mxu1 %vm1399_vm8, %v1385_v42 }
 0x2d3   : > { %v1443_v44 = vpop.f32.mrf.mxu1 }
 0x2d4   : > { %v1444_v25 = vadd.f32 %v1604_v43, %v1443_v44 }
 0x2d5   : > { %v1819_v13 = vpop.f32.mrf.mxu1 }
 0x2d6   : > { %v1465_v34 = vmax.f32 %v1444_v25, 0.0 }
 0x2d7   : > { %v1446_v45 = vpop.f32.mrf.mxu1 }
 0x2d8   : > { %1470 = vst.msk [vmem:[%s406_s24] sm:$0xff] %vm1399_vm8, %v1465_v34  ;;  %v1447_v3 = vadd.f32 %v1604_v43, %v1446_v45 }
 0x2d9   : > { %v1820_v46 = vpop.f32.mrf.mxu1 }
 0x2da   : > { %v1466_v29 = vmax.f32 %v1447_v3, 0.0 }
 0x2db   : > { %v1451_v47 = vpop.f32.mrf.mxu1 }
 0x2dc   : > { %1471 = vst.msk [vmem:[%s406_s24 + $0x8] sm:$0xff] %vm1399_vm8, %v1466_v29  ;;  %v1452_v48 = vadd.f32 %v1604_v43, %v1451_v47 }
 0x2dd   : > { %v1823_v35 = vpop.f32.mrf.mxu1 }
 0x2de   : > { %v1467_v37 = vmax.f32 %v1452_v48, 0.0 }
 0x2df   : > { %v1454_v40 = vpop.f32.mrf.mxu1 }
 0x2e0   : > { %1472 = vst.msk [vmem:[%s406_s24 + $0x10] sm:$0xff] %vm1399_vm8, %v1467_v37  ;;  %v1455_v49 = vadd.f32 %v1604_v43, %v1454_v40 }
 0x2e1   : > { %v1824_v36 = vpop.f32.mrf.mxu1 }
 0x2e2   : > { %v1468_v38 = vmax.f32 %v1455_v49, 0.0 }
 0x2e3   : > { %v1459_v50 = vpop.f32.mrf.mxu1 }
 0x2e4   : > { %1473 = vst.msk [vmem:[%s406_s24 + $0x18] sm:$0xff] %vm1399_vm8, %v1468_v38  ;;  %v1460_v51 = vadd.f32 %v1604_v43, %v1459_v50 }
 0x2e5   : > { %v1827_v53 = vpop.f32.mrf.mxu1 }
 0x2e6   : > { %v1469_v54 = vmax.f32 %v1460_v51, 0.0 }
 0x2e7   : > { %v1462_v55 = vpop.f32.mrf.mxu1 }
 0x2e8   : > { %1475 = vst.msk [vmem:[%s406_s24 + $0x20] sm:$0xf] %vm1474_vm9, %v1469_v54 }
 0x2e9   : > { %v1828_v56 = vpop.f32.mrf.mxu1 }
 0x2ea PF: > { %s21_s17 = sadd.s32 1, %s1847_s17  }
 0x2eb   : > { %p18_p4 = scmp.ge.s32.totalorder %s21_s17, 4  }
 0x2ed   :  { %20 = sbr.rel (!%p18_p4) target bundleno = 1 (0x1), region = 105 }

// kernel: _lambda_.14
= control target key start
LH: loop header
LB: loop body
LE: loop exit
PB: predicated region body
PF: predicated region fallthrough
CT: control target
= control target key end

     0   :  { %s558_s12 = smov 0   ;;  %s560_s13 = smov 0   ;;  %s707_s0 = inlined_call_operand.vmem [shape: f32[2,4,288], index: 0, kind: input, shape index: {}]   ;;  %s708_s1 = inlined_call_operand.vmem [shape: f32[288,64], index: 1, kind: input, shape index: {}]   ;;  %s709_s2 = inlined_call_operand.vmem [shape: f32[1,64], index: 2, kind: input, shape index: {}]   ;;  %s710_s3 = inlined_call_operand.vmem [shape: f32[2,4,64], index: 3, kind: output, shape index: {}]  }
   0x1   :  { %s562_s14 = smov 0  }
   0x2 LB: > { %s25_s15 = sadd.s32 1, %s530_s13  ;;  %p444_p0 = scmp.ge.s32.totalorder %s534_s14, 1  ;;  %s534_s14 = sphi %s562_s14, %s13_s14   ;;  %s530_s13 = sphi %s560_s13, %s712_s13   ;;  %s526_s12 = sphi %s558_s12, %s711_s12  }
   0x3   : > { %p27_p1 = scmp.ge.s32.totalorder %s25_s15, 2  ;;  %p157_p2 = scmp.lt.s32.totalorder %s534_s14, 3 }
   0x5   : > { %s714_s15 = smov (%p27_p1, %s25_s15), 0  ;;  %p158_p3 = pnand %p444_p0, %p157_p2 }
   0x6   : > { %p187_p4 = scmp.lt.s32.totalorder (!%p158_p3), %s526_s12, 1 }
   0x7   : > { %161 = sbr.rel (%p158_p3) target bundleno = 251 (0xfb), region = 32 }
   0xc   : > { %v242_v0 = vld [vmem:[%s708_s1 + $0xf0] sm:$0xff]  ;;  %v243_v1 = vld [vmem:[%s708_s1 + $0xf8] sm:$0xff]  ;;  %v240_v5 = vld [vmem:[%s708_s1 + $0xe0] sm:$0xff]  ;;  %v536_v7 = vmov 0.0   ;;  %vm537_vm0 = vmmov 0   ;;  %s716_s12 = smov (!%p187_p4, %s526_s12), 1 }
   0xd   : > { %v226_v2 = vld [vmem:[%s708_s1 + $0x70] sm:$0xff]  ;;  %v263_v3 = vpack.c.bf16 %v243_v1, %v242_v0  ;;  %v227_v4 = vld [vmem:[%s708_s1 + $0x78] sm:$0xff]  ;;  %v241_v6 = vld [vmem:[%s708_s1 + $0xe8] sm:$0xff]  ;;  %476 = vmatprep.subr.bf16.mxu1 %v536_v7  ;;  %480 = vmatprep.mubr.msk.bf16.mxu1 %vm537_vm0, %v536_v7  ;;  %s484_s17 = smul.u32 12, %s716_s12  ;;  %vm273_vm1 = vcmask 261120   ;;  %s446_s25 = sshll.u32 %s716_s12, 2 }
   0xe   : > { %v255_v8 = vpack.c.bf16 %v227_v4, %v226_v2  ;;  %v262_v9 = vpack.c.bf16 %v241_v6, %v240_v5  ;;  %v224_v10 = vld [vmem:[%s708_s1 + $0x60] sm:$0xff]  ;;  %v225_v11 = vld [vmem:[%s708_s1 + $0x68] sm:$0xff]  ;;  %v238_v12 = vld [vmem:[%s708_s1 + $0xd0] sm:$0xff]  ;;  %s202_s28 = scalar_lea.vmem %s710_s3, %s446_s25  ;;  %vm358_vm2 = vcmask 519168  }
   0xf   : > { %451 = vmatprep.subr.bf16.mxu0 %v263_v3  ;;  %v239_v13 = vld [vmem:[%s708_s1 + $0xd8] sm:$0xff]  ;;  %v254_v14 = vpack.c.bf16 %v225_v11, %v224_v10  ;;  %v222_v16 = vld [vmem:[%s708_s1 + $0x50] sm:$0xff]  ;;  %v236_v18 = vld [vmem:[%s708_s1 + $0xc0] sm:$0xff]  ;;  %s195_s5 = scalar_lea.vmem %s707_s0, %s484_s17 }
  0x10   : > { %452 = vmatpush3.bf16.msra.mxu0 %v255_v8  ;;  %v261_v15 = vpack.c.bf16 %v239_v13, %v238_v12  ;;  %v223_v17 = vld [vmem:[%s708_s1 + $0x58] sm:$0xff]  ;;  %v237_v19 = vld [vmem:[%s708_s1 + $0xc8] sm:$0xff]  ;;  %v246_v21 = vld [vmem:[%s708_s1 + $0x110] sm:$0xff] }
  0x11   : > { %453 = vmatprep.subr.bf16.mxu0 %v262_v9  ;;  %v253_v20 = vpack.c.bf16 %v223_v17, %v222_v16  ;;  %v260_v22 = vpack.c.bf16 %v237_v19, %v236_v18  ;;  %v220_v23 = vld [vmem:[%s708_s1 + $0x40] sm:$0xff]  ;;  %v221_v24 = vld [vmem:[%s708_s1 + $0x48] sm:$0xff]  ;;  %v247_v25 = vld [vmem:[%s708_s1 + $0x118] sm:$0xff] }
  0x12   : > { %v234_v26 = vld [vmem:[%s708_s1 + $0xb0] sm:$0xff]  ;;  %v235_v27 = vld [vmem:[%s708_s1 + $0xb8] sm:$0xff]  ;;  %v265_v28 = vpack.c.bf16 %v247_v25, %v246_v21  ;;  %v244_v29 = vld [vmem:[%s708_s1 + $0x100] sm:$0xff]  ;;  %v252_v31 = vpack.c.bf16 %v221_v24, %v220_v23 }
  0x13   : > { %v245_v30 = vld [vmem:[%s708_s1 + $0x108] sm:$0xff]  ;;  %v204_v33 = vld [vmem:[%s195_s5] sm:$0xff]  ;;  %v259_v35 = vpack.c.bf16 %v235_v27, %v234_v26  ;;  %v218_v36 = vld [vmem:[%s708_s1 + $0x30] sm:$0xff] }
  0x14   : > { %454 = vmatpush3.bf16.msra.mxu0 %v254_v14  ;;  %477 = vmatpush3.bf16.msra.mxu1 %v265_v28  ;;  %v264_v32 = vpack.c.bf16 %v245_v30, %v244_v29  ;;  %v205_v34 = vld [vmem:[%s195_s5 + $0x8] sm:$0xf]  ;;  %v219_v37 = vld [vmem:[%s708_s1 + $0x38] sm:$0xff]  ;;  %v207_v38 = vcombine.high %v204_v33, %v204_v33  ;;  %v232_v39 = vld [vmem:[%s708_s1 + $0xa0] sm:$0xff]  ;;  %v209_v60 = vpack.c.bf16 %v204_v33, %v204_v33 }
  0x15   : > { %455 = vmatprep.subr.bf16.mxu0 %v261_v15  ;;  %478 = vmatprep.subr.bf16.mxu1 %v536_v7  ;;  %v233_v40 = vld [vmem:[%s708_s1 + $0xa8] sm:$0xff]  ;;  %v211_v42 = vpack.c.bf16 %v205_v34, %v205_v34  ;;  %v251_v43 = vpack.c.bf16 %v219_v37, %v218_v36  ;;  %v216_v45 = vld [vmem:[%s708_s1 + $0x20] sm:$0xff]  ;;  %v230_v47 = vld [vmem:[%s708_s1 + $0x90] sm:$0xff] }
  0x16   : > { %v210_v41 = vpack.c.bf16 %v207_v38, %v207_v38  ;;  %v258_v44 = vpack.c.bf16 %v233_v40, %v232_v39  ;;  %v217_v46 = vld [vmem:[%s708_s1 + $0x28] sm:$0xff]  ;;  %v231_v48 = vld [vmem:[%s708_s1 + $0x98] sm:$0xff]  ;;  %v214_v51 = vld [vmem:[%s708_s1 + $0x10] sm:$0xff] }
  0x17   : > { %v250_v49 = vpack.c.bf16 %v217_v46, %v216_v45  ;;  %v257_v50 = vpack.c.bf16 %v231_v48, %v230_v47  ;;  %v215_v52 = vld [vmem:[%s708_s1 + $0x18] sm:$0xff]  ;;  %v228_v53 = vld [vmem:[%s708_s1 + $0x80] sm:$0xff]  ;;  %v229_v54 = vld [vmem:[%s708_s1 + $0x88] sm:$0xff] }
  0x18   : > { %456 = vmatpush3.bf16.msra.mxu0 %v253_v20  ;;  %479 = vmatpush3.bf16.msra.mxu1 %v264_v32  ;;  %v249_v55 = vpack.c.bf16 %v215_v52, %v214_v51  ;;  %v256_v56 = vpack.c.bf16 %v229_v54, %v228_v53  ;;  %v212_v57 = vld [vmem:[%s708_s1] sm:$0xff]  ;;  %v213_v58 = vld [vmem:[%s708_s1 + $0x8] sm:$0xff] }
  0x19   : > { %457 = vmatprep.subr.bf16.mxu0 %v260_v22  ;;  %309 = vmatprep.mubr.bf16.mxu0 %v210_v41  ;;  %v248_v59 = vpack.c.bf16 %v213_v58, %v212_v57  ;;  %v447_v2 = vld [vmem:[%s709_s2] ss:$0 sm:$0xff] }
  0x1b   : > { %481 = vmatmul.mubr.msk.bf16.vlgmr.msra.gmra.mxu1 %vm273_vm1, %v211_v42 }
  0x1c   : > { %458 = vmatpush3.bf16.msra.mxu0 %v252_v31 }
  0x1d   : > { %459 = vmatprep.subr.bf16.mxu0 %v259_v35 }
  0x20   : > { %460 = vmatpush3.bf16.msra.mxu0 %v251_v43 }
  0x21   : > { %461 = vmatprep.subr.bf16.mxu0 %v258_v44 }
  0x24   : > { %462 = vmatpush3.bf16.msra.mxu0 %v250_v49 }
  0x25   : > { %463 = vmatprep.subr.bf16.mxu0 %v257_v50 }
  0x28   : > { %464 = vmatpush3.bf16.msra.mxu0 %v249_v55 }
  0x29   : > { %465 = vmatprep.subr.bf16.mxu0 %v256_v56 }
  0x2c   : > { %466 = vmatpush3.bf16.msra.mxu0 %v248_v59 }
  0x2f   : > { %310 = vmatmul.mubr.bf16.vlgmr.msra.gmra.mxu0 %v209_v60 }
  0xdb   : > { %v351_v61 = vpop.f32.mrf.mxu1 }
  0xdd   : > { %v482_v62 = vpop.f32.mrf.mxu1 }
  0xdf   : > { %v354_v63 = vpop.f32.mrf.mxu1 }
  0xe1   : > { %v483_v0 = vpop.f32.mrf.mxu1 }
  0xef   : > { %v467_v1 = vpop.f32.mrf.mxu0 }
  0xf1   : > { %v468_v3 = vpop.f32.mrf.mxu0 }
  0xf2   : > { %v469_v4 = vadd.f32 %v468_v3, %v467_v1 }
  0xf3   : > { %v470_v5 = vpop.f32.mrf.mxu0 }
  0xf4   : > { %v312_v6 = vadd.f32 %v469_v4, %v447_v2 }
  0xf5   : > { %v471_v7 = vpop.f32.mrf.mxu0 }
  0xf6   : > { %v352_v8 = vadd.f32 %v351_v61, %v312_v6 }
  0xf8   : > { %v357_v9 = vmax.f32 %v352_v8, 0.0 }
  0xfa   : > { %359 = vst.msk [vmem:[%s202_s28] sm:$0xf] %vm358_vm2, %v357_v9 }
  0xfb PF: > { %s13_s14 = sadd.s32 1, %s534_s14   ;;  %s711_s12 = smov %s530_s13 }
  0xfc   : > { %p10_p5 = scmp.ge.s32.totalorder %s13_s14, 4   ;;  %s712_s13 = smov %s714_s15 }
  0xfe   :  { %12 = sbr.rel (!%p10_p5) target bundleno = 2 (0x2), region = 62 }

// kernel: _lambda_.15
= control target key start
LH: loop header
LB: loop body
LE: loop exit
PB: predicated region body
PF: predicated region fallthrough
CT: control target
= control target key end

     0   :  { %s1506_s17 = smov 0   ;;  %s1808_s0 = inlined_call_operand.vmem [shape: f32[2,26,32], index: 0, kind: input, shape index: {}]   ;;  %s1809_s1 = inlined_call_operand.vmem [shape: f32[2,16,32], index: 1, kind: input, shape index: {}]   ;;  %s1810_s2 = inlined_call_operand.vmem [shape: f32[9,32,32], index: 2, kind: input, shape index: {}]   ;;  %s1811_s3 = inlined_call_operand.vmem [shape: f32[1,32], index: 3, kind: input, shape index: {}]   ;;  %s1812_s4 = inlined_call_operand.vmem [shape: f32[1,32], index: 4, kind: input, shape index: {}]   ;;  %s1813_s5 = inlined_call_operand.vmem [shape: f32[1,32], index: 5, kind: input, shape index: {}]   ;;  %s1814_s6 = inlined_call_operand.vmem [shape: f32[32,64], index: 6, kind: input, shape index: {}]   ;;  %s1815_s7 = inlined_call_operand.vmem [shape: f32[32,64], index: 7, kind: input, shape index: {}]   ;;  %s1816_s8 = inlined_call_operand.vmem [shape: f32[1,64], index: 8, kind: input, shape index: {}]   ;;  %s1817_s9 = inlined_call_operand.vmem [shape: f32[64,64], index: 9, kind: input, shape index: {}]   ;;  %s1818_s10 = inlined_call_operand.vmem [shape: f32[1,64], index: 10, kind: input, shape index: {}]   ;;  %s1819_s11 = inlined_call_operand.vmem [shape: f32[2,16,64], index: 11, kind: output, shape index: {}]  }
   0x1 LB: > { %s1223_s18 = sadd.s32 4294967295, %s1442_s17   ;;  %p1227_p0 = scmp.ge.s32.totalorder %s1442_s17, 1  ;;  %s1442_s17 = sphi %s1506_s17, %s21_s17  }
   0x2   : > { %p347_p1 = scmp.lt.s32.totalorder %s1442_s17, 3 }
   0x4   : > { %p348_p2 = pnand %p1227_p0, %p347_p1 }
   0x5   : > { %p1523_p3 = scmp.lt.s32.totalorder (!%p348_p2), %s1223_s18, 1 }
   0x6   : > { %351 = sbr.rel (%p348_p2) target bundleno = 668 (0x29c), region = 64 }
   0xb   : > { %v1236_v0 = vld [vmem:[%s1810_s2 + $0x30] sm:$0xff]  ;;  %v1237_v1 = vld [vmem:[%s1810_s2 + $0x38] sm:$0xff]  ;;  %v1444_v3 = vmov 0.0   ;;  %v1234_v6 = vld [vmem:[%s1810_s2 + $0x20] sm:$0xff]  ;;  %vm1445_vm0 = vmmov 0   ;;  %s1822_s18 = smov (!%p1523_p3, %s1223_s18), 1 }
   0xc   : > { %v415_v2 = vld [vmem:[%s1810_s2 + $0x10] sm:$0xff]  ;;  %1326 = vmatprep.subr.bf16.mxu0 %v1444_v3  ;;  %v426_v4 = vpack.c.bf16 %v1237_v1, %v1236_v0  ;;  %1334 = vmatprep.subr.bf16.mxu1 %v1444_v3  ;;  %v416_v5 = vld [vmem:[%s1810_s2 + $0x18] sm:$0xff]  ;;  %v1235_v7 = vld [vmem:[%s1810_s2 + $0x28] sm:$0xff]  ;;  %s1285_s19 = sshll.u32 %s1822_s18, 5  ;;  %vm440_vm1 = vcmask 261120   ;;  %vm594_vm3 = vcmask 1045504  }
   0xd   : > { %v418_v8 = vpack.c.bf16 %v416_v5, %v415_v2  ;;  %v413_v9 = vld [vmem:[%s1810_s2] sm:$0xff]  ;;  %v414_v10 = vld [vmem:[%s1810_s2 + $0x8] sm:$0xff]  ;;  %1330 = vmatprep.mubr.msk.bf16.mxu0 %vm1445_vm0, %v1444_v3  ;;  %1338 = vmatprep.mubr.msk.bf16.mxu1 %vm1445_vm0, %v1444_v3  ;;  %v425_v11 = vpack.c.bf16 %v1235_v7, %v1234_v6  ;;  %s1558_s22 = scalar_lea.vmem %s1808_s0, %s1285_s19  ;;  %v1247_v13 = vld [vmem:[%s1810_s2 + $0x70] sm:$0xff]  ;;  %vm427_vm2 = vsmask.f32 7424  ;;  %vm537_vm4 = vcmask 1046528  }
   0xe   : > { %1327 = vmatpush3.bf16.msra.mxu0 %v426_v4  ;;  %v417_v12 = vpack.c.bf16 %v414_v10, %v413_v9  ;;  %v1248_v14 = vld [vmem:[%s1810_s2 + $0x78] sm:$0xff]  ;;  %v408_v15 = vld [vmem:[%s1558_s22] sm:$0xff]  ;;  %v409_v16 = vld [vmem:[%s1558_s22 + $0x8] sm:$0xff]  ;;  %vm714_vm5 = vcmask 1044480   ;;  %vm651_vm6 = vsmask.f32 5376 }
   0xf   : > { %1335 = vmatpush3.bf16.msra.mxu1 %v418_v8  ;;  %1328 = vmatprep.subr.bf16.mxu0 %v1444_v3  ;;  %v410_v17 = vld [vmem:[%s1558_s22 + $0x10] sm:$0xff]  ;;  %v1569_v18 = vpack.c.bf16 %v409_v16, %v408_v15  ;;  %v593_v20 = vpack.c.bf16 %v1248_v14, %v1247_v13  ;;  %v1245_v24 = vld [vmem:[%s1810_s2 + $0x60] sm:$0xff]  ;;  %v1246_v25 = vld [vmem:[%s1810_s2 + $0x68] sm:$0xff]  ;;  %s1286_s29 = sshll.u32 %s1822_s18, 4  ;;  %vm1107_vm7 = vcmask 523264  }
  0x10   : > { %1336 = vmatprep.subr.bf16.mxu1 %v1444_v3  ;;  %v1571_v19 = vpack.c.bf16 %v410_v17, %v410_v17  ;;  %v1242_v26 = vld [vmem:[%s1810_s2 + $0x50] sm:$0xff]  ;;  %v1243_v27 = vld [vmem:[%s1810_s2 + $0x58] sm:$0xff]  ;;  %v592_v30 = vpack.c.bf16 %v1246_v25, %v1245_v24  ;;  %v1240_v37 = vld [vmem:[%s1810_s2 + $0x40] sm:$0xff]  ;;  %v1623_v46 = vpack.c.bf16 %v410_v17, %v409_v16  ;;  %s401_s16 = scalar_lea.vmem %s1809_s1, %s1286_s29  ;;  %s406_s28 = scalar_lea.vmem %s1819_s11, %s1286_s29 }
  0x11   : > { %v429_v21 = vshrl.u32 %v1569_v18, 16  ;;  %v431_v22 = vshll.u32 %v1569_v18, 16  ;;  %v595_v31 = vrot.slane %v1569_v18, 2  ;;  %v534_v34 = vpack.c.bf16 %v1243_v27, %v1242_v26  ;;  %v1257_v35 = vld [vmem:[%s1810_s2 + $0xb0] sm:$0xff]  ;;  %v1258_v36 = vld [vmem:[%s1810_s2 + $0xb8] sm:$0xff]  ;;  %v1241_v38 = vld [vmem:[%s1810_s2 + $0x48] sm:$0xff] }
  0x12   : > { %1329 = vmatpush3.bf16.msra.mxu0 %v425_v11  ;;  %v436_v23 = vshll.u32 %v1571_v19, 16  ;;  %v596_v32 = vrot.slane %v1571_v19, 2  ;;  %v1252_v40 = vld [vmem:[%s1810_s2 + $0x90] sm:$0xff]  ;;  %v1253_v42 = vld [vmem:[%s1810_s2 + $0x98] sm:$0xff]  ;;  %v713_v43 = vpack.c.bf16 %v1258_v36, %v1257_v35  ;;  %v1255_v44 = vld [vmem:[%s1810_s2 + $0xa0] sm:$0xff]  ;;  %v533_v47 = vpack.c.bf16 %v1241_v38, %v1240_v37 }
  0x13   : > { %1337 = vmatpush3.bf16.msra.mxu1 %v417_v12  ;;  %1342 = vmatprep.subr.bf16.mxu0 %v1444_v3  ;;  %v433_v28 = vrot.slane %v431_v22, 1  ;;  %v1256_v45 = vld [vmem:[%s1810_s2 + $0xa8] sm:$0xff]  ;;  %v538_v48 = vrot.slane %v1569_v18, 1  ;;  %v539_v49 = vrot.slane %v1571_v19, 1  ;;  %v655_v50 = vshrl.u32 %v1571_v19, 16  ;;  %v1267_v57 = vld [vmem:[%s1810_s2 + $0xf0] sm:$0xff] }
  0x14   : > { %1350 = vmatprep.subr.bf16.mxu1 %v1444_v3  ;;  %v438_v29 = vrot.slane %v436_v23, 1  ;;  %v597_v41 = vsel %vm594_vm3, %v595_v31, %v596_v32  ;;  %v411_v51 = vld [vmem:[%s1558_s22 + $0x18] sm:$0x3]  ;;  %v652_v52 = vrot.slane %v429_v21, 2  ;;  %v650_v53 = vpack.c.bf16 %v1253_v42, %v1252_v40  ;;  %v1250_v1 = vld [vmem:[%s1810_s2 + $0x80] sm:$0xff]  ;;  %v1251_v2 = vld [vmem:[%s1810_s2 + $0x88] sm:$0xff] }
  0x15   : > { %v434_v33 = vor.u32 %v433_v28, %v429_v21  ;;  %v712_v54 = vpack.c.bf16 %v1256_v45, %v1255_v44  ;;  %v715_v55 = vrot.slane %v1569_v18, 3  ;;  %v716_v56 = vrot.slane %v1571_v19, 3  ;;  %v1268_v58 = vld [vmem:[%s1810_s2 + $0xf8] sm:$0xff]  ;;  %v1265_v12 = vld [vmem:[%s1810_s2 + $0xe0] sm:$0xff]  ;;  %v1266_v13 = vld [vmem:[%s1810_s2 + $0xe8] sm:$0xff] }
  0x16   : > { %1339 = vmatmul.mubr.msk.bf16.vlgmr.msra.gmra.mxu1 %vm440_vm1, %v1569_v18  ;;  %v1644_v59 = vpack.c.bf16 %v411_v51, %v411_v51  ;;  %v828_v60 = vshll.u32 %v1623_v46, 16  ;;  %v658_v61 = vrot.slane %v436_v23, 3  ;;  %v540_v62 = vsel %vm537_vm4, %v538_v48, %v539_v49  ;;  %v1262_v14 = vld [vmem:[%s1810_s2 + $0xd0] sm:$0xff]  ;;  %v1263_v15 = vld [vmem:[%s1810_s2 + $0xd8] sm:$0xff]  ;;  %v1260_v21 = vld [vmem:[%s1810_s2 + $0xc0] sm:$0xff] }
  0x17   : > { %1351 = vmatpush3.bf16.msra.mxu1 %v593_v20  ;;  %1354 = vmatprep.mubr.msk.bf16.mxu1 %vm1445_vm0, %v1444_v3  ;;  %v439_v39 = vsel %vm427_vm2, %v434_v33, %v438_v29  ;;  %v653_v63 = vrot.slane %v431_v22, 3  ;;  %v657_v0 = vrot.slane %v655_v50, 2  ;;  %v825_v4 = vpack.c.bf16 %v1268_v58, %v1267_v57  ;;  %v1261_v22 = vld [vmem:[%s1810_s2 + $0xc8] sm:$0xff]  ;;  %v1272_v25 = vld [vmem:[%s1810_s2 + $0x110] sm:$0xff]  ;;  %v1273_v26 = vld [vmem:[%s1810_s2 + $0x118] sm:$0xff] }
  0x18   : > { %1352 = vmatprep.subr.bf16.mxu1 %v1444_v3  ;;  %1331 = vmatmul.mubr.msk.bf16.vlgmr.msra.gmra.mxu0 %vm440_vm1, %v439_v39  ;;  %v717_v5 = vsel %vm714_vm5, %v715_v55, %v716_v56  ;;  %v826_v6 = vshrl.u32 %v1623_v46, 16  ;;  %v830_v7 = vrot.slane %v828_v60, 1  ;;  %v833_v8 = vshll.u32 %v1644_v59, 16  ;;  %v1270_v28 = vld [vmem:[%s1810_s2 + $0x100] sm:$0xff]  ;;  %v1271_v29 = vld [vmem:[%s1810_s2 + $0x108] sm:$0xff]  ;;  %v985_v35 = vld [vmem:[%s1815_s7 + $0x18] sm:$0xff] }
  0x19   : > { %1343 = vmatpush3.bf16.msra.mxu0 %v534_v34  ;;  %1346 = vmatprep.mubr.msk.bf16.mxu0 %vm1445_vm0, %v1444_v3  ;;  %v649_v9 = vpack.c.bf16 %v1251_v2, %v1250_v1  ;;  %v654_v10 = vor.u32 %v653_v63, %v652_v52  ;;  %v659_v11 = vor.u32 %v658_v61, %v657_v0  ;;  %v892_v31 = vrot.slane %v1623_v46, 1  ;;  %v984_v34 = vld [vmem:[%s1815_s7 + $0x10] sm:$0xff]  ;;  %v952_v37 = vld [vmem:[%s401_s16] sm:$0xff]  ;;  %v953_v38 = vld [vmem:[%s401_s16 + $0x8] sm:$0xff] }
  0x1a   : > { %1344 = vmatprep.subr.bf16.mxu0 %v1444_v3  ;;  %v824_v16 = vpack.c.bf16 %v1266_v13, %v1265_v12  ;;  %v831_v17 = vor.u32 %v830_v7, %v826_v6  ;;  %v835_v18 = vrot.slane %v833_v8, 1  ;;  %v771_v20 = vpack.c.bf16 %v1263_v15, %v1262_v14  ;;  %v1276_v39 = vld [vmem:[%s1812_s4] ss:$0 sm:$0xff]  ;;  %v983_v44 = vld [vmem:[%s1815_s7 + $0x8] sm:$0xff]  ;;  %v977_v48 = vld [vmem:[%s1814_s6 + $0x10] sm:$0xff] }
  0x1b   : > { %1353 = vmatpush3.bf16.msra.mxu1 %v592_v30  ;;  %v660_v19 = vsel %vm651_vm6, %v654_v10, %v659_v11  ;;  %v770_v24 = vpack.c.bf16 %v1261_v22, %v1260_v21  ;;  %v889_v27 = vpack.c.bf16 %v1273_v26, %v1272_v25  ;;  %v888_v30 = vpack.c.bf16 %v1271_v29, %v1270_v28  ;;  %v1277_v42 = vld [vmem:[%s1813_s5] ss:$0 sm:$0xff]  ;;  %v978_v49 = vld [vmem:[%s1814_s6 + $0x18] sm:$0xff]  ;;  %v976_v55 = vld [vmem:[%s1814_s6 + $0x8] sm:$0xff] }
  0x1c   : > { %1366 = vmatprep.subr.bf16.mxu1 %v1444_v3  ;;  %v836_v23 = vsel %vm427_vm2, %v831_v17, %v835_v18  ;;  %v893_v32 = vrot.slane %v1644_v59, 1  ;;  %v987_v36 = vpack.c.bf16 %v985_v35, %v984_v34  ;;  %v961_v40 = vmul.f32 %v1276_v39, %v952_v37  ;;  %v1094_v57 = vld [vmem:[%s1817_s9 + $0x30] sm:$0xff]  ;;  %v1095_v58 = vld [vmem:[%s1817_s9 + $0x38] sm:$0xff] }
  0x1d   : > { %1345 = vmatpush3.bf16.msra.mxu0 %v533_v47  ;;  %v980_v52 = vpack.c.bf16 %v978_v49, %v977_v48  ;;  %v1099_v59 = vpack.c.bf16 %v1095_v58, %v1094_v57  ;;  %v1092_v58 = vld [vmem:[%s1817_s9 + $0x20] sm:$0xff] }
  0x1e   : > { %1355 = vmatmul.mubr.msk.bf16.vlgmr.msra.gmra.mxu1 %vm440_vm1, %v597_v41  ;;  %1358 = vmatprep.subr.bf16.mxu0 %v1444_v3  ;;  %v894_v33 = vsel %vm537_vm4, %v892_v31, %v893_v32  ;;  %v962_v41 = vmul.f32 %v1276_v39, %v953_v38  ;;  %v970_v45 = vadd.f32 %v1277_v42, %v961_v40 }
  0x1f   : > { %1367 = vmatpush3.bf16.msra.mxu1 %v713_v43  ;;  %1370 = vmatprep.mubr.msk.bf16.mxu1 %vm1445_vm0, %v1444_v3  ;;  %v982_v43 = vld [vmem:[%s1815_s7] sm:$0xff] }
  0x20   : > { %1368 = vmatprep.subr.bf16.mxu1 %v1444_v3  ;;  %1347 = vmatmul.mubr.msk.bf16.vlgmr.msra.gmra.mxu0 %vm440_vm1, %v540_v62  ;;  %v986_v47 = vpack.c.bf16 %v983_v44, %v982_v43  ;;  %v972_v50 = vmax.f32 %v970_v45, 0.0  ;;  %v1275_v44 = vld [vmem:[%s1811_s3] ss:$0 sm:$0xff] }
  0x21   : > { %1359 = vmatpush3.bf16.msra.mxu0 %v650_v53  ;;  %1362 = vmatprep.mubr.msk.bf16.mxu0 %vm1445_vm0, %v1444_v3 }
  0x22   : > { %1360 = vmatprep.subr.bf16.mxu0 %v1444_v3 }
  0x23   : > { %1369 = vmatpush3.bf16.msra.mxu1 %v712_v54  ;;  %v975_v54 = vld [vmem:[%s1814_s6] sm:$0xff] }
  0x24   : > { %1382 = vmatprep.subr.bf16.mxu1 %v1444_v3  ;;  %v979_v56 = vpack.c.bf16 %v976_v55, %v975_v54 }
  0x25   : > { %1361 = vmatpush3.bf16.msra.mxu0 %v649_v9 }
  0x26   : > { %1371 = vmatmul.mubr.msk.bf16.vlgmr.msra.gmra.mxu1 %vm440_vm1, %v717_v5  ;;  %1374 = vmatprep.subr.bf16.mxu0 %v1444_v3 }
  0x27   : > { %1383 = vmatpush3.bf16.msra.mxu1 %v825_v4  ;;  %1386 = vmatprep.mubr.msk.bf16.mxu1 %vm1445_vm0, %v1444_v3 }
  0x28   : > { %1384 = vmatprep.subr.bf16.mxu1 %v1444_v3  ;;  %1363 = vmatmul.mubr.msk.bf16.vlgmr.msra.gmra.mxu0 %vm440_vm1, %v660_v19 }
  0x29   : > { %1375 = vmatpush3.bf16.msra.mxu0 %v771_v20  ;;  %1378 = vmatprep.mubr.msk.bf16.mxu0 %vm1445_vm0, %v1444_v3 }
  0x2a   : > { %1376 = vmatprep.subr.bf16.mxu0 %v1444_v3 }
  0x2b   : > { %1385 = vmatpush3.bf16.msra.mxu1 %v824_v16 }
  0x2c   : > { %1398 = vmatprep.subr.bf16.mxu1 %v1444_v3 }
  0x2d   : > { %1377 = vmatpush3.bf16.msra.mxu0 %v770_v24 }
  0x2e   : > { %1387 = vmatmul.mubr.msk.bf16.vlgmr.msra.gmra.mxu1 %vm440_vm1, %v836_v23  ;;  %1390 = vmatprep.subr.bf16.mxu0 %v1444_v3 }
  0x2f   : > { %1402 = vmatprep.mubr.msk.bf16.mxu1 %vm1445_vm0, %v1444_v3  ;;  %1399 = vmatpush3.bf16.msra.mxu1 %v987_v36 }
  0x30   : > { %1379 = vmatmul.mubr.msk.bf16.vlgmr.msra.gmra.mxu0 %vm440_vm1, %v1623_v46  ;;  %1400 = vmatprep.subr.bf16.mxu1 %v1444_v3  ;;  %v971_v46 = vadd.f32 %v1277_v42, %v962_v41 }
  0x31   : > { %1391 = vmatpush3.bf16.msra.mxu0 %v889_v27  ;;  %1394 = vmatprep.mubr.msk.bf16.mxu0 %vm1445_vm0, %v1444_v3 }
  0x32   : > { %1392 = vmatprep.subr.bf16.mxu0 %v1444_v3  ;;  %v973_v51 = vmax.f32 %v971_v46, 0.0 }
  0x33   : > { %1401 = vmatpush3.bf16.msra.mxu1 %v986_v47 }
  0x34   : > { %v981_v53 = vpack.c.bf16 %v973_v51, %v972_v50  ;;  %1414 = vmatprep.subr.bf16.mxu1 %v1444_v3 }
  0x35   : > { %1393 = vmatpush3.bf16.msra.mxu0 %v888_v30 }
  0x36   : > { %1406 = vmatprep.subr.bf16.mxu0 %v1444_v3  ;;  %1403 = vmatmul.mubr.msk.bf16.vlgmr.msra.gmra.mxu1 %vm440_vm1, %v981_v53 }
  0x37   : > { %1422 = vmatprep.mubr.msk.bf16.mxu1 %vm1445_vm0, %v1444_v3  ;;  %1415 = vmatpush3.bf16.msra.mxu1 %v1099_v59  ;;  %v1093_v59 = vld [vmem:[%s1817_s9 + $0x28] sm:$0xff] }
  0x38   : > { %1395 = vmatmul.mubr.msk.bf16.vlgmr.msra.gmra.mxu0 %vm440_vm1, %v894_v33  ;;  %1416 = vmatprep.subr.bf16.mxu1 %v1444_v3 }
  0x39   : > { %1410 = vmatprep.mubr.msk.bf16.mxu0 %vm1445_vm0, %v1444_v3  ;;  %1407 = vmatpush3.bf16.msra.mxu0 %v980_v52 }
  0x3a   : > { %1408 = vmatprep.subr.bf16.mxu0 %v1444_v3 }
  0x3d   : > { %1409 = vmatpush3.bf16.msra.mxu0 %v979_v56 }
  0xd6   : > { %v521_v60 = vpop.f32.mrf.mxu1 }
  0xd8   : > { %v1340_v61 = vpop.f32.mrf.mxu1  ;;  %v478_v63 = vpop.f32.mrf.mxu0 }
  0xd9   : > { %v522_v13 = vadd.f32 %v521_v60, %v478_v63  ;;  %v1098_v61 = vpack.c.bf16 %v1093_v59, %v1092_v58  ;;  %v1091_v63 = vld [vmem:[%s1817_s9 + $0x18] sm:$0xff] }
  0xda   : > { %v524_v62 = vpop.f32.mrf.mxu1  ;;  %v1332_v1 = vpop.f32.mrf.mxu0 }
  0xdb   : > { %1417 = vmatpush3.bf16.msra.mxu1 %v1098_v61  ;;  %v1088_v1 = vld [vmem:[%s1817_s9] sm:$0xff] }
  0xdc   : > { %v1341_v0 = vpop.f32.mrf.mxu1  ;;  %v481_v4 = vpop.f32.mrf.mxu0  ;;  %1418 = vmatprep.subr.bf16.mxu1 %v1444_v3 }
  0xdd   : > { %v525_v19 = vadd.f32 %v524_v62, %v481_v4  ;;  %v1090_v62 = vld [vmem:[%s1817_s9 + $0x10] sm:$0xff] }
  0xde   : > { %v635_v2 = vpop.f32.mrf.mxu1  ;;  %v1333_v6 = vpop.f32.mrf.mxu0  ;;  %v1097_v0 = vpack.c.bf16 %v1091_v63, %v1090_v62 }
  0xe0   : > { %v1356_v5 = vpop.f32.mrf.mxu1  ;;  %v578_v8 = vpop.f32.mrf.mxu0  ;;  %1419 = vmatpush3.bf16.msra.mxu1 %v1097_v0 }
  0xe1   : > { %v585_v16 = vadd.f32 %v578_v8, %v522_v13  ;;  %1420 = vmatprep.subr.bf16.mxu1 %v1444_v3 }
  0xe2   : > { %v638_v7 = vpop.f32.mrf.mxu1  ;;  %v1348_v10 = vpop.f32.mrf.mxu0 }
  0xe3   : > { %v642_v22 = vadd.f32 %v635_v2, %v585_v16  ;;  %v1089_v2 = vld [vmem:[%s1817_s9 + $0x8] sm:$0xff]  ;;  %v1281_v16 = vld [vmem:[%s1818_s10] ss:$0 sm:$0xff] }
  0xe4   : > { %v1357_v9 = vpop.f32.mrf.mxu1  ;;  %v581_v12 = vpop.f32.mrf.mxu0  ;;  %v1096_v4 = vpack.c.bf16 %v1089_v2, %v1088_v1 }
  0xe5   : > { %v586_v23 = vadd.f32 %v581_v12, %v525_v19 }
  0xe6   : > { %v755_v11 = vpop.f32.mrf.mxu1  ;;  %v1349_v15 = vpop.f32.mrf.mxu0  ;;  %1421 = vmatpush3.bf16.msra.mxu1 %v1096_v4 }
  0xe7   : > { %v643_v29 = vadd.f32 %v638_v7, %v586_v23  ;;  %v1280_v7 = vld [vmem:[%s1816_s8] ss:$0 sm:$0xff] }
  0xe8   : > { %v1372_v14 = vpop.f32.mrf.mxu1  ;;  %v698_v18 = vpop.f32.mrf.mxu0 }
  0xe9   : > { %v705_v26 = vadd.f32 %v698_v18, %v642_v22 }
  0xea   : > { %v758_v17 = vpop.f32.mrf.mxu1  ;;  %v1364_v21 = vpop.f32.mrf.mxu0 }
  0xeb   : > { %v762_v32 = vadd.f32 %v755_v11, %v705_v26 }
  0xec   : > { %v1373_v20 = vpop.f32.mrf.mxu1  ;;  %v701_v25 = vpop.f32.mrf.mxu0 }
  0xed   : > { %v706_v33 = vadd.f32 %v701_v25, %v643_v29 }
  0xee   : > { %v874_v24 = vpop.f32.mrf.mxu1  ;;  %v1365_v28 = vpop.f32.mrf.mxu0 }
  0xef   : > { %v763_v38 = vadd.f32 %v758_v17, %v706_v33 }
  0xf0   : > { %v1388_v27 = vpop.f32.mrf.mxu1  ;;  %v809_v31 = vpop.f32.mrf.mxu0 }
  0xf1   : > { %v816_v36 = vadd.f32 %v809_v31, %v762_v32 }
  0xf2   : > { %v877_v30 = vpop.f32.mrf.mxu1  ;;  %v1380_v35 = vpop.f32.mrf.mxu0 }
  0xf3   : > { %v881_v40 = vadd.f32 %v874_v24, %v816_v36 }
  0xf4   : > { %v1389_v34 = vpop.f32.mrf.mxu1  ;;  %v812_v37 = vpop.f32.mrf.mxu0 }
  0xf5   : > { %v817_v41 = vadd.f32 %v812_v37, %v763_v38 }
  0xf6   : > { %v1381_v39 = vpop.f32.mrf.mxu0  ;;  %v1025_v55 = vpop.f32.mrf.mxu1 }
  0xf7   : > { %v882_v46 = vadd.f32 %v877_v30, %v817_v41 }
  0xf8   : > { %v932_v42 = vpop.f32.mrf.mxu0  ;;  %v1404_v56 = vpop.f32.mrf.mxu1 }
  0xf9   : > { %v939_v43 = vadd.f32 %v932_v42, %v881_v40 }
  0xfa   : > { %v1396_v45 = vpop.f32.mrf.mxu0  ;;  %v1028_v57 = vpop.f32.mrf.mxu1 }
  0xfb   : > { %v948_v48 = vadd.f32 %v1275_v44, %v939_v43 }
  0xfc   : > { %v935_v47 = vpop.f32.mrf.mxu0  ;;  %v1405_v60 = vpop.f32.mrf.mxu1 }
  0xfd   : > { %v940_v49 = vadd.f32 %v935_v47, %v882_v46  ;;  %v950_v52 = vmax.f32 %v948_v48, 0.0 }
  0xfe   : > { %v1397_v50 = vpop.f32.mrf.mxu0 }
  0xff   : > { %v949_v51 = vadd.f32 %v1275_v44, %v940_v49 }
 0x101   : > { %v951_v53 = vmax.f32 %v949_v51, 0.0 }
 0x103   : > { %v974_v54 = vpack.c.bf16 %v951_v53, %v950_v52 }
 0x105   : > { %1411 = vmatmul.mubr.msk.bf16.vlgmr.msra.gmra.mxu0 %vm440_vm1, %v974_v54 }
 0x1c5   : > { %v1069_v5 = vpop.f32.mrf.mxu0 }
 0x1c6   : > { %v1070_v6 = vadd.f32 %v1069_v5, %v1025_v55 }
 0x1c7   : > { %v1412_v8 = vpop.f32.mrf.mxu0 }
 0x1c8   : > { %v1083_v3 = vadd.f32 %v1280_v7, %v1070_v6 }
 0x1c9   : > { %v1072_v9 = vpop.f32.mrf.mxu0 }
 0x1ca   : > { %v1073_v10 = vadd.f32 %v1072_v9, %v1028_v57  ;;  %v1085_v13 = vmax.f32 %v1083_v3, 0.0 }
 0x1cb   : > { %v1413_v11 = vpop.f32.mrf.mxu0 }
 0x1cc   : > { %v1084_v12 = vadd.f32 %v1280_v7, %v1073_v10 }
 0x1ce   : > { %v1086_v14 = vmax.f32 %v1084_v12, 0.0 }
 0x1d0   : > { %v1087_v15 = vpack.c.bf16 %v1086_v14, %v1085_v13 }
 0x1d2   : > { %1423 = vmatmul.mubr.msk.bf16.vlgmr.msra.gmra.mxu1 %vm1107_vm7, %v1087_v15 }
 0x292   : > { %v1145_v17 = vpop.f32.mrf.mxu1 }
 0x293   : > { %v1146_v18 = vadd.f32 %v1281_v16, %v1145_v17 }
 0x294   : > { %v1424_v19 = vpop.f32.mrf.mxu1 }
 0x295   : > { %v1152_v20 = vmax.f32 %v1146_v18, 0.0 }
 0x296   : > { %v1148_v21 = vpop.f32.mrf.mxu1 }
 0x297   : > { %1154 = vst.msk [vmem:[%s406_s28] sm:$0xff] %vm1107_vm7, %v1152_v20  ;;  %v1149_v22 = vadd.f32 %v1281_v16, %v1148_v21 }
 0x298   : > { %v1425_v23 = vpop.f32.mrf.mxu1 }
 0x299   : > { %v1153_v24 = vmax.f32 %v1149_v22, 0.0 }
 0x29b   : > { %1155 = vst.msk [vmem:[%s406_s28 + $0x8] sm:$0xff] %vm1107_vm7, %v1153_v24 }
 0x29c PF: > { %s21_s17 = sadd.s32 1, %s1442_s17  }
 0x29d   : > { %p18_p4 = scmp.ge.s32.totalorder %s21_s17, 4  }
 0x29f   :  { %20 = sbr.rel (!%p18_p4) target bundleno = 1 (0x1), region = 105 }

</bundles_post_ra>
